<compile_context>
chip_gen: v6e
topology: v6e:2x2x1
jax: 0.10.0
libtpu: 0.0.40
codegen_flags: <defaults>
</compile_context>

<pallas_src>
import functools

import jax
import jax.numpy as jnp
from jax.experimental import pallas as pl
from jax.experimental.pallas import tpu as pltpu


# ----------------------------------------------------------------------------
# Fused kernel: 3x3 conv (9 shifted matmuls) + ReLU + global pool + consensus
# Grid = (N videos, frame-group reduction tiles)
# ----------------------------------------------------------------------------
def tsn_fused_kernel(x_ref, w9_ref, cb_ref, mask_ref, out_ref, acc_ref,
                     *, shifts):
    """One (video n, frame-group k) grid step.

    x_ref   : (1, C, TILE_L) bf16  padded pixels; lane axis = frames*(Hp*Wp pad128)
    w9_ref  : (9, F, C)      bf16  conv taps; tap i = (di, dj) = (i//3, i%3)
    cb_ref  : (F, 1)         f32   conv bias
    mask_ref: (1, TILE_L)    f32   valid-position mask, pre-scaled by 1/(T*H*W)
    out_ref : (1, 1, F)      f32   pooled features (written at last k only)
    acc_ref : (F, TILE_L)    f32   running per-lane sum of relu(conv)
    """
    k = pl.program_id(1)

    @pl.when(k == 0)
    def _init():
        acc_ref[...] = jnp.zeros_like(acc_ref)

    x_bf = x_ref[0]                           # (C, TILE_L) bf16
    x32 = x_bf.astype(jnp.float32)            # 32-bit copy for the lane rolls
    tile_l = x32.shape[-1]

    # 3x3 conv as 9 shifted matmuls: for tap shift s, the contribution at every
    # valid output lane p is w_tap @ x[:, p + s]; the lane roll (XLU slot) runs
    # alongside the MXU matmuls. Wrapped/cross-frame lanes are invalid and get
    # masked at finalize.
    y = None
    for i, s in enumerate(shifts):            # 9 taps, statically unrolled
        if s == 0:
            xs = x_bf
        else:
            xs = pltpu.roll(x32, shift=(-s) % tile_l, axis=1).astype(jnp.bfloat16)
        part = jnp.dot(w9_ref[i], xs,
                       preferred_element_type=jnp.float32)    # (F, TILE_L) f32
        y = part if y is None else y + part

    # conv bias + ReLU, then lane-wise accumulate (plain VPU adds; no per-step
    # cross-lane reduce). Garbage at padding/border lanes is masked at finalize.
    acc_ref[...] += jnp.maximum(y + cb_ref[...], 0.0)

    @pl.when(k == pl.num_programs(1) - 1)
    def _finalize():
        # Single cross-lane XLU reduce. The mask zeroes invalid (padding/border)
        # lanes and already carries the 1/(T*H*W) scale of global-avg-pool +
        # AvgConsensus, so this emits the pooled feature vector directly.
        pooled = jnp.sum(acc_ref[...] * mask_ref[...], axis=1)   # (F,)
        out_ref[...] = pooled.reshape(1, 1, -1)


# ----------------------------------------------------------------------------
# Tiling helper
# ----------------------------------------------------------------------------
def _pick_tile_frames(t_total, frame_lanes, max_tile_lanes):
    """Largest divisor tt of t_total with tt*frame_lanes <= max_tile_lanes (>=1)."""
    best = 1
    for tt in range(1, t_total + 1):
        if t_total % tt == 0 and tt * frame_lanes <= max_tile_lanes:
            best = tt
    return best


# ----------------------------------------------------------------------------
# TSNRecognizer forward
# ----------------------------------------------------------------------------
def tsn_forward(imgs, params):
    """imgs: (N, C, T, H, W) float32 (PyTorch convention)."""
    assert imgs.ndim == 5
    N, C, T, H, W = imgs.shape

    conv_w = params["conv_w"]        # (F, C, 3, 3)  PyTorch layout
    conv_b = params["conv_b"]        # (F,)
    head_w = params["head_w"]        # (NC, F)       PyTorch Linear layout
    head_b = params["head_b"]        # (NC,)
    F_dim = conv_w.shape[0]

    Hp, Wp = H + 2, W + 2
    frame = Hp * Wp
    # Pad each frame's flat Hp*Wp slab to a multiple of 128 lanes so every tile
    # (and every roll / load / store) is lane-aligned, for any divisor of T.
    frame_p = ((frame + 127) // 128) * 128

    # --- input prep: ONE cheap pad + bf16 cast, no transposes, no im2col -----
    # imgs.transpose(1, 2) in the PyTorch module only reorders the (N*T) batch;
    # conv/pool are per-frame and the consensus averages over T, so the fused
    # reduction is over T*H*W per (video, channel) -- already the contiguous
    # trailing block of the native (N, C, T, H, W) layout.
    x = jnp.pad(imgs.astype(jnp.bfloat16),
                ((0, 0), (0, 0), (0, 0), (1, 1), (1, 1)))      # (N,C,T,Hp,Wp)
    x = x.reshape(N, C, T, frame)
    if frame_p != frame:
        x = jnp.pad(x, ((0, 0), (0, 0), (0, 0), (0, frame_p - frame)))
    x = x.reshape(N, C, T * frame_p)

    # --- tiling over frame groups (reduction axis) ----------------------------
    # Budget the f32 (F, TILE_L) accumulator at ~12 MiB; take the biggest
    # frame-group that fits (fewer, larger DMAs).
    max_tile_lanes = max(frame_p, (12 << 20) // (4 * F_dim))
    tile_t = _pick_tile_frames(T, frame_p, max_tile_lanes)
    tile_l = tile_t * frame_p
    n_k = T // tile_t
    # TODO(synk): if a single frame ever exceeds the lane budget, split frames
    # with a (Wp+1)-lane halo instead of growing the accumulator.

    # --- small resident operands ----------------------------------------------
    # Conv taps as 9 (F, C) matrices; tap i = di*3+dj pairs with lane shift
    # (di-1)*Wp + (dj-1) in the flattened padded frame.
    w9 = jnp.transpose(conv_w, (2, 3, 0, 1)).reshape(9, F_dim, C)
    w9 = w9.astype(jnp.bfloat16)
    cb = conv_b.reshape(F_dim, 1).astype(jnp.float32)
    shifts = tuple((di - 1) * Wp + (dj - 1) for di in range(3) for dj in range(3))

    # Valid-output mask over one frame-group tile (identical for every tile),
    # pre-scaled by 1/(T*H*W) = global-avg-pool * AvgConsensus.
    o = jnp.arange(frame_p)
    r, q = o // Wp, o % Wp
    valid = (o < frame) & (r >= 1) & (r <= H) & (q >= 1) & (q <= W)
    frame_mask = jnp.where(valid, 1.0 / float(T * H * W), 0.0).astype(jnp.float32)
    mask = jnp.tile(frame_mask, tile_t).reshape(1, tile_l)

    # --- VMEM budget (v7x has only 64 MiB / TC: cap the request at 32 MiB) ----
    vmem_need = (2 * C * tile_l * 2          # double-buffered bf16 pixel tiles
                 + F_dim * tile_l * 4        # f32 accumulator scratch
                 + 2 * tile_l * 4            # mask
                 + 4 * 9 * F_dim * 128 * 2   # conv taps (lane-padded layout)
                 + (1 << 20))                # misc slack (bias/out/temps)
    vmem_limit = int(min(max(2 * vmem_need, 8 << 20), 32 << 20))

    kernel = functools.partial(tsn_fused_kernel, shifts=shifts)

    pooled = pl.pallas_call(
        kernel,
        out_shape=jax.ShapeDtypeStruct((N, 1, F_dim), jnp.float32),
        grid_spec=pltpu.PrefetchScalarGridSpec(
            num_scalar_prefetch=0,
            grid=(N, n_k),                   # reduction axis (k) innermost
            in_specs=[
                # pixels: one video (n), one lane-aligned frame-group (k)
                # TODO(synk): add pipeline_mode=pl.Buffered(3) here once n_k > 1
                # at real shapes (no-op at these toy shapes where n_k == 1).
                pl.BlockSpec((1, C, tile_l), lambda n, k: (n, 0, k)),
                # small invariant operands (constant index_map -> resident)
                pl.BlockSpec((9, F_dim, C), lambda n, k: (0, 0, 0)),
                pl.BlockSpec((F_dim, 1), lambda n, k: (0, 0)),
                pl.BlockSpec((1, tile_l), lambda n, k: (0, 0)),
            ],
            out_specs=pl.BlockSpec((1, 1, F_dim), lambda n, k: (n, 0, 0)),
            scratch_shapes=[pltpu.VMEM((F_dim, tile_l), jnp.float32)],
        ),
        compiler_params=pltpu.CompilerParams(
            dimension_semantics=("parallel", "arbitrary"),
            vmem_limit_bytes=vmem_limit,
        ),
    )(x, w9, cb, mask)
    # TODO(synk): on v7x with N == 1, add a second "parallel" split of the frame
    # axis (partial pooled sums combined in XLA) to keep both TensorCores busy.

    feats = pooled.reshape(N, F_dim)
    # Head (+bias) and AvgConsensus are both linear and hoisted out of the
    # kernel: one tiny lane-dense XLA matmul over all videos.
    probs = feats @ head_w.astype(jnp.float32).T + head_b.astype(jnp.float32)
    return {"probs": probs}


# ----------------------------------------------------------------------------
# Pure-JAX f32 reference for correctness check
# ----------------------------------------------------------------------------
def tsn_forward_ref(imgs, params):
    N, C, T, H, W = imgs.shape
    x = jnp.transpose(imgs, (0, 2, 1, 3, 4)).reshape(N * T, C, H, W)
    y = jax.lax.conv_general_dilated(
        x, params["conv_w"], window_strides=(1, 1), padding=((1, 1), (1, 1)),
        dimension_numbers=("NCHW", "OIHW", "NCHW"))
    y = y + params["conv_b"][None, :, None, None]
    y = jnp.maximum(y, 0.0)
    feats = jnp.mean(y, axis=(2, 3))                         # (N*T, F)
    logits = feats @ params["head_w"].T + params["head_b"]   # (N*T, NC)
    logits = logits.reshape(N, T, -1)
    return {"probs": jnp.mean(logits, axis=1)}


if __name__ == "__main__":
    # small shapes: N=2 videos, C=4 channels, T=8 segments, 16x16 spatial
    N, C, T, H, W = 2, 4, 8, 16, 16
    F_dim, NC = 32, 16

    key = jax.random.PRNGKey(0)
    k_img, k_cw, k_cb, k_hw, k_hb = jax.random.split(key, 5)

    imgs = jax.random.normal(k_img, (N, C, T, H, W), dtype=jnp.float32)
    params = {
        "conv_w": jax.random.normal(k_cw, (F_dim, C, 3, 3), dtype=jnp.float32) * 0.1,
        "conv_b": jax.random.normal(k_cb, (F_dim,), dtype=jnp.float32) * 0.1,
        "head_w": jax.random.normal(k_hw, (NC, F_dim), dtype=jnp.float32) * 0.1,
        "head_b": jax.random.normal(k_hb, (NC,), dtype=jnp.float32) * 0.1,
    }

    out = tsn_forward(imgs, params)
    probs = jax.block_until_ready(out["probs"])

    ref = tsn_forward_ref(imgs, params)["probs"]
    assert probs.shape == (N, NC)
    # bf16 pixel/weight stream (f32 accumulation) -> bf16-level tolerance
    assert jnp.allclose(probs, ref, atol=1e-2, rtol=1e-2), "mismatch vs reference"

    # TODO(synk): fix_bn / partial_bn (train-mode BN freezing) has no forward-pass
    # effect here since the synthetic backbone has no BatchNorm.
    print("KERNEL_OK")
</pallas_src>

<mosaic_0001>
module attributes {stable_mosaic.version = 11 : i64} {
  func.func @tsn_fused_kernel(%arg0: i32, %arg1: i32, %arg2: memref<1x4x3072xbf16, #tpu.memory_space<vmem>>, %arg3: memref<9x32x4xbf16, #tpu.memory_space<vmem>>, %arg4: memref<32x1xf32, #tpu.memory_space<vmem>>, %arg5: memref<1x3072xf32, #tpu.memory_space<vmem>>, %arg6: memref<1x1x32xf32, #tpu.memory_space<vmem>>, %arg7: memref<32x3072xf32, #tpu.memory_space<vmem>>) attributes {dimension_semantics = [#tpu.dimension_semantics<parallel>, #tpu.dimension_semantics<arbitrary>], iteration_bounds = array<i64: 2, 1>, scalar_prefetch = 0 : i64, scratch_operands = 1 : i64, tpu.core_type = #tpu.core_type<tc>, window_params = [{transform_indices = @transform_0, window_bounds = array<i64: 1, 4, 3072>}, {pipeline_mode = #tpu.pipeline_mode<synchronous>, transform_indices = @transform_1, window_bounds = array<i64: 9, 32, 4>}, {pipeline_mode = #tpu.pipeline_mode<synchronous>, transform_indices = @transform_2, window_bounds = array<i64: 32, 1>}, {pipeline_mode = #tpu.pipeline_mode<synchronous>, transform_indices = @transform_3, window_bounds = array<i64: 1, 3072>}, {transform_indices = @transform_4, window_bounds = array<i64: 1, 1, 32>}]} {
    %c0_i32 = arith.constant 0 : i32
    %0 = arith.cmpi eq, %arg1, %c0_i32 : i32
    %1 = arith.extui %0 : i1 to i32
    %c0_i32_0 = arith.constant 0 : i32
    %2 = arith.cmpi ne, %1, %c0_i32_0 : i32
    scf.if %2 {
      %cst_39 = arith.constant 0.000000e+00 : f32
      %68 = vector.broadcast %cst_39 : f32 to vector<32x3072xf32>
      %c0_40 = arith.constant 0 : index
      %c0_41 = arith.constant 0 : index
      %69 = vector.load %arg7[%c0_40, %c0_41] : memref<32x3072xf32, #tpu.memory_space<vmem>>, vector<32x3072xf32>
      tpu.vector_store %arg7[%c0_40, %c0_41], %68 {strides = array<i32>} : memref<32x3072xf32, #tpu.memory_space<vmem>>, vector<32x3072xf32>,
    } else {
    }
    %c0 = arith.constant 0 : index
    %c0_1 = arith.constant 0 : index
    %c0_2 = arith.constant 0 : index
    %3 = vector.load %arg2[%c0, %c0_1, %c0_2] : memref<1x4x3072xbf16, #tpu.memory_space<vmem>>, vector<1x4x3072xbf16>
    %4 = vector.shape_cast %3 : vector<1x4x3072xbf16> to vector<4x3072xbf16>
    %5 = arith.extf %4 : vector<4x3072xbf16> to vector<4x3072xf32>
    %c19_i32 = arith.constant 19 : i32
    %6 = tpu.dynamic_rotate %5 by %c19_i32 dim 1 : vector<4x3072xf32>, i32 -> vector<4x3072xf32>
    %7 = arith.truncf %6 : vector<4x3072xf32> to vector<4x3072xbf16>
    %c0_3 = arith.constant 0 : index
    %c0_4 = arith.constant 0 : index
    %c0_5 = arith.constant 0 : index
    %8 = vector.load %arg3[%c0_3, %c0_4, %c0_5] : memref<9x32x4xbf16, #tpu.memory_space<vmem>>, vector<1x32x4xbf16>
    %9 = vector.shape_cast %8 : vector<1x32x4xbf16> to vector<32x4xbf16>
    %cst = arith.constant dense<0.000000e+00> : vector<32x3072xf32>
    %10 = tpu.matmul %9, %7, %cst {dimension_numbers = #tpu.dot_dimension_numbers<[1], [0], [0], [1], [0, 0, 1, 1], [], []>} : vector<32x4xbf16>, vector<4x3072xbf16>, vector<32x3072xf32> -> vector<32x3072xf32>
    %c18_i32 = arith.constant 18 : i32
    %11 = tpu.dynamic_rotate %5 by %c18_i32 dim 1 : vector<4x3072xf32>, i32 -> vector<4x3072xf32>
    %12 = arith.truncf %11 : vector<4x3072xf32> to vector<4x3072xbf16>
    %c1 = arith.constant 1 : index
    %c0_6 = arith.constant 0 : index
    %c0_7 = arith.constant 0 : index
    %13 = vector.load %arg3[%c1, %c0_6, %c0_7] : memref<9x32x4xbf16, #tpu.memory_space<vmem>>, vector<1x32x4xbf16>
    %14 = vector.shape_cast %13 : vector<1x32x4xbf16> to vector<32x4xbf16>
    %cst_8 = arith.constant dense<0.000000e+00> : vector<32x3072xf32>
    %15 = tpu.matmul %14, %12, %cst_8 {dimension_numbers = #tpu.dot_dimension_numbers<[1], [0], [0], [1], [0, 0, 1, 1], [], []>} : vector<32x4xbf16>, vector<4x3072xbf16>, vector<32x3072xf32> -> vector<32x3072xf32>
    %16 = arith.addf %10, %15 : vector<32x3072xf32>
    %c17_i32 = arith.constant 17 : i32
    %17 = tpu.dynamic_rotate %5 by %c17_i32 dim 1 : vector<4x3072xf32>, i32 -> vector<4x3072xf32>
    %18 = arith.truncf %17 : vector<4x3072xf32> to vector<4x3072xbf16>
    %c2 = arith.constant 2 : index
    %c0_9 = arith.constant 0 : index
    %c0_10 = arith.constant 0 : index
    %19 = vector.load %arg3[%c2, %c0_9, %c0_10] : memref<9x32x4xbf16, #tpu.memory_space<vmem>>, vector<1x32x4xbf16>
    %20 = vector.shape_cast %19 : vector<1x32x4xbf16> to vector<32x4xbf16>
    %cst_11 = arith.constant dense<0.000000e+00> : vector<32x3072xf32>
    %21 = tpu.matmul %20, %18, %cst_11 {dimension_numbers = #tpu.dot_dimension_numbers<[1], [0], [0], [1], [0, 0, 1, 1], [], []>} : vector<32x4xbf16>, vector<4x3072xbf16>, vector<32x3072xf32> -> vector<32x3072xf32>
    %22 = arith.addf %16, %21 : vector<32x3072xf32>
    %c1_i32 = arith.constant 1 : i32
    %23 = tpu.dynamic_rotate %5 by %c1_i32 dim 1 : vector<4x3072xf32>, i32 -> vector<4x3072xf32>
    %24 = arith.truncf %23 : vector<4x3072xf32> to vector<4x3072xbf16>
    %c3 = arith.constant 3 : index
    %c0_12 = arith.constant 0 : index
    %c0_13 = arith.constant 0 : index
    %25 = vector.load %arg3[%c3, %c0_12, %c0_13] : memref<9x32x4xbf16, #tpu.memory_space<vmem>>, vector<1x32x4xbf16>
    %26 = vector.shape_cast %25 : vector<1x32x4xbf16> to vector<32x4xbf16>
    %cst_14 = arith.constant dense<0.000000e+00> : vector<32x3072xf32>
    %27 = tpu.matmul %26, %24, %cst_14 {dimension_numbers = #tpu.dot_dimension_numbers<[1], [0], [0], [1], [0, 0, 1, 1], [], []>} : vector<32x4xbf16>, vector<4x3072xbf16>, vector<32x3072xf32> -> vector<32x3072xf32>
    %28 = arith.addf %22, %27 : vector<32x3072xf32>
    %c4 = arith.constant 4 : index
    %c0_15 = arith.constant 0 : index
    %c0_16 = arith.constant 0 : index
    %29 = vector.load %arg3[%c4, %c0_15, %c0_16] : memref<9x32x4xbf16, #tpu.memory_space<vmem>>, vector<1x32x4xbf16>
    %30 = vector.shape_cast %29 : vector<1x32x4xbf16> to vector<32x4xbf16>
    %cst_17 = arith.constant dense<0.000000e+00> : vector<32x3072xf32>
    %31 = tpu.matmul %30, %4, %cst_17 {dimension_numbers = #tpu.dot_dimension_numbers<[1], [0], [0], [1], [0, 0, 1, 1], [], []>} : vector<32x4xbf16>, vector<4x3072xbf16>, vector<32x3072xf32> -> vector<32x3072xf32>
    %32 = arith.addf %28, %31 : vector<32x3072xf32>
    %c3071_i32 = arith.constant 3071 : i32
    %33 = tpu.dynamic_rotate %5 by %c3071_i32 dim 1 : vector<4x3072xf32>, i32 -> vector<4x3072xf32>
    %34 = arith.truncf %33 : vector<4x3072xf32> to vector<4x3072xbf16>
    %c5 = arith.constant 5 : index
    %c0_18 = arith.constant 0 : index
    %c0_19 = arith.constant 0 : index
    %35 = vector.load %arg3[%c5, %c0_18, %c0_19] : memref<9x32x4xbf16, #tpu.memory_space<vmem>>, vector<1x32x4xbf16>
    %36 = vector.shape_cast %35 : vector<1x32x4xbf16> to vector<32x4xbf16>
    %cst_20 = arith.constant dense<0.000000e+00> : vector<32x3072xf32>
    %37 = tpu.matmul %36, %34, %cst_20 {dimension_numbers = #tpu.dot_dimension_numbers<[1], [0], [0], [1], [0, 0, 1, 1], [], []>} : vector<32x4xbf16>, vector<4x3072xbf16>, vector<32x3072xf32> -> vector<32x3072xf32>
    %38 = arith.addf %32, %37 : vector<32x3072xf32>
    %c3055_i32 = arith.constant 3055 : i32
    %39 = tpu.dynamic_rotate %5 by %c3055_i32 dim 1 : vector<4x3072xf32>, i32 -> vector<4x3072xf32>
    %40 = arith.truncf %39 : vector<4x3072xf32> to vector<4x3072xbf16>
    %c6 = arith.constant 6 : index
    %c0_21 = arith.constant 0 : index
    %c0_22 = arith.constant 0 : index
    %41 = vector.load %arg3[%c6, %c0_21, %c0_22] : memref<9x32x4xbf16, #tpu.memory_space<vmem>>, vector<1x32x4xbf16>
    %42 = vector.shape_cast %41 : vector<1x32x4xbf16> to vector<32x4xbf16>
    %cst_23 = arith.constant dense<0.000000e+00> : vector<32x3072xf32>
    %43 = tpu.matmul %42, %40, %cst_23 {dimension_numbers = #tpu.dot_dimension_numbers<[1], [0], [0], [1], [0, 0, 1, 1], [], []>} : vector<32x4xbf16>, vector<4x3072xbf16>, vector<32x3072xf32> -> vector<32x3072xf32>
    %44 = arith.addf %38, %43 : vector<32x3072xf32>
    %c3054_i32 = arith.constant 3054 : i32
    %45 = tpu.dynamic_rotate %5 by %c3054_i32 dim 1 : vector<4x3072xf32>, i32 -> vector<4x3072xf32>
    %46 = arith.truncf %45 : vector<4x3072xf32> to vector<4x3072xbf16>
    %c7 = arith.constant 7 : index
    %c0_24 = arith.constant 0 : index
    %c0_25 = arith.constant 0 : index
    %47 = vector.load %arg3[%c7, %c0_24, %c0_25] : memref<9x32x4xbf16, #tpu.memory_space<vmem>>, vector<1x32x4xbf16>
    %48 = vector.shape_cast %47 : vector<1x32x4xbf16> to vector<32x4xbf16>
    %cst_26 = arith.constant dense<0.000000e+00> : vector<32x3072xf32>
    %49 = tpu.matmul %48, %46, %cst_26 {dimension_numbers = #tpu.dot_dimension_numbers<[1], [0], [0], [1], [0, 0, 1, 1], [], []>} : vector<32x4xbf16>, vector<4x3072xbf16>, vector<32x3072xf32> -> vector<32x3072xf32>
    %50 = arith.addf %44, %49 : vector<32x3072xf32>
    %c3053_i32 = arith.constant 3053 : i32
    %51 = tpu.dynamic_rotate %5 by %c3053_i32 dim 1 : vector<4x3072xf32>, i32 -> vector<4x3072xf32>
    %52 = arith.truncf %51 : vector<4x3072xf32> to vector<4x3072xbf16>
    %c8 = arith.constant 8 : index
    %c0_27 = arith.constant 0 : index
    %c0_28 = arith.constant 0 : index
    %53 = vector.load %arg3[%c8, %c0_27, %c0_28] : memref<9x32x4xbf16, #tpu.memory_space<vmem>>, vector<1x32x4xbf16>
    %54 = vector.shape_cast %53 : vector<1x32x4xbf16> to vector<32x4xbf16>
    %cst_29 = arith.constant dense<0.000000e+00> : vector<32x3072xf32>
    %55 = tpu.matmul %54, %52, %cst_29 {dimension_numbers = #tpu.dot_dimension_numbers<[1], [0], [0], [1], [0, 0, 1, 1], [], []>} : vector<32x4xbf16>, vector<4x3072xbf16>, vector<32x3072xf32> -> vector<32x3072xf32>
    %56 = arith.addf %50, %55 : vector<32x3072xf32>
    %c0_30 = arith.constant 0 : index
    %c0_31 = arith.constant 0 : index
    %57 = vector.load %arg7[%c0_30, %c0_31] : memref<32x3072xf32, #tpu.memory_space<vmem>>, vector<32x3072xf32>
    %c0_32 = arith.constant 0 : index
    %c0_33 = arith.constant 0 : index
    %58 = vector.load %arg4[%c0_32, %c0_33] : memref<32x1xf32, #tpu.memory_space<vmem>>, vector<32x1xf32>
    %59 = vector.broadcast %58 : vector<32x1xf32> to vector<32x3072xf32>
    %60 = arith.addf %56, %59 : vector<32x3072xf32>
    %cst_34 = arith.constant 0.000000e+00 : f32
    %61 = vector.broadcast %cst_34 : f32 to vector<32x3072xf32>
    %62 = arith.maximumf %60, %61 : vector<32x3072xf32>
    %63 = arith.addf %57, %62 : vector<32x3072xf32>
    %c0_35 = arith.constant 0 : index
    %c0_36 = arith.constant 0 : index
    %64 = vector.load %arg7[%c0_35, %c0_36] : memref<32x3072xf32, #tpu.memory_space<vmem>>, vector<32x3072xf32>
    tpu.vector_store %arg7[%c0_35, %c0_36], %63 {strides = array<i32>} : memref<32x3072xf32, #tpu.memory_space<vmem>>, vector<32x3072xf32>,
    %c0_i32_37 = arith.constant 0 : i32
    %65 = arith.cmpi eq, %arg1, %c0_i32_37 : i32
    %66 = arith.extui %65 : i1 to i32
    %c0_i32_38 = arith.constant 0 : i32
    %67 = arith.cmpi ne, %66, %c0_i32_38 : i32
    scf.if %67 {
      %c0_39 = arith.constant 0 : index
      %c0_40 = arith.constant 0 : index
      %68 = vector.load %arg7[%c0_39, %c0_40] : memref<32x3072xf32, #tpu.memory_space<vmem>>, vector<32x3072xf32>
      %c0_41 = arith.constant 0 : index
      %c0_42 = arith.constant 0 : index
      %69 = vector.load %arg5[%c0_41, %c0_42] : memref<1x3072xf32, #tpu.memory_space<vmem>>, vector<1x3072xf32>
      %70 = vector.broadcast %69 : vector<1x3072xf32> to vector<32x3072xf32>
      %71 = arith.mulf %68, %70 : vector<32x3072xf32>
      %cst_43 = arith.constant dense<0.000000e+00> : vector<32xf32>
      %72 = vector.multi_reduction <add>, %71, %cst_43 [1] : vector<32x3072xf32> to vector<32xf32>
      %73 = vector.shape_cast %72 : vector<32xf32> to vector<1x1x32xf32>
      %c0_44 = arith.constant 0 : index
      %c0_45 = arith.constant 0 : index
      %c0_46 = arith.constant 0 : index
      %74 = vector.load %arg6[%c0_44, %c0_45, %c0_46] : memref<1x1x32xf32, #tpu.memory_space<vmem>>, vector<1x1x32xf32>
      tpu.vector_store %arg6[%c0_44, %c0_45, %c0_46], %73 {strides = array<i32>} : memref<1x1x32xf32, #tpu.memory_space<vmem>>, vector<1x1x32xf32>,
    } else {
    }
    return
  }
  func.func @transform_0(%arg0: i32, %arg1: i32) -> (i32, i32, i32) {
    %c0_i32 = arith.constant 0 : i32
    %c0_i32_0 = arith.constant 0 : i32
    return %arg0, %c0_i32, %arg1 : i32, i32, i32
  }
  func.func @transform_1(%arg0: i32, %arg1: i32) -> (i32, i32, i32) {
    %c0_i32 = arith.constant 0 : i32
    %c0_i32_0 = arith.constant 0 : i32
    %c0_i32_1 = arith.constant 0 : i32
    %c0_i32_2 = arith.constant 0 : i32
    return %c0_i32, %c0_i32_0, %c0_i32_1 : i32, i32, i32
  }
  func.func @transform_2(%arg0: i32, %arg1: i32) -> (i32, i32) {
    %c0_i32 = arith.constant 0 : i32
    %c0_i32_0 = arith.constant 0 : i32
    %c0_i32_1 = arith.constant 0 : i32
    return %c0_i32, %c0_i32_0 : i32, i32
  }
  func.func @transform_3(%arg0: i32, %arg1: i32) -> (i32, i32) {
    %c0_i32 = arith.constant 0 : i32
    %c0_i32_0 = arith.constant 0 : i32
    %c0_i32_1 = arith.constant 0 : i32
    return %c0_i32, %c0_i32_0 : i32, i32
  }
  func.func @transform_4(%arg0: i32, %arg1: i32) -> (i32, i32, i32) {
    %c0_i32 = arith.constant 0 : i32
    %c0_i32_0 = arith.constant 0 : i32
    %c0_i32_1 = arith.constant 0 : i32
    return %arg0, %c0_i32, %c0_i32_0 : i32, i32, i32
  }
}

</mosaic_0001>

<bundles_post_ra>
// kernel: tpu_custom_call.1
= control target key start
LH: loop header
LB: loop body
LE: loop exit
PB: predicated region body
PF: predicated region fallthrough
CT: control target
= control target key end

     0   :  { %9 = vsyncpa [#allocation4], 0  ;;  %s15692_s0 = inlined_call_operand.vmem [shape: bf16[2,4,3072], index: 0, kind: input, shape index: {}]   ;;  %s15693_s1 = inlined_call_operand.vmem [shape: bf16[9,32,4], index: 1, kind: input, shape index: {}]   ;;  %s15694_s2 = inlined_call_operand.vmem [shape: f32[32,1], index: 2, kind: input, shape index: {}]   ;;  %s15695_s3 = inlined_call_operand.vmem [shape: f32[1,3072], index: 3, kind: input, shape index: {}]   ;;  %s15696_s4 = inlined_call_operand.hbm [shape: f32[2,1,32], index: 4, kind: output, shape index: {}]  }
   0x1   :  { %11 = vsyncpa [#allocation4 + $0x1], 0  ;;  %s10572_s15 = smov 0   ;;  %s10574_s16 = smov 0  }
   0x2   :  { %s10576_s17 = smov 0   ;;  %s10578_s18 = smov 0  }
   0x3   :  { %s10580_s19 = smov 0   ;;  %s10582_s20 = smov 0  }
   0x4 LB: > { %s9537_s21 = sadd.s32 4294967295, %s10534_s20   ;;  %s9538_s22 = sadd.s32 4294967294, %s10534_s20   ;;  %s10534_s20 = sphi %s10582_s20, %s17_s20   ;;  %s10530_s19 = sphi %s10580_s19, %s16904_s19   ;;  %s10526_s18 = sphi %s10578_s18, %s16903_s18   ;;  %s10522_s17 = sphi %s10576_s17, %s16902_s17   ;;  %s10518_s16 = sphi %s10574_s16, %s16901_s16   ;;  %s10514_s15 = sphi %s10572_s15, %s16900_s15  }
   0x5   : > { %s29_s23 = sadd.s32 1, %s10530_s19  ;;  %s127_s24 = sadd.s32 1, %s10522_s17 }
   0x6   : > { %p31_p0 = scmp.ge.s32.totalorder %s29_s23, 2  ;;  %p137_p1 = scmp.ne.s32.totalorder %s10522_s17, %s10518_s16 }
   0x7   : > { %p138_p2 = scmp.eq.s32.totalorder %s9537_s21, 1  ;;  %p143_p3 = scmp.ne.s32.totalorder %s10518_s16, %s10514_s15 }
   0x8   : > { %s16906_s23 = smov (%p31_p0, %s29_s23), 0  ;;  %p144_p5 = scmp.eq.s32.totalorder %s9538_s22, 1 }
   0x9   : > { %p10612_p4 = por %p138_p2, %p137_p1  ;;  %s124_s26 = ssub.s32 %s10530_s19, %s16906_s23 }
   0xa   : > { %p9541_p6 = scmp.ge.s32.totalorder %s10534_s20, 1  ;;  %p125_p7 = scmp.eq.s32.totalorder %s124_s26, 0 }
   0xb   : > { %p10619_p8 = por %p144_p5, %p143_p3  ;;  %p184_p9 = scmp.lt.s32.totalorder %s10534_s20, 3 }
   0xc   : > { %s10625_s28 = scalar_select %p125_p7, %s10522_s17, %s127_s24  }
   0xd   : > { %p185_p10 = pnand %p9541_p6, %p184_p9 }
   0xf   : > { %188 = sbr.rel (%p185_p10) target bundleno = 1404 (0x57c), region = 36 }
  0x14   : > { %p214_p11 = scmp.lt.s32.totalorder %s10526_s18, 1  ;;  %s10536_s8 = smov 18   ;;  %v15700_v29 = vmov 0   ;;  %v15697_v42 = vlaneseq  ;;  %vm600_vm1 = vcmask 1041408   ;;  %v10836_v63 = vld [vmem:[%s15693_s1 + $0x10] sm:$0xff]   ;;  %vm593_vm2 = vcmask 31744  }
  0x15   : > { %758 = vmatprep.mubr.bf16.mxu1 %v15700_v29  ;;  %705 = vmatprep.mubr.bf16.mxu0 %v15700_v29  ;;  %s10538_s9 = smov 19   ;;  %s10539_s10 = smov 17   ;;  %vm9436_vm10 = vcmask 130112   ;;  %vm9443_vm11 = vcmask 195712   ;;  %vm9450_vm12 = vcmask 261312   ;;  %vm9453_vm13 = vcmask 253952  }
  0x16   : > { %s215_s29 = scalar_select %p214_p11, %s10526_s18, 1  ;;  %10426 = vset.pattern.permute.xlu0 %v15700_v29  ;;  %10427 = vset.pattern.permute.xlu1 %v15700_v29  ;;  %v10816_v43 = vand.u32 127, %v15697_v42 }
  0x17   : > { %s10540_s21 = smov 1   ;;  %s10542_s14 = smov 111  }
  0x18   : > { %s9920_s30 = smul.u32 48, %s215_s29  ;;  %15751 = vst [vmem:[#allocation7_spill] sm:$0xff] %v10816_v43  ;;  %vm529_vm0 = vcmp.lt.s32.totalorder %v10816_v43, 18  ;;  %vm428_vm3 = vcmp.lt.s32.totalorder %v10816_v43, 19  ;;  %vm2081_vm4 = vcmp.lt.s32.totalorder %v10816_v43, 17  ;;  %vm3003_vm5 = vcmp.lt.s32.totalorder %v10816_v43, 1 }
  0x19   : > { %s10544_s29 = smov 110  }
  0x1a   : > { %s10632_s7 = scalar_lea.vmem %s15692_s0, %s9920_s30 }
  0x1b   : > { %v324_v0 = vld [vmem:[%s10632_s7] sm:$0xff]  ;;  %v329_v1 = vld [vmem:[%s10632_s7 + $0x28] sm:$0xff]  ;;  %v326_v8 = vld [vmem:[%s10632_s7 + $0x10] sm:$0xff] }
  0x1c   : > { %v325_v2 = vld [vmem:[%s10632_s7 + $0x8] sm:$0xff]  ;;  %v10637_v3 = vunpack.c.h.bf16 %v324_v0  ;;  %v330_v4 = vunpack.c.l.bf16 %v324_v0  ;;  %v10641_v6 = vunpack.c.h.bf16 %v329_v1  ;;  %v10654_v12 = vunpack.c.l.bf16 %v326_v8  ;;  %v327_v13 = vld [vmem:[%s10632_s7 + $0x18] sm:$0xff]  ;;  %v328_v25 = vld [vmem:[%s10632_s7 + $0x20] sm:$0xff] }
  0x1d   : > { %v10639_v5 = vunpack.c.l.bf16 %v325_v2  ;;  %v10643_v7 = vunpack.c.h.bf16 %v325_v2  ;;  %v10667_v17 = vunpack.c.h.bf16 %v326_v8  ;;  %v10685_v21 = vunpack.c.l.bf16 %v327_v13 }
  0x1e   : > { %v10648_v9 = vcombine.high %v10637_v3, %v10637_v3  ;;  %v354_v10 = vcombine.high %v330_v4, %v330_v4  ;;  %v10679_v19 = vcombine.high %v10641_v6, %v10641_v6  ;;  %v10683_v20 = vcombine.high %v10654_v12, %v10654_v12 }
  0x1f   : > { %v10652_v11 = vcombine.high %v10639_v5, %v10639_v5  ;;  %v10665_v16 = vcombine.high %v10643_v7, %v10643_v7  ;;  %v10693_v23 = vcombine.high %v10667_v17, %v10667_v17  ;;  %v10695_v24 = vunpack.c.h.bf16 %v327_v13 }
  0x20   : > { %v10659_v14 = vpack.i.bf16 %v10648_v9, %v10637_v3  ;;  %v10661_v15 = vpack.i.bf16 %v354_v10, %v330_v4  ;;  %15750 = vst [vmem:[#allocation6_spill] sm:$0xff] %v10679_v19  ;;  %v10704_v26 = vpack.i.bf16 %v10683_v20, %v10654_v12  ;;  %v10708_v27 = vcombine.high %v10685_v21, %v10685_v21 }
  0x21   : > { %v10675_v18 = vpack.i.bf16 %v10652_v11, %v10639_v5  ;;  %v10689_v22 = vpack.i.bf16 %v10665_v16, %v10643_v7  ;;  %v10710_v28 = vunpack.c.l.bf16 %v328_v25  ;;  %v10718_v30 = vcombine.high %v10695_v24, %v10695_v24 }
  0x22   : > { %9992 = vrot.lane.b32.xlu1 %v10659_v14, %s10536_s8  ;;  %9987 = vrot.lane.b32.xlu0 %v10661_v15, %s10536_s8  ;;  %v10720_v31 = vunpack.c.h.bf16 %v328_v25  ;;  %v10728_v32 = vpack.i.bf16 %v10693_v23, %v10667_v17  ;;  %v10732_v33 = vpack.i.bf16 %v10708_v27, %v10685_v21  ;;  %v10738_v35 = vunpack.c.l.bf16 %v329_v1 }
  0x23   : > { %v10736_v34 = vcombine.high %v10710_v28, %v10710_v28  ;;  %v10742_v36 = vpack.i.bf16 %v10718_v30, %v10695_v24 }
  0x24   : > { %v10748_v37 = vcombine.high %v10720_v31, %v10720_v31  ;;  %v10758_v39 = vcombine.high %v10738_v35, %v10738_v35 }
  0x25   : > { %v10754_v38 = vpack.i.bf16 %v10736_v34, %v10710_v28 }
  0x26   : > { %9997 = vrot.lane.b32.xlu1 %v10675_v18, %s10536_s8  ;;  %527 = vrot.lane.b32.xlu0 %v10679_v19, %s10536_s8  ;;  %v10764_v40 = vpack.i.bf16 %v10748_v37, %v10720_v31  ;;  %v10770_v41 = vpack.i.bf16 %v10758_v39, %v10738_v35 }
  0x2a   : > { %10002 = vrot.lane.b32.xlu0 %v10689_v22, %s10536_s8  ;;  %10007 = vrot.lane.b32.xlu1 %v10704_v26, %s10536_s8 }
  0x2e   : > { %10012 = vrot.lane.b32.xlu0 %v10728_v32, %s10536_s8  ;;  %10017 = vrot.lane.b32.xlu1 %v10732_v33, %s10536_s8 }
  0x32   : > { %10022 = vrot.lane.b32.xlu0 %v10742_v36, %s10536_s8  ;;  %10027 = vrot.lane.b32.xlu1 %v10754_v38, %s10536_s8 }
  0x36   : > { %10032 = vrot.lane.b32.xlu0 %v10764_v40, %s10536_s8  ;;  %10037 = vrot.lane.b32.xlu1 %v10770_v41, %s10536_s8 }
  0x3a   : > { %525 = vrot.lane.b32.xlu0 %v10641_v6, %s10536_s8  ;;  %10042 = vrot.lane.b32.xlu1 %v10661_v15, %s10538_s9  ;;  %s10545_s8 = smov 109  }
  0x3e   : > { %10047 = vrot.lane.b32.xlu1 %v10659_v14, %s10538_s9  ;;  %424 = vrot.lane.b32.xlu0 %v10679_v19, %s10538_s9 }
  0x42   : > { %10057 = vrot.lane.b32.xlu1 %v10689_v22, %s10538_s9  ;;  %10052 = vrot.lane.b32.xlu0 %v10675_v18, %s10538_s9 }
  0x46   : > { %10067 = vrot.lane.b32.xlu1 %v10728_v32, %s10538_s9  ;;  %10062 = vrot.lane.b32.xlu0 %v10704_v26, %s10538_s9 }
  0x4a   : > { %10077 = vrot.lane.b32.xlu1 %v10742_v36, %s10538_s9  ;;  %10072 = vrot.lane.b32.xlu0 %v10732_v33, %s10538_s9 }
  0x4e   : > { %10087 = vrot.lane.b32.xlu1 %v10764_v40, %s10538_s9  ;;  %10082 = vrot.lane.b32.xlu0 %v10754_v38, %s10538_s9 }
  0x52   : > { %422 = vrot.lane.b32.xlu1 %v10641_v6, %s10538_s9  ;;  %10092 = vrot.lane.b32.xlu0 %v10770_v41, %s10538_s9  ;;  %s10541_s9 = smov 127  }
  0x56   : > { %10097 = vrot.lane.b32.xlu0 %v10661_v15, %s10539_s10  ;;  %2079 = vrot.lane.b32.xlu1 %v10679_v19, %s10539_s10 }
  0x5a   : > { %10102 = vrot.lane.b32.xlu0 %v10659_v14, %s10539_s10  ;;  %10107 = vrot.lane.b32.xlu1 %v10675_v18, %s10539_s10 }
  0x5e   : > { %10112 = vrot.lane.b32.xlu0 %v10689_v22, %s10539_s10  ;;  %10117 = vrot.lane.b32.xlu1 %v10704_v26, %s10539_s10 }
  0x62   : > { %10122 = vrot.lane.b32.xlu0 %v10728_v32, %s10539_s10  ;;  %10127 = vrot.lane.b32.xlu1 %v10732_v33, %s10539_s10 }
  0x66   : > { %10132 = vrot.lane.b32.xlu0 %v10742_v36, %s10539_s10  ;;  %10137 = vrot.lane.b32.xlu1 %v10754_v38, %s10539_s10 }
  0x6a   : > { %10142 = vrot.lane.b32.xlu0 %v10764_v40, %s10539_s10  ;;  %10147 = vrot.lane.b32.xlu1 %v10770_v41, %s10539_s10 }
  0x6e   : > { %2077 = vrot.lane.b32.xlu0 %v10641_v6, %s10539_s10  ;;  %10152 = vrot.lane.b32.xlu1 %v10661_v15, %s10540_s21 }
  0x72   : > { %3001 = vrot.lane.b32.xlu0 %v10679_v19, %s10540_s21  ;;  %10157 = vrot.lane.b32.xlu1 %v10659_v14, %s10540_s21 }
  0x76   : > { %10167 = vrot.lane.b32.xlu1 %v10689_v22, %s10540_s21  ;;  %10162 = vrot.lane.b32.xlu0 %v10675_v18, %s10540_s21 }
  0x7a   : > { %10177 = vrot.lane.b32.xlu1 %v10728_v32, %s10540_s21  ;;  %10172 = vrot.lane.b32.xlu0 %v10704_v26, %s10540_s21 }
  0x7e   : > { %10187 = vrot.lane.b32.xlu1 %v10742_v36, %s10540_s21  ;;  %10182 = vrot.lane.b32.xlu0 %v10732_v33, %s10540_s21 }
  0x82   : > { %10197 = vrot.lane.b32.xlu1 %v10764_v40, %s10540_s21  ;;  %10192 = vrot.lane.b32.xlu0 %v10754_v38, %s10540_s21 }
  0x86   : > { %2999 = vrot.lane.b32.xlu1 %v10641_v6, %s10540_s21  ;;  %10202 = vrot.lane.b32.xlu0 %v10770_v41, %s10540_s21  ;;  %v11112_v41 = vld [vmem:[%s15693_s1 + $0x8] sm:$0xff]  }
  0x8a   : > { %4814 = vrot.lane.b32.xlu1 %v10637_v3, %s10541_s9  ;;  %10207 = vrot.lane.b32.xlu0 %v10661_v15, %s10541_s9 }
  0x94   : > { %v9993_v44 = vpop.permute.xlu1 %9992  ;;  %v9988_v45 = vpop.permute.xlu0 %9987 }
  0x95   : > { %v9995_v46 = vunpack.i.h.bf16 %v9993_v44  ;;  %v9994_v47 = vunpack.i.l.bf16 %v9993_v44  ;;  %v9990_v48 = vunpack.i.h.bf16 %v9988_v45  ;;  %v9989_v49 = vunpack.i.l.bf16 %v9988_v45 }
  0x97   : > { %v552_v50 = vsel %vm529_vm0, %v9989_v49, %v9990_v48  ;;  %v550_v51 = vsel %vm529_vm0, %v9994_v47, %v9995_v46  ;;  %v551_v52 = vsel %vm529_vm0, %v9990_v48, %v9994_v47 }
  0x98   : > { %v9998_v53 = vpop.permute.xlu1 %9997  ;;  %v10825_v54 = vpop.permute.xlu0 %527  ;;  %v555_v55 = vpack.c.bf16 %v552_v50, %v552_v50  ;;  %v557_v56 = vpack.c.bf16 %v550_v51, %v550_v51  ;;  %v556_v57 = vpack.c.bf16 %v551_v52, %v551_v52 }
  0x99   : > { %v10000_v58 = vunpack.i.h.bf16 %v9998_v53  ;;  %v9999_v59 = vunpack.i.l.bf16 %v9998_v53  ;;  %v553_v60 = vsel %vm529_vm0, %v10825_v54, %v9989_v49 }
  0x9a   : > { %9549 = vmatprep.subr.msk.bf16.mxu0 %vm600_vm1, %v555_v55  ;;  %9552 = vmatprep.subr.msk.bf16.mxu1 %vm600_vm1, %v557_v56  ;;  %v608_v61 = vsel %vm600_vm1, %v556_v57, 0  ;;  %v554_v62 = vpack.c.bf16 %v553_v60, %v553_v60  ;;  %v10868_v60 = vld [vmem:[%s15693_s1 + $0x18] sm:$0xff]  }
  0x9b   : > { %741 = vmatpush1.bf16.msra.mxu1 %v608_v61  ;;  %v548_v0 = vsel %vm529_vm0, %v9999_v59, %v10000_v58  ;;  %v549_v1 = vsel %vm529_vm0, %v9995_v46, %v9999_v59 }
  0x9c   : > { %v10003_v2 = vpop.permute.xlu0 %10002  ;;  %v602_v4 = vsel %vm600_vm1, %v554_v62, 0  ;;  %v10008_v8 = vpop.permute.xlu1 %10007  ;;  %v559_v10 = vpack.c.bf16 %v548_v0, %v548_v0  ;;  %v558_v13 = vpack.c.bf16 %v549_v1, %v549_v1 }
  0x9d   : > { %v10005_v25 = vunpack.i.h.bf16 %v10003_v2  ;;  %v10004_v44 = vunpack.i.l.bf16 %v10003_v2  ;;  %688 = vmatpush1.bf16.msra.mxu0 %v602_v4  ;;  %v10010_v45 = vunpack.i.h.bf16 %v10008_v8  ;;  %v10009_v47 = vunpack.i.l.bf16 %v10008_v8 }
  0x9e   : > { %9553 = vmatmul.mubr.msk.bf16.vlgmr.msra.gmra.mxu1 %vm593_vm2, %v10836_v63  ;;  %9555 = vmatprep.subr.msk.bf16.mxu0 %vm600_vm1, %v559_v10  ;;  %v614_v46 = vsel %vm600_vm1, %v558_v13, 0 }
  0x9f   : > { %v546_v48 = vsel %vm529_vm0, %v10004_v44, %v10005_v25  ;;  %v547_v49 = vsel %vm529_vm0, %v10000_v58, %v10004_v44  ;;  %768 = vmatprep.mubr.bf16.mxu1 %v15700_v29  ;;  %v544_v50 = vsel %vm529_vm0, %v10009_v47, %v10010_v45  ;;  %v545_v44 = vsel %vm529_vm0, %v10005_v25, %v10009_v47 }
  0xa0   : > { %v10856_v51 = vpop.permute.xlu0 %10012  ;;  %9550 = vmatmul.mubr.msk.bf16.vlgmr.msra.gmra.mxu0 %vm593_vm2, %v10836_v63  ;;  %v561_v52 = vpack.c.bf16 %v546_v48, %v546_v48  ;;  %v560_v53 = vpack.c.bf16 %v547_v49, %v547_v49  ;;  %v10018_v55 = vpop.permute.xlu1 %10017  ;;  %v563_v56 = vpack.c.bf16 %v544_v50, %v544_v50  ;;  %v562_v49 = vpack.c.bf16 %v545_v44, %v545_v44 }
  0xa1   : > { %v10015_v57 = vunpack.i.h.bf16 %v10856_v51  ;;  %v10014_v59 = vunpack.i.l.bf16 %v10856_v51  ;;  %794 = vmatpush1.bf16.msra.mxu0 %v614_v46  ;;  %715 = vmatprep.mubr.bf16.mxu0 %v15700_v29  ;;  %v10020_v10 = vunpack.i.h.bf16 %v10018_v55  ;;  %v10019_v13 = vunpack.i.l.bf16 %v10018_v55 }
  0xa2   : > { %9558 = vmatprep.subr.msk.bf16.mxu1 %vm600_vm1, %v561_v52  ;;  %v620_v58 = vsel %vm600_vm1, %v560_v53, 0  ;;  %9561 = vmatprep.subr.msk.bf16.mxu0 %vm600_vm1, %v563_v56  ;;  %v626_v52 = vsel %vm600_vm1, %v562_v49, 0 }
  0xa3   : > { %847 = vmatpush1.bf16.msra.mxu1 %v620_v58  ;;  %v542_v61 = vsel %vm529_vm0, %v10014_v59, %v10015_v57  ;;  %v543_v8 = vsel %vm529_vm0, %v10010_v45, %v10014_v59  ;;  %v540_v25 = vsel %vm529_vm0, %v10019_v13, %v10020_v10 }
  0xa4   : > { %v10873_v62 = vpop.permute.xlu0 %10022  ;;  %v565_v0 = vpack.c.bf16 %v542_v61, %v542_v61  ;;  %v10875_v1 = vpop.permute.xlu1 %10027  ;;  %v564_v46 = vpack.c.bf16 %v543_v8, %v543_v8  ;;  %v567_v53 = vpack.c.bf16 %v540_v25, %v540_v25  ;;  %v541_v61 = vsel %vm529_vm0, %v10015_v57, %v10019_v13 }
  0xa5   : > { %v10025_v2 = vunpack.i.h.bf16 %v10873_v62  ;;  %v10024_v4 = vunpack.i.l.bf16 %v10873_v62  ;;  %v10029_v32 = vunpack.i.l.bf16 %v10875_v1 }
  0xa6   : > { %9554 = vmatmul.mubr.msk.bf16.gmra.mxu1 %vm593_vm2, %v10868_v60  ;;  %9564 = vmatprep.subr.msk.bf16.mxu1 %vm600_vm1, %v565_v0  ;;  %v632_v47 = vsel %vm600_vm1, %v564_v46, 0 }
  0xa7   : > { %864 = vmatprep.mubr.bf16.mxu1 %v15700_v29  ;;  %v538_v48 = vsel %vm529_vm0, %v10024_v4, %v10025_v2  ;;  %v539_v58 = vsel %vm529_vm0, %v10020_v10, %v10024_v4  ;;  %v10030_v4 = vunpack.i.h.bf16 %v10875_v1  ;;  %v566_v10 = vpack.c.bf16 %v541_v61, %v541_v61 }
  0xa8   : > { %9551 = vmatmul.mubr.msk.bf16.gmra.mxu0 %vm593_vm2, %v10868_v60  ;;  %v10893_v45 = vpop.permute.xlu1 %10037  ;;  %v569_v50 = vpack.c.bf16 %v538_v48, %v538_v48  ;;  %v10922_v22 = vpop.permute.xlu0 %10032  ;;  %v568_v0 = vpack.c.bf16 %v539_v58, %v539_v58  ;;  %v537_v58 = vsel %vm529_vm0, %v10025_v2, %v10029_v32 }
  0xa9   : > { %811 = vmatprep.mubr.bf16.mxu0 %v15700_v29  ;;  %v10035_v56 = vunpack.i.h.bf16 %v10922_v22  ;;  %v10034_v59 = vunpack.i.l.bf16 %v10922_v22  ;;  %v536_v57 = vsel %vm529_vm0, %v10029_v32, %v10030_v4  ;;  %v638_v1 = vsel %vm600_vm1, %v566_v10, 0 }
  0xaa   : > { %v644_v13 = vsel %vm600_vm1, %v568_v0, 0  ;;  %v571_v48 = vpack.c.bf16 %v536_v57, %v536_v57  ;;  %v570_v61 = vpack.c.bf16 %v537_v58, %v537_v58 }
  0xab   : > { %v534_v36 = vsel %vm529_vm0, %v10034_v59, %v10035_v56 }
  0xac   : > { %v10905_v51 = vpop.permute.xlu1 %10042  ;;  %v573_v44 = vpack.c.bf16 %v534_v36, %v534_v36  ;;  %v526_v40 = vpop.permute.xlu0 %525 }
  0xad   : > { %v530_v0 = vsel %vm529_vm0, %v526_v40, %v10825_v54  ;;  %v10044_v10 = vunpack.i.l.bf16 %v10905_v51 }
  0xae   : > { %9559 = vmatmul.mubr.msk.bf16.vlgmr.msra.gmra.mxu1 %vm593_vm2, %v10836_v63  ;;  %v577_v2 = vpack.c.bf16 %v530_v0, %v530_v0 }
  0xaf   : > { %953 = vmatpush1.bf16.msra.mxu1 %v632_v47  ;;  %874 = vmatprep.mubr.bf16.mxu1 %v15700_v29  ;;  %v535_v47 = vsel %vm529_vm0, %v10030_v4, %v10034_v59 }
  0xb0   : > { %9556 = vmatmul.mubr.msk.bf16.vlgmr.msra.gmra.mxu0 %vm593_vm2, %v10836_v63  ;;  %9570 = vmatprep.subr.msk.bf16.mxu1 %vm600_vm1, %v569_v50  ;;  %v10916_v14 = vpop.permute.xlu1 %10047  ;;  %v425_v18 = vpop.permute.xlu0 %424  ;;  %v572_v59 = vpack.c.bf16 %v535_v47, %v535_v47 }
  0xb1   : > { %900 = vmatpush1.bf16.msra.mxu0 %v626_v52  ;;  %821 = vmatprep.mubr.bf16.mxu0 %v15700_v29  ;;  %v10040_v52 = vunpack.i.h.bf16 %v10893_v45  ;;  %v10050_v26 = vunpack.i.h.bf16 %v10916_v14  ;;  %v10049_v54 = vunpack.i.l.bf16 %v10916_v14 }
  0xb2   : > { %9567 = vmatprep.subr.msk.bf16.mxu0 %vm600_vm1, %v567_v53  ;;  %v10039_v53 = vunpack.i.l.bf16 %v10893_v45  ;;  %v656_v62 = vsel %vm600_vm1, %v572_v59, 0  ;;  %v650_v45 = vsel %vm600_vm1, %v570_v61, 0  ;;  %v452_v59 = vsel %vm428_vm3, %v425_v18, %v10044_v10 }
  0xb3   : > { %v531_v36 = vsel %vm529_vm0, %v10040_v52, %v526_v40 }
  0xb4   : > { %v10924_v55 = vpop.permute.xlu1 %10057  ;;  %v532_v4 = vsel %vm529_vm0, %v10039_v53, %v10040_v52  ;;  %v533_v57 = vsel %vm529_vm0, %v10035_v56, %v10039_v53  ;;  %v10053_v33 = vpop.permute.xlu0 %10052 }
  0xb5   : > { %v575_v32 = vpack.c.bf16 %v532_v4, %v532_v4  ;;  %v10060_v52 = vunpack.i.h.bf16 %v10924_v55  ;;  %v10059_v53 = vunpack.i.l.bf16 %v10924_v55  ;;  %v10055_v61 = vunpack.i.h.bf16 %v10053_v33 }
  0xb6   : > { %9560 = vmatmul.mubr.msk.bf16.gmra.mxu1 %vm593_vm2, %v10868_v60  ;;  %v10054_v0 = vunpack.i.l.bf16 %v10053_v33 }
  0xb7   : > { %970 = vmatprep.mubr.bf16.mxu1 %v15700_v29 }
  0xb8   : > { %9557 = vmatmul.mubr.msk.bf16.gmra.mxu0 %vm593_vm2, %v10868_v60  ;;  %v10940_v8 = vpop.permute.xlu1 %10067  ;;  %v10063_v38 = vpop.permute.xlu0 %10062 }
  0xb9   : > { %917 = vmatprep.mubr.bf16.mxu0 %v15700_v29 }
  0xbc   : > { %v10953_v46 = vpop.permute.xlu1 %10077  ;;  %v10073_v33 = vpop.permute.xlu0 %10072 }
  0xbe   : > { %9565 = vmatmul.mubr.msk.bf16.vlgmr.msra.gmra.mxu1 %vm593_vm2, %v10836_v63 }
  0xbf   : > { %1059 = vmatpush1.bf16.msra.mxu1 %v644_v13  ;;  %980 = vmatprep.mubr.bf16.mxu1 %v15700_v29  ;;  %v576_v13 = vpack.c.bf16 %v531_v36, %v531_v36 }
  0xc0   : > { %9562 = vmatmul.mubr.msk.bf16.vlgmr.msra.gmra.mxu0 %vm593_vm2, %v10836_v63  ;;  %9576 = vmatprep.subr.msk.bf16.mxu1 %vm600_vm1, %v573_v44  ;;  %v10966_v49 = vpop.permute.xlu1 %10087  ;;  %v10045_v44 = vunpack.i.h.bf16 %v10905_v51 }
  0xc1   : > { %1006 = vmatpush1.bf16.msra.mxu0 %v638_v1  ;;  %927 = vmatprep.mubr.bf16.mxu0 %v15700_v29  ;;  %v449_v1 = vsel %vm428_vm3, %v10049_v54, %v10050_v26  ;;  %v668_v40 = vsel %vm600_vm1, %v576_v13, 0  ;;  %v446_v13 = vsel %vm428_vm3, %v10055_v61, %v10059_v53 }
  0xc2   : > { %9573 = vmatprep.subr.msk.bf16.mxu0 %vm600_vm1, %v571_v48  ;;  %v574_v48 = vpack.c.bf16 %v533_v57, %v533_v57  ;;  %v451_v22 = vsel %vm428_vm3, %v10044_v10, %v10045_v44  ;;  %v456_v56 = vpack.c.bf16 %v449_v1, %v449_v1  ;;  %v450_v58 = vsel %vm428_vm3, %v10045_v44, %v10049_v54 }
  0xc3   : > { %v454_v47 = vpack.c.bf16 %v451_v22, %v451_v22  ;;  %v455_v4 = vpack.c.bf16 %v450_v58, %v450_v58  ;;  %v10070_v10 = vunpack.i.h.bf16 %v10940_v8  ;;  %v10069_v57 = vunpack.i.l.bf16 %v10940_v8 }
  0xc4   : > { %v10971_v25 = vpop.permute.xlu1 %422  ;;  %v662_v51 = vsel %vm600_vm1, %v574_v48, 0  ;;  %v10064_v44 = vunpack.i.l.bf16 %v10063_v38  ;;  %v448_v1 = vsel %vm428_vm3, %v10050_v26, %v10054_v0  ;;  %v459_v48 = vpack.c.bf16 %v446_v13, %v446_v13 }
  0xc5   : > { %v10978_v50 = vsel %vm428_vm3, %v10971_v25, %v425_v18  ;;  %v441_v22 = vsel %vm428_vm3, %v10069_v57, %v10070_v10  ;;  %v457_v14 = vpack.c.bf16 %v448_v1, %v448_v1  ;;  %v10079_v58 = vunpack.i.l.bf16 %v10953_v46 }
  0xc6   : > { %9566 = vmatmul.mubr.msk.bf16.gmra.mxu1 %vm593_vm2, %v10868_v60 }
  0xc7   : > { %1076 = vmatprep.mubr.bf16.mxu1 %v15700_v29 }
  0xc8   : > { %9563 = vmatmul.mubr.msk.bf16.gmra.mxu0 %vm593_vm2, %v10868_v60 }
  0xc9   : > { %1023 = vmatprep.mubr.bf16.mxu0 %v15700_v29 }
  0xce   : > { %9571 = vmatmul.mubr.msk.bf16.vlgmr.msra.gmra.mxu1 %vm593_vm2, %v10836_v63 }
  0xcf   : > { %1165 = vmatpush1.bf16.msra.mxu1 %v656_v62  ;;  %1086 = vmatprep.mubr.bf16.mxu1 %v15700_v29  ;;  %v445_v62 = vsel %vm428_vm3, %v10059_v53, %v10060_v52  ;;  %v10080_v53 = vunpack.i.h.bf16 %v10953_v46 }
  0xd0   : > { %9582 = vmatprep.subr.msk.bf16.mxu1 %vm600_vm1, %v577_v2  ;;  %9568 = vmatmul.mubr.msk.bf16.vlgmr.msra.gmra.mxu0 %vm593_vm2, %v10836_v63  ;;  %v453_v2 = vpack.c.bf16 %v452_v59, %v452_v59  ;;  %v460_v18 = vpack.c.bf16 %v445_v62, %v445_v62 }
  0xd1   : > { %1112 = vmatpush1.bf16.msra.mxu0 %v650_v45  ;;  %1033 = vmatprep.mubr.bf16.mxu0 %v15700_v29  ;;  %v447_v45 = vsel %vm428_vm3, %v10054_v0, %v10055_v61  ;;  %v10075_v61 = vunpack.i.h.bf16 %v10073_v33  ;;  %v10074_v0 = vunpack.i.l.bf16 %v10073_v33  ;;  %v437_v46 = vsel %vm428_vm3, %v10079_v58, %v10080_v53 }
  0xd2   : > { %9579 = vmatprep.subr.msk.bf16.mxu0 %vm600_vm1, %v575_v32  ;;  %v1332_v32 = vsel %vm600_vm1, %v455_v4, 0  ;;  %v458_v54 = vpack.c.bf16 %v447_v45, %v447_v45  ;;  %v1326_v36 = vsel %vm600_vm1, %v453_v2, 0  ;;  %v444_v4 = vsel %vm428_vm3, %v10060_v52, %v10064_v44 }
  0xd3   : > { %v461_v2 = vpack.c.bf16 %v444_v4, %v444_v4  ;;  %v439_v45 = vsel %vm428_vm3, %v10074_v0, %v10075_v61  ;;  %v476_v4 = vpack.c.bf16 %v10978_v50, %v10978_v50 }
  0xd4   : > { %v466_v55 = vpack.c.bf16 %v439_v45, %v439_v45 }
  0xd5   : > { %v1350_v52 = vsel %vm600_vm1, %v461_v2, 0 }
  0xd6   : > { %9572 = vmatmul.mubr.msk.bf16.gmra.mxu1 %vm593_vm2, %v10868_v60 }
  0xd7   : > { %1182 = vmatprep.mubr.bf16.mxu1 %v15700_v29 }
  0xd8   : > { %9569 = vmatmul.mubr.msk.bf16.gmra.mxu0 %vm593_vm2, %v10868_v60 }
  0xd9   : > { %1129 = vmatprep.mubr.bf16.mxu0 %v15700_v29 }
  0xde   : > { %9577 = vmatmul.mubr.msk.bf16.vlgmr.msra.gmra.mxu1 %vm593_vm2, %v10836_v63 }
  0xdf   : > { %1271 = vmatpush1.bf16.msra.mxu1 %v668_v40  ;;  %1192 = vmatprep.mubr.bf16.mxu1 %v15700_v29  ;;  %v464_v40 = vpack.c.bf16 %v441_v22, %v441_v22 }
  0xe0   : > { %9574 = vmatmul.mubr.msk.bf16.vlgmr.msra.gmra.mxu0 %vm593_vm2, %v10836_v63  ;;  %9590 = vmatprep.subr.msk.bf16.mxu1 %vm600_vm1, %v456_v56  ;;  %v11094_v56 = vld [vmem:[%s15693_s1] sm:$0xff]  }
  0xe1   : > { %1218 = vmatpush1.bf16.msra.mxu0 %v662_v51  ;;  %1139 = vmatprep.mubr.bf16.mxu0 %v15700_v29 }
  0xe2   : > { %9587 = vmatprep.subr.msk.bf16.mxu0 %vm600_vm1, %v454_v47  ;;  %v1338_v47 = vsel %vm600_vm1, %v457_v14, 0 }
  0xe6   : > { %9578 = vmatmul.mubr.msk.bf16.gmra.mxu1 %vm593_vm2, %v10868_v60 }
  0xe7   : > { %1288 = vmatprep.mubr.bf16.mxu1 %v15700_v29 }
  0xe8   : > { %9575 = vmatmul.mubr.msk.bf16.gmra.mxu0 %vm593_vm2, %v10868_v60 }
  0xe9   : > { %1235 = vmatprep.mubr.bf16.mxu0 %v15700_v29 }
  0xee   : > { %9583 = vmatmul.mubr.msk.bf16.vlgmr.msra.gmra.mxu1 %vm593_vm2, %v10836_v63 }
  0xef   : > { %1465 = vmatpush1.bf16.msra.mxu1 %v1332_v32  ;;  %1298 = vmatprep.mubr.bf16.mxu1 %v15700_v29 }
  0xf0   : > { %9580 = vmatmul.mubr.msk.bf16.vlgmr.msra.gmra.mxu0 %vm593_vm2, %v10836_v63  ;;  %9596 = vmatprep.subr.msk.bf16.mxu1 %vm600_vm1, %v460_v18  ;;  %v10065_v63 = vunpack.i.h.bf16 %v10063_v38  ;;  %v468_v18 = vpack.c.bf16 %v437_v46, %v437_v46  ;;  %v438_v38 = vsel %vm428_vm3, %v10075_v61, %v10079_v58 }
  0xf1   : > { %1412 = vmatpush1.bf16.msra.mxu0 %v1326_v36  ;;  %1245 = vmatprep.mubr.bf16.mxu0 %v15700_v29  ;;  %v10089_v36 = vunpack.i.l.bf16 %v10966_v49 }
  0xf2   : > { %9593 = vmatprep.subr.msk.bf16.mxu0 %vm600_vm1, %v458_v54  ;;  %v443_v26 = vsel %vm428_vm3, %v10064_v44, %v10065_v63  ;;  %v442_v59 = vsel %vm428_vm3, %v10065_v63, %v10069_v57  ;;  %v10090_v54 = vunpack.i.h.bf16 %v10966_v49  ;;  %v10083_v57 = vpop.permute.xlu0 %10082  ;;  %v440_v63 = vsel %vm428_vm3, %v10070_v10, %v10074_v0 }
  0xf3   : > { %v462_v51 = vpack.c.bf16 %v443_v26, %v443_v26  ;;  %v463_v62 = vpack.c.bf16 %v442_v59, %v442_v59  ;;  %v10084_v13 = vunpack.i.l.bf16 %v10083_v57  ;;  %v467_v44 = vpack.c.bf16 %v438_v38, %v438_v38 }
  0xf4   : > { %v433_v49 = vsel %vm428_vm3, %v10089_v36, %v10090_v54  ;;  %v10085_v1 = vunpack.i.h.bf16 %v10083_v57 }
  0xf5   : > { %v1356_v32 = vsel %vm600_vm1, %v463_v62, 0  ;;  %v472_v14 = vpack.c.bf16 %v433_v49, %v433_v49  ;;  %v1368_v8 = vsel %vm600_vm1, %v467_v44, 0  ;;  %v436_v33 = vsel %vm428_vm3, %v10080_v53, %v10084_v13  ;;  %v11221_v49 = vpop.permute.xlu1 %2079 }
  0xf6   : > { %9584 = vmatmul.mubr.msk.bf16.gmra.mxu1 %vm593_vm2, %v10868_v60  ;;  %v435_v22 = vsel %vm428_vm3, %v10084_v13, %v10085_v1  ;;  %v469_v59 = vpack.c.bf16 %v436_v33, %v436_v33 }
  0xf7   : > { %1482 = vmatprep.mubr.bf16.mxu1 %v15700_v29  ;;  %v470_v26 = vpack.c.bf16 %v435_v22, %v435_v22 }
  0xf8   : > { %9581 = vmatmul.mubr.msk.bf16.gmra.mxu0 %vm593_vm2, %v10868_v60  ;;  %v1344_v60 = vsel %vm600_vm1, %v459_v48, 0  ;;  %v465_v48 = vpack.c.bf16 %v440_v63, %v440_v63  ;;  %v1374_v53 = vsel %vm600_vm1, %v469_v59, 0 }
  0xf9   : > { %1429 = vmatprep.mubr.bf16.mxu0 %v15700_v29 }
  0xfa   : > { %v1362_v10 = vsel %vm600_vm1, %v465_v48, 0  ;;  %v10108_v48 = vpop.permute.xlu1 %10107 }
  0xfe   : > { %9591 = vmatmul.mubr.msk.bf16.vlgmr.msra.gmra.mxu1 %vm593_vm2, %v11094_v56 }
  0xff   : > { %1571 = vmatpush1.bf16.msra.mxu1 %v1344_v60  ;;  %1492 = vmatprep.mubr.bf16.mxu1 %v15700_v29  ;;  %v434_v60 = vsel %vm428_vm3, %v10085_v1, %v10089_v36 }
 0x100   : > { %9588 = vmatmul.mubr.msk.bf16.vlgmr.msra.gmra.mxu0 %vm593_vm2, %v11094_v56  ;;  %9602 = vmatprep.subr.msk.bf16.mxu1 %vm600_vm1, %v464_v40  ;;  %v10093_v40 = vpop.permute.xlu0 %10092  ;;  %v471_v58 = vpack.c.bf16 %v434_v60, %v434_v60 }
 0x101   : > { %1518 = vmatpush1.bf16.msra.mxu0 %v1338_v47  ;;  %1439 = vmatprep.mubr.bf16.mxu0 %v15700_v29  ;;  %v10094_v47 = vunpack.i.l.bf16 %v10093_v40 }
 0x102   : > { %9599 = vmatprep.subr.msk.bf16.mxu0 %vm600_vm1, %v462_v51  ;;  %v10095_v51 = vunpack.i.h.bf16 %v10093_v40  ;;  %v1380_v0 = vsel %vm600_vm1, %v471_v58, 0  ;;  %v10109_v40 = vunpack.i.l.bf16 %v10108_v48 }
 0x104   : > { %v431_v61 = vsel %vm428_vm3, %v10094_v47, %v10095_v51  ;;  %v10098_v46 = vpop.permute.xlu0 %10097 }
 0x105   : > { %v474_v62 = vpack.c.bf16 %v431_v61, %v431_v61  ;;  %v10100_v36 = vunpack.i.h.bf16 %v10098_v46 }
 0x106   : > { %9592 = vmatmul.mubr.msk.bf16.gmra.mxu1 %vm593_vm2, %v11112_v41 }
 0x107   : > { %1588 = vmatprep.mubr.bf16.mxu1 %v15700_v29 }
 0x108   : > { %9589 = vmatmul.mubr.msk.bf16.gmra.mxu0 %vm593_vm2, %v11112_v41  ;;  %v11195_v50 = vpop.permute.xlu0 %10102 }
 0x109   : > { %1535 = vmatprep.mubr.bf16.mxu0 %v15700_v29  ;;  %v10105_v2 = vunpack.i.h.bf16 %v11195_v50  ;;  %v10104_v45 = vunpack.i.l.bf16 %v11195_v50 }
 0x10c   : > { %v11229_v1 = vpop.permute.xlu0 %10112 }
 0x10d   : > { %v10115_v22 = vunpack.i.h.bf16 %v11229_v1 }
 0x10e   : > { %9597 = vmatmul.mubr.msk.bf16.vlgmr.msra.gmra.mxu1 %vm593_vm2, %v11094_v56 }
 0x10f   : > { %1677 = vmatpush1.bf16.msra.mxu1 %v1356_v32  ;;  %1598 = vmatprep.mubr.bf16.mxu1 %v15700_v29  ;;  %v10099_v32 = vunpack.i.l.bf16 %v10098_v46 }
 0x110   : > { %9594 = vmatmul.mubr.msk.bf16.vlgmr.msra.gmra.mxu0 %vm593_vm2, %v11094_v56  ;;  %9608 = vmatprep.subr.msk.bf16.mxu1 %vm600_vm1, %v468_v18  ;;  %v430_v18 = vsel %vm428_vm3, %v10095_v51, %v10971_v25  ;;  %v2102_v25 = vsel %vm2081_vm4, %v10104_v45, %v10105_v2 }
 0x111   : > { %1624 = vmatpush1.bf16.msra.mxu0 %v1350_v52  ;;  %1545 = vmatprep.mubr.bf16.mxu0 %v15700_v29  ;;  %v475_v52 = vpack.c.bf16 %v430_v18, %v430_v18  ;;  %v2104_v57 = vsel %vm2081_vm4, %v10099_v32, %v10100_v36  ;;  %v2109_v13 = vpack.c.bf16 %v2102_v25, %v2102_v25 }
 0x112   : > { %9605 = vmatprep.subr.msk.bf16.mxu0 %vm600_vm1, %v466_v55  ;;  %v432_v55 = vsel %vm428_vm3, %v10090_v54, %v10094_v47  ;;  %v2107_v54 = vpack.c.bf16 %v2104_v57, %v2104_v57 }
 0x113   : > { %v473_v38 = vpack.c.bf16 %v432_v55, %v432_v55  ;;  %v1392_v63 = vsel %vm600_vm1, %v475_v52, 0 }
 0x115   : > { %v1386_v44 = vsel %vm600_vm1, %v473_v38, 0 }
 0x116   : > { %9598 = vmatmul.mubr.msk.bf16.gmra.mxu1 %vm593_vm2, %v11112_v41 }
 0x117   : > { %1694 = vmatprep.mubr.bf16.mxu1 %v15700_v29 }
 0x118   : > { %9595 = vmatmul.mubr.msk.bf16.gmra.mxu0 %vm593_vm2, %v11112_v41 }
 0x119   : > { %1641 = vmatprep.mubr.bf16.mxu0 %v15700_v29 }
 0x11e   : > { %9603 = vmatmul.mubr.msk.bf16.vlgmr.msra.gmra.mxu1 %vm593_vm2, %v11094_v56 }
 0x11f   : > { %1783 = vmatpush1.bf16.msra.mxu1 %v1368_v8  ;;  %1704 = vmatprep.mubr.bf16.mxu1 %v15700_v29  ;;  %v2103_v8 = vsel %vm2081_vm4, %v10100_v36, %v10104_v45  ;;  %v11283_v36 = vld [vmem:[%s15693_s1 + $0x20] sm:$0xff]  }
 0x120   : > { %9600 = vmatmul.mubr.msk.bf16.vlgmr.msra.gmra.mxu0 %vm593_vm2, %v11094_v56  ;;  %9614 = vmatprep.subr.msk.bf16.mxu1 %vm600_vm1, %v472_v14  ;;  %v10114_v14 = vunpack.i.l.bf16 %v11229_v1  ;;  %v2108_v60 = vpack.c.bf16 %v2103_v8, %v2103_v8  ;;  %v11360_v1 = vpack.i.bf16 %v10654_v12, %v10665_v16 }
 0x121   : > { %1730 = vmatpush1.bf16.msra.mxu0 %v1362_v10  ;;  %1651 = vmatprep.mubr.bf16.mxu0 %v15700_v29  ;;  %v10110_v10 = vunpack.i.h.bf16 %v10108_v48 }
 0x122   : > { %9611 = vmatprep.subr.msk.bf16.mxu0 %vm600_vm1, %v470_v26  ;;  %v2105_v26 = vsel %vm2081_vm4, %v11221_v49, %v10099_v32  ;;  %v2098_v51 = vsel %vm2081_vm4, %v10114_v14, %v10115_v22  ;;  %v2158_v59 = vsel %vm600_vm1, %v2108_v60, 0  ;;  %v2101_v32 = vsel %vm2081_vm4, %v10105_v2, %v10109_v40 }
 0x123   : > { %v2106_v47 = vpack.c.bf16 %v2105_v26, %v2105_v26  ;;  %v2100_v33 = vsel %vm2081_vm4, %v10109_v40, %v10110_v10  ;;  %v2113_v58 = vpack.c.bf16 %v2098_v51, %v2098_v51  ;;  %v2099_v45 = vsel %vm2081_vm4, %v10110_v10, %v10114_v14  ;;  %v11309_v14 = vld [vmem:[%s15693_s1 + $0x28] sm:$0xff]  }
 0x124   : > { %v2111_v61 = vpack.c.bf16 %v2100_v33, %v2100_v33  ;;  %v2112_v55 = vpack.c.bf16 %v2099_v45, %v2099_v45  ;;  %v2110_v50 = vpack.c.bf16 %v2101_v32, %v2101_v32  ;;  %v11330_v33 = vpack.i.bf16 %v10639_v5, %v10648_v9 }
 0x126   : > { %9604 = vmatmul.mubr.msk.bf16.gmra.mxu1 %vm593_vm2, %v11112_v41  ;;  %10212 = vrot.lane.b32.xlu0 %v11330_v33, %s10541_s9 }
 0x127   : > { %1800 = vmatprep.mubr.bf16.mxu1 %v15700_v29 }
 0x128   : > { %9601 = vmatmul.mubr.msk.bf16.gmra.mxu0 %vm593_vm2, %v11112_v41 }
 0x129   : > { %1747 = vmatprep.mubr.bf16.mxu0 %v15700_v29 }
 0x12a   : > { %10222 = vrot.lane.b32.xlu0 %v11360_v1, %s10541_s9 }
 0x12e   : > { %9609 = vmatmul.mubr.msk.bf16.vlgmr.msra.gmra.mxu1 %vm593_vm2, %v11094_v56 }
 0x12f   : > { %1889 = vmatpush1.bf16.msra.mxu1 %v1380_v0  ;;  %1810 = vmatprep.mubr.bf16.mxu1 %v15700_v29  ;;  %v2152_v0 = vsel %vm600_vm1, %v2106_v47, 0 }
 0x130   : > { %9620 = vmatprep.subr.msk.bf16.mxu1 %vm600_vm1, %v476_v4  ;;  %9606 = vmatmul.mubr.msk.bf16.vlgmr.msra.gmra.mxu0 %vm593_vm2, %v11094_v56  ;;  %v11260_v4 = vpop.permute.xlu0 %10122 }
 0x131   : > { %1836 = vmatpush1.bf16.msra.mxu0 %v1374_v53  ;;  %1757 = vmatprep.mubr.bf16.mxu0 %v15700_v29  ;;  %v10125_v53 = vunpack.i.h.bf16 %v11260_v4  ;;  %v10124_v46 = vunpack.i.l.bf16 %v11260_v4 }
 0x132   : > { %9617 = vmatprep.subr.msk.bf16.mxu0 %vm600_vm1, %v474_v62  ;;  %v10118_v62 = vpop.permute.xlu1 %10117 }
 0x133   : > { %v10119_v18 = vunpack.i.l.bf16 %v10118_v62  ;;  %v2094_v52 = vsel %vm2081_vm4, %v10124_v46, %v10125_v53 }
 0x134   : > { %v2117_v25 = vpack.c.bf16 %v2094_v52, %v2094_v52  ;;  %v11314_v8 = vpop.permute.xlu0 %10132 }
 0x135   : > { %v15698_v60 = vunpack.i.h.bf16 %v11314_v8  ;;  %v10134_v51 = vunpack.i.l.bf16 %v11314_v8 }
 0x136   : > { %9610 = vmatmul.mubr.msk.bf16.gmra.mxu1 %vm593_vm2, %v11112_v41  ;;  %v11316_v26 = vpop.permute.xlu1 %10127 }
 0x137   : > { %1906 = vmatprep.mubr.bf16.mxu1 %v15700_v29  ;;  %v2090_v45 = vsel %vm2081_vm4, %v10134_v51, %v15698_v60 }
 0x138   : > { %9607 = vmatmul.mubr.msk.bf16.gmra.mxu0 %vm593_vm2, %v11112_v41 }
 0x139   : > { %1853 = vmatprep.mubr.bf16.mxu0 %v15700_v29 }
 0x13e   : > { %9615 = vmatmul.mubr.msk.bf16.vlgmr.msra.gmra.mxu1 %vm593_vm2, %v11094_v56 }
 0x13f   : > { %1995 = vmatpush1.bf16.msra.mxu1 %v1392_v63  ;;  %1916 = vmatprep.mubr.bf16.mxu1 %v15700_v29 }
 0x140   : > { %9612 = vmatmul.mubr.msk.bf16.vlgmr.msra.gmra.mxu0 %vm593_vm2, %v11094_v56  ;;  %9632 = vmatprep.subr.msk.bf16.mxu1 %vm600_vm1, %v2109_v13  ;;  %v2164_v13 = vsel %vm600_vm1, %v2110_v50, 0 }
 0x141   : > { %1942 = vmatpush1.bf16.msra.mxu0 %v1386_v44  ;;  %1863 = vmatprep.mubr.bf16.mxu0 %v15700_v29 }
 0x142   : > { %9629 = vmatprep.subr.msk.bf16.mxu0 %vm600_vm1, %v2107_v54 }
 0x146   : > { %9616 = vmatmul.mubr.msk.bf16.gmra.mxu1 %vm593_vm2, %v11112_v41 }
 0x147   : > { %2012 = vmatprep.mubr.bf16.mxu1 %v15700_v29 }
 0x148   : > { %9613 = vmatmul.mubr.msk.bf16.gmra.mxu0 %vm593_vm2, %v11112_v41 }
 0x149   : > { %1959 = vmatprep.mubr.bf16.mxu0 %v15700_v29 }
 0x14e   : > { %9621 = vmatmul.mubr.msk.bf16.vlgmr.msra.gmra.mxu1 %vm593_vm2, %v11094_v56 }
 0x14f   : > { %2291 = vmatpush1.bf16.msra.mxu1 %v2158_v59  ;;  %2022 = vmatprep.mubr.bf16.mxu1 %v15700_v29 }
 0x150   : > { %9618 = vmatmul.mubr.msk.bf16.vlgmr.msra.gmra.mxu0 %vm593_vm2, %v11094_v56  ;;  %9638 = vmatprep.subr.msk.bf16.mxu1 %vm600_vm1, %v2113_v58  ;;  %v10120_v56 = vunpack.i.h.bf16 %v10118_v62  ;;  %v2097_v62 = vsel %vm2081_vm4, %v10115_v22, %v10119_v18 }
 0x151   : > { %2238 = vmatpush1.bf16.msra.mxu0 %v2152_v0  ;;  %1969 = vmatprep.mubr.bf16.mxu0 %v15700_v29  ;;  %v10129_v0 = vunpack.i.l.bf16 %v11316_v26 }
 0x152   : > { %9635 = vmatprep.subr.msk.bf16.mxu0 %vm600_vm1, %v2111_v61  ;;  %v2096_v2 = vsel %vm2081_vm4, %v10119_v18, %v10120_v56  ;;  %v2095_v47 = vsel %vm2081_vm4, %v10120_v56, %v10124_v46  ;;  %v10130_v61 = vunpack.i.h.bf16 %v11316_v26  ;;  %v2114_v18 = vpack.c.bf16 %v2097_v62, %v2097_v62 }
 0x153   : > { %v2115_v38 = vpack.c.bf16 %v2096_v2, %v2096_v2  ;;  %v2116_v46 = vpack.c.bf16 %v2095_v47, %v2095_v47 }
 0x154   : > { %v2092_v32 = vsel %vm2081_vm4, %v10129_v0, %v10130_v61 }
 0x155   : > { %v2182_v2 = vsel %vm600_vm1, %v2116_v46, 0  ;;  %v2119_v12 = vpack.c.bf16 %v2092_v32, %v2092_v32 }
 0x156   : > { %9622 = vmatmul.mubr.msk.bf16.gmra.mxu1 %vm593_vm2, %v11112_v41 }
 0x157   : > { %2308 = vmatprep.mubr.bf16.mxu1 %v15700_v29 }
 0x158   : > { %9619 = vmatmul.mubr.msk.bf16.gmra.mxu0 %vm593_vm2, %v11112_v41  ;;  %v2170_v41 = vsel %vm600_vm1, %v2112_v55, 0  ;;  %v2121_v55 = vpack.c.bf16 %v2090_v45, %v2090_v45 }
 0x159   : > { %2255 = vmatprep.mubr.bf16.mxu0 %v15700_v29 }
 0x15e   : > { %v11288_v57 = vpop.f32.mrf.mxu1  ;;  %9633 = vmatmul.mubr.msk.bf16.vlgmr.msra.gmra.mxu1 %vm593_vm2, %v11283_v36 }
 0x15f   : > { %2397 = vmatpush1.bf16.msra.mxu1 %v2170_v41  ;;  %2318 = vmatprep.mubr.bf16.mxu1 %v15700_v29  ;;  %v2176_v41 = vsel %vm600_vm1, %v2114_v18, 0 }
 0x160   : > { %v11294_v63 = vpop.f32.mrf.mxu0  ;;  %v11296_v54 = vpop.f32.mrf.mxu1  ;;  %9630 = vmatmul.mubr.msk.bf16.vlgmr.msra.gmra.mxu0 %vm593_vm2, %v11283_v36  ;;  %9644 = vmatprep.subr.msk.bf16.mxu1 %vm600_vm1, %v2117_v25 }
 0x161   : > { %2344 = vmatpush1.bf16.msra.mxu0 %v2164_v13  ;;  %2265 = vmatprep.mubr.bf16.mxu0 %v15700_v29 }
 0x162   : > { %v11302_v44 = vpop.f32.mrf.mxu0  ;;  %v11304_v48 = vpop.f32.mrf.mxu1  ;;  %9641 = vmatprep.subr.msk.bf16.mxu0 %vm600_vm1, %v2115_v38  ;;  %v11384_v38 = vpack.i.bf16 %v10685_v21, %v10693_v23  ;;  %v11404_v21 = vpack.i.bf16 %v10710_v28, %v10718_v30  ;;  %v11426_v28 = vpack.i.bf16 %v10738_v35, %v10748_v37 }
 0x163   : > { %v11406_v23 = vpop.permute.xlu0 %10142 }
 0x164   : > { %v11320_v10 = vpop.f32.mrf.mxu0  ;;  %v11322_v40 = vpop.f32.mrf.mxu1  ;;  %15754 = vst [vmem:[#allocation10_spill] sm:$0xff] %v11384_v38  ;;  %10232 = vrot.lane.b32.xlu0 %v11384_v38, %s10541_s9  ;;  %15759 = vst [vmem:[#allocation15_spill] sm:$0xff] %v11404_v21  ;;  %v15699_v18 = vunpack.i.h.bf16 %v11406_v23  ;;  %v10144_v32 = vunpack.i.l.bf16 %v11406_v23 }
 0x165   : > { %15764 = vst [vmem:[#allocation20_spill] sm:$0xff] %v11426_v28 }
 0x166   : > { %v11332_v58 = vpop.f32.mrf.mxu0  ;;  %v11334_v59 = vpop.f32.mrf.mxu1  ;;  %9634 = vmatmul.mubr.msk.bf16.gmra.mxu1 %vm593_vm2, %v11309_v14  ;;  %v2086_v35 = vsel %vm2081_vm4, %v10144_v32, %v15699_v18 }
 0x167   : > { %2414 = vmatprep.mubr.bf16.mxu1 %v15700_v29 }
 0x168   : > { %v11347_v5 = vpop.f32.mrf.mxu0  ;;  %v11349_v9 = vpop.f32.mrf.mxu1  ;;  %9631 = vmatmul.mubr.msk.bf16.gmra.mxu0 %vm593_vm2, %v11309_v14  ;;  %10242 = vrot.lane.b32.xlu0 %v11404_v21, %s10541_s9 }
 0x169   : > { %2361 = vmatprep.mubr.bf16.mxu0 %v15700_v29 }
 0x16a   : > { %v11362_v22 = vpop.f32.mrf.mxu0  ;;  %v11364_v56 = vpop.f32.mrf.mxu1 }
 0x16c   : > { %v11370_v52 = vpop.f32.mrf.mxu0  ;;  %v11372_v50 = vpop.f32.mrf.mxu1  ;;  %10252 = vrot.lane.b32.xlu0 %v11426_v28, %s10541_s9 }
 0x16e   : > { %v11375_v16 = vpop.f32.mrf.mxu0  ;;  %v11377_v25 = vpop.f32.mrf.mxu1  ;;  %9639 = vmatmul.mubr.msk.bf16.vlgmr.msra.gmra.mxu1 %vm593_vm2, %v11283_v36 }
 0x16f   : > { %15752 = vst [vmem:[#allocation8_spill] sm:$0xff] %v11375_v16  ;;  %15753 = vst [vmem:[#allocation9_spill] sm:$0xff] %v11377_v25  ;;  %2503 = vmatpush1.bf16.msra.mxu1 %v2182_v2  ;;  %2424 = vmatprep.mubr.bf16.mxu1 %v15700_v29  ;;  %v2091_v2 = vsel %vm2081_vm4, %v10130_v61, %v10134_v51  ;;  %v2093_v51 = vsel %vm2081_vm4, %v10125_v53, %v10129_v0 }
 0x170   : > { %v11387_v13 = vpop.f32.mrf.mxu0  ;;  %v11389_v26 = vpop.f32.mrf.mxu1  ;;  %9636 = vmatmul.mubr.msk.bf16.vlgmr.msra.gmra.mxu0 %vm593_vm2, %v11283_v36  ;;  %9650 = vmatprep.subr.msk.bf16.mxu1 %vm600_vm1, %v2121_v55  ;;  %v2120_v60 = vpack.c.bf16 %v2091_v2, %v2091_v2  ;;  %v2118_v53 = vpack.c.bf16 %v2093_v51, %v2093_v51  ;;  %v11454_v2 = vpack.i.bf16 %v10643_v7, %v10652_v11  ;;  %v15774_v11 = vmov 0  }
 0x171   : > { %15755 = vst [vmem:[#allocation11_spill] sm:$0xff] %v11387_v13  ;;  %15756 = vst [vmem:[#allocation12_spill] sm:$0xff] %v11389_v26  ;;  %2450 = vmatpush1.bf16.msra.mxu0 %v2176_v41  ;;  %2371 = vmatprep.mubr.bf16.mxu0 %v15700_v29  ;;  %v10138_v55 = vpop.permute.xlu1 %10137 }
 0x172   : > { %v11395_v47 = vpop.f32.mrf.mxu0  ;;  %v11397_v62 = vpop.f32.mrf.mxu1  ;;  %9647 = vmatprep.subr.msk.bf16.mxu0 %vm600_vm1, %v2119_v12  ;;  %v10139_v30 = vunpack.i.l.bf16 %v10138_v55  ;;  %v10140_v37 = vunpack.i.h.bf16 %v10138_v55  ;;  %15769 = vst [vmem:[#allocation25_spill] sm:$0xff] %v11454_v2  ;;  %10217 = vrot.lane.b32.xlu1 %v11454_v2, %s10541_s9  ;;  %v2188_v7 = vsel %vm600_vm1, %v2118_v53, 0 }
 0x173   : > { %15757 = vst [vmem:[#allocation13_spill] sm:$0xff] %v11395_v47  ;;  %15758 = vst [vmem:[#allocation14_spill] sm:$0xff] %v11397_v62  ;;  %4856 = vrot.lane.b32.xlu0 %v10679_v19, %s10541_s9 }
 0x174   : > { %v11408_v46 = vpop.f32.mrf.mxu0  ;;  %v11410_v45 = vpop.f32.mrf.mxu1  ;;  %v2088_v0 = vsel %vm2081_vm4, %v10139_v30, %v10140_v37 }
 0x175   : > { %15760 = vst [vmem:[#allocation16_spill] sm:$0xff] %v11408_v46  ;;  %15761 = vst [vmem:[#allocation17_spill] sm:$0xff] %v11410_v45  ;;  %v2123_v51 = vpack.c.bf16 %v2088_v0, %v2088_v0 }
 0x176   : > { %v11416_v12 = vpop.f32.mrf.mxu0  ;;  %v11418_v41 = vpop.f32.mrf.mxu1  ;;  %9640 = vmatmul.mubr.msk.bf16.gmra.mxu1 %vm593_vm2, %v11309_v14 }
 0x177   : > { %15762 = vst [vmem:[#allocation18_spill] sm:$0xff] %v11416_v12  ;;  %15763 = vst [vmem:[#allocation19_spill] sm:$0xff] %v11418_v41  ;;  %2520 = vmatprep.mubr.bf16.mxu1 %v15700_v29  ;;  %5736 = vrot.lane.b32.xlu0 %v10637_v3, %s10542_s14 }
 0x178   : > { %v11433_v61 = vpop.f32.mrf.mxu0  ;;  %v11435_v42 = vpop.f32.mrf.mxu1  ;;  %9637 = vmatmul.mubr.msk.bf16.gmra.mxu0 %vm593_vm2, %v11309_v14 }
 0x179   : > { %15765 = vst [vmem:[#allocation21_spill] sm:$0xff] %v11433_v61  ;;  %15766 = vst [vmem:[#allocation22_spill] sm:$0xff] %v11435_v42  ;;  %2467 = vmatprep.mubr.bf16.mxu0 %v15700_v29  ;;  %v2125_v42 = vpack.c.bf16 %v2086_v35, %v2086_v35  ;;  %v2194_v29 = vsel %vm600_vm1, %v2120_v60, 0 }
 0x17a   : > { %v11444_v4 = vpop.f32.mrf.mxu0  ;;  %v11446_v41 = vpop.f32.mrf.mxu1 }
 0x17b   : > { %15767 = vst [vmem:[#allocation23_spill] sm:$0xff] %v11444_v4  ;;  %15768 = vst [vmem:[#allocation24_spill] sm:$0xff] %v11446_v41  ;;  %10272 = vrot.lane.b32.xlu0 %v11454_v2, %s10542_s14 }
 0x17c   : > { %v11456_v18 = vpop.f32.mrf.mxu0  ;;  %v11458_v55 = vpop.f32.mrf.mxu1 }
 0x17d   : > { %15770 = vst [vmem:[#allocation26_spill] sm:$0xff] %v11456_v18  ;;  %15771 = vst [vmem:[#allocation27_spill] sm:$0xff] %v11458_v55 }
 0x17e   : > { %v11463_v41 = vpop.f32.mrf.mxu0  ;;  %v11465_v4 = vpop.f32.mrf.mxu1  ;;  %9645 = vmatmul.mubr.msk.bf16.vlgmr.msra.gmra.mxu1 %vm593_vm2, %v11283_v36 }
 0x17f   : > { %15772 = vst [vmem:[#allocation28_spill] sm:$0xff] %v11463_v41  ;;  %15773 = vst [vmem:[#allocation29_spill] sm:$0xff] %v11465_v4  ;;  %2609 = vmatpush1.bf16.msra.mxu1 %v2194_v29  ;;  %2530 = vmatprep.mubr.bf16.mxu1 %v15774_v11  ;;  %v10148_v29 = vpop.permute.xlu1 %10147 }
 0x180   : > { %v11473_v60 = vpop.f32.mrf.mxu0  ;;  %v11475_v35 = vpop.f32.mrf.mxu1  ;;  %9642 = vmatmul.mubr.msk.bf16.vlgmr.msra.gmra.mxu0 %vm593_vm2, %v11283_v36  ;;  %9656 = vmatprep.subr.msk.bf16.mxu1 %vm600_vm1, %v2125_v42 }
 0x181   : > { %15775 = vst [vmem:[#allocation30_spill] sm:$0xff] %v11473_v60  ;;  %15776 = vst [vmem:[#allocation31_spill] sm:$0xff] %v11475_v35  ;;  %2556 = vmatpush1.bf16.msra.mxu0 %v2188_v7  ;;  %2477 = vmatprep.mubr.bf16.mxu0 %v15774_v11  ;;  %v2087_v35 = vsel %vm2081_vm4, %v10140_v37, %v10144_v32  ;;  %v2078_v7 = vpop.permute.xlu0 %2077 }
 0x182   : > { %v11481_v0 = vpop.f32.mrf.mxu0  ;;  %v11483_v53 = vpop.f32.mrf.mxu1  ;;  %9653 = vmatprep.subr.msk.bf16.mxu0 %vm600_vm1, %v2123_v51  ;;  %v10149_v51 = vunpack.i.l.bf16 %v10148_v29  ;;  %v2124_v37 = vpack.c.bf16 %v2087_v35, %v2087_v35 }
 0x183   : > { %15777 = vst [vmem:[#allocation32_spill] sm:$0xff] %v11481_v0  ;;  %15778 = vst [vmem:[#allocation33_spill] sm:$0xff] %v11483_v53  ;;  %v10150_v53 = vunpack.i.h.bf16 %v10148_v29  ;;  %v15783_v0 = vunpack.i.h.bf16 %v11314_v8  ;;  %v2082_v8 = vsel %vm2081_vm4, %v2078_v7, %v11221_v49 }
 0x184   : > { %v11486_v4 = vpop.f32.mrf.mxu0  ;;  %v11488_v60 = vpop.f32.mrf.mxu1 }
 0x185   : > { %15779 = vst [vmem:[#allocation34_spill] sm:$0xff] %v11486_v4  ;;  %15780 = vst [vmem:[#allocation35_spill] sm:$0xff] %v11488_v60  ;;  %v2089_v60 = vsel %vm2081_vm4, %v15783_v0, %v10139_v30  ;;  %v2084_v30 = vsel %vm2081_vm4, %v10149_v51, %v10150_v53  ;;  %v11521_v0 = vpack.i.bf16 %v10667_v17, %v10683_v20 }
 0x186   : > { %v11492_v41 = vpop.f32.mrf.mxu0  ;;  %v11494_v42 = vpop.f32.mrf.mxu1  ;;  %9646 = vmatmul.mubr.msk.bf16.gmra.mxu1 %vm593_vm2, %v11309_v14  ;;  %v2122_v29 = vpack.c.bf16 %v2089_v60, %v2089_v60  ;;  %v2129_v60 = vpack.c.bf16 %v2082_v8, %v2082_v8  ;;  %v2127_v49 = vpack.c.bf16 %v2084_v30, %v2084_v30 }
 0x187   : > { %15781 = vst [vmem:[#allocation36_spill] sm:$0xff] %v11492_v41  ;;  %15782 = vst [vmem:[#allocation37_spill] sm:$0xff] %v11494_v42  ;;  %2626 = vmatprep.mubr.bf16.mxu1 %v15774_v11  ;;  %10227 = vrot.lane.b32.xlu1 %v11521_v0, %s10541_s9 }
 0x188   : > { %v11503_v4 = vpop.f32.mrf.mxu0  ;;  %v11505_v32 = vpop.f32.mrf.mxu1  ;;  %9643 = vmatmul.mubr.msk.bf16.gmra.mxu0 %vm593_vm2, %v11309_v14  ;;  %15788 = vst [vmem:[#allocation42_spill] sm:$0xff] %v11521_v0  ;;  %v2200_v17 = vsel %vm600_vm1, %v2122_v29, 0  ;;  %10282 = vrot.lane.b32.xlu0 %v11521_v0, %s10542_s14 }
 0x189   : > { %15784 = vst [vmem:[#allocation38_spill] sm:$0xff] %v11503_v4  ;;  %15785 = vst [vmem:[#allocation39_spill] sm:$0xff] %v11505_v32  ;;  %2573 = vmatprep.mubr.bf16.mxu0 %v15774_v11  ;;  %v11528_v4 = vpop.permute.xlu1 %10152 }
 0x18a   : > { %v11510_v42 = vpop.f32.mrf.mxu0  ;;  %v11512_v41 = vpop.f32.mrf.mxu1 }
 0x18b   : > { %15786 = vst [vmem:[#allocation40_spill] sm:$0xff] %v11510_v42  ;;  %15787 = vst [vmem:[#allocation41_spill] sm:$0xff] %v11512_v41  ;;  %v2206_v42 = vsel %vm600_vm1, %v2124_v37, 0 }
 0x18c   : > { %v11523_v32 = vpop.f32.mrf.mxu0  ;;  %v11525_v35 = vpop.f32.mrf.mxu1 }
 0x18d   : > { %15789 = vst [vmem:[#allocation43_spill] sm:$0xff] %v11523_v32  ;;  %15790 = vst [vmem:[#allocation44_spill] sm:$0xff] %v11525_v35  ;;  %v11603_v35 = vpop.permute.xlu0 %3001 }
 0x18e   : > { %v11532_v41 = vpop.f32.mrf.mxu0  ;;  %v11534_v55 = vpop.f32.mrf.mxu1  ;;  %9651 = vmatmul.mubr.msk.bf16.vlgmr.msra.gmra.mxu1 %vm593_vm2, %v11283_v36 }
 0x18f   : > { %15791 = vst [vmem:[#allocation45_spill] sm:$0xff] %v11532_v41  ;;  %15792 = vst [vmem:[#allocation46_spill] sm:$0xff] %v11534_v55  ;;  %2715 = vmatpush1.bf16.msra.mxu1 %v2206_v42  ;;  %2636 = vmatprep.mubr.bf16.mxu1 %v15774_v11  ;;  %v11553_v42 = vpop.permute.xlu1 %10157 }
 0x190   : > { %9662 = vmatprep.subr.msk.bf16.mxu1 %vm600_vm1, %v2129_v60  ;;  %v11541_v20 = vpop.f32.mrf.mxu0  ;;  %v11543_v37 = vpop.f32.mrf.mxu1  ;;  %9648 = vmatmul.mubr.msk.bf16.vlgmr.msra.gmra.mxu0 %vm593_vm2, %v11283_v36 }
 0x191   : > { %15793 = vst [vmem:[#allocation47_spill] sm:$0xff] %v11541_v20  ;;  %15794 = vst [vmem:[#allocation48_spill] sm:$0xff] %v11543_v37  ;;  %2662 = vmatpush1.bf16.msra.mxu0 %v2200_v17  ;;  %2583 = vmatprep.mubr.bf16.mxu0 %v15774_v11  ;;  %v10159_v20 = vunpack.i.l.bf16 %v11553_v42  ;;  %v2083_v17 = vsel %vm2081_vm4, %v10150_v53, %v2078_v7  ;;  %v15801_v37 = vunpack.i.h.bf16 %v11406_v23 }
 0x192   : > { %v11548_v8 = vpop.f32.mrf.mxu0  ;;  %v11550_v30 = vpop.f32.mrf.mxu1  ;;  %9659 = vmatprep.subr.msk.bf16.mxu0 %vm600_vm1, %v2127_v49  ;;  %v10154_v49 = vunpack.i.l.bf16 %v11528_v4  ;;  %v2128_v7 = vpack.c.bf16 %v2083_v17, %v2083_v17  ;;  %v11596_v17 = vpack.i.bf16 %v10695_v24, %v10708_v27 }
 0x193   : > { %15795 = vst [vmem:[#allocation49_spill] sm:$0xff] %v11548_v8  ;;  %15796 = vst [vmem:[#allocation50_spill] sm:$0xff] %v11550_v30 }
 0x194   : > { %v11555_v29 = vpop.f32.mrf.mxu0  ;;  %v11557_v60 = vpop.f32.mrf.mxu1  ;;  %15807 = vst [vmem:[#allocation59_spill] sm:$0xff] %v11596_v17  ;;  %10237 = vrot.lane.b32.xlu1 %v11596_v17, %s10541_s9  ;;  %10292 = vrot.lane.b32.xlu0 %v11596_v17, %s10542_s14 }
 0x195   : > { %15797 = vst [vmem:[#allocation51_spill] sm:$0xff] %v11555_v29  ;;  %15798 = vst [vmem:[#allocation52_spill] sm:$0xff] %v11557_v60  ;;  %v2085_v60 = vsel %vm2081_vm4, %v15801_v37, %v10149_v51 }
 0x196   : > { %v11564_v8 = vpop.f32.mrf.mxu0  ;;  %v11566_v30 = vpop.f32.mrf.mxu1  ;;  %9652 = vmatmul.mubr.msk.bf16.gmra.mxu1 %vm593_vm2, %v11309_v14  ;;  %v2126_v37 = vpack.c.bf16 %v2085_v60, %v2085_v60 }
 0x197   : > { %15799 = vst [vmem:[#allocation53_spill] sm:$0xff] %v11564_v8  ;;  %15800 = vst [vmem:[#allocation54_spill] sm:$0xff] %v11566_v30  ;;  %2732 = vmatprep.mubr.bf16.mxu1 %v15774_v11  ;;  %v10155_v30 = vunpack.i.h.bf16 %v11528_v4  ;;  %v15804_v8 = vunpack.i.h.bf16 %v11553_v42 }
 0x198   : > { %v11576_v29 = vpop.f32.mrf.mxu0  ;;  %v11578_v53 = vpop.f32.mrf.mxu1  ;;  %9649 = vmatmul.mubr.msk.bf16.gmra.mxu0 %vm593_vm2, %v11309_v14  ;;  %v2212_v24 = vsel %vm600_vm1, %v2126_v37, 0 }
 0x199   : > { %15802 = vst [vmem:[#allocation55_spill] sm:$0xff] %v11576_v29  ;;  %15803 = vst [vmem:[#allocation56_spill] sm:$0xff] %v11578_v53  ;;  %v3024_v55 = vsel %vm3003_vm5, %v10159_v20, %v15804_v8  ;;  %2679 = vmatprep.mubr.bf16.mxu0 %v15774_v11  ;;  %v3026_v53 = vsel %vm3003_vm5, %v10154_v49, %v10155_v30  ;;  %v2218_v8 = vsel %vm600_vm1, %v2128_v7, 0  ;;  %v11628_v37 = vpop.permute.xlu1 %10167 }
 0x19a   : > { %v11588_v23 = vpop.f32.mrf.mxu0  ;;  %v11590_v51 = vpop.f32.mrf.mxu1  ;;  %v3031_v4 = vpack.c.bf16 %v3024_v55, %v3024_v55  ;;  %v3029_v60 = vpack.c.bf16 %v3026_v53, %v3026_v53  ;;  %v15848_v61 = vunpack.i.h.bf16 %v11628_v37 }
 0x19b   : > { %15805 = vst [vmem:[#allocation57_spill] sm:$0xff] %v11588_v23  ;;  %15806 = vst [vmem:[#allocation58_spill] sm:$0xff] %v11590_v51 }
 0x19c   : > { %v11598_v29 = vpop.f32.mrf.mxu0  ;;  %v11600_v41 = vpop.f32.mrf.mxu1 }
 0x19d   : > { %15808 = vst [vmem:[#allocation60_spill] sm:$0xff] %v11598_v29  ;;  %15809 = vst [vmem:[#allocation61_spill] sm:$0xff] %v11600_v41 }
 0x19e   : > { %v11607_v51 = vpop.f32.mrf.mxu0  ;;  %v11609_v23 = vpop.f32.mrf.mxu1  ;;  %9657 = vmatmul.mubr.msk.bf16.vlgmr.msra.gmra.mxu1 %vm593_vm2, %v11283_v36 }
 0x19f   : > { %15810 = vst [vmem:[#allocation62_spill] sm:$0xff] %v11607_v51  ;;  %15811 = vst [vmem:[#allocation63_spill] sm:$0xff] %v11609_v23  ;;  %2821 = vmatpush1.bf16.msra.mxu1 %v2218_v8  ;;  %2742 = vmatprep.mubr.bf16.mxu1 %v15774_v11  ;;  %v10163_v8 = vpop.permute.xlu0 %10162 }
 0x1a0   : > { %v11615_v27 = vpop.f32.mrf.mxu0  ;;  %v11617_v55 = vpop.f32.mrf.mxu1  ;;  %9654 = vmatmul.mubr.msk.bf16.vlgmr.msra.gmra.mxu0 %vm593_vm2, %v11283_v36  ;;  %9674 = vmatprep.subr.msk.bf16.mxu1 %vm600_vm1, %v3031_v4  ;;  %v10169_v4 = vunpack.i.l.bf16 %v11628_v37  ;;  %v10164_v23 = vunpack.i.l.bf16 %v10163_v8 }
 0x1a1   : > { %15812 = vst [vmem:[#allocation64_spill] sm:$0xff] %v11615_v27  ;;  %15813 = vst [vmem:[#allocation65_spill] sm:$0xff] %v11617_v55  ;;  %2768 = vmatpush1.bf16.msra.mxu0 %v2212_v24  ;;  %2689 = vmatprep.mubr.bf16.mxu0 %v15774_v11  ;;  %v3025_v24 = vsel %vm3003_vm5, %v10155_v30, %v10159_v20  ;;  %v15822_v30 = vunpack.i.h.bf16 %v11628_v37 }
 0x1a2   : > { %v11623_v53 = vpop.f32.mrf.mxu0  ;;  %v11625_v7 = vpop.f32.mrf.mxu1  ;;  %9671 = vmatprep.subr.msk.bf16.mxu0 %vm600_vm1, %v3029_v60  ;;  %v3027_v60 = vsel %vm3003_vm5, %v11603_v35, %v10154_v49  ;;  %v3030_v20 = vpack.c.bf16 %v3025_v24, %v3025_v24 }
 0x1a3   : > { %15814 = vst [vmem:[#allocation66_spill] sm:$0xff] %v11623_v53  ;;  %15815 = vst [vmem:[#allocation67_spill] sm:$0xff] %v11625_v7  ;;  %v3028_v49 = vpack.c.bf16 %v3027_v60, %v3027_v60 }
 0x1a4   : > { %v11630_v27 = vpop.f32.mrf.mxu0  ;;  %v11632_v55 = vpop.f32.mrf.mxu1 }
 0x1a5   : > { %15816 = vst [vmem:[#allocation68_spill] sm:$0xff] %v11630_v27  ;;  %15817 = vst [vmem:[#allocation69_spill] sm:$0xff] %v11632_v55  ;;  %v10165_v55 = vunpack.i.h.bf16 %v10163_v8 }
 0x1a6   : > { %v11638_v51 = vpop.f32.mrf.mxu0  ;;  %v11640_v53 = vpop.f32.mrf.mxu1  ;;  %9658 = vmatmul.mubr.msk.bf16.gmra.mxu1 %vm593_vm2, %v11309_v14 }
 0x1a7   : > { %15818 = vst [vmem:[#allocation70_spill] sm:$0xff] %v11638_v51  ;;  %15819 = vst [vmem:[#allocation71_spill] sm:$0xff] %v11640_v53  ;;  %2838 = vmatprep.mubr.bf16.mxu1 %v15774_v11  ;;  %v3020_v53 = vsel %vm3003_vm5, %v10169_v4, %v15822_v30  ;;  %v3022_v8 = vsel %vm3003_vm5, %v10164_v23, %v10165_v55  ;;  %v3080_v30 = vsel %vm600_vm1, %v3030_v20, 0 }
 0x1a8   : > { %v11648_v27 = vpop.f32.mrf.mxu0  ;;  %v11650_v7 = vpop.f32.mrf.mxu1  ;;  %9655 = vmatmul.mubr.msk.bf16.gmra.mxu0 %vm593_vm2, %v11309_v14  ;;  %v3035_v24 = vpack.c.bf16 %v3020_v53, %v3020_v53  ;;  %v3033_v60 = vpack.c.bf16 %v3022_v8, %v3022_v8 }
 0x1a9   : > { %15820 = vst [vmem:[#allocation72_spill] sm:$0xff] %v11648_v27  ;;  %15821 = vst [vmem:[#allocation73_spill] sm:$0xff] %v11650_v7  ;;  %2785 = vmatprep.mubr.bf16.mxu0 %v15774_v11  ;;  %v11667_v7 = vpack.i.bf16 %v10720_v31, %v10736_v34  ;;  %v3074_v31 = vsel %vm600_vm1, %v3028_v49, 0  ;;  %v11697_v49 = vpop.permute.xlu1 %10177 }
 0x1aa   : > { %v11659_v51 = vpop.f32.mrf.mxu0  ;;  %v11661_v41 = vpop.f32.mrf.mxu1 }
 0x1ab   : > { %15823 = vst [vmem:[#allocation74_spill] sm:$0xff] %v11659_v51  ;;  %15824 = vst [vmem:[#allocation75_spill] sm:$0xff] %v11661_v41  ;;  %10247 = vrot.lane.b32.xlu1 %v11667_v7, %s10541_s9  ;;  %10302 = vrot.lane.b32.xlu0 %v11667_v7, %s10542_s14 }
 0x1ac   : > { %15825 = vst [vmem:[#allocation76_spill] sm:$0xff] %v11667_v7  ;;  %v11669_v27 = vpop.f32.mrf.mxu0  ;;  %v11671_v29 = vpop.f32.mrf.mxu1 }
 0x1ad   : > { %15826 = vst [vmem:[#allocation77_spill] sm:$0xff] %v11669_v27  ;;  %15827 = vst [vmem:[#allocation78_spill] sm:$0xff] %v11671_v29 }
 0x1ae   : > { %v11676_v51 = vpop.f32.mrf.mxu0  ;;  %v11678_v41 = vpop.f32.mrf.mxu1  ;;  %9663 = vmatmul.mubr.msk.bf16.vlgmr.msra.gmra.mxu1 %vm593_vm2, %v11283_v36 }
 0x1af   : > { %15828 = vst [vmem:[#allocation79_spill] sm:$0xff] %v11676_v51  ;;  %15829 = vst [vmem:[#allocation80_spill] sm:$0xff] %v11678_v41  ;;  %3213 = vmatpush1.bf16.msra.mxu1 %v3080_v30  ;;  %2848 = vmatprep.mubr.bf16.mxu1 %v15774_v11  ;;  %v11699_v30 = vpop.permute.xlu0 %10172 }
 0x1b0   : > { %v11684_v34 = vpop.f32.mrf.mxu0  ;;  %v11686_v53 = vpop.f32.mrf.mxu1  ;;  %9660 = vmatmul.mubr.msk.bf16.vlgmr.msra.gmra.mxu0 %vm593_vm2, %v11283_v36  ;;  %9680 = vmatprep.subr.msk.bf16.mxu1 %vm600_vm1, %v3035_v24  ;;  %v10179_v24 = vunpack.i.l.bf16 %v11697_v49  ;;  %v15838_v36 = vunpack.i.h.bf16 %v11553_v42 }
 0x1b1   : > { %15830 = vst [vmem:[#allocation81_spill] sm:$0xff] %v11684_v34  ;;  %15831 = vst [vmem:[#allocation82_spill] sm:$0xff] %v11686_v53  ;;  %3160 = vmatpush1.bf16.msra.mxu0 %v3074_v31  ;;  %2795 = vmatprep.mubr.bf16.mxu0 %v15774_v11  ;;  %v3021_v31 = vsel %vm3003_vm5, %v10165_v55, %v10169_v4 }
 0x1b2   : > { %v11692_v20 = vpop.f32.mrf.mxu0  ;;  %v11694_v8 = vpop.f32.mrf.mxu1  ;;  %9677 = vmatprep.subr.msk.bf16.mxu0 %vm600_vm1, %v3033_v60  ;;  %v10175_v60 = vunpack.i.h.bf16 %v11699_v30  ;;  %v3034_v4 = vpack.c.bf16 %v3021_v31, %v3021_v31  ;;  %v11746_v31 = vpack.i.bf16 %v10641_v6, %v10758_v39 }
 0x1b3   : > { %15832 = vst [vmem:[#allocation83_spill] sm:$0xff] %v11692_v20  ;;  %15833 = vst [vmem:[#allocation84_spill] sm:$0xff] %v11694_v8 }
 0x1b4   : > { %v11701_v34 = vpop.f32.mrf.mxu0  ;;  %v11703_v53 = vpop.f32.mrf.mxu1  ;;  %15844 = vst [vmem:[#allocation93_spill] sm:$0xff] %v11746_v31  ;;  %10257 = vrot.lane.b32.xlu1 %v11746_v31, %s10541_s9  ;;  %10312 = vrot.lane.b32.xlu0 %v11746_v31, %s10542_s14 }
 0x1b5   : > { %15834 = vst [vmem:[#allocation85_spill] sm:$0xff] %v11701_v34  ;;  %15835 = vst [vmem:[#allocation86_spill] sm:$0xff] %v11703_v53  ;;  %v10174_v53 = vunpack.i.l.bf16 %v11699_v30  ;;  %v3023_v34 = vsel %vm3003_vm5, %v15838_v36, %v10164_v23  ;;  %v11740_v23 = vld [vmem:[%s15693_s1 + $0x30] sm:$0xff]  }
 0x1b6   : > { %v11709_v20 = vpop.f32.mrf.mxu0  ;;  %v11711_v8 = vpop.f32.mrf.mxu1  ;;  %9664 = vmatmul.mubr.msk.bf16.gmra.mxu1 %vm593_vm2, %v11309_v14  ;;  %v3032_v36 = vpack.c.bf16 %v3023_v34, %v3023_v34 }
 0x1b7   : > { %15836 = vst [vmem:[#allocation87_spill] sm:$0xff] %v11709_v20  ;;  %15837 = vst [vmem:[#allocation88_spill] sm:$0xff] %v11711_v8  ;;  %3230 = vmatprep.mubr.bf16.mxu1 %v15774_v11  ;;  %v15841_v8 = vunpack.i.h.bf16 %v11697_v49 }
 0x1b8   : > { %v11722_v41 = vpop.f32.mrf.mxu0  ;;  %v11724_v55 = vpop.f32.mrf.mxu1  ;;  %9661 = vmatmul.mubr.msk.bf16.gmra.mxu0 %vm593_vm2, %v11309_v14  ;;  %v3018_v14 = vsel %vm3003_vm5, %v10174_v53, %v10175_v60  ;;  %v3086_v6 = vsel %vm600_vm1, %v3032_v36, 0  ;;  %10262 = vrot.lane.b32.xlu1 %v10661_v15, %s10542_s14 }
 0x1b9   : > { %15839 = vst [vmem:[#allocation89_spill] sm:$0xff] %v11722_v41  ;;  %15840 = vst [vmem:[#allocation90_spill] sm:$0xff] %v11724_v55  ;;  %v3016_v20 = vsel %vm3003_vm5, %v10179_v24, %v15841_v8  ;;  %3177 = vmatprep.mubr.bf16.mxu0 %v15774_v11  ;;  %v11783_v36 = vpop.permute.xlu1 %10187  ;;  %10317 = vrot.lane.b32.xlu0 %v10661_v15, %s10544_s29 }
 0x1ba   : > { %v11733_v30 = vpop.f32.mrf.mxu0  ;;  %v11735_v42 = vpop.f32.mrf.mxu1  ;;  %v3039_v8 = vpack.c.bf16 %v3016_v20, %v3016_v20 }
 0x1bb   : > { %15842 = vst [vmem:[#allocation91_spill] sm:$0xff] %v11733_v30  ;;  %15843 = vst [vmem:[#allocation92_spill] sm:$0xff] %v11735_v42  ;;  %v3092_v42 = vsel %vm600_vm1, %v3034_v4, 0  ;;  %v3037_v30 = vpack.c.bf16 %v3018_v14, %v3018_v14 }
 0x1bc   : > { %v11748_v55 = vpop.f32.mrf.mxu0  ;;  %v11750_v41 = vpop.f32.mrf.mxu1  ;;  %10267 = vrot.lane.b32.xlu1 %v11330_v33, %s10542_s14 }
 0x1bd   : > { %15845 = vst [vmem:[#allocation94_spill] sm:$0xff] %v11748_v55  ;;  %15846 = vst [vmem:[#allocation95_spill] sm:$0xff] %v11750_v41  ;;  %v10189_v55 = vunpack.i.l.bf16 %v11783_v36  ;;  %v3019_v41 = vsel %vm3003_vm5, %v15848_v61, %v10174_v53  ;;  %10322 = vrot.lane.b32.xlu0 %v11330_v33, %s10544_s29 }
 0x1be   : > { %v11755_v51 = vpop.f32.mrf.mxu0  ;;  %v11757_v34 = vpop.f32.mrf.mxu1  ;;  %9675 = vmatmul.mubr.msk.bf16.vlgmr.msra.gmra.mxu1 %vm593_vm2, %v11740_v23  ;;  %v3036_v53 = vpack.c.bf16 %v3019_v41, %v3019_v41 }
 0x1bf   : > { %15847 = vst [vmem:[#allocation96_spill] sm:$0xff] %v11755_v51  ;;  %3319 = vmatpush1.bf16.msra.mxu1 %v3092_v42  ;;  %3240 = vmatprep.mubr.bf16.mxu1 %v15774_v11  ;;  %v11778_v42 = vld [vmem:[%s15693_s1 + $0x38] sm:$0xff]  }
 0x1c0   : > { %v11763_v39 = vpop.f32.mrf.mxu0  ;;  %v11765_v20 = vpop.f32.mrf.mxu1  ;;  %9672 = vmatmul.mubr.msk.bf16.vlgmr.msra.gmra.mxu0 %vm593_vm2, %v11740_v23  ;;  %9686 = vmatprep.subr.msk.bf16.mxu1 %vm600_vm1, %v3039_v8  ;;  %v3098_v41 = vsel %vm600_vm1, %v3036_v53, 0 }
 0x1c1   : > { %3266 = vmatpush1.bf16.msra.mxu0 %v3086_v6  ;;  %3187 = vmatprep.mubr.bf16.mxu0 %v15774_v11  ;;  %v10183_v8 = vpop.permute.xlu0 %10182 }
 0x1c2   : > { %v11771_v4 = vpop.f32.mrf.mxu0  ;;  %v11773_v14 = vpop.f32.mrf.mxu1  ;;  %9683 = vmatprep.subr.msk.bf16.mxu0 %vm600_vm1, %v3037_v30  ;;  %v3017_v30 = vsel %vm3003_vm5, %v10175_v60, %v10179_v24  ;;  %v10185_v32 = vunpack.i.h.bf16 %v10183_v8  ;;  %v10184_v18 = vunpack.i.l.bf16 %v10183_v8  ;;  %v15849_v60 = vunpack.i.h.bf16 %v11783_v36  ;;  %10277 = vrot.lane.b32.xlu1 %v11360_v1, %s10542_s14 }
 0x1c3   : > { %v3038_v24 = vpack.c.bf16 %v3017_v30, %v3017_v30  ;;  %v1434_v31 = vadd.f32 %v11771_v4, %v11302_v44  ;;  %v12180_v4 = vld [vmem:[%s15693_s1 + $0x48] sm:$0xff]   ;;  %10332 = vrot.lane.b32.xlu0 %v11360_v1, %s10544_s29 }
 0x1c4   : > { %v11785_v6 = vpop.f32.mrf.mxu0  ;;  %v11787_v51 = vpop.f32.mrf.mxu1  ;;  %v3012_v8 = vsel %vm3003_vm5, %v10189_v55, %v15849_v60  ;;  %v3014_v46 = vsel %vm3003_vm5, %v10184_v18, %v10185_v32 }
 0x1c5   : > { %v3043_v62 = vpack.c.bf16 %v3012_v8, %v3012_v8  ;;  %v3104_v26 = vsel %vm600_vm1, %v3038_v24, 0  ;;  %v3041_v60 = vpack.c.bf16 %v3014_v46, %v3014_v46 }
 0x1c6   : > { %v11795_v29 = vpop.f32.mrf.mxu0  ;;  %v11797_v27 = vpop.f32.mrf.mxu1  ;;  %9676 = vmatmul.mubr.msk.bf16.gmra.mxu1 %vm593_vm2, %v11778_v42  ;;  %10287 = vrot.lane.b32.xlu1 %v11384_v38, %s10542_s14 }
 0x1c7   : > { %3336 = vmatprep.mubr.bf16.mxu1 %v15774_v11 }
 0x1c8   : > { %v11806_v12 = vpop.f32.mrf.mxu0  ;;  %v11808_v45 = vpop.f32.mrf.mxu1  ;;  %9673 = vmatmul.mubr.msk.bf16.gmra.mxu0 %vm593_vm2, %v11778_v42 }
 0x1c9   : > { %3283 = vmatprep.mubr.bf16.mxu0 %v15774_v11 }
 0x1ca   : > { %v11819_v37 = vpop.f32.mrf.mxu0  ;;  %v11821_v61 = vpop.f32.mrf.mxu1  ;;  %10297 = vrot.lane.b32.xlu1 %v11404_v21, %s10542_s14 }
 0x1cc   : > { %v11825_v30 = vpop.f32.mrf.mxu0  ;;  %v11827_v47 = vpop.f32.mrf.mxu1 }
 0x1ce   : > { %v11832_v13 = vpop.f32.mrf.mxu0  ;;  %v11834_v25 = vpop.f32.mrf.mxu1  ;;  %9681 = vmatmul.mubr.msk.bf16.vlgmr.msra.gmra.mxu1 %vm593_vm2, %v11740_v23  ;;  %10307 = vrot.lane.b32.xlu1 %v11426_v28, %s10542_s14 }
 0x1cf   : > { %15850 = vst [vmem:[#allocation97_spill] sm:$0xff] %v11834_v25  ;;  %3425 = vmatpush1.bf16.msra.mxu1 %v3104_v26  ;;  %3346 = vmatprep.mubr.bf16.mxu1 %v15774_v11  ;;  %v11855_v26 = vpop.permute.xlu1 %10197 }
 0x1d0   : > { %v11840_v8 = vpop.f32.mrf.mxu0  ;;  %v11842_v16 = vpop.f32.mrf.mxu1  ;;  %9678 = vmatmul.mubr.msk.bf16.vlgmr.msra.gmra.mxu0 %vm593_vm2, %v11740_v23  ;;  %9692 = vmatprep.subr.msk.bf16.mxu1 %vm600_vm1, %v3043_v62  ;;  %v15859_v62 = vunpack.i.h.bf16 %v11697_v49 }
 0x1d1   : > { %15851 = vst [vmem:[#allocation98_spill] sm:$0xff] %v11840_v8  ;;  %15852 = vst [vmem:[#allocation99_spill] sm:$0xff] %v11842_v16  ;;  %3372 = vmatpush1.bf16.msra.mxu0 %v3098_v41  ;;  %3293 = vmatprep.mubr.bf16.mxu0 %v15774_v11  ;;  %v10199_v41 = vunpack.i.l.bf16 %v11855_v26  ;;  %v10193_v8 = vpop.permute.xlu0 %10192 }
 0x1d2   : > { %v11848_v46 = vpop.f32.mrf.mxu0  ;;  %v11850_v24 = vpop.f32.mrf.mxu1  ;;  %9689 = vmatprep.subr.msk.bf16.mxu0 %vm600_vm1, %v3041_v60  ;;  %5778 = vrot.lane.b32.xlu1 %v10679_v19, %s10542_s14 }
 0x1d3   : > { %15853 = vst [vmem:[#allocation100_spill] sm:$0xff] %v11848_v46  ;;  %15854 = vst [vmem:[#allocation101_spill] sm:$0xff] %v11850_v24  ;;  %v3013_v46 = vsel %vm3003_vm5, %v10185_v32, %v10189_v55 }
 0x1d4   : > { %v11857_v53 = vpop.f32.mrf.mxu0  ;;  %v11859_v16 = vpop.f32.mrf.mxu1  ;;  %v3042_v55 = vpack.c.bf16 %v3013_v46, %v3013_v46 }
 0x1d5   : > { %15855 = vst [vmem:[#allocation102_spill] sm:$0xff] %v11857_v53  ;;  %15856 = vst [vmem:[#allocation103_spill] sm:$0xff] %v11859_v16  ;;  %v10194_v16 = vunpack.i.l.bf16 %v10193_v8  ;;  %v3015_v53 = vsel %vm3003_vm5, %v15859_v62, %v10184_v18 }
 0x1d6   : > { %v11865_v24 = vpop.f32.mrf.mxu0  ;;  %v11867_v60 = vpop.f32.mrf.mxu1  ;;  %9682 = vmatmul.mubr.msk.bf16.gmra.mxu1 %vm593_vm2, %v11778_v42  ;;  %v3040_v18 = vpack.c.bf16 %v3015_v53, %v3015_v53  ;;  %6658 = vrot.lane.b32.xlu1 %v10637_v3, %s10544_s29 }
 0x1d7   : > { %15857 = vst [vmem:[#allocation104_spill] sm:$0xff] %v11865_v24  ;;  %15858 = vst [vmem:[#allocation105_spill] sm:$0xff] %v11867_v60  ;;  %3442 = vmatprep.mubr.bf16.mxu1 %v15774_v11  ;;  %v15862_v60 = vunpack.i.h.bf16 %v11855_v26  ;;  %v10195_v24 = vunpack.i.h.bf16 %v10193_v8  ;;  %v3116_v8 = vsel %vm600_vm1, %v3042_v55, 0 }
 0x1d8   : > { %v11878_v38 = vpop.f32.mrf.mxu0  ;;  %v11880_v32 = vpop.f32.mrf.mxu1  ;;  %9679 = vmatmul.mubr.msk.bf16.gmra.mxu0 %vm593_vm2, %v11778_v42  ;;  %v3110_v28 = vsel %vm600_vm1, %v3040_v18, 0 }
 0x1d9   : > { %15860 = vst [vmem:[#allocation106_spill] sm:$0xff] %v11878_v38  ;;  %15861 = vst [vmem:[#allocation107_spill] sm:$0xff] %v11880_v32  ;;  %v3008_v21 = vsel %vm3003_vm5, %v10199_v41, %v15862_v60  ;;  %3389 = vmatprep.mubr.bf16.mxu0 %v15774_v11  ;;  %v3010_v62 = vsel %vm3003_vm5, %v10194_v16, %v10195_v24 }
 0x1da   : > { %v11889_v49 = vpop.f32.mrf.mxu0  ;;  %v11891_v25 = vpop.f32.mrf.mxu1  ;;  %v3047_v46 = vpack.c.bf16 %v3008_v21, %v3008_v21  ;;  %v3045_v60 = vpack.c.bf16 %v3010_v62, %v3010_v62 }
 0x1db   : > { %15863 = vst [vmem:[#allocation108_spill] sm:$0xff] %v11889_v49 }
 0x1dc   : > { %v11897_v32 = vpop.f32.mrf.mxu0  ;;  %v11899_v38 = vpop.f32.mrf.mxu1 }
 0x1dd   : > { %15864 = vst [vmem:[#allocation109_spill] sm:$0xff] %v11899_v38 }
 0x1de   : > { %v11904_v49 = vpop.f32.mrf.mxu0  ;;  %v11906_v53 = vpop.f32.mrf.mxu1  ;;  %9687 = vmatmul.mubr.msk.bf16.vlgmr.msra.gmra.mxu1 %vm593_vm2, %v11740_v23 }
 0x1df   : > { %15865 = vst [vmem:[#allocation110_spill] sm:$0xff] %v11904_v49  ;;  %15866 = vst [vmem:[#allocation111_spill] sm:$0xff] %v11906_v53  ;;  %3531 = vmatpush1.bf16.msra.mxu1 %v3116_v8  ;;  %3452 = vmatprep.mubr.bf16.mxu1 %v15774_v11  ;;  %v10203_v8 = vpop.permute.xlu0 %10202 }
 0x1e0   : > { %v11914_v21 = vpop.f32.mrf.mxu0  ;;  %v11916_v55 = vpop.f32.mrf.mxu1  ;;  %9684 = vmatmul.mubr.msk.bf16.vlgmr.msra.gmra.mxu0 %vm593_vm2, %v11740_v23  ;;  %9698 = vmatprep.subr.msk.bf16.mxu1 %vm600_vm1, %v3047_v46 }
 0x1e1   : > { %15867 = vst [vmem:[#allocation112_spill] sm:$0xff] %v11914_v21  ;;  %15868 = vst [vmem:[#allocation113_spill] sm:$0xff] %v11916_v55  ;;  %3478 = vmatpush1.bf16.msra.mxu0 %v3110_v28  ;;  %3399 = vmatprep.mubr.bf16.mxu0 %v15774_v11  ;;  %v3009_v55 = vsel %vm3003_vm5, %v10195_v24, %v10199_v41  ;;  %v3000_v28 = vpop.permute.xlu1 %2999 }
 0x1e2   : > { %v11922_v62 = vpop.f32.mrf.mxu0  ;;  %v11924_v18 = vpop.f32.mrf.mxu1  ;;  %9695 = vmatprep.subr.msk.bf16.mxu0 %vm600_vm1, %v3045_v60  ;;  %v10204_v60 = vunpack.i.l.bf16 %v10203_v8  ;;  %v3046_v41 = vpack.c.bf16 %v3009_v55, %v3009_v55 }
 0x1e3   : > { %15869 = vst [vmem:[#allocation114_spill] sm:$0xff] %v11922_v62  ;;  %15870 = vst [vmem:[#allocation115_spill] sm:$0xff] %v11924_v18  ;;  %v10205_v18 = vunpack.i.h.bf16 %v10203_v8  ;;  %v15875_v62 = vunpack.i.h.bf16 %v11783_v36  ;;  %v3004_v36 = vsel %vm3003_vm5, %v3000_v28, %v11603_v35 }
 0x1e4   : > { %v11927_v19 = vpop.f32.mrf.mxu0  ;;  %v11929_v21 = vpop.f32.mrf.mxu1  ;;  %v3128_v55 = vsel %vm600_vm1, %v3046_v41, 0  ;;  %v3051_v49 = vpack.c.bf16 %v3004_v36, %v3004_v36 }
 0x1e5   : > { %15871 = vst [vmem:[#allocation116_spill] sm:$0xff] %v11927_v19  ;;  %15872 = vst [vmem:[#allocation117_spill] sm:$0xff] %v11929_v21  ;;  %v3011_v21 = vsel %vm3003_vm5, %v15875_v62, %v10194_v16  ;;  %v3006_v16 = vsel %vm3003_vm5, %v10204_v60, %v10205_v18 }
 0x1e6   : > { %v11933_v2 = vpop.f32.mrf.mxu0  ;;  %v11935_v46 = vpop.f32.mrf.mxu1  ;;  %9688 = vmatmul.mubr.msk.bf16.gmra.mxu1 %vm593_vm2, %v11778_v42  ;;  %v3044_v8 = vpack.c.bf16 %v3011_v21, %v3011_v21 }
 0x1e7   : > { %15873 = vst [vmem:[#allocation118_spill] sm:$0xff] %v11933_v2  ;;  %15874 = vst [vmem:[#allocation119_spill] sm:$0xff] %v11935_v46  ;;  %3548 = vmatprep.mubr.bf16.mxu1 %v15774_v11 }
 0x1e8   : > { %v11944_v19 = vpop.f32.mrf.mxu0  ;;  %v11946_v24 = vpop.f32.mrf.mxu1  ;;  %9685 = vmatmul.mubr.msk.bf16.gmra.mxu0 %vm593_vm2, %v11778_v42  ;;  %v3122_v35 = vsel %vm600_vm1, %v3044_v8, 0 }
 0x1e9   : > { %15876 = vst [vmem:[#allocation120_spill] sm:$0xff] %v11944_v19  ;;  %15877 = vst [vmem:[#allocation121_spill] sm:$0xff] %v11946_v24  ;;  %3495 = vmatprep.mubr.bf16.mxu0 %v15774_v11  ;;  %v10543_v19 = vmov 1983009808  }
 0x1ea   : > { %v11951_v46 = vpop.f32.mrf.mxu0  ;;  %v11953_v2 = vpop.f32.mrf.mxu1  ;;  %v3900_v53 = vunpack.c.l.s4 %v10543_v19 }
 0x1eb   : > { %15878 = vst [vmem:[#allocation122_spill] sm:$0xff] %v11951_v46  ;;  %v3049_v46 = vpack.c.bf16 %v3006_v16, %v3006_v16  ;;  %v15883_v16 = vlaneseq }
 0x1ec   : > { %v11960_v62 = vpop.f32.mrf.mxu0  ;;  %v11962_v24 = vpop.f32.mrf.mxu1  ;;  %v3901_v36 = vunpack.c.0.s8 %v3900_v53  ;;  %v10452_v53 = vld [vmem:[%s10632_s7] sm:$0xff] }
 0x1ee   : > { %v11965_v38 = vpop.f32.mrf.mxu0  ;;  %v11967_v21 = vpop.f32.mrf.mxu1  ;;  %9693 = vmatmul.mubr.msk.bf16.vlgmr.msra.gmra.mxu1 %vm593_vm2, %v11740_v23 }
 0x1ef   : > { %15879 = vst [vmem:[#allocation123_spill] sm:$0xff] %v11965_v38  ;;  %15880 = vst [vmem:[#allocation124_spill] sm:$0xff] %v11967_v21  ;;  %3637 = vmatpush1.bf16.msra.mxu1 %v3128_v55  ;;  %3558 = vmatprep.mubr.bf16.mxu1 %v15774_v11  ;;  %v11983_v21 = vshrl.u32 %v15883_v16, 7 }
 0x1f0   : > { %9704 = vmatprep.subr.msk.bf16.mxu1 %vm600_vm1, %v3051_v49  ;;  %v11976_v19 = vpop.f32.mrf.mxu0  ;;  %v11978_v41 = vpop.f32.mrf.mxu1  ;;  %9690 = vmatmul.mubr.msk.bf16.vlgmr.msra.gmra.mxu0 %vm593_vm2, %v11740_v23 }
 0x1f1   : > { %15881 = vst [vmem:[#allocation125_spill] sm:$0xff] %v11976_v19  ;;  %15882 = vst [vmem:[#allocation126_spill] sm:$0xff] %v11978_v41  ;;  %3584 = vmatpush1.bf16.msra.mxu0 %v3122_v35  ;;  %3505 = vmatprep.mubr.bf16.mxu0 %v15774_v11  ;;  %v11996_v41 = vsub.s32 %v3901_v36, %v11983_v21  ;;  %v3898_v19 = vcombine.high %v10452_v53, %v10452_v53 }
 0x1f2   : > { %15884 = vst [vmem:[#allocation127_spill] sm:$0xff] %v11983_v21  ;;  %v11986_v8 = vpop.f32.mrf.mxu0  ;;  %v11988_v55 = vpop.f32.mrf.mxu1  ;;  %9701 = vmatprep.subr.msk.bf16.mxu0 %vm600_vm1, %v3049_v46  ;;  %v3005_v35 = vsel %vm3003_vm5, %v10205_v18, %v3000_v28  ;;  %v15888_v46 = vunpack.i.h.bf16 %v11855_v26 }
 0x1f3   : > { %v3050_v18 = vpack.c.bf16 %v3005_v35, %v3005_v35  ;;  %v3912_v28 = vrot.slane %v3898_v19, %v11996_v41  ;;  %v3905_v43 = vrot.slane %v10452_v53, %v11996_v41 }
 0x1f4   : > { %v11991_v49 = vpop.f32.mrf.mxu0  ;;  %v11993_v0 = vpop.f32.mrf.mxu1  ;;  %v3007_v36 = vsel %vm3003_vm5, %v15888_v46, %v10204_v60 }
 0x1f5   : > { %15885 = vst [vmem:[#allocation128_spill] sm:$0xff] %v11993_v0  ;;  %v3048_v26 = vpack.c.bf16 %v3007_v36, %v3007_v36  ;;  %v3913_v36 = vcombine.high %v3905_v43, %v3905_v43 }
 0x1f6   : > { %v12001_v16 = vpop.f32.mrf.mxu0  ;;  %v12003_v38 = vpop.f32.mrf.mxu1  ;;  %9694 = vmatmul.mubr.msk.bf16.gmra.mxu1 %vm593_vm2, %v11778_v42 }
 0x1f7   : > { %15886 = vst [vmem:[#allocation129_spill] sm:$0xff] %v12001_v16  ;;  %15887 = vst [vmem:[#allocation130_spill] sm:$0xff] %v12003_v38  ;;  %3654 = vmatprep.mubr.bf16.mxu1 %v15774_v11  ;;  %v3134_v53 = vsel %vm600_vm1, %v3048_v26, 0 }
 0x1f8   : > { %v12012_v21 = vpop.f32.mrf.mxu0  ;;  %v12014_v0 = vpop.f32.mrf.mxu1  ;;  %9691 = vmatmul.mubr.msk.bf16.gmra.mxu0 %vm593_vm2, %v11778_v42 }
 0x1f9   : > { %15889 = vst [vmem:[#allocation131_spill] sm:$0xff] %v12012_v21  ;;  %15890 = vst [vmem:[#allocation132_spill] sm:$0xff] %v12014_v0  ;;  %3601 = vmatprep.mubr.bf16.mxu0 %v15774_v11  ;;  %v3140_v0 = vsel %vm600_vm1, %v3050_v18, 0  ;;  %v3914_v21 = vcombine.high %v3912_v28, %v3912_v28 }
 0x1fa   : > { %v12020_v38 = vpop.f32.mrf.mxu0  ;;  %v12022_v16 = vpop.f32.mrf.mxu1 }
 0x1fc   : > { %v12025_v60 = vpop.f32.mrf.mxu0  ;;  %v12027_v46 = vpop.f32.mrf.mxu1 }
 0x1fd   : > { %15891 = vst [vmem:[#allocation133_spill] sm:$0xff] %v12025_v60  ;;  %15892 = vst [vmem:[#allocation134_spill] sm:$0xff] %v12027_v46 }
 0x1fe   : > { %v12032_v19 = vpop.f32.mrf.mxu0  ;;  %v12034_v35 = vpop.f32.mrf.mxu1  ;;  %9699 = vmatmul.mubr.msk.bf16.vlgmr.msra.gmra.mxu1 %vm593_vm2, %v11740_v23 }
 0x1ff   : > { %15893 = vst [vmem:[#allocation135_spill] sm:$0xff] %v12032_v19  ;;  %15894 = vst [vmem:[#allocation136_spill] sm:$0xff] %v12034_v35  ;;  %3743 = vmatpush1.bf16.msra.mxu1 %v3140_v0  ;;  %3664 = vmatprep.mubr.bf16.mxu1 %v15774_v11 }
 0x200   : > { %v12040_v46 = vpop.f32.mrf.mxu0  ;;  %v12042_v18 = vpop.f32.mrf.mxu1  ;;  %9696 = vmatmul.mubr.msk.bf16.vlgmr.msra.gmra.mxu0 %vm593_vm2, %v11740_v23  ;;  %9716 = vmatprep.subr.msk.bf16.mxu1 %vm600_vm1, %v3914_v21 }
 0x201   : > { %15895 = vst [vmem:[#allocation137_spill] sm:$0xff] %v12040_v46  ;;  %15896 = vst [vmem:[#allocation138_spill] sm:$0xff] %v12042_v18  ;;  %3690 = vmatpush1.bf16.msra.mxu0 %v3134_v53  ;;  %3611 = vmatprep.mubr.bf16.mxu0 %v15774_v11  ;;  %v10453_v46 = vld [vmem:[%s10632_s7 + $0x8] sm:$0xff] }
 0x202   : > { %v12048_v17 = vpop.f32.mrf.mxu0  ;;  %v12050_v35 = vpop.f32.mrf.mxu1  ;;  %9713 = vmatprep.subr.msk.bf16.mxu0 %vm600_vm1, %v3913_v36  ;;  %v3915_v18 = vcombine.high %v10453_v46, %v10453_v46 }
 0x203   : > { %15897 = vst [vmem:[#allocation139_spill] sm:$0xff] %v12048_v17  ;;  %15898 = vst [vmem:[#allocation140_spill] sm:$0xff] %v12050_v35 }
 0x204   : > { %v12053_v0 = vpop.f32.mrf.mxu0  ;;  %v12055_v26 = vpop.f32.mrf.mxu1  ;;  %v3929_v36 = vrot.slane %v3915_v18, %v11996_v41 }
 0x205   : > { %15899 = vst [vmem:[#allocation141_spill] sm:$0xff] %v12053_v0  ;;  %15900 = vst [vmem:[#allocation142_spill] sm:$0xff] %v12055_v26 }
 0x206   : > { %v12058_v19 = vpop.f32.mrf.mxu0  ;;  %v12060_v60 = vpop.f32.mrf.mxu1  ;;  %9700 = vmatmul.mubr.msk.bf16.gmra.mxu1 %vm593_vm2, %v11778_v42 }
 0x207   : > { %15901 = vst [vmem:[#allocation143_spill] sm:$0xff] %v12058_v19  ;;  %15902 = vst [vmem:[#allocation144_spill] sm:$0xff] %v12060_v60  ;;  %3760 = vmatprep.mubr.bf16.mxu1 %v15774_v11  ;;  %v3922_v60 = vrot.slane %v10453_v46, %v11996_v41  ;;  %v4007_v46 = vsel %vm600_vm1, %v3905_v43, 0 }
 0x208   : > { %v12065_v21 = vpop.f32.mrf.mxu0  ;;  %v12067_v53 = vpop.f32.mrf.mxu1  ;;  %9697 = vmatmul.mubr.msk.bf16.gmra.mxu0 %vm593_vm2, %v11778_v42 }
 0x209   : > { %15903 = vst [vmem:[#allocation145_spill] sm:$0xff] %v12065_v21  ;;  %15904 = vst [vmem:[#allocation146_spill] sm:$0xff] %v12067_v53  ;;  %3707 = vmatprep.mubr.bf16.mxu0 %v15774_v11  ;;  %v4013_v21 = vsel %vm600_vm1, %v3912_v28, 0  ;;  %v3931_v53 = vcombine.high %v3929_v36, %v3929_v36 }
 0x20a   : > { %v12073_v26 = vpop.f32.mrf.mxu0  ;;  %v12075_v19 = vpop.f32.mrf.mxu1 }
 0x20b   : > { %15905 = vst [vmem:[#allocation147_spill] sm:$0xff] %v12075_v19  ;;  %v3930_v19 = vcombine.high %v3922_v60, %v3922_v60 }
 0x20c   : > { %v12078_v0 = vpop.f32.mrf.mxu0  ;;  %v12080_v35 = vpop.f32.mrf.mxu1 }
 0x20d   : > { %15906 = vst [vmem:[#allocation148_spill] sm:$0xff] %v12080_v35 }
 0x20e   : > { %v12085_v17 = vpop.f32.mrf.mxu0  ;;  %v12087_v18 = vpop.f32.mrf.mxu1  ;;  %9705 = vmatmul.mubr.msk.bf16.vlgmr.msra.gmra.mxu1 %vm593_vm2, %v11740_v23 }
 0x20f   : > { %15907 = vst [vmem:[#allocation149_spill] sm:$0xff] %v12085_v17  ;;  %15908 = vst [vmem:[#allocation150_spill] sm:$0xff] %v12087_v18  ;;  %3770 = vmatprep.mubr.bf16.mxu1 %v15774_v11  ;;  %4146 = vmatpush1.bf16.msra.mxu1 %v4013_v21 }
 0x210   : > { %v12093_v35 = vpop.f32.mrf.mxu0  ;;  %v12095_v28 = vpop.f32.mrf.mxu1  ;;  %9702 = vmatmul.mubr.msk.bf16.vlgmr.msra.gmra.mxu0 %vm593_vm2, %v11740_v23  ;;  %9722 = vmatprep.subr.msk.bf16.mxu1 %vm600_vm1, %v3931_v53 }
 0x211   : > { %15909 = vst [vmem:[#allocation151_spill] sm:$0xff] %v12093_v35  ;;  %15910 = vst [vmem:[#allocation152_spill] sm:$0xff] %v12095_v28  ;;  %4093 = vmatpush1.bf16.msra.mxu0 %v4007_v46  ;;  %3717 = vmatprep.mubr.bf16.mxu0 %v15774_v11  ;;  %v10454_v35 = vld [vmem:[%s10632_s7 + $0x10] sm:$0xff] }
 0x212   : > { %v12101_v7 = vpop.f32.mrf.mxu0  ;;  %v12103_v18 = vpop.f32.mrf.mxu1  ;;  %9719 = vmatprep.subr.msk.bf16.mxu0 %vm600_vm1, %v3930_v19  ;;  %v3932_v28 = vcombine.high %v10454_v35, %v10454_v35 }
 0x213   : > { %15911 = vst [vmem:[#allocation153_spill] sm:$0xff] %v12103_v18 }
 0x214   : > { %v12106_v43 = vpop.f32.mrf.mxu0  ;;  %v12108_v21 = vpop.f32.mrf.mxu1  ;;  %v12125_v19 = vrot.slane %v3932_v28, %v11996_v41  ;;  %v4025_v28 = vsel %vm600_vm1, %v3929_v36, 0 }
 0x215   : > { %15912 = vst [vmem:[#allocation154_spill] sm:$0xff] %v12106_v43  ;;  %15913 = vst [vmem:[#allocation155_spill] sm:$0xff] %v12108_v21  ;;  %v12135_v21 = vld [vmem:[%s15693_s1 + $0x40] sm:$0xff]  }
 0x216   : > { %v12111_v17 = vpop.f32.mrf.mxu0  ;;  %v12113_v23 = vpop.f32.mrf.mxu1  ;;  %9706 = vmatmul.mubr.msk.bf16.gmra.mxu1 %vm593_vm2, %v11778_v42  ;;  %v3948_v43 = vcombine.high %v12125_v19, %v12125_v19 }
 0x217   : > { %15914 = vst [vmem:[#allocation156_spill] sm:$0xff] %v12111_v17  ;;  %15915 = vst [vmem:[#allocation157_spill] sm:$0xff] %v12113_v23  ;;  %4163 = vmatprep.mubr.bf16.mxu1 %v15774_v11 }
 0x218   : > { %v12118_v53 = vpop.f32.mrf.mxu0  ;;  %v12120_v46 = vpop.f32.mrf.mxu1  ;;  %9703 = vmatmul.mubr.msk.bf16.gmra.mxu0 %vm593_vm2, %v11778_v42 }
 0x219   : > { %15916 = vst [vmem:[#allocation158_spill] sm:$0xff] %v12118_v53  ;;  %15917 = vst [vmem:[#allocation159_spill] sm:$0xff] %v12120_v46  ;;  %4110 = vmatprep.mubr.bf16.mxu0 %v15774_v11  ;;  %v12138_v53 = vrot.slane %v10454_v35, %v11996_v41  ;;  %v4019_v35 = vsel %vm600_vm1, %v3922_v60, 0 }
 0x21a   : > { %v12128_v17 = vpop.f32.mrf.mxu0  ;;  %v12130_v23 = vpop.f32.mrf.mxu1 }
 0x21b   : > { %15918 = vst [vmem:[#allocation160_spill] sm:$0xff] %v12128_v17  ;;  %15919 = vst [vmem:[#allocation161_spill] sm:$0xff] %v12130_v23  ;;  %v1485_v23 = vadd.f32 %v11757_v34, %v11288_v57  ;;  %v3947_v36 = vcombine.high %v12138_v53, %v12138_v53  ;;  %v1487_v57 = vadd.f32 %v11765_v20, %v11296_v54 }
 0x21c   : > { %v12140_v46 = vpop.f32.mrf.mxu0  ;;  %v12142_v42 = vpop.f32.mrf.mxu1 }
 0x21d   : > { %15920 = vst [vmem:[#allocation162_spill] sm:$0xff] %v12140_v46  ;;  %15921 = vst [vmem:[#allocation163_spill] sm:$0xff] %v12142_v42  ;;  %v1432_v42 = vadd.f32 %v11763_v39, %v11294_v63  ;;  %v1489_v63 = vadd.f32 %v11773_v14, %v11304_v48  ;;  %v1436_v48 = vadd.f32 %v11785_v6, %v11320_v10 }
 0x21e   : > { %v12151_v17 = vpop.f32.mrf.mxu0  ;;  %v2310_v18 = vpop.f32.mrf.mxu1  ;;  %9717 = vmatmul.mubr.msk.bf16.vlgmr.msra.gmra.mxu1 %vm593_vm2, %v12135_v21  ;;  %v1495_v10 = vadd.f32 %v11797_v27, %v11334_v59  ;;  %v1444_v59 = vadd.f32 %v11819_v37, %v11362_v22 }
 0x21f   : > { %15922 = vst [vmem:[#allocation164_spill] sm:$0xff] %v12151_v17  ;;  %v12162_v34 = vadd.f32 %v2310_v18, %v1485_v23  ;;  %4173 = vmatprep.mubr.bf16.mxu1 %v15774_v11  ;;  %4252 = vmatpush1.bf16.msra.mxu1 %v4025_v28  ;;  %v1438_v18 = vadd.f32 %v11795_v29, %v11332_v58 }
 0x220   : > { %v2257_v17 = vpop.f32.mrf.mxu0  ;;  %v2312_v46 = vpop.f32.mrf.mxu1  ;;  %9714 = vmatmul.mubr.msk.bf16.vlgmr.msra.gmra.mxu0 %vm593_vm2, %v12135_v21  ;;  %9728 = vmatprep.subr.msk.bf16.mxu1 %vm600_vm1, %v3948_v43  ;;  %v1442_v58 = vadd.f32 %v11806_v12, %v11347_v5  ;;  %v1497_v29 = vadd.f32 %v11808_v45, %v11349_v9  ;;  %v1499_v5 = vadd.f32 %v11821_v61, %v11364_v56 }
 0x221   : > { %v12172_v39 = vadd.f32 %v2257_v17, %v1432_v42  ;;  %v12174_v54 = vadd.f32 %v2312_v46, %v1487_v57  ;;  %4199 = vmatpush1.bf16.msra.mxu0 %v4019_v35  ;;  %4120 = vmatprep.mubr.bf16.mxu0 %v15774_v11  ;;  %v1491_v17 = vadd.f32 %v11787_v51, %v11322_v40  ;;  %v10455_v46 = vld [vmem:[%s10632_s7 + $0x18] sm:$0xff] }
 0x222   : > { %v2259_v20 = vpop.f32.mrf.mxu0  ;;  %v2314_v44 = vpop.f32.mrf.mxu1  ;;  %9725 = vmatprep.subr.msk.bf16.mxu0 %vm600_vm1, %v3947_v36  ;;  %v3949_v42 = vcombine.high %v10455_v46, %v10455_v46  ;;  %v12232_v37 = vrot.slane %v10455_v46, %v11996_v41 }
 0x223   : > { %v12189_v14 = vadd.f32 %v2259_v20, %v1434_v31  ;;  %v12191_v60 = vadd.f32 %v2314_v44, %v1489_v63  ;;  %v1446_v63 = vadd.f32 %v11825_v30, %v11370_v52  ;;  %v1501_v20 = vadd.f32 %v11827_v47, %v11372_v50  ;;  %v15924_v30 = vld [vmem:[#allocation9_spill] sm:$0xff] }
 0x224   : > { %v2261_v43 = vpop.f32.mrf.mxu0  ;;  %v2316_v23 = vpop.f32.mrf.mxu1  ;;  %v12220_v57 = vrot.slane %v3949_v42, %v11996_v41  ;;  %v15925_v50 = vld [vmem:[#allocation97_spill] sm:$0xff]  ;;  %v15926_v42 = vld [vmem:[#allocation11_spill] sm:$0xff] }
 0x225   : > { %v12200_v6 = vadd.f32 %v2261_v43, %v1436_v48  ;;  %v12202_v40 = vadd.f32 %v2316_v23, %v1491_v17  ;;  %v4037_v17 = vsel %vm600_vm1, %v12125_v19, 0  ;;  %v15923_v43 = vld [vmem:[#allocation8_spill] sm:$0xff]  ;;  %v1591_v47 = vadd.f32 %v15925_v50, %v15924_v30 }
 0x226   : > { %v2263_v51 = vpop.f32.mrf.mxu0  ;;  %v2320_v31 = vpop.f32.mrf.mxu1  ;;  %9718 = vmatmul.mubr.msk.bf16.gmra.mxu1 %vm593_vm2, %v12180_v4  ;;  %v1448_v52 = vadd.f32 %v11832_v13, %v15923_v43  ;;  %v3964_v13 = vcombine.high %v12232_v37, %v12232_v37 }
 0x227   : > { %v12210_v28 = vadd.f32 %v2263_v51, %v1438_v18  ;;  %v12212_v35 = vadd.f32 %v2320_v31, %v1495_v10  ;;  %4269 = vmatprep.mubr.bf16.mxu1 %v15774_v11  ;;  %v3965_v18 = vcombine.high %v12220_v57, %v12220_v57  ;;  %v15927_v10 = vld [vmem:[#allocation98_spill] sm:$0xff] }
 0x228   : > { %v2267_v27 = vpop.f32.mrf.mxu0  ;;  %v2322_v36 = vpop.f32.mrf.mxu1  ;;  %9715 = vmatmul.mubr.msk.bf16.gmra.mxu0 %vm593_vm2, %v12180_v4  ;;  %v1538_v51 = vadd.f32 %v15927_v10, %v15926_v42  ;;  %v15936_v42 = vld [vmem:[#allocation16_spill] sm:$0xff] }
 0x229   : > { %v12226_v9 = vadd.f32 %v2267_v27, %v1442_v58  ;;  %v12228_v45 = vadd.f32 %v2322_v36, %v1497_v29  ;;  %4216 = vmatprep.mubr.bf16.mxu0 %v15774_v11  ;;  %v4031_v58 = vsel %vm600_vm1, %v12138_v53, 0  ;;  %v15928_v29 = vld [vmem:[#allocation12_spill] sm:$0xff]  ;;  %v15932_v53 = vld [vmem:[#allocation14_spill] sm:$0xff] }
 0x22a   : > { %v2269_v22 = vpop.f32.mrf.mxu0  ;;  %v2324_v12 = vpop.f32.mrf.mxu1 }
 0x22b   : > { %v12238_v44 = vadd.f32 %v2269_v22, %v1444_v59  ;;  %v12240_v56 = vadd.f32 %v2324_v12, %v1499_v5  ;;  %v15929_v59 = vld [vmem:[#allocation99_spill] sm:$0xff]  ;;  %v15930_v22 = vld [vmem:[#allocation13_spill] sm:$0xff]  ;;  %v15931_v12 = vld [vmem:[#allocation100_spill] sm:$0xff] }
 0x22c   : > { %v2271_v61 = vpop.f32.mrf.mxu0  ;;  %v2326_v48 = vpop.f32.mrf.mxu1  ;;  %v1593_v27 = vadd.f32 %v15929_v59, %v15928_v29 }
 0x22d   : > { %v12252_v23 = vadd.f32 %v2271_v61, %v1446_v63  ;;  %v12254_v46 = vadd.f32 %v2326_v48, %v1501_v20  ;;  %v1540_v63 = vadd.f32 %v15931_v12, %v15930_v22  ;;  %v15933_v48 = vld [vmem:[#allocation101_spill] sm:$0xff] }
 0x22e   : > { %v2273_v19 = vpop.f32.mrf.mxu0  ;;  %v2416_v31 = vpop.f32.mrf.mxu1  ;;  %9723 = vmatmul.mubr.msk.bf16.vlgmr.msra.gmra.mxu1 %vm593_vm2, %v12135_v21  ;;  %v1595_v43 = vadd.f32 %v15933_v48, %v15932_v53  ;;  %v10456_v22 = vld [vmem:[%s10632_s7 + $0x20] sm:$0xff]  ;;  %v15943_v53 = vld [vmem:[#allocation19_spill] sm:$0xff] }
 0x22f   : > { %v12266_v36 = vadd.f32 %v2273_v19, %v1448_v52  ;;  %v12268_v5 = vadd.f32 %v2416_v31, %v1591_v47  ;;  %4279 = vmatprep.mubr.bf16.mxu1 %v15774_v11  ;;  %4358 = vmatpush1.bf16.msra.mxu1 %v4037_v17  ;;  %v15935_v47 = vld [vmem:[#allocation10_spill] sm:$0xff]  ;;  %v15938_v19 = vld [vmem:[#allocation17_spill] sm:$0xff]  ;;  %v15939_v31 = vld [vmem:[#allocation103_spill] sm:$0xff]  ;;  %v3966_v12 = vcombine.high %v10456_v22, %v10456_v22 }
 0x230   : > { %v2363_v20 = vpop.f32.mrf.mxu0  ;;  %v2418_v61 = vpop.f32.mrf.mxu1  ;;  %9720 = vmatmul.mubr.msk.bf16.vlgmr.msra.gmra.mxu0 %vm593_vm2, %v12135_v21  ;;  %9734 = vmatprep.subr.msk.bf16.mxu1 %vm600_vm1, %v3965_v18  ;;  %v15937_v18 = vld [vmem:[#allocation102_spill] sm:$0xff]  ;;  %v1597_v29 = vadd.f32 %v15939_v31, %v15938_v19  ;;  %v15944_v48 = vld [vmem:[#allocation105_spill] sm:$0xff] }
 0x231   : > { %v12278_v52 = vadd.f32 %v2363_v20, %v1538_v51  ;;  %v12280_v30 = vadd.f32 %v2418_v61, %v1593_v27  ;;  %4305 = vmatpush1.bf16.msra.mxu0 %v4031_v58  ;;  %4226 = vmatprep.mubr.bf16.mxu0 %v15774_v11  ;;  %v1542_v10 = vadd.f32 %v15937_v18, %v15936_v42  ;;  %v15941_v20 = vld [vmem:[#allocation18_spill] sm:$0xff]  ;;  %v15942_v61 = vld [vmem:[#allocation104_spill] sm:$0xff] }
 0x232   : > { %v2365_v17 = vpop.f32.mrf.mxu0  ;;  %v2420_v50 = vpop.f32.mrf.mxu1  ;;  %9731 = vmatprep.subr.msk.bf16.mxu0 %vm600_vm1, %v3964_v13  ;;  %10342 = vrot.lane.b32.xlu0 %v15935_v47, %s10544_s29  ;;  %v1544_v13 = vadd.f32 %v15942_v61, %v15941_v20  ;;  %v1601_v47 = vadd.f32 %v15944_v48, %v15943_v53  ;;  %v15949_v31 = vld [vmem:[#allocation22_spill] sm:$0xff]  ;;  %v15950_v20 = vld [vmem:[#allocation107_spill] sm:$0xff]  ;;  %v15954_v48 = vld [vmem:[#allocation108_spill] sm:$0xff] }
 0x233   : > { %15934 = vst [vmem:[#allocation8_spill] sm:$0xff] %v12280_v30  ;;  %v12290_v51 = vadd.f32 %v2365_v17, %v1540_v63  ;;  %v12292_v59 = vadd.f32 %v2420_v50, %v1595_v43  ;;  %v15946_v63 = vld [vmem:[#allocation15_spill] sm:$0xff]  ;;  %v15947_v43 = vld [vmem:[#allocation21_spill] sm:$0xff]  ;;  %v15948_v17 = vld [vmem:[#allocation106_spill] sm:$0xff]  ;;  %v1603_v61 = vadd.f32 %v15950_v20, %v15949_v31 }
 0x234   : > { %v2367_v58 = vpop.f32.mrf.mxu0  ;;  %v2422_v27 = vpop.f32.mrf.mxu1  ;;  %v1548_v50 = vadd.f32 %v15948_v17, %v15947_v43  ;;  %v15953_v53 = vld [vmem:[#allocation23_spill] sm:$0xff]  ;;  %v15955_v17 = vld [vmem:[#allocation24_spill] sm:$0xff] }
 0x235   : > { %15940 = vst [vmem:[#allocation9_spill] sm:$0xff] %v12292_v59  ;;  %v12299_v30 = vadd.f32 %v2367_v58, %v1542_v10  ;;  %v12301_v42 = vadd.f32 %v2422_v27, %v1597_v29  ;;  %v12319_v27 = vrot.slane %v3966_v12, %v11996_v41  ;;  %v1550_v43 = vadd.f32 %v15954_v48, %v15953_v53  ;;  %v15960_v53 = vld [vmem:[#allocation27_spill] sm:$0xff]  ;;  %v15961_v48 = vld [vmem:[#allocation109_spill] sm:$0xff] }
 0x236   : > { %v2369_v18 = vpop.f32.mrf.mxu0  ;;  %v2426_v19 = vpop.f32.mrf.mxu1  ;;  %9724 = vmatmul.mubr.msk.bf16.gmra.mxu1 %vm593_vm2, %v12180_v4  ;;  %10352 = vrot.lane.b32.xlu0 %v15946_v63, %s10544_s29  ;;  %v1605_v31 = vadd.f32 %v11891_v25, %v15955_v17  ;;  %v12333_v12 = vrot.slane %v10456_v22, %v11996_v41  ;;  %v1607_v25 = vadd.f32 %v15961_v48, %v15960_v53  ;;  %v15964_v22 = vld [vmem:[#allocation28_spill] sm:$0xff] }
 0x237   : > { %15945 = vst [vmem:[#allocation97_spill] sm:$0xff] %v12301_v42  ;;  %v12311_v59 = vadd.f32 %v2369_v18, %v1544_v13  ;;  %v12313_v10 = vadd.f32 %v2426_v19, %v1601_v47  ;;  %4375 = vmatprep.mubr.bf16.mxu1 %v15774_v11  ;;  %v15958_v18 = vld [vmem:[#allocation26_spill] sm:$0xff]  ;;  %v3982_v17 = vcombine.high %v12319_v27, %v12319_v27 }
 0x238   : > { %v2373_v29 = vpop.f32.mrf.mxu0  ;;  %v2428_v58 = vpop.f32.mrf.mxu1  ;;  %9721 = vmatmul.mubr.msk.bf16.gmra.mxu0 %vm593_vm2, %v12180_v4  ;;  %v1552_v19 = vadd.f32 %v11897_v32, %v15958_v18  ;;  %v4049_v32 = vsel %vm600_vm1, %v12220_v57, 0  ;;  %v15965_v18 = vld [vmem:[#allocation110_spill] sm:$0xff] }
 0x239   : > { %15951 = vst [vmem:[#allocation11_spill] sm:$0xff] %v12311_v59  ;;  %15952 = vst [vmem:[#allocation98_spill] sm:$0xff] %v12313_v10  ;;  %v12325_v13 = vadd.f32 %v2373_v29, %v1548_v50  ;;  %v12327_v47 = vadd.f32 %v2428_v58, %v1603_v61  ;;  %4322 = vmatprep.mubr.bf16.mxu0 %v15774_v11  ;;  %v15959_v59 = vld [vmem:[#allocation20_spill] sm:$0xff] }
 0x23a   : > { %v2375_v20 = vpop.f32.mrf.mxu0  ;;  %v2430_v10 = vpop.f32.mrf.mxu1  ;;  %10362 = vrot.lane.b32.xlu0 %v15959_v59, %s10544_s29  ;;  %v15967_v59 = vld [vmem:[#allocation111_spill] sm:$0xff] }
 0x23b   : > { %15956 = vst [vmem:[#allocation12_spill] sm:$0xff] %v12325_v13  ;;  %15957 = vst [vmem:[#allocation99_spill] sm:$0xff] %v12327_v47  ;;  %v12339_v50 = vadd.f32 %v2375_v20, %v1550_v43  ;;  %v12341_v61 = vadd.f32 %v2430_v10, %v1605_v31  ;;  %v1554_v47 = vadd.f32 %v15965_v18, %v15964_v22  ;;  %v15966_v13 = vld [vmem:[#allocation29_spill] sm:$0xff]  ;;  %v15971_v31 = vld [vmem:[#allocation30_spill] sm:$0xff]  ;;  %v4043_v22 = vsel %vm600_vm1, %v12232_v37, 0 }
 0x23c   : > { %v2377_v29 = vpop.f32.mrf.mxu0  ;;  %v2432_v58 = vpop.f32.mrf.mxu1  ;;  %v1697_v63 = vadd.f32 %v15967_v59, %v15966_v13  ;;  %v15970_v10 = vld [vmem:[#allocation25_spill] sm:$0xff]  ;;  %v15972_v20 = vld [vmem:[#allocation112_spill] sm:$0xff]  ;;  %v3981_v59 = vcombine.high %v12333_v12, %v12333_v12  ;;  %v15973_v13 = vld [vmem:[#allocation6_spill] sm:$0xff] }
 0x23d   : > { %15962 = vst [vmem:[#allocation13_spill] sm:$0xff] %v12339_v50  ;;  %15963 = vst [vmem:[#allocation100_spill] sm:$0xff] %v12341_v61  ;;  %v12351_v42 = vadd.f32 %v2377_v29, %v1552_v19  ;;  %v12353_v43 = vadd.f32 %v2432_v58, %v1607_v25  ;;  %10327 = vrot.lane.b32.xlu1 %v15970_v10, %s10544_s29  ;;  %v1644_v53 = vadd.f32 %v15972_v20, %v15971_v31  ;;  %v15974_v19 = vld [vmem:[#allocation31_spill] sm:$0xff]  ;;  %v15975_v25 = vld [vmem:[#allocation113_spill] sm:$0xff] }
 0x23e   : > { %v2379_v57 = vpop.f32.mrf.mxu0  ;;  %v2522_v48 = vpop.f32.mrf.mxu1  ;;  %9729 = vmatmul.mubr.msk.bf16.vlgmr.msra.gmra.mxu1 %vm593_vm2, %v12135_v21  ;;  %6700 = vrot.lane.b32.xlu0 %v15973_v13, %s10544_s29  ;;  %v1699_v29 = vadd.f32 %v15975_v25, %v15974_v19  ;;  %v15978_v31 = vld [vmem:[#allocation32_spill] sm:$0xff]  ;;  %v15979_v20 = vld [vmem:[#allocation114_spill] sm:$0xff]  ;;  %v15980_v13 = vld [vmem:[#allocation33_spill] sm:$0xff] }
 0x23f   : > { %15968 = vst [vmem:[#allocation14_spill] sm:$0xff] %v12351_v42  ;;  %15969 = vst [vmem:[#allocation101_spill] sm:$0xff] %v12353_v43  ;;  %v12369_v58 = vadd.f32 %v2379_v57, %v1554_v47  ;;  %v12371_v18 = vadd.f32 %v2522_v48, %v1697_v63  ;;  %4385 = vmatprep.mubr.bf16.mxu1 %v15774_v11  ;;  %4464 = vmatpush1.bf16.msra.mxu1 %v4049_v32  ;;  %v15981_v19 = vld [vmem:[#allocation115_spill] sm:$0xff]  ;;  %v15984_v25 = vld [vmem:[#allocation34_spill] sm:$0xff] }
 0x240   : > { %v1646_v10 = vadd.f32 %v15979_v20, %v15978_v31  ;;  %v2469_v37 = vpop.f32.mrf.mxu0  ;;  %v2524_v43 = vpop.f32.mrf.mxu1  ;;  %9726 = vmatmul.mubr.msk.bf16.vlgmr.msra.gmra.mxu0 %vm593_vm2, %v12135_v21  ;;  %9740 = vmatprep.subr.msk.bf16.mxu1 %vm600_vm1, %v3982_v17  ;;  %v1701_v47 = vadd.f32 %v15981_v19, %v15980_v13  ;;  %v15985_v31 = vld [vmem:[#allocation116_spill] sm:$0xff]  ;;  %v15991_v19 = vld [vmem:[#allocation118_spill] sm:$0xff]  ;;  %v15993_v61 = vld [vmem:[#allocation119_spill] sm:$0xff] }
 0x241   : > { %15976 = vst [vmem:[#allocation16_spill] sm:$0xff] %v12369_v58  ;;  %15977 = vst [vmem:[#allocation102_spill] sm:$0xff] %v12371_v18  ;;  %v12381_v57 = vadd.f32 %v2469_v37, %v1644_v53  ;;  %v12383_v63 = vadd.f32 %v2524_v43, %v1699_v29  ;;  %4411 = vmatpush1.bf16.msra.mxu0 %v4043_v22  ;;  %4332 = vmatprep.mubr.bf16.mxu0 %v15774_v11  ;;  %v15986_v18 = vld [vmem:[#allocation35_spill] sm:$0xff]  ;;  %v15987_v58 = vld [vmem:[#allocation117_spill] sm:$0xff] }
 0x242   : > { %v2471_v32 = vpop.f32.mrf.mxu0  ;;  %v2526_v48 = vpop.f32.mrf.mxu1  ;;  %9737 = vmatprep.subr.msk.bf16.mxu0 %vm600_vm1, %v3981_v59  ;;  %v1648_v20 = vadd.f32 %v15985_v31, %v15984_v25  ;;  %v1703_v17 = vadd.f32 %v15987_v58, %v15986_v18  ;;  %v10457_v29 = vld [vmem:[%s10632_s7 + $0x28] sm:$0xff]  ;;  %v15990_v37 = vld [vmem:[#allocation36_spill] sm:$0xff]  ;;  %7580 = vrot.lane.b32.xlu0 %v10637_v3, %s10545_s8  ;;  %s9917_s7 = sshll.u32 %s10526_s18, 4  ;;  %s10546_s18 = smov [#allocation3]  }
 0x243   : > { %15982 = vst [vmem:[#allocation17_spill] sm:$0xff] %v12381_v57  ;;  %15983 = vst [vmem:[#allocation103_spill] sm:$0xff] %v12383_v63  ;;  %v12391_v42 = vadd.f32 %v2471_v32, %v1646_v10  ;;  %v12393_v13 = vadd.f32 %v2526_v48, %v1701_v47  ;;  %v3983_v22 = vcombine.high %v10457_v29, %v10457_v29  ;;  %v15992_v57 = vld [vmem:[#allocation37_spill] sm:$0xff]  ;;  %v15994_v10 = vld [vmem:[#allocation38_spill] sm:$0xff]  ;;  %s15652_s9 = scalar_lea.hbm %s15696_s4, %s9917_s7  ;;  %s10462_s12 = sshll.u32 %s10546_s18, 4  ;;  %s10463_s12 = int_to_ptr.vmem [resolvable:$false] %s10462_s12 }
 0x244   : > { %v2473_v53 = vpop.f32.mrf.mxu0  ;;  %v2528_v43 = vpop.f32.mrf.mxu1  ;;  %v1650_v63 = vadd.f32 %v15991_v19, %v15990_v37  ;;  %v1707_v59 = vadd.f32 %v15993_v61, %v15992_v57  ;;  %v15995_v18 = vld [vmem:[#allocation120_spill] sm:$0xff]  ;;  %v15996_v32 = vld [vmem:[#allocation39_spill] sm:$0xff]  ;;  %v15997_v48 = vld [vmem:[#allocation121_spill] sm:$0xff]  ;;  %s10464_s13 = scalar_lea.vmem %s10463_s12, 32 }
 0x245   : > { %15988 = vst [vmem:[#allocation18_spill] sm:$0xff] %v12391_v42  ;;  %15989 = vst [vmem:[#allocation104_spill] sm:$0xff] %v12393_v13  ;;  %v12400_v50 = vadd.f32 %v2473_v53, %v1648_v20  ;;  %v12402_v25 = vadd.f32 %v2528_v43, %v1703_v17  ;;  %v1654_v47 = vadd.f32 %v15995_v18, %v15994_v10  ;;  %v15998_v17 = vld [vmem:[#allocation40_spill] sm:$0xff]  ;;  %v15999_v53 = vld [vmem:[#allocation122_spill] sm:$0xff] }
 0x246   : > { %v2475_v31 = vpop.f32.mrf.mxu0  ;;  %v2532_v58 = vpop.f32.mrf.mxu1  ;;  %9730 = vmatmul.mubr.msk.bf16.gmra.mxu1 %vm593_vm2, %v12180_v4  ;;  %v1709_v13 = vadd.f32 %v15997_v48, %v15996_v32  ;;  %v12418_v20 = vrot.slane %v3983_v22, %v11996_v41  ;;  %v1656_v43 = vadd.f32 %v15999_v53, %v15998_v17  ;;  %v16000_v19 = vld [vmem:[#allocation41_spill] sm:$0xff]  ;;  %v12430_v18 = vrot.slane %v10457_v29, %v11996_v41  ;;  %v16003_v32 = vld [vmem:[#allocation43_spill] sm:$0xff]  ;;  %v16004_v48 = vld [vmem:[#allocation44_spill] sm:$0xff] }
 0x247   : > { %v12410_v42 = vadd.f32 %v2475_v31, %v1650_v63  ;;  %v12412_v37 = vadd.f32 %v2532_v58, %v1707_v59  ;;  %4481 = vmatprep.mubr.bf16.mxu1 %v15774_v11  ;;  %v1711_v10 = vadd.f32 %v11953_v2, %v16000_v19  ;;  %v1658_v22 = vadd.f32 %v11960_v62, %v16003_v32  ;;  %v16007_v41 = vld [vmem:[#allocation45_spill] sm:$0xff]  ;;  %v16008_v29 = vld [vmem:[#allocation123_spill] sm:$0xff]  ;;  %v16010_v62 = vld [vmem:[#allocation124_spill] sm:$0xff] }
 0x248   : > { %v2479_v61 = vpop.f32.mrf.mxu0  ;;  %v2534_v57 = vpop.f32.mrf.mxu1  ;;  %9727 = vmatmul.mubr.msk.bf16.gmra.mxu0 %vm593_vm2, %v12180_v4  ;;  %v1713_v17 = vadd.f32 %v11962_v24, %v16004_v48  ;;  %v1660_v19 = vadd.f32 %v16008_v29, %v16007_v41  ;;  %v4055_v41 = vsel %vm600_vm1, %v12333_v12, 0 }
 0x249   : > { %v12424_v63 = vadd.f32 %v2479_v61, %v1654_v47  ;;  %v12426_v59 = vadd.f32 %v2534_v57, %v1709_v13  ;;  %4428 = vmatprep.mubr.bf16.mxu0 %v15774_v11  ;;  %v4061_v61 = vsel %vm600_vm1, %v12319_v27, 0  ;;  %v3999_v57 = vcombine.high %v12418_v20, %v12418_v20 }
 0x24a   : > { %v2481_v31 = vpop.f32.mrf.mxu0  ;;  %v2536_v58 = vpop.f32.mrf.mxu1 }
 0x24b   : > { %16001 = vst [vmem:[#allocation19_spill] sm:$0xff] %v12424_v63  ;;  %16002 = vst [vmem:[#allocation105_spill] sm:$0xff] %v12426_v59  ;;  %v12436_v53 = vadd.f32 %v2481_v31, %v1656_v43  ;;  %v12438_v2 = vadd.f32 %v2536_v58, %v1711_v10  ;;  %v16009_v59 = vld [vmem:[#allocation46_spill] sm:$0xff]  ;;  %v12452_v43 = vpop.permute.xlu0 %10207  ;;  %v16013_v10 = vld [vmem:[#allocation47_spill] sm:$0xff] }
 0x24c   : > { %v2483_v47 = vpop.f32.mrf.mxu0  ;;  %v2538_v13 = vpop.f32.mrf.mxu1  ;;  %v1803_v32 = vadd.f32 %v16010_v62, %v16009_v59  ;;  %v16014_v31 = vld [vmem:[#allocation125_spill] sm:$0xff]  ;;  %v3998_v59 = vcombine.high %v12430_v18, %v12430_v18 }
 0x24d   : > { %16005 = vst [vmem:[#allocation21_spill] sm:$0xff] %v12436_v53  ;;  %16006 = vst [vmem:[#allocation106_spill] sm:$0xff] %v12438_v2  ;;  %v12448_v63 = vadd.f32 %v2483_v47, %v1658_v22  ;;  %v12450_v24 = vadd.f32 %v2538_v13, %v1713_v17  ;;  %v1750_v58 = vadd.f32 %v16014_v31, %v16013_v10  ;;  %v16015_v22 = vld [vmem:[#allocation42_spill] sm:$0xff]  ;;  %v16016_v17 = vld [vmem:[#allocation48_spill] sm:$0xff] }
 0x24e   : > { %v2485_v48 = vpop.f32.mrf.mxu0  ;;  %v2628_v27 = vpop.f32.mrf.mxu1  ;;  %9735 = vmatmul.mubr.msk.bf16.vlgmr.msra.gmra.mxu1 %vm593_vm2, %v12135_v21  ;;  %10337 = vrot.lane.b32.xlu1 %v16015_v22, %s10544_s29  ;;  %v16017_v47 = vld [vmem:[#allocation126_spill] sm:$0xff]  ;;  %v16020_v10 = vld [vmem:[#allocation49_spill] sm:$0xff] }
 0x24f   : > { %16011 = vst [vmem:[#allocation22_spill] sm:$0xff] %v12448_v63  ;;  %16012 = vst [vmem:[#allocation107_spill] sm:$0xff] %v12450_v24  ;;  %v1805_v13 = vadd.f32 %v16017_v47, %v16016_v17  ;;  %v12466_v29 = vadd.f32 %v2485_v48, %v1660_v19  ;;  %v12468_v62 = vadd.f32 %v2628_v27, %v1803_v32  ;;  %4491 = vmatprep.mubr.bf16.mxu1 %v15774_v11  ;;  %v16021_v22 = vld [vmem:[#allocation50_spill] sm:$0xff]  ;;  %v16025_v47 = vld [vmem:[#allocation52_spill] sm:$0xff] }
 0x250   : > { %4570 = vmatpush1.bf16.msra.mxu1 %v4061_v61  ;;  %v1752_v31 = vadd.f32 %v11986_v8, %v16020_v10  ;;  %v2575_v12 = vpop.f32.mrf.mxu0  ;;  %v2630_v24 = vpop.f32.mrf.mxu1  ;;  %9732 = vmatmul.mubr.msk.bf16.vlgmr.msra.gmra.mxu0 %vm593_vm2, %v12135_v21  ;;  %v1807_v17 = vadd.f32 %v11988_v55, %v16021_v22  ;;  %v16024_v8 = vld [vmem:[#allocation51_spill] sm:$0xff]  ;;  %v16026_v10 = vld [vmem:[#allocation128_spill] sm:$0xff] }
 0x251   : > { %16018 = vst [vmem:[#allocation23_spill] sm:$0xff] %v12466_v29  ;;  %16019 = vst [vmem:[#allocation108_spill] sm:$0xff] %v12468_v62  ;;  %9746 = vmatprep.subr.msk.bf16.mxu1 %vm600_vm1, %v3999_v57  ;;  %v12478_v19 = vadd.f32 %v2575_v12, %v1750_v58  ;;  %v12480_v32 = vadd.f32 %v2630_v24, %v1805_v13  ;;  %4517 = vmatpush1.bf16.msra.mxu0 %v4055_v41  ;;  %v12492_v58 = vpop.permute.xlu0 %10212  ;;  %v16029_v22 = vld [vmem:[#allocation7_spill] sm:$0xff]  ;;  %v16030_v12 = vld [vmem:[#allocation53_spill] sm:$0xff] }
 0x252   : > { %4438 = vmatprep.mubr.bf16.mxu0 %v15774_v11  ;;  %v2577_v61 = vpop.f32.mrf.mxu0  ;;  %v2632_v48 = vpop.f32.mrf.mxu1  ;;  %9743 = vmatprep.subr.msk.bf16.mxu0 %vm600_vm1, %v3998_v59  ;;  %v1754_v27 = vadd.f32 %v11991_v49, %v16024_v8  ;;  %v1809_v57 = vadd.f32 %v16026_v10, %v16025_v47  ;;  %vm4858_vm6 = vcmp.lt.s32.totalorder %v16029_v22, 127  ;;  %v16032_v8 = vld [vmem:[#allocation54_spill] sm:$0xff]  ;;  %v16036_v13 = vld [vmem:[#allocation55_spill] sm:$0xff]  ;;  %v16039_v29 = vld [vmem:[#allocation132_spill] sm:$0xff]  ;;  %vm5780_vm7 = vcmp.lt.s32.totalorder %v16029_v22, 111 }
 0x253   : > { %16022 = vst [vmem:[#allocation24_spill] sm:$0xff] %v12478_v19  ;;  %16023 = vst [vmem:[#allocation26_spill] sm:$0xff] %v12480_v32  ;;  %v12488_v62 = vadd.f32 %v2577_v61, %v1752_v31  ;;  %v12490_v55 = vadd.f32 %v2632_v48, %v1807_v17  ;;  %v16031_v32 = vld [vmem:[#allocation129_spill] sm:$0xff]  ;;  %v16033_v19 = vld [vmem:[#allocation130_spill] sm:$0xff]  ;;  %vm6702_vm8 = vcmp.lt.s32.totalorder %v16029_v22, 110  ;;  %vm7624_vm9 = vcmp.lt.s32.totalorder %v16029_v22, 109 }
 0x254   : > { %v2579_v24 = vpop.f32.mrf.mxu0  ;;  %v2634_v41 = vpop.f32.mrf.mxu1  ;;  %v1756_v49 = vadd.f32 %v16031_v32, %v16030_v12  ;;  %v1813_v47 = vadd.f32 %v16033_v19, %v16032_v8  ;;  %v16058_v63 = vld [vmem:[#allocation136_spill] sm:$0xff] }
 0x255   : > { %16027 = vst [vmem:[#allocation27_spill] sm:$0xff] %v12488_v62  ;;  %16028 = vst [vmem:[#allocation109_spill] sm:$0xff] %v12490_v55  ;;  %v12501_v31 = vadd.f32 %v2579_v24, %v1754_v27  ;;  %v12503_v17 = vadd.f32 %v2634_v41, %v1809_v57  ;;  %v16037_v55 = vld [vmem:[#allocation131_spill] sm:$0xff]  ;;  %v16038_v62 = vld [vmem:[#allocation56_spill] sm:$0xff]  ;;  %v16042_v27 = vunpack.i.h.bf16 %v12492_v58  ;;  %v16043_v57 = vunpack.i.l.bf16 %v12492_v58 }
 0x256   : > { %v2581_v48 = vpop.f32.mrf.mxu0  ;;  %v2638_v10 = vpop.f32.mrf.mxu1  ;;  %9736 = vmatmul.mubr.msk.bf16.gmra.mxu1 %vm593_vm2, %v12180_v4  ;;  %v1760_v59 = vadd.f32 %v16037_v55, %v16036_v13  ;;  %v1815_v32 = vadd.f32 %v16039_v29, %v16038_v62  ;;  %v16044_v55 = vld [vmem:[#allocation57_spill] sm:$0xff]  ;;  %v16045_v62 = vld [vmem:[#allocation58_spill] sm:$0xff] }
 0x257   : > { %16034 = vst [vmem:[#allocation28_spill] sm:$0xff] %v12501_v31  ;;  %16035 = vst [vmem:[#allocation110_spill] sm:$0xff] %v12503_v17  ;;  %v12512_v12 = vadd.f32 %v2581_v48, %v1756_v49  ;;  %v12514_v19 = vadd.f32 %v2638_v10, %v1813_v47  ;;  %4587 = vmatprep.mubr.bf16.mxu1 %v15774_v11  ;;  %v4878_v24 = vsel %vm4858_vm6, %v16043_v57, %v16042_v27  ;;  %v4815_v48 = vpop.permute.xlu1 %4814  ;;  %v16048_v10 = vld [vmem:[#allocation60_spill] sm:$0xff]  ;;  %v16049_v27 = vld [vmem:[#allocation133_spill] sm:$0xff] }
 0x258   : > { %v2585_v41 = vpop.f32.mrf.mxu0  ;;  %v2640_v8 = vpop.f32.mrf.mxu1  ;;  %9733 = vmatmul.mubr.msk.bf16.gmra.mxu0 %vm593_vm2, %v12180_v4  ;;  %v1762_v29 = vadd.f32 %v12020_v38, %v16044_v55  ;;  %v1817_v13 = vadd.f32 %v12022_v16, %v16045_v62  ;;  %v1764_v57 = vadd.f32 %v16049_v27, %v16048_v10  ;;  %v16051_v55 = vld [vmem:[#allocation61_spill] sm:$0xff]  ;;  %v16052_v17 = vld [vmem:[#allocation134_spill] sm:$0xff]  ;;  %v4073_v10 = vsel %vm600_vm1, %v12418_v20, 0  ;;  %v16057_v31 = vld [vmem:[#allocation63_spill] sm:$0xff] }
 0x259   : > { %16040 = vst [vmem:[#allocation29_spill] sm:$0xff] %v12512_v12  ;;  %16041 = vst [vmem:[#allocation111_spill] sm:$0xff] %v12514_v19  ;;  %v12529_v49 = vadd.f32 %v2585_v41, %v1760_v59  ;;  %v12531_v47 = vadd.f32 %v2640_v8, %v1815_v32  ;;  %4534 = vmatprep.mubr.bf16.mxu0 %v15774_v11  ;;  %v16050_v12 = vunpack.i.h.bf16 %v12452_v43  ;;  %v16055_v27 = vld [vmem:[#allocation62_spill] sm:$0xff]  ;;  %v4067_v20 = vsel %vm600_vm1, %v12430_v18, 0  ;;  %v16070_v18 = vld [vmem:[#allocation67_spill] sm:$0xff] }
 0x25a   : > { %v2587_v61 = vpop.f32.mrf.mxu0  ;;  %v2642_v19 = vpop.f32.mrf.mxu1  ;;  %v1819_v16 = vadd.f32 %v16052_v17, %v16051_v55  ;;  %v4886_v41 = vpack.c.bf16 %v4878_v24, %v4878_v24  ;;  %v1909_v2 = vadd.f32 %v16058_v63, %v16057_v31  ;;  %v16061_v17 = vld [vmem:[#allocation59_spill] sm:$0xff]  ;;  %v16064_v63 = vld [vmem:[#allocation65_spill] sm:$0xff]  ;;  %v16065_v31 = vld [vmem:[#allocation138_spill] sm:$0xff] }
 0x25b   : > { %16046 = vst [vmem:[#allocation30_spill] sm:$0xff] %v12529_v49  ;;  %16047 = vst [vmem:[#allocation112_spill] sm:$0xff] %v12531_v47  ;;  %v4880_v38 = vsel %vm4858_vm6, %v16050_v12, %v4815_v48  ;;  %v12542_v59 = vadd.f32 %v2587_v61, %v1762_v29  ;;  %v12544_v32 = vadd.f32 %v2642_v19, %v1817_v13  ;;  %v16056_v47 = vld [vmem:[#allocation135_spill] sm:$0xff]  ;;  %10347 = vrot.lane.b32.xlu1 %v16061_v17, %s10544_s29  ;;  %v16062_v61 = vld [vmem:[#allocation64_spill] sm:$0xff] }
 0x25c   : > { %v2589_v8 = vpop.f32.mrf.mxu0  ;;  %v2644_v62 = vpop.f32.mrf.mxu1  ;;  %v1766_v49 = vadd.f32 %v16056_v47, %v16055_v27  ;;  %v16063_v19 = vld [vmem:[#allocation137_spill] sm:$0xff]  ;;  %v4884_v47 = vpack.c.bf16 %v4880_v38, %v4880_v38  ;;  %v16071_v38 = vld [vmem:[#allocation140_spill] sm:$0xff] }
 0x25d   : > { %16053 = vst [vmem:[#allocation31_spill] sm:$0xff] %v12542_v59  ;;  %16054 = vst [vmem:[#allocation113_spill] sm:$0xff] %v12544_v32  ;;  %v12552_v12 = vadd.f32 %v2589_v8, %v1764_v57  ;;  %v12554_v53 = vadd.f32 %v2644_v62, %v1819_v16  ;;  %v1856_v24 = vadd.f32 %v16063_v19, %v16062_v61  ;;  %v16068_v8 = vld [vmem:[#allocation66_spill] sm:$0xff]  ;;  %v16069_v62 = vld [vmem:[#allocation139_spill] sm:$0xff] }
 0x25e   : > { %v2591_v29 = vpop.f32.mrf.mxu0  ;;  %v2734_v13 = vpop.f32.mrf.mxu1  ;;  %9741 = vmatmul.mubr.msk.bf16.vlgmr.msra.gmra.mxu1 %vm593_vm2, %v12135_v21  ;;  %v1911_v57 = vadd.f32 %v16065_v31, %v16064_v63  ;;  %v1858_v27 = vadd.f32 %v16069_v62, %v16068_v8  ;;  %v1913_v63 = vadd.f32 %v16071_v38, %v16070_v18  ;;  %v16074_v31 = vld [vmem:[#allocation68_spill] sm:$0xff]  ;;  %v16075_v8 = vld [vmem:[#allocation141_spill] sm:$0xff]  ;;  %v16110_v32 = vld [vmem:[#allocation150_spill] sm:$0xff] }
 0x25f   : > { %16059 = vst [vmem:[#allocation32_spill] sm:$0xff] %v12552_v12  ;;  %16060 = vst [vmem:[#allocation114_spill] sm:$0xff] %v12554_v53  ;;  %v12566_v55 = vadd.f32 %v2591_v29, %v1766_v49  ;;  %v12568_v16 = vadd.f32 %v2734_v13, %v1909_v2  ;;  %4597 = vmatprep.mubr.bf16.mxu1 %v15774_v11  ;;  %4676 = vmatpush1.bf16.msra.mxu1 %v4073_v10  ;;  %v12589_v18 = vpop.permute.xlu0 %10222  ;;  %v16080_v10 = vunpack.i.l.bf16 %v12492_v58  ;;  %v16108_v17 = vld [vmem:[#allocation149_spill] sm:$0xff]  ;;  %v16109_v12 = vld [vmem:[#allocation80_spill] sm:$0xff] }
 0x260   : > { %v2681_v61 = vpop.f32.mrf.mxu0  ;;  %v2736_v19 = vpop.f32.mrf.mxu1  ;;  %9738 = vmatmul.mubr.msk.bf16.vlgmr.msra.gmra.mxu0 %vm593_vm2, %v12135_v21  ;;  %9758 = vmatprep.subr.msk.bf16.mxu1 %vm600_vm1, %v4886_v41  ;;  %v1860_v62 = vadd.f32 %v16075_v8, %v16074_v31  ;;  %v16076_v41 = vld [vmem:[#allocation69_spill] sm:$0xff]  ;;  %v16082_v8 = vld [vmem:[#allocation143_spill] sm:$0xff]  ;;  %v2015_v59 = vadd.f32 %v16110_v32, %v16109_v12  ;;  %v16115_v32 = vld [vmem:[#allocation152_spill] sm:$0xff] }
 0x261   : > { %16066 = vst [vmem:[#allocation33_spill] sm:$0xff] %v12566_v55  ;;  %16067 = vst [vmem:[#allocation115_spill] sm:$0xff] %v12568_v16  ;;  %v12578_v49 = vadd.f32 %v2681_v61, %v1856_v24  ;;  %v12580_v2 = vadd.f32 %v2736_v19, %v1911_v57  ;;  %4623 = vmatpush1.bf16.msra.mxu0 %v4067_v20  ;;  %4544 = vmatprep.mubr.bf16.mxu0 %v15774_v11  ;;  %v16077_v16 = vld [vmem:[#allocation142_spill] sm:$0xff]  ;;  %v12595_v20 = vpop.permute.xlu1 %10217  ;;  %v16096_v19 = vunpack.i.l.bf16 %v12589_v18 }
 0x262   : > { %v2683_v29 = vpop.f32.mrf.mxu0  ;;  %v2738_v13 = vpop.f32.mrf.mxu1  ;;  %9755 = vmatprep.subr.msk.bf16.mxu0 %vm600_vm1, %v4884_v47  ;;  %v1915_v55 = vadd.f32 %v16077_v16, %v16076_v41  ;;  %v4879_v31 = vsel %vm4858_vm6, %v4815_v48, %v16080_v10  ;;  %v16081_v16 = vld [vmem:[#allocation70_spill] sm:$0xff]  ;;  %v16087_v48 = vunpack.i.h.bf16 %v12452_v43  ;;  %v16088_v10 = vunpack.i.l.bf16 %v12452_v43 }
 0x263   : > { %16072 = vst [vmem:[#allocation34_spill] sm:$0xff] %v12578_v49  ;;  %16073 = vst [vmem:[#allocation116_spill] sm:$0xff] %v12580_v2  ;;  %v12591_v24 = vadd.f32 %v2683_v29, %v1858_v27  ;;  %v12593_v57 = vadd.f32 %v2738_v13, %v1913_v63  ;;  %v1862_v41 = vadd.f32 %v16082_v8, %v16081_v16  ;;  %v16083_v27 = vld [vmem:[#allocation71_spill] sm:$0xff]  ;;  %v16084_v29 = vld [vmem:[#allocation144_spill] sm:$0xff]  ;;  %v16095_v2 = vunpack.i.h.bf16 %v12589_v18 }
 0x264   : > { %v2685_v38 = vpop.f32.mrf.mxu0  ;;  %v2740_v47 = vpop.f32.mrf.mxu1  ;;  %v1919_v63 = vadd.f32 %v16084_v29, %v16083_v27  ;;  %v4881_v16 = vsel %vm4858_vm6, %v16088_v10, %v16087_v48  ;;  %v16092_v8 = vld [vmem:[#allocation146_spill] sm:$0xff]  ;;  %v16103_v49 = vunpack.i.h.bf16 %v12595_v20 }
 0x265   : > { %16078 = vst [vmem:[#allocation35_spill] sm:$0xff] %v12591_v24  ;;  %16079 = vst [vmem:[#allocation117_spill] sm:$0xff] %v12593_v57  ;;  %v12607_v13 = vadd.f32 %v2685_v38, %v1860_v62  ;;  %v12609_v57 = vadd.f32 %v2740_v47, %v1915_v55  ;;  %v16089_v62 = vld [vmem:[#allocation72_spill] sm:$0xff]  ;;  %v16090_v38 = vld [vmem:[#allocation145_spill] sm:$0xff] }
 0x266   : > { %v2687_v61 = vpop.f32.mrf.mxu0  ;;  %v2744_v24 = vpop.f32.mrf.mxu1  ;;  %9742 = vmatmul.mubr.msk.bf16.gmra.mxu1 %vm593_vm2, %v12180_v4  ;;  %v1866_v55 = vadd.f32 %v16090_v38, %v16089_v62  ;;  %v16091_v47 = vld [vmem:[#allocation73_spill] sm:$0xff]  ;;  %v4885_v62 = vpack.c.bf16 %v4879_v31, %v4879_v31  ;;  %v16097_v38 = vld [vmem:[#allocation74_spill] sm:$0xff]  ;;  %v16104_v31 = vunpack.i.l.bf16 %v12595_v20 }
 0x267   : > { %16085 = vst [vmem:[#allocation36_spill] sm:$0xff] %v12607_v13  ;;  %16086 = vst [vmem:[#allocation118_spill] sm:$0xff] %v12609_v57  ;;  %v1921_v27 = vadd.f32 %v16092_v8, %v16091_v47  ;;  %v12625_v29 = vadd.f32 %v2687_v61, %v1862_v41  ;;  %v12627_v57 = vadd.f32 %v2744_v24, %v1919_v63  ;;  %4693 = vmatprep.mubr.bf16.mxu1 %v15774_v11  ;;  %v16098_v24 = vld [vmem:[#allocation75_spill] sm:$0xff] }
 0x268   : > { %v4874_v13 = vsel %vm4858_vm6, %v16096_v19, %v16095_v2  ;;  %v2691_v48 = vpop.f32.mrf.mxu0  ;;  %v2746_v10 = vpop.f32.mrf.mxu1  ;;  %9739 = vmatmul.mubr.msk.bf16.gmra.mxu0 %vm593_vm2, %v12180_v4  ;;  %v1868_v61 = vadd.f32 %v12073_v26, %v16097_v38  ;;  %v16099_v41 = vld [vmem:[#allocation147_spill] sm:$0xff]  ;;  %v4876_v26 = vsel %vm4858_vm6, %v16104_v31, %v16103_v49  ;;  %v4883_v38 = vpack.c.bf16 %v4881_v16, %v4881_v16 }
 0x269   : > { %16093 = vst [vmem:[#allocation37_spill] sm:$0xff] %v12625_v29  ;;  %16094 = vst [vmem:[#allocation119_spill] sm:$0xff] %v12627_v57  ;;  %v1923_v63 = vadd.f32 %v16099_v41, %v16098_v24  ;;  %v12642_v47 = vadd.f32 %v2691_v48, %v1866_v55  ;;  %v12644_v8 = vadd.f32 %v2746_v10, %v1921_v27  ;;  %4640 = vmatprep.mubr.bf16.mxu0 %v15774_v11  ;;  %v16102_v57 = vld [vmem:[#allocation77_spill] sm:$0xff]  ;;  %v16105_v24 = vld [vmem:[#allocation78_spill] sm:$0xff] }
 0x26a   : > { %v1870_v2 = vadd.f32 %v12078_v0, %v16102_v57  ;;  %v2693_v19 = vpop.f32.mrf.mxu0  ;;  %v2748_v29 = vpop.f32.mrf.mxu1  ;;  %v16106_v55 = vld [vmem:[#allocation148_spill] sm:$0xff]  ;;  %v4890_v41 = vpack.c.bf16 %v4874_v13, %v4874_v13  ;;  %v4935_v57 = vsel %vm600_vm1, %v4885_v62, 0  ;;  %v16114_v62 = vld [vmem:[#allocation82_spill] sm:$0xff] }
 0x26b   : > { %16100 = vst [vmem:[#allocation38_spill] sm:$0xff] %v12642_v47  ;;  %16101 = vst [vmem:[#allocation120_spill] sm:$0xff] %v12644_v8  ;;  %v1925_v48 = vadd.f32 %v16106_v55, %v16105_v24  ;;  %v12657_v27 = vadd.f32 %v2693_v19, %v1868_v61  ;;  %v12659_v10 = vadd.f32 %v2748_v29, %v1923_v63  ;;  %v16107_v47 = vld [vmem:[#allocation79_spill] sm:$0xff]  ;;  %v16111_v61 = vld [vmem:[#allocation76_spill] sm:$0xff] }
 0x26c   : > { %v2695_v8 = vpop.f32.mrf.mxu0  ;;  %v2750_v0 = vpop.f32.mrf.mxu1  ;;  %v1872_v53 = vadd.f32 %v16108_v17, %v16107_v47  ;;  %10357 = vrot.lane.b32.xlu1 %v16111_v61, %s10544_s29  ;;  %v16112_v29 = vld [vmem:[#allocation81_spill] sm:$0xff]  ;;  %v16113_v63 = vld [vmem:[#allocation151_spill] sm:$0xff]  ;;  %v4888_v19 = vpack.c.bf16 %v4876_v26, %v4876_v26  ;;  %v4929_v17 = vsel %vm600_vm1, %v4883_v38, 0  ;;  %v2017_v12 = vadd.f32 %v16115_v32, %v16114_v62  ;;  %v16119_v38 = vld [vmem:[#allocation84_spill] sm:$0xff] }
 0x26d   : > { %v12666_v49 = vadd.f32 %v2695_v8, %v1870_v2  ;;  %v12668_v16 = vadd.f32 %v2750_v0, %v1925_v48  ;;  %v1962_v13 = vadd.f32 %v16113_v63, %v16112_v29  ;;  %v16118_v2 = vld [vmem:[#allocation83_spill] sm:$0xff]  ;;  %v16120_v0 = vld [vmem:[#allocation153_spill] sm:$0xff]  ;;  %v12701_v32 = vpop.permute.xlu0 %10232 }
 0x26e   : > { %v2697_v31 = vpop.f32.mrf.mxu0  ;;  %v2840_v24 = vpop.f32.mrf.mxu1  ;;  %9747 = vmatmul.mubr.msk.bf16.vlgmr.msra.gmra.mxu1 %vm593_vm2, %v12135_v21  ;;  %v1964_v26 = vadd.f32 %v12101_v7, %v16118_v2  ;;  %v2019_v29 = vadd.f32 %v16120_v0, %v16119_v38  ;;  %v16123_v7 = vld [vmem:[#allocation85_spill] sm:$0xff]  ;;  %v16126_v62 = vld [vmem:[#allocation155_spill] sm:$0xff]  ;;  %v16129_v38 = vunpack.i.l.bf16 %v12589_v18  ;;  %v16130_v0 = vunpack.i.h.bf16 %v12595_v20 }
 0x26f   : > { %v12679_v47 = vadd.f32 %v2697_v31, %v1872_v53  ;;  %v12681_v8 = vadd.f32 %v2840_v24, %v2015_v59  ;;  %5068 = vmatpush1.bf16.msra.mxu1 %v4935_v57  ;;  %4703 = vmatprep.mubr.bf16.mxu1 %v15774_v11  ;;  %v16124_v31 = vld [vmem:[#allocation154_spill] sm:$0xff] }
 0x270   : > { %v2787_v55 = vpop.f32.mrf.mxu0  ;;  %v2842_v48 = vpop.f32.mrf.mxu1  ;;  %9744 = vmatmul.mubr.msk.bf16.vlgmr.msra.gmra.mxu0 %vm593_vm2, %v12135_v21  ;;  %9764 = vmatprep.subr.msk.bf16.mxu1 %vm600_vm1, %v4890_v41  ;;  %v1966_v24 = vadd.f32 %v16124_v31, %v16123_v7  ;;  %v16125_v21 = vld [vmem:[#allocation86_spill] sm:$0xff]  ;;  %v4875_v7 = vsel %vm4858_vm6, %v16130_v0, %v16129_v38  ;;  %v16131_v31 = vld [vmem:[#allocation87_spill] sm:$0xff]  ;;  %v16137_v38 = vunpack.i.l.bf16 %v12595_v20  ;;  %v16138_v0 = vunpack.i.h.bf16 %v12492_v58 }
 0x271   : > { %16116 = vst [vmem:[#allocation39_spill] sm:$0xff] %v12679_v47  ;;  %16117 = vst [vmem:[#allocation121_spill] sm:$0xff] %v12681_v8  ;;  %v12691_v53 = vadd.f32 %v2787_v55, %v1962_v13  ;;  %v12693_v59 = vadd.f32 %v2842_v48, %v2017_v12  ;;  %5015 = vmatpush1.bf16.msra.mxu0 %v4929_v17  ;;  %4650 = vmatprep.mubr.bf16.mxu0 %v15774_v11  ;;  %v12707_v12 = vpop.permute.xlu1 %10227  ;;  %v16146_v20 = vunpack.i.l.bf16 %v12701_v32 }
 0x272   : > { %v2789_v57 = vpop.f32.mrf.mxu0  ;;  %v2844_v63 = vpop.f32.mrf.mxu1  ;;  %9761 = vmatprep.subr.msk.bf16.mxu0 %vm600_vm1, %v4888_v19  ;;  %v2021_v41 = vadd.f32 %v16126_v62, %v16125_v21 }
 0x273   : > { %16121 = vst [vmem:[#allocation40_spill] sm:$0xff] %v12691_v53  ;;  %16122 = vst [vmem:[#allocation122_spill] sm:$0xff] %v12693_v59  ;;  %v12703_v2 = vadd.f32 %v2789_v57, %v1964_v26  ;;  %v12705_v13 = vadd.f32 %v2844_v63, %v2019_v29  ;;  %v16132_v26 = vld [vmem:[#allocation156_spill] sm:$0xff]  ;;  %v16134_v63 = vld [vmem:[#allocation157_spill] sm:$0xff]  ;;  %v16145_v59 = vunpack.i.h.bf16 %v12701_v32 }
 0x274   : > { %v2791_v48 = vpop.f32.mrf.mxu0  ;;  %v2846_v19 = vpop.f32.mrf.mxu1  ;;  %v1968_v57 = vadd.f32 %v16132_v26, %v16131_v31  ;;  %v16133_v29 = vld [vmem:[#allocation88_spill] sm:$0xff]  ;;  %v4877_v31 = vsel %vm4858_vm6, %v16138_v0, %v16137_v38  ;;  %v16142_v26 = vld [vmem:[#allocation159_spill] sm:$0xff] }
 0x275   : > { %16127 = vst [vmem:[#allocation41_spill] sm:$0xff] %v12703_v2  ;;  %16128 = vst [vmem:[#allocation43_spill] sm:$0xff] %v12705_v13  ;;  %v2025_v21 = vadd.f32 %v16134_v63, %v16133_v29  ;;  %v12721_v62 = vadd.f32 %v2791_v48, %v1966_v24  ;;  %v12723_v17 = vadd.f32 %v2846_v19, %v2021_v41  ;;  %v16139_v24 = vld [vmem:[#allocation89_spill] sm:$0xff]  ;;  %v16140_v48 = vld [vmem:[#allocation158_spill] sm:$0xff] }
 0x276   : > { %v2793_v55 = vpop.f32.mrf.mxu0  ;;  %v2850_v13 = vpop.f32.mrf.mxu1  ;;  %9748 = vmatmul.mubr.msk.bf16.gmra.mxu1 %vm593_vm2, %v12180_v4  ;;  %v1972_v41 = vadd.f32 %v16140_v48, %v16139_v24  ;;  %v16141_v19 = vld [vmem:[#allocation90_spill] sm:$0xff]  ;;  %v4870_v58 = vsel %vm4858_vm6, %v16146_v20, %v16145_v59  ;;  %v4889_v24 = vpack.c.bf16 %v4875_v7, %v4875_v7  ;;  %v16147_v48 = vld [vmem:[#allocation91_spill] sm:$0xff]  ;;  %v16156_v7 = vunpack.i.l.bf16 %v12707_v12  ;;  %v16159_v53 = vld [vmem:[#allocation96_spill] sm:$0xff] }
 0x277   : > { %16135 = vst [vmem:[#allocation44_spill] sm:$0xff] %v12721_v62  ;;  %16136 = vst [vmem:[#allocation45_spill] sm:$0xff] %v12723_v17  ;;  %v2027_v29 = vadd.f32 %v16142_v26, %v16141_v19  ;;  %v12739_v63 = vadd.f32 %v2793_v55, %v1968_v57  ;;  %v12741_v17 = vadd.f32 %v2850_v13, %v2025_v21  ;;  %5085 = vmatprep.mubr.bf16.mxu1 %v15774_v11  ;;  %v16148_v55 = vld [vmem:[#allocation160_spill] sm:$0xff]  ;;  %v16150_v21 = vld [vmem:[#allocation161_spill] sm:$0xff] }
 0x278   : > { %v2797_v38 = vpop.f32.mrf.mxu0  ;;  %v2852_v0 = vpop.f32.mrf.mxu1  ;;  %9745 = vmatmul.mubr.msk.bf16.gmra.mxu0 %vm593_vm2, %v12180_v4  ;;  %v1974_v57 = vadd.f32 %v16148_v55, %v16147_v48  ;;  %v16149_v13 = vld [vmem:[#allocation92_spill] sm:$0xff]  ;;  %v16154_v59 = vld [vmem:[#allocation162_spill] sm:$0xff]  ;;  %v16155_v4 = vunpack.i.h.bf16 %v12707_v12 }
 0x279   : > { %16143 = vst [vmem:[#allocation123_spill] sm:$0xff] %v12739_v63  ;;  %16144 = vst [vmem:[#allocation46_spill] sm:$0xff] %v12741_v17  ;;  %v2029_v19 = vadd.f32 %v16150_v21, %v16149_v13  ;;  %v12756_v26 = vadd.f32 %v2797_v38, %v1972_v41  ;;  %v12758_v2 = vadd.f32 %v2852_v0, %v2027_v29  ;;  %5032 = vmatprep.mubr.bf16.mxu0 %v15774_v11  ;;  %v16153_v17 = vld [vmem:[#allocation94_spill] sm:$0xff]  ;;  %v12772_v41 = vld [vmem:[%s15693_s1 + $0x50] sm:$0xff]  }
 0x27a   : > { %v1976_v20 = vadd.f32 %v16154_v59, %v16153_v17  ;;  %v2799_v63 = vpop.f32.mrf.mxu0  ;;  %v2854_v62 = vpop.f32.mrf.mxu1  ;;  %v4872_v48 = vsel %vm4858_vm6, %v16156_v7, %v16155_v4  ;;  %v4887_v29 = vpack.c.bf16 %v4877_v31, %v4877_v31  ;;  %v16157_v38 = vld [vmem:[#allocation95_spill] sm:$0xff]  ;;  %v4894_v21 = vpack.c.bf16 %v4870_v58, %v4870_v58  ;;  %v16160_v4 = vld [vmem:[#allocation164_spill] sm:$0xff]  ;;  %v16161_v31 = vld [vmem:[#allocation93_spill] sm:$0xff] }
 0x27b   : > { %16151 = vst [vmem:[#allocation124_spill] sm:$0xff] %v12756_v26  ;;  %16152 = vst [vmem:[#allocation47_spill] sm:$0xff] %v12758_v2  ;;  %v16158_v0 = vld [vmem:[#allocation163_spill] sm:$0xff]  ;;  %v12776_v13 = vadd.f32 %v2799_v63, %v1974_v57  ;;  %v12778_v17 = vadd.f32 %v2854_v62, %v2029_v19  ;;  %v4947_v26 = vsel %vm600_vm1, %v4889_v24, 0  ;;  %v1978_v7 = vadd.f32 %v16160_v4, %v16159_v53 }
 0x27c   : > { %v2031_v55 = vadd.f32 %v16158_v0, %v16157_v38  ;;  %v2801_v59 = vpop.f32.mrf.mxu0  ;;  %v2856_v2 = vpop.f32.mrf.mxu1  ;;  %10367 = vrot.lane.b32.xlu1 %v16161_v31, %s10544_s29  ;;  %v4892_v38 = vpack.c.bf16 %v4872_v48, %v4872_v48  ;;  %v4941_v62 = vsel %vm600_vm1, %v4887_v29, 0  ;;  %v12811_v48 = vld [vmem:[%s15693_s1 + $0x58] sm:$0xff]   ;;  %s211_s29 = sand.u32 1, %s10518_s16  }
 0x27d   : > { %v12783_v8 = vadd.f32 %v2801_v59, %v1976_v20  ;;  %v12824_v0 = vpop.permute.xlu1 %10237  ;;  %s212_s30 = scalar_lea.vmem [#allocation3], %s211_s29  ;;  %s9456_s10 = scalar_lea.sflag [#allocation4], %s211_s29 }
 0x27e   : > { %v12785_v47 = vadd.f32 %v2856_v2, %v2031_v55  ;;  %v2803_v63 = vpop.f32.mrf.mxu0  ;;  %v3232_v57 = vpop.f32.mrf.mxu1  ;;  %9759 = vmatmul.mubr.msk.bf16.vlgmr.msra.gmra.mxu1 %vm593_vm2, %v12772_v41  ;;  %s9468_s5 = sshll.u32 %s212_s30, 4  ;;  %s9469_s5 = int_to_ptr.vmem [resolvable:$true] %s9468_s5 }
 0x27f   : > { %v12792_v58 = vadd.f32 %v2803_v63, %v1978_v7  ;;  %v12795_v24 = vadd.f32 %v3232_v57, %v12162_v34  ;;  %5174 = vmatpush1.bf16.msra.mxu1 %v4947_v26  ;;  %5095 = vmatprep.mubr.bf16.mxu1 %v15774_v11  ;;  %v16163_v7 = vunpack.i.h.bf16 %v12707_v12  ;;  %s10458_s11 = scalar_lea.vmem %s9469_s5, 16  ;;  %p10465_p1 = scmp.lt.s32.totalorder %s9469_s5, %s10463_s12 }
 0x280   : > { %v3179_v53 = vpop.f32.mrf.mxu0  ;;  %v3234_v2 = vpop.f32.mrf.mxu1  ;;  %9756 = vmatmul.mubr.msk.bf16.vlgmr.msra.gmra.mxu0 %vm593_vm2, %v12772_v41  ;;  %9770 = vmatprep.subr.msk.bf16.mxu1 %vm600_vm1, %v4894_v21  ;;  %p10459_p12 = scmp.ne.s32.totalorder %s9469_s5, %s10458_s11  ;;  %p10466_p2 = scmp.lt.s32.totalorder %s10464_s13, %s10458_s11 }
 0x281   : > { %v12802_v19 = vadd.f32 %v3179_v53, %v12172_v39  ;;  %v12805_v20 = vadd.f32 %v3234_v2, %v12174_v54  ;;  %5121 = vmatpush1.bf16.msra.mxu0 %v4941_v62  ;;  %5042 = vmatprep.mubr.bf16.mxu0 %v15774_v11  ;;  %v12816_v39 = vpop.permute.xlu0 %10242  ;;  %v10240_v2 = vunpack.i.h.bf16 %v12824_v0 }
 0x282   : > { %v3181_v34 = vpop.f32.mrf.mxu0  ;;  %v3236_v26 = vpop.f32.mrf.mxu1  ;;  %9767 = vmatprep.subr.msk.bf16.mxu0 %vm600_vm1, %v4892_v38  ;;  %v15724_v55 = vunpack.i.h.bf16 %v12816_v39  ;;  %v10244_v21 = vunpack.i.l.bf16 %v12816_v39  ;;  %10372 = vrot.lane.b32.xlu1 %v10661_v15, %s10545_s8  ;;  %v16164_v15 = vunpack.i.l.bf16 %v12707_v12  ;;  %p10460_p13 = pnand %p10459_p12, %p10612_p4  ;;  %p10467_p3 = por %p10466_p2, %p10465_p1 }
 0x283   : > { %v12819_v54 = vadd.f32 %v3181_v34, %v12189_v14  ;;  %v12822_v29 = vadd.f32 %v3236_v26, %v12191_v60  ;;  %v16162_v60 = vunpack.i.l.bf16 %v12701_v32  ;;  %v10239_v34 = vunpack.i.l.bf16 %v12824_v0 }
 0x284   : > { %v3183_v59 = vpop.f32.mrf.mxu0  ;;  %v3238_v4 = vpop.f32.mrf.mxu1  ;;  %p10461_p0 = pneg %p10460_p13 }
 0x285   : > { %v12831_v3 = vadd.f32 %v3183_v59, %v12200_v6  ;;  %v12834_v14 = vadd.f32 %v3238_v4, %v12202_v40  ;;  %v4871_v38 = vsel %vm4858_vm6, %v16163_v7, %v16162_v60  ;;  %v16165_v6 = vunpack.i.h.bf16 %v12589_v18 }
 0x286   : > { %v3185_v63 = vpop.f32.mrf.mxu0  ;;  %v3242_v57 = vpop.f32.mrf.mxu1  ;;  %9760 = vmatmul.mubr.msk.bf16.gmra.mxu1 %vm593_vm2, %v12811_v48  ;;  %v4893_v18 = vpack.c.bf16 %v4871_v38, %v4871_v38  ;;  %10377 = vrot.lane.b32.xlu1 %v11330_v33, %s10545_s8  ;;  %p10468_p5 = pnand %p10467_p3, %p10461_p0 }
 0x287   : > { %v4873_v40 = vsel %vm4858_vm6, %v16165_v6, %v16164_v15  ;;  %v12851_v62 = vadd.f32 %v3185_v63, %v12210_v28  ;;  %v12854_v53 = vadd.f32 %v3242_v57, %v12212_v35  ;;  %5191 = vmatprep.mubr.bf16.mxu1 %v15774_v11  ;;  %v4866_v28 = vsel %vm4858_vm6, %v10244_v21, %v15724_v55 }
 0x288   : > { %v3189_v26 = vpop.f32.mrf.mxu0  ;;  %v3244_v59 = vpop.f32.mrf.mxu1  ;;  %9757 = vmatmul.mubr.msk.bf16.gmra.mxu0 %vm593_vm2, %v12811_v48  ;;  %v4891_v7 = vpack.c.bf16 %v4873_v40, %v4873_v40  ;;  %v4898_v63 = vpack.c.bf16 %v4866_v28, %v4866_v28  ;;  %v4959_v15 = vsel %vm600_vm1, %v4893_v18, 0 }
 0x289   : > { %v12870_v35 = vadd.f32 %v3189_v26, %v12226_v9  ;;  %v12873_v12 = vadd.f32 %v3244_v59, %v12228_v45  ;;  %5138 = vmatprep.mubr.bf16.mxu0 %v15774_v11  ;;  %v4868_v9 = vsel %vm4858_vm6, %v10239_v34, %v10240_v2 }
 0x28a   : > { %v3191_v4 = vpop.f32.mrf.mxu0  ;;  %v3246_v60 = vpop.f32.mrf.mxu1  ;;  %10387 = vrot.lane.b32.xlu1 %v11360_v1, %s10545_s8  ;;  %v4953_v59 = vsel %vm600_vm1, %v4891_v7, 0  ;;  %v16167_v7 = vld [vmem:[#allocation10_spill] sm:$0xff] }
 0x28b   : > { %v12877_v33 = vadd.f32 %v3191_v4, %v12238_v44  ;;  %v12880_v38 = vadd.f32 %v3246_v60, %v12240_v56  ;;  %v4896_v56 = vpack.c.bf16 %v4868_v9, %v4868_v9  ;;  %v16166_v4 = vld [vmem:[#allocation8_spill] sm:$0xff]  ;;  %v12918_v9 = vpop.permute.xlu0 %10252 }
 0x28c   : > { %v3193_v57 = vpop.f32.mrf.mxu0  ;;  %v3248_v45 = vpop.f32.mrf.mxu1 }
 0x28d   : > { %v12890_v6 = vadd.f32 %v3193_v57, %v12252_v23  ;;  %v12893_v44 = vadd.f32 %v3248_v45, %v12254_v46  ;;  %v15725_v45 = vunpack.i.h.bf16 %v12918_v9 }
 0x28e   : > { %v3195_v40 = vpop.f32.mrf.mxu0  ;;  %v3338_v26 = vpop.f32.mrf.mxu1  ;;  %9765 = vmatmul.mubr.msk.bf16.vlgmr.msra.gmra.mxu1 %vm593_vm2, %v12772_v41  ;;  %10397 = vrot.lane.b32.xlu1 %v16167_v7, %s10545_s8 }
 0x28f   : > { %v12899_v28 = vadd.f32 %v3195_v40, %v12266_v36  ;;  %v12902_v18 = vadd.f32 %v3338_v26, %v12268_v5  ;;  %5280 = vmatpush1.bf16.msra.mxu1 %v4959_v15  ;;  %5201 = vmatprep.mubr.bf16.mxu1 %v15774_v11  ;;  %v15726_v26 = vunpack.i.l.bf16 %v12918_v9 }
 0x290   : > { %v3285_v1 = vpop.f32.mrf.mxu0  ;;  %v3340_v23 = vpop.f32.mrf.mxu1  ;;  %9762 = vmatmul.mubr.msk.bf16.vlgmr.msra.gmra.mxu0 %vm593_vm2, %v12772_v41  ;;  %9776 = vmatprep.subr.msk.bf16.mxu1 %vm600_vm1, %v4898_v63 }
 0x291   : > { %v12909_v46 = vadd.f32 %v3285_v1, %v12278_v52  ;;  %v12912_v60 = vadd.f32 %v3340_v23, %v16166_v4  ;;  %5227 = vmatpush1.bf16.msra.mxu0 %v4953_v59  ;;  %5148 = vmatprep.mubr.bf16.mxu0 %v15774_v11  ;;  %v16168_v52 = vld [vmem:[#allocation9_spill] sm:$0xff]  ;;  %v12934_v23 = vpop.permute.xlu1 %10247 }
 0x292   : > { %v3287_v36 = vpop.f32.mrf.mxu0  ;;  %v3342_v5 = vpop.f32.mrf.mxu1  ;;  %9773 = vmatprep.subr.msk.bf16.mxu0 %vm600_vm1, %v4896_v56  ;;  %v16170_v56 = vld [vmem:[#allocation97_spill] sm:$0xff] }
 0x293   : > { %v12921_v63 = vadd.f32 %v3287_v36, %v12290_v51  ;;  %v12924_v57 = vadd.f32 %v3342_v5, %v16168_v52  ;;  %v4867_v51 = vsel %vm4858_vm6, %v10240_v2, %v10244_v21  ;;  %v16172_v5 = vld [vmem:[#allocation15_spill] sm:$0xff]  ;;  %v16175_v52 = vld [vmem:[#allocation98_spill] sm:$0xff]  ;;  %v16177_v21 = vunpack.i.h.bf16 %v12701_v32 }
 0x294   : > { %v3289_v15 = vpop.f32.mrf.mxu0  ;;  %v3344_v40 = vpop.f32.mrf.mxu1  ;;  %10407 = vrot.lane.b32.xlu1 %v16172_v5, %s10545_s8  ;;  %v16178_v5 = vld [vmem:[#allocation12_spill] sm:$0xff]  ;;  %v16180_v32 = vld [vmem:[#allocation99_spill] sm:$0xff] }
 0x295   : > { %v12929_v59 = vadd.f32 %v3289_v15, %v12299_v30  ;;  %v12932_v1 = vadd.f32 %v3344_v40, %v16170_v56  ;;  %v16173_v30 = vld [vmem:[#allocation11_spill] sm:$0xff]  ;;  %v10249_v40 = vunpack.i.l.bf16 %v12934_v23  ;;  %v4869_v2 = vsel %vm4858_vm6, %v16177_v21, %v10239_v34 }
 0x296   : > { %v3291_v4 = vpop.f32.mrf.mxu0  ;;  %v3348_v36 = vpop.f32.mrf.mxu1  ;;  %9766 = vmatmul.mubr.msk.bf16.gmra.mxu1 %vm593_vm2, %v12811_v48  ;;  %v10250_v34 = vunpack.i.h.bf16 %v12934_v23 }
 0x297   : > { %16169 = vst [vmem:[#allocation125_spill] sm:$0xff] %v12929_v59  ;;  %16171 = vst [vmem:[#allocation48_spill] sm:$0xff] %v12932_v1  ;;  %v12945_v7 = vadd.f32 %v3291_v4, %v16173_v30  ;;  %v12948_v15 = vadd.f32 %v3348_v36, %v16175_v52  ;;  %5297 = vmatprep.mubr.bf16.mxu1 %v15774_v11  ;;  %v4897_v4 = vpack.c.bf16 %v4867_v51, %v4867_v51 }
 0x298   : > { %v3295_v56 = vpop.f32.mrf.mxu0  ;;  %v3350_v55 = vpop.f32.mrf.mxu1  ;;  %9763 = vmatmul.mubr.msk.bf16.gmra.mxu0 %vm593_vm2, %v12811_v48  ;;  %v4862_v36 = vsel %vm4858_vm6, %v15726_v26, %v15725_v45  ;;  %v4895_v51 = vpack.c.bf16 %v4869_v2, %v4869_v2  ;;  %v16184_v45 = vld [vmem:[#allocation100_spill] sm:$0xff]  ;;  %v16186_v2 = vld [vmem:[#allocation101_spill] sm:$0xff] }
 0x299   : > { %16174 = vst [vmem:[#allocation126_spill] sm:$0xff] %v12945_v7  ;;  %16176 = vst [vmem:[#allocation49_spill] sm:$0xff] %v12948_v15  ;;  %v12967_v0 = vadd.f32 %v3295_v56, %v16178_v5  ;;  %v12970_v30 = vadd.f32 %v3350_v55, %v16180_v32  ;;  %5244 = vmatprep.mubr.bf16.mxu0 %v15774_v11  ;;  %v16182_v15 = vld [vmem:[#allocation20_spill] sm:$0xff]  ;;  %v16183_v7 = vld [vmem:[#allocation13_spill] sm:$0xff]  ;;  %v4864_v55 = vsel %vm4858_vm6, %v10249_v40, %v10250_v34 }
 0x29a   : > { %v3297_v52 = vpop.f32.mrf.mxu0  ;;  %v3352_v21 = vpop.f32.mrf.mxu1  ;;  %10417 = vrot.lane.b32.xlu1 %v16182_v15, %s10545_s8  ;;  %v4902_v56 = vpack.c.bf16 %v4862_v36, %v4862_v36  ;;  %v4971_v32 = vsel %vm600_vm1, %v4897_v4, 0  ;;  %v4900_v15 = vpack.c.bf16 %v4864_v55, %v4864_v55  ;;  %v4965_v36 = vsel %vm600_vm1, %v4895_v51, 0  ;;  %v16190_v4 = vld [vmem:[#allocation16_spill] sm:$0xff]  ;;  %v16193_v51 = vld [vmem:[#allocation17_spill] sm:$0xff] }
 0x29b   : > { %16179 = vst [vmem:[#allocation50_spill] sm:$0xff] %v12967_v0  ;;  %16181 = vst [vmem:[#allocation51_spill] sm:$0xff] %v12970_v30  ;;  %v12977_v1 = vadd.f32 %v3297_v52, %v16183_v7  ;;  %v12980_v26 = vadd.f32 %v3352_v21, %v16184_v45  ;;  %v16185_v30 = vld [vmem:[#allocation14_spill] sm:$0xff]  ;;  %v16188_v7 = vld [vmem:[#allocation25_spill] sm:$0xff] }
 0x29c   : > { %v3299_v5 = vpop.f32.mrf.mxu0  ;;  %v3354_v23 = vpop.f32.mrf.mxu1  ;;  %10382 = vrot.lane.b32.xlu0 %v16188_v7, %s10545_s8  ;;  %v16189_v21 = vld [vmem:[#allocation6_spill] sm:$0xff] }
 0x29d   : > { %v12986_v0 = vadd.f32 %v3299_v5, %v16185_v30  ;;  %v12989_v59 = vadd.f32 %v3354_v23, %v16186_v2  ;;  %v16191_v5 = vld [vmem:[#allocation102_spill] sm:$0xff] }
 0x29e   : > { %v3301_v45 = vpop.f32.mrf.mxu0  ;;  %v3444_v52 = vpop.f32.mrf.mxu1  ;;  %9771 = vmatmul.mubr.msk.bf16.vlgmr.msra.gmra.mxu1 %vm593_vm2, %v12772_v41  ;;  %7622 = vrot.lane.b32.xlu1 %v16189_v21, %s10545_s8  ;;  %v16194_v21 = vld [vmem:[#allocation103_spill] sm:$0xff] }
 0x29f   : > { %16187 = vst [vmem:[#allocation52_spill] sm:$0xff] %v12989_v59  ;;  %v12999_v30 = vadd.f32 %v3301_v45, %v16190_v4  ;;  %v13002_v23 = vadd.f32 %v3444_v52, %v16191_v5  ;;  %5386 = vmatpush1.bf16.msra.mxu1 %v4971_v32  ;;  %5307 = vmatprep.mubr.bf16.mxu1 %v15774_v11  ;;  %v16195_v52 = vld [vmem:[#allocation18_spill] sm:$0xff]  ;;  %v16197_v5 = vld [vmem:[#allocation104_spill] sm:$0xff] }
 0x2a0   : > { %v3391_v55 = vpop.f32.mrf.mxu0  ;;  %v3446_v2 = vpop.f32.mrf.mxu1  ;;  %9768 = vmatmul.mubr.msk.bf16.vlgmr.msra.gmra.mxu0 %vm593_vm2, %v12772_v41  ;;  %9782 = vmatprep.subr.msk.bf16.mxu1 %vm600_vm1, %v4902_v56 }
 0x2a1   : > { %16192 = vst [vmem:[#allocation128_spill] sm:$0xff] %v13002_v23  ;;  %v13009_v7 = vadd.f32 %v3391_v55, %v16193_v51  ;;  %v13012_v59 = vadd.f32 %v3446_v2, %v16194_v21  ;;  %5333 = vmatpush1.bf16.msra.mxu0 %v4965_v36  ;;  %5254 = vmatprep.mubr.bf16.mxu0 %v15774_v11  ;;  %v13022_v56 = vpop.permute.xlu1 %10257  ;;  %v16201_v21 = vunpack.i.l.bf16 %v12918_v9 }
 0x2a2   : > { %v3393_v45 = vpop.f32.mrf.mxu0  ;;  %v3448_v32 = vpop.f32.mrf.mxu1  ;;  %9779 = vmatprep.subr.msk.bf16.mxu0 %vm600_vm1, %v4900_v15 }
 0x2a3   : > { %v13017_v4 = vadd.f32 %v3393_v45, %v16195_v52  ;;  %v13020_v23 = vadd.f32 %v3448_v32, %v16197_v5  ;;  %v4863_v15 = vsel %vm4858_vm6, %v10250_v34, %v16201_v21  ;;  %v16202_v32 = vunpack.i.h.bf16 %v12816_v39 }
 0x2a4   : > { %v3395_v55 = vpop.f32.mrf.mxu0  ;;  %v3450_v51 = vpop.f32.mrf.mxu1  ;;  %v10260_v34 = vunpack.i.h.bf16 %v13022_v56  ;;  %v4901_v39 = vpack.c.bf16 %v4863_v15, %v4863_v15  ;;  %v16212_v15 = vld [vmem:[#allocation106_spill] sm:$0xff] }
 0x2a5   : > { %16196 = vst [vmem:[#allocation53_spill] sm:$0xff] %v13017_v4  ;;  %16198 = vst [vmem:[#allocation129_spill] sm:$0xff] %v13020_v23  ;;  %v13025_v2 = vadd.f32 %v3395_v55, %v12400_v50  ;;  %v13028_v36 = vadd.f32 %v3450_v51, %v12402_v25  ;;  %v4865_v5 = vsel %vm4858_vm6, %v16202_v32, %v10249_v40  ;;  %v4857_v50 = vpop.permute.xlu0 %4856  ;;  %v10259_v51 = vunpack.i.l.bf16 %v13022_v56  ;;  %v16205_v40 = vld [vmem:[#allocation19_spill] sm:$0xff] }
 0x2a6   : > { %v3397_v45 = vpop.f32.mrf.mxu0  ;;  %v3454_v52 = vpop.f32.mrf.mxu1  ;;  %9772 = vmatmul.mubr.msk.bf16.gmra.mxu1 %vm593_vm2, %v12811_v48 }
 0x2a7   : > { %16199 = vst [vmem:[#allocation54_spill] sm:$0xff] %v13025_v2  ;;  %16200 = vst [vmem:[#allocation130_spill] sm:$0xff] %v13028_v36  ;;  %v13041_v55 = vadd.f32 %v3397_v45, %v12410_v42  ;;  %v13044_v25 = vadd.f32 %v3454_v52, %v12412_v37  ;;  %5403 = vmatprep.mubr.bf16.mxu1 %v15774_v11  ;;  %v16207_v42 = vld [vmem:[#allocation105_spill] sm:$0xff] }
 0x2a8   : > { %v3401_v21 = vpop.f32.mrf.mxu0  ;;  %v3456_v36 = vpop.f32.mrf.mxu1  ;;  %9769 = vmatmul.mubr.msk.bf16.gmra.mxu0 %vm593_vm2, %v12811_v48  ;;  %v16210_v2 = vld [vmem:[#allocation21_spill] sm:$0xff] }
 0x2a9   : > { %16203 = vst [vmem:[#allocation55_spill] sm:$0xff] %v13041_v55  ;;  %16204 = vst [vmem:[#allocation131_spill] sm:$0xff] %v13044_v25  ;;  %v13052_v32 = vadd.f32 %v3401_v21, %v16205_v40  ;;  %v13055_v45 = vadd.f32 %v3456_v36, %v16207_v42  ;;  %5350 = vmatprep.mubr.bf16.mxu0 %v15774_v11  ;;  %v4899_v25 = vpack.c.bf16 %v4865_v5, %v4865_v5 }
 0x2aa   : > { %v3403_v37 = vpop.f32.mrf.mxu0  ;;  %v3458_v52 = vpop.f32.mrf.mxu1  ;;  %v16209_v55 = vunpack.i.l.bf16 %v12452_v43  ;;  %v4860_v36 = vsel %vm4858_vm6, %v10259_v51, %v10260_v34  ;;  %v4983_v42 = vsel %vm600_vm1, %v4901_v39, 0  ;;  %v16216_v43 = vld [vmem:[#allocation107_spill] sm:$0xff] }
 0x2ab   : > { %16206 = vst [vmem:[#allocation56_spill] sm:$0xff] %v13052_v32  ;;  %16208 = vst [vmem:[#allocation132_spill] sm:$0xff] %v13055_v45  ;;  %v13063_v23 = vadd.f32 %v3403_v37, %v16210_v2  ;;  %v13066_v4 = vadd.f32 %v3458_v52, %v16212_v15  ;;  %v16214_v45 = vld [vmem:[#allocation22_spill] sm:$0xff]  ;;  %v4904_v37 = vpack.c.bf16 %v4860_v36, %v4860_v36  ;;  %v4977_v15 = vsel %vm600_vm1, %v4899_v25, 0  ;;  %v16219_v39 = vld [vmem:[#allocation23_spill] sm:$0xff] }
 0x2ac   : > { %v4882_v56 = vsel %vm4858_vm6, %v4857_v50, %v16209_v55  ;;  %v3405_v21 = vpop.f32.mrf.mxu0  ;;  %v3460_v40 = vpop.f32.mrf.mxu1  ;;  %v16223_v25 = vld [vmem:[#allocation24_spill] sm:$0xff] }
 0x2ad   : > { %16211 = vst [vmem:[#allocation57_spill] sm:$0xff] %v13063_v23  ;;  %16213 = vst [vmem:[#allocation58_spill] sm:$0xff] %v13066_v4  ;;  %v13072_v5 = vadd.f32 %v3405_v21, %v16214_v45  ;;  %v13075_v32 = vadd.f32 %v3460_v40, %v16216_v43  ;;  %v13077_v55 = vpop.permute.xlu1 %10262  ;;  %v4906_v2 = vpack.c.bf16 %v4882_v56, %v4882_v56  ;;  %v16218_v4 = vld [vmem:[#allocation42_spill] sm:$0xff]  ;;  %v16221_v21 = vld [vmem:[#allocation108_spill] sm:$0xff] }
 0x2ae   : > { %v3407_v23 = vpop.f32.mrf.mxu0  ;;  %v3550_v52 = vpop.f32.mrf.mxu1  ;;  %9777 = vmatmul.mubr.msk.bf16.vlgmr.msra.gmra.mxu1 %vm593_vm2, %v12772_v41  ;;  %10392 = vrot.lane.b32.xlu0 %v16218_v4, %s10545_s8  ;;  %v16225_v4 = vld [vmem:[#allocation26_spill] sm:$0xff] }
 0x2af   : > { %16215 = vst [vmem:[#allocation60_spill] sm:$0xff] %v13072_v5  ;;  %16217 = vst [vmem:[#allocation133_spill] sm:$0xff] %v13075_v32  ;;  %v13085_v45 = vadd.f32 %v3407_v23, %v16219_v39  ;;  %v13088_v40 = vadd.f32 %v3550_v52, %v16221_v21  ;;  %5492 = vmatpush1.bf16.msra.mxu1 %v4983_v42  ;;  %5413 = vmatprep.mubr.bf16.mxu1 %v15774_v11  ;;  %v16227_v52 = vld [vmem:[#allocation27_spill] sm:$0xff]  ;;  %v16229_v39 = vld [vmem:[#allocation109_spill] sm:$0xff] }
 0x2b0   : > { %9788 = vmatprep.subr.msk.bf16.mxu1 %vm600_vm1, %v4906_v2  ;;  %v3497_v56 = vpop.f32.mrf.mxu0  ;;  %v3552_v36 = vpop.f32.mrf.mxu1  ;;  %9774 = vmatmul.mubr.msk.bf16.vlgmr.msra.gmra.mxu0 %vm593_vm2, %v12772_v41 }
 0x2b1   : > { %16220 = vst [vmem:[#allocation61_spill] sm:$0xff] %v13085_v45  ;;  %16222 = vst [vmem:[#allocation134_spill] sm:$0xff] %v13088_v40  ;;  %v13095_v43 = vadd.f32 %v3497_v56, %v16223_v25  ;;  %v13098_v32 = vadd.f32 %v3552_v36, %v16225_v4  ;;  %5439 = vmatpush1.bf16.msra.mxu0 %v4977_v15  ;;  %5360 = vmatprep.mubr.bf16.mxu0 %v15774_v11  ;;  %v13108_v40 = vpop.permute.xlu1 %10267  ;;  %v16231_v4 = vld [vmem:[#allocation28_spill] sm:$0xff]  ;;  %v16235_v36 = vld [vmem:[#allocation29_spill] sm:$0xff] }
 0x2b2   : > { %v3499_v23 = vpop.f32.mrf.mxu0  ;;  %v3554_v42 = vpop.f32.mrf.mxu1  ;;  %9785 = vmatprep.subr.msk.bf16.mxu0 %vm600_vm1, %v4904_v37 }
 0x2b3   : > { %16224 = vst [vmem:[#allocation62_spill] sm:$0xff] %v13095_v43  ;;  %16226 = vst [vmem:[#allocation135_spill] sm:$0xff] %v13098_v32  ;;  %v13103_v2 = vadd.f32 %v3499_v23, %v16227_v52  ;;  %v13106_v21 = vadd.f32 %v3554_v42, %v16229_v39  ;;  %v16233_v32 = vld [vmem:[#allocation110_spill] sm:$0xff]  ;;  %v4859_v23 = vsel %vm4858_vm6, %v10260_v34, %v4857_v50  ;;  %v16240_v39 = vunpack.i.h.bf16 %v13108_v40 }
 0x2b4   : > { %v3501_v56 = vpop.f32.mrf.mxu0  ;;  %v3556_v25 = vpop.f32.mrf.mxu1 }
 0x2b5   : > { %16228 = vst [vmem:[#allocation63_spill] sm:$0xff] %v13103_v2  ;;  %16230 = vst [vmem:[#allocation136_spill] sm:$0xff] %v13106_v21  ;;  %v13112_v15 = vadd.f32 %v3501_v56, %v16231_v4  ;;  %v13115_v43 = vadd.f32 %v3556_v25, %v16233_v32  ;;  %v16237_v4 = vld [vmem:[#allocation111_spill] sm:$0xff]  ;;  %v16239_v25 = vunpack.i.h.bf16 %v12918_v9  ;;  %v16244_v9 = vld [vmem:[#allocation112_spill] sm:$0xff] }
 0x2b6   : > { %v3503_v52 = vpop.f32.mrf.mxu0  ;;  %v3560_v42 = vpop.f32.mrf.mxu1  ;;  %9778 = vmatmul.mubr.msk.bf16.gmra.mxu1 %vm593_vm2, %v12811_v48  ;;  %v16247_v2 = vld [vmem:[#allocation113_spill] sm:$0xff] }
 0x2b7   : > { %16232 = vst [vmem:[#allocation64_spill] sm:$0xff] %v13112_v15  ;;  %16234 = vst [vmem:[#allocation137_spill] sm:$0xff] %v13115_v43  ;;  %v13125_v56 = vadd.f32 %v3503_v52, %v16235_v36  ;;  %v13128_v32 = vadd.f32 %v3560_v42, %v16237_v4  ;;  %5509 = vmatprep.mubr.bf16.mxu1 %v15774_v11  ;;  %v4861_v50 = vsel %vm4858_vm6, %v16239_v25, %v10259_v51  ;;  %v16242_v42 = vld [vmem:[#allocation30_spill] sm:$0xff]  ;;  %v5737_v51 = vpop.permute.xlu0 %5736 }
 0x2b8   : > { %v3507_v34 = vpop.f32.mrf.mxu0  ;;  %v3562_v37 = vpop.f32.mrf.mxu1  ;;  %9775 = vmatmul.mubr.msk.bf16.gmra.mxu0 %vm593_vm2, %v12811_v48  ;;  %v4905_v43 = vpack.c.bf16 %v4859_v23, %v4859_v23  ;;  %v16241_v36 = vunpack.i.l.bf16 %v13108_v40  ;;  %v4903_v15 = vpack.c.bf16 %v4861_v50, %v4861_v50  ;;  %v16246_v23 = vld [vmem:[#allocation31_spill] sm:$0xff]  ;;  %v16252_v50 = vld [vmem:[#allocation114_spill] sm:$0xff] }
 0x2b9   : > { %16236 = vst [vmem:[#allocation65_spill] sm:$0xff] %v13125_v56  ;;  %16238 = vst [vmem:[#allocation138_spill] sm:$0xff] %v13128_v32  ;;  %v13144_v4 = vadd.f32 %v3507_v34, %v16242_v42  ;;  %v13147_v32 = vadd.f32 %v3562_v37, %v16244_v9  ;;  %5456 = vmatprep.mubr.bf16.mxu0 %v15774_v11 }
 0x2ba   : > { %v5800_v52 = vsel %vm5780_vm7, %v16241_v36, %v16240_v39  ;;  %v3509_v25 = vpop.f32.mrf.mxu0  ;;  %v3564_v56 = vpop.f32.mrf.mxu1  ;;  %v16249_v39 = vunpack.i.h.bf16 %v13077_v55  ;;  %v4995_v9 = vsel %vm600_vm1, %v4905_v43, 0  ;;  %v16257_v43 = vld [vmem:[#allocation115_spill] sm:$0xff] }
 0x2bb   : > { %16243 = vst [vmem:[#allocation66_spill] sm:$0xff] %v13144_v4  ;;  %16245 = vst [vmem:[#allocation139_spill] sm:$0xff] %v13147_v32  ;;  %v13151_v21 = vadd.f32 %v3509_v25, %v16246_v23  ;;  %v13154_v45 = vadd.f32 %v3564_v56, %v16247_v2  ;;  %v5808_v36 = vpack.c.bf16 %v5800_v52, %v5800_v52  ;;  %v16250_v32 = vld [vmem:[#allocation32_spill] sm:$0xff]  ;;  %v16254_v25 = vld [vmem:[#allocation59_spill] sm:$0xff]  ;;  %v4989_v52 = vsel %vm600_vm1, %v4903_v15, 0 }
 0x2bc   : > { %v5802_v34 = vsel %vm5780_vm7, %v16249_v39, %v5737_v51  ;;  %v3511_v37 = vpop.f32.mrf.mxu0  ;;  %v3566_v42 = vpop.f32.mrf.mxu1  ;;  %10402 = vrot.lane.b32.xlu0 %v16254_v25, %s10545_s8  ;;  %v16255_v39 = vld [vmem:[#allocation33_spill] sm:$0xff]  ;;  %v16261_v15 = vld [vmem:[#allocation116_spill] sm:$0xff] }
 0x2bd   : > { %16248 = vst [vmem:[#allocation67_spill] sm:$0xff] %v13154_v45  ;;  %v13162_v4 = vadd.f32 %v3511_v37, %v16250_v32  ;;  %v13165_v5 = vadd.f32 %v3566_v42, %v16252_v50  ;;  %v5806_v23 = vpack.c.bf16 %v5802_v34, %v5802_v34  ;;  %v16259_v50 = vld [vmem:[#allocation34_spill] sm:$0xff] }
 0x2be   : > { %v3513_v2 = vpop.f32.mrf.mxu0  ;;  %v3656_v56 = vpop.f32.mrf.mxu1  ;;  %9783 = vmatmul.mubr.msk.bf16.vlgmr.msra.gmra.mxu1 %vm593_vm2, %v12772_v41 }
 0x2bf   : > { %16251 = vst [vmem:[#allocation140_spill] sm:$0xff] %v13162_v4  ;;  %16253 = vst [vmem:[#allocation68_spill] sm:$0xff] %v13165_v5  ;;  %v13173_v45 = vadd.f32 %v3513_v2, %v16255_v39  ;;  %v13176_v32 = vadd.f32 %v3656_v56, %v16257_v43  ;;  %5598 = vmatpush1.bf16.msra.mxu1 %v4995_v9  ;;  %5519 = vmatprep.mubr.bf16.mxu1 %v15774_v11  ;;  %v13191_v39 = vpop.permute.xlu1 %10277  ;;  %v16263_v43 = vld [vmem:[#allocation35_spill] sm:$0xff]  ;;  %v16269_v56 = vld [vmem:[#allocation118_spill] sm:$0xff] }
 0x2c0   : > { %v3603_v37 = vpop.f32.mrf.mxu0  ;;  %v3658_v42 = vpop.f32.mrf.mxu1  ;;  %9780 = vmatmul.mubr.msk.bf16.vlgmr.msra.gmra.mxu0 %vm593_vm2, %v12772_v41  ;;  %9800 = vmatprep.subr.msk.bf16.mxu1 %vm600_vm1, %v5808_v36  ;;  %v16265_v36 = vld [vmem:[#allocation117_spill] sm:$0xff] }
 0x2c1   : > { %16256 = vst [vmem:[#allocation141_spill] sm:$0xff] %v13173_v45  ;;  %16258 = vst [vmem:[#allocation69_spill] sm:$0xff] %v13176_v32  ;;  %v13183_v25 = vadd.f32 %v3603_v37, %v16259_v50  ;;  %v13186_v34 = vadd.f32 %v3658_v42, %v16261_v15  ;;  %5545 = vmatpush1.bf16.msra.mxu0 %v4989_v52  ;;  %5466 = vmatprep.mubr.bf16.mxu0 %v15774_v11  ;;  %v13199_v50 = vpop.permute.xlu0 %10272 }
 0x2c2   : > { %v3605_v2 = vpop.f32.mrf.mxu0  ;;  %v3660_v9 = vpop.f32.mrf.mxu1  ;;  %9797 = vmatprep.subr.msk.bf16.mxu0 %vm600_vm1, %v5806_v23  ;;  %v10275_v52 = vunpack.i.h.bf16 %v13199_v50  ;;  %10412 = vrot.lane.b32.xlu0 %v16111_v61, %s10545_s8  ;;  %v16286_v61 = vld [vmem:[#allocation40_spill] sm:$0xff] }
 0x2c3   : > { %16260 = vst [vmem:[#allocation142_spill] sm:$0xff] %v13183_v25  ;;  %16262 = vst [vmem:[#allocation70_spill] sm:$0xff] %v13186_v34  ;;  %v13194_v32 = vadd.f32 %v3605_v2, %v16263_v43  ;;  %v13197_v37 = vadd.f32 %v3660_v9, %v16265_v36  ;;  %v16267_v25 = vld [vmem:[#allocation36_spill] sm:$0xff]  ;;  %v16271_v2 = vunpack.i.l.bf16 %v13108_v40 }
 0x2c4   : > { %v3607_v42 = vpop.f32.mrf.mxu0  ;;  %v3662_v15 = vpop.f32.mrf.mxu1 }
 0x2c5   : > { %16264 = vst [vmem:[#allocation143_spill] sm:$0xff] %v13194_v32  ;;  %16266 = vst [vmem:[#allocation71_spill] sm:$0xff] %v13197_v37  ;;  %v13204_v23 = vadd.f32 %v3607_v42, %v16267_v25  ;;  %v13207_v45 = vadd.f32 %v3662_v15, %v16269_v56  ;;  %v5801_v9 = vsel %vm5780_vm7, %v5737_v51, %v16271_v2  ;;  %v16272_v37 = vld [vmem:[#allocation37_spill] sm:$0xff]  ;;  %v16274_v25 = vld [vmem:[#allocation119_spill] sm:$0xff]  ;;  %v10274_v56 = vunpack.i.l.bf16 %v13199_v50 }
 0x2c6   : > { %v3609_v43 = vpop.f32.mrf.mxu0  ;;  %v3666_v36 = vpop.f32.mrf.mxu1  ;;  %9784 = vmatmul.mubr.msk.bf16.gmra.mxu1 %vm593_vm2, %v12811_v48  ;;  %v16276_v15 = vunpack.i.h.bf16 %v13077_v55  ;;  %v16277_v51 = vunpack.i.l.bf16 %v13077_v55  ;;  %10422 = vrot.lane.b32.xlu0 %v16161_v31, %s10545_s8 }
 0x2c7   : > { %16268 = vst [vmem:[#allocation144_spill] sm:$0xff] %v13204_v23  ;;  %16270 = vst [vmem:[#allocation72_spill] sm:$0xff] %v13207_v45  ;;  %v13217_v34 = vadd.f32 %v3609_v43, %v16272_v37  ;;  %v13220_v42 = vadd.f32 %v3666_v36, %v16274_v25  ;;  %5615 = vmatprep.mubr.bf16.mxu1 %v15774_v11  ;;  %v5807_v37 = vpack.c.bf16 %v5801_v9, %v5801_v9  ;;  %v16280_v25 = vld [vmem:[#allocation38_spill] sm:$0xff] }
 0x2c8   : > { %v5803_v2 = vsel %vm5780_vm7, %v16277_v51, %v16276_v15  ;;  %v3613_v45 = vpop.f32.mrf.mxu0  ;;  %v3668_v23 = vpop.f32.mrf.mxu1  ;;  %9781 = vmatmul.mubr.msk.bf16.gmra.mxu0 %vm593_vm2, %v12811_v48  ;;  %v16278_v43 = vunpack.i.h.bf16 %v13191_v39  ;;  %v16279_v36 = vunpack.i.l.bf16 %v13191_v39 }
 0x2c9   : > { %16273 = vst [vmem:[#allocation145_spill] sm:$0xff] %v13217_v34  ;;  %16275 = vst [vmem:[#allocation73_spill] sm:$0xff] %v13220_v42  ;;  %v13239_v42 = vadd.f32 %v3613_v45, %v16280_v25  ;;  %v16281_v34 = vld [vmem:[#allocation120_spill] sm:$0xff]  ;;  %5562 = vmatprep.mubr.bf16.mxu0 %v15774_v11  ;;  %v5805_v5 = vpack.c.bf16 %v5803_v2, %v5803_v2 }
 0x2ca   : > { %v5796_v50 = vsel %vm5780_vm7, %v16279_v36, %v16278_v43  ;;  %v13242_v32 = vadd.f32 %v3668_v23, %v16281_v34  ;;  %v3615_v15 = vpop.f32.mrf.mxu0  ;;  %v3670_v51 = vpop.f32.mrf.mxu1  ;;  %v5798_v43 = vsel %vm5780_vm7, %v10274_v56, %v10275_v52  ;;  %v5857_v34 = vsel %vm600_vm1, %v5807_v37, 0  ;;  %v16284_v37 = vld [vmem:[#allocation121_spill] sm:$0xff] }
 0x2cb   : > { %v13246_v9 = vadd.f32 %v3615_v15, %v12657_v27  ;;  %v13249_v4 = vadd.f32 %v3670_v51, %v12659_v10  ;;  %v5812_v36 = vpack.c.bf16 %v5796_v50, %v5796_v50  ;;  %v5810_v27 = vpack.c.bf16 %v5798_v43, %v5798_v43  ;;  %v16283_v15 = vld [vmem:[#allocation39_spill] sm:$0xff] }
 0x2cc   : > { %16282 = vst [vmem:[#allocation146_spill] sm:$0xff] %v13242_v32  ;;  %v3617_v45 = vpop.f32.mrf.mxu0  ;;  %v3672_v25 = vpop.f32.mrf.mxu1  ;;  %v5851_v50 = vsel %vm600_vm1, %v5805_v5, 0  ;;  %v16288_v5 = vld [vmem:[#allocation122_spill] sm:$0xff] }
 0x2cd   : > { %v13255_v23 = vadd.f32 %v3617_v45, %v12666_v49  ;;  %v13258_v32 = vadd.f32 %v3672_v25, %v12668_v16 }
 0x2ce   : > { %v3619_v10 = vpop.f32.mrf.mxu0  ;;  %v3762_v2 = vpop.f32.mrf.mxu1  ;;  %9789 = vmatmul.mubr.msk.bf16.vlgmr.msra.gmra.mxu1 %vm593_vm2, %v12772_v41 }
 0x2cf   : > { %v13266_v51 = vadd.f32 %v3619_v10, %v16283_v15  ;;  %v13269_v49 = vadd.f32 %v3762_v2, %v16284_v37  ;;  %5990 = vmatpush1.bf16.msra.mxu1 %v5857_v34  ;;  %5625 = vmatprep.mubr.bf16.mxu1 %v15774_v11  ;;  %v13283_v2 = vpop.permute.xlu1 %10287  ;;  %v16290_v15 = vld [vmem:[#allocation41_spill] sm:$0xff] }
 0x2d0   : > { %v3709_v16 = vpop.f32.mrf.mxu0  ;;  %v3764_v45 = vpop.f32.mrf.mxu1  ;;  %9786 = vmatmul.mubr.msk.bf16.vlgmr.msra.gmra.mxu0 %vm593_vm2, %v12772_v41  ;;  %9806 = vmatprep.subr.msk.bf16.mxu1 %vm600_vm1, %v5812_v36  ;;  %v16291_v41 = vld [vmem:[#allocation43_spill] sm:$0xff] }
 0x2d1   : > { %16285 = vst [vmem:[#allocation74_spill] sm:$0xff] %v13269_v49  ;;  %v13276_v43 = vadd.f32 %v3709_v16, %v16286_v61  ;;  %v13279_v25 = vadd.f32 %v3764_v45, %v16288_v5  ;;  %5937 = vmatpush1.bf16.msra.mxu0 %v5851_v50  ;;  %5572 = vmatprep.mubr.bf16.mxu0 %v15774_v11  ;;  %v13291_v16 = vpop.permute.xlu0 %10282  ;;  %v16298_v45 = vunpack.i.h.bf16 %v13108_v40 }
 0x2d2   : > { %v3711_v10 = vpop.f32.mrf.mxu0  ;;  %v3766_v34 = vpop.f32.mrf.mxu1  ;;  %9803 = vmatprep.subr.msk.bf16.mxu0 %vm600_vm1, %v5810_v27  ;;  %v16295_v27 = vld [vmem:[#allocation45_spill] sm:$0xff] }
 0x2d3   : > { %16287 = vst [vmem:[#allocation75_spill] sm:$0xff] %v13276_v43  ;;  %16289 = vst [vmem:[#allocation147_spill] sm:$0xff] %v13279_v25  ;;  %v13286_v37 = vadd.f32 %v3711_v10, %v16290_v15  ;;  %v13289_v36 = vadd.f32 %v3766_v34, %v16291_v41  ;;  %v16293_v25 = vld [vmem:[#allocation44_spill] sm:$0xff]  ;;  %v16297_v10 = vunpack.i.l.bf16 %v13191_v39  ;;  %v5799_v5 = vsel %vm5780_vm7, %v16298_v45, %v10274_v56 }
 0x2d4   : > { %v3713_v61 = vpop.f32.mrf.mxu0  ;;  %v3768_v50 = vpop.f32.mrf.mxu1  ;;  %v16303_v56 = vunpack.i.h.bf16 %v13283_v2  ;;  %v16304_v45 = vunpack.i.l.bf16 %v13283_v2 }
 0x2d5   : > { %16292 = vst [vmem:[#allocation77_spill] sm:$0xff] %v13289_v36  ;;  %v13296_v43 = vadd.f32 %v3713_v61, %v16293_v25  ;;  %v13299_v49 = vadd.f32 %v3768_v50, %v16295_v27  ;;  %v5797_v34 = vsel %vm5780_vm7, %v10275_v52, %v16297_v10  ;;  %v16299_v25 = vld [vmem:[#allocation123_spill] sm:$0xff]  ;;  %v16301_v50 = vld [vmem:[#allocation46_spill] sm:$0xff]  ;;  %v10285_v52 = vunpack.i.h.bf16 %v13291_v16 }
 0x2d6   : > { %v3715_v15 = vpop.f32.mrf.mxu0  ;;  %v3772_v41 = vpop.f32.mrf.mxu1  ;;  %9790 = vmatmul.mubr.msk.bf16.gmra.mxu1 %vm593_vm2, %v12811_v48  ;;  %v10284_v10 = vunpack.i.l.bf16 %v13291_v16  ;;  %v5811_v40 = vpack.c.bf16 %v5797_v34, %v5797_v34  ;;  %v5809_v34 = vpack.c.bf16 %v5799_v5, %v5799_v5 }
 0x2d7   : > { %16294 = vst [vmem:[#allocation78_spill] sm:$0xff] %v13296_v43  ;;  %16296 = vst [vmem:[#allocation148_spill] sm:$0xff] %v13299_v49  ;;  %v13312_v61 = vadd.f32 %v3715_v15, %v16299_v25  ;;  %v13315_v27 = vadd.f32 %v3772_v41, %v16301_v50  ;;  %6007 = vmatprep.mubr.bf16.mxu1 %v15774_v11  ;;  %v5792_v15 = vsel %vm5780_vm7, %v16304_v45, %v16303_v56  ;;  %v16305_v41 = vld [vmem:[#allocation124_spill] sm:$0xff]  ;;  %v16307_v50 = vld [vmem:[#allocation47_spill] sm:$0xff] }
 0x2d8   : > { %v3719_v49 = vpop.f32.mrf.mxu0  ;;  %v3774_v43 = vpop.f32.mrf.mxu1  ;;  %9787 = vmatmul.mubr.msk.bf16.gmra.mxu0 %vm593_vm2, %v12811_v48  ;;  %v13338_v48 = vld [vmem:[%s15693_s1 + $0x60] sm:$0xff]  }
 0x2d9   : > { %16300 = vst [vmem:[#allocation79_spill] sm:$0xff] %v13312_v61  ;;  %16302 = vst [vmem:[#allocation149_spill] sm:$0xff] %v13315_v27  ;;  %v13329_v25 = vadd.f32 %v3719_v49, %v16305_v41  ;;  %v13332_v27 = vadd.f32 %v3774_v43, %v16307_v50  ;;  %5954 = vmatprep.mubr.bf16.mxu0 %v15774_v11  ;;  %v5794_v49 = vsel %vm5780_vm7, %v10284_v10, %v10285_v52 }
 0x2da   : > { %v3721_v16 = vpop.f32.mrf.mxu0  ;;  %v3776_v61 = vpop.f32.mrf.mxu1  ;;  %v5816_v43 = vpack.c.bf16 %v5792_v15, %v5792_v15  ;;  %v5869_v50 = vsel %vm600_vm1, %v5811_v40, 0 }
 0x2db   : > { %16306 = vst [vmem:[#allocation80_spill] sm:$0xff] %v13329_v25  ;;  %16308 = vst [vmem:[#allocation150_spill] sm:$0xff] %v13332_v27  ;;  %v13341_v36 = vadd.f32 %v3721_v16, %v12776_v13  ;;  %v13344_v56 = vadd.f32 %v3776_v61, %v12778_v17  ;;  %v5814_v13 = vpack.c.bf16 %v5794_v49, %v5794_v49  ;;  %v5863_v61 = vsel %vm600_vm1, %v5809_v34, 0  ;;  %v13380_v34 = vld [vmem:[%s15693_s1 + $0x68] sm:$0xff]   ;;  %v13383_v49 = vpop.permute.xlu1 %10297 }
 0x2dc   : > { %v3723_v45 = vpop.f32.mrf.mxu0  ;;  %v3778_v41 = vpop.f32.mrf.mxu1 }
 0x2dd   : > { %v13350_v27 = vadd.f32 %v3723_v45, %v12783_v8  ;;  %v13353_v25 = vadd.f32 %v3778_v41, %v12785_v47  ;;  %v15727_v45 = vunpack.i.h.bf16 %v13383_v49 }
 0x2de   : > { %v3725_v17 = vpop.f32.mrf.mxu0  ;;  %v4165_v5 = vpop.f32.mrf.mxu1  ;;  %9801 = vmatmul.mubr.msk.bf16.vlgmr.msra.gmra.mxu1 %vm593_vm2, %v13338_v48 }
 0x2df   : > { %v13361_v15 = vadd.f32 %v3725_v17, %v12792_v58  ;;  %v13364_v8 = vadd.f32 %v4165_v5, %v12795_v24  ;;  %6096 = vmatpush1.bf16.msra.mxu1 %v5869_v50  ;;  %6017 = vmatprep.mubr.bf16.mxu1 %v15774_v11  ;;  %v15728_v17 = vunpack.i.l.bf16 %v13383_v49 }
 0x2e0   : > { %v4112_v47 = vpop.f32.mrf.mxu0  ;;  %v4167_v40 = vpop.f32.mrf.mxu1  ;;  %9798 = vmatmul.mubr.msk.bf16.vlgmr.msra.gmra.mxu0 %vm593_vm2, %v13338_v48  ;;  %9812 = vmatprep.subr.msk.bf16.mxu1 %vm600_vm1, %v5816_v43 }
 0x2e1   : > { %v13371_v31 = vadd.f32 %v4112_v47, %v12802_v19  ;;  %v13374_v16 = vadd.f32 %v4167_v40, %v12805_v20  ;;  %6043 = vmatpush1.bf16.msra.mxu0 %v5863_v61  ;;  %5964 = vmatprep.mubr.bf16.mxu0 %v15774_v11  ;;  %v13391_v43 = vpop.permute.xlu0 %10292  ;;  %v16310_v40 = vunpack.i.h.bf16 %v13191_v39 }
 0x2e2   : > { %v4114_v58 = vpop.f32.mrf.mxu0  ;;  %v4169_v24 = vpop.f32.mrf.mxu1  ;;  %9809 = vmatprep.subr.msk.bf16.mxu0 %vm600_vm1, %v5814_v13 }
 0x2e3   : > { %v13386_v19 = vadd.f32 %v4114_v58, %v12819_v54  ;;  %v13389_v20 = vadd.f32 %v4169_v24, %v12822_v29  ;;  %v16309_v54 = vunpack.i.l.bf16 %v13283_v2  ;;  %v5795_v58 = vsel %vm5780_vm7, %v16310_v40, %v10284_v10 }
 0x2e4   : > { %v4116_v41 = vpop.f32.mrf.mxu0  ;;  %v4171_v50 = vpop.f32.mrf.mxu1  ;;  %v10294_v24 = vunpack.i.l.bf16 %v13391_v43 }
 0x2e5   : > { %v13396_v5 = vadd.f32 %v4116_v41, %v12831_v3  ;;  %v13399_v13 = vadd.f32 %v4171_v50, %v12834_v14  ;;  %v5793_v29 = vsel %vm5780_vm7, %v10285_v52, %v16309_v54  ;;  %v10295_v52 = vunpack.i.h.bf16 %v13391_v43 }
 0x2e6   : > { %v4118_v61 = vpop.f32.mrf.mxu0  ;;  %v4175_v47 = vpop.f32.mrf.mxu1  ;;  %9802 = vmatmul.mubr.msk.bf16.gmra.mxu1 %vm593_vm2, %v13380_v34  ;;  %v5815_v39 = vpack.c.bf16 %v5793_v29, %v5793_v29 }
 0x2e7   : > { %v13412_v3 = vadd.f32 %v4118_v61, %v12851_v62  ;;  %v13415_v14 = vadd.f32 %v4175_v47, %v12854_v53  ;;  %6113 = vmatprep.mubr.bf16.mxu1 %v15774_v11  ;;  %v5788_v62 = vsel %vm5780_vm7, %v15728_v17, %v15727_v45  ;;  %v5813_v61 = vpack.c.bf16 %v5795_v58, %v5795_v58 }
 0x2e8   : > { %v4122_v41 = vpop.f32.mrf.mxu0  ;;  %v4177_v50 = vpop.f32.mrf.mxu1  ;;  %9799 = vmatmul.mubr.msk.bf16.gmra.mxu0 %vm593_vm2, %v13380_v34  ;;  %v5790_v40 = vsel %vm5780_vm7, %v10294_v24, %v10295_v52  ;;  %v5820_v45 = vpack.c.bf16 %v5788_v62, %v5788_v62 }
 0x2e9   : > { %v13429_v53 = vadd.f32 %v4122_v41, %v12870_v35  ;;  %v13432_v10 = vadd.f32 %v4177_v50, %v12873_v12  ;;  %6060 = vmatprep.mubr.bf16.mxu0 %v15774_v11  ;;  %v5881_v12 = vsel %vm600_vm1, %v5815_v39, 0  ;;  %v5818_v58 = vpack.c.bf16 %v5790_v40, %v5790_v40  ;;  %v13471_v40 = vpop.permute.xlu1 %10307 }
 0x2ea   : > { %v4124_v43 = vpop.f32.mrf.mxu0  ;;  %v4179_v54 = vpop.f32.mrf.mxu1 }
 0x2eb   : > { %v13436_v29 = vadd.f32 %v4124_v43, %v12877_v33  ;;  %v13439_v47 = vadd.f32 %v4179_v54, %v12880_v38  ;;  %v5875_v38 = vsel %vm600_vm1, %v5813_v61, 0 }
 0x2ec   : > { %v4126_v35 = vpop.f32.mrf.mxu0  ;;  %v4181_v41 = vpop.f32.mrf.mxu1 }
 0x2ed   : > { %v13445_v50 = vadd.f32 %v4126_v35, %v12890_v6  ;;  %v13448_v17 = vadd.f32 %v4181_v41, %v12893_v44 }
 0x2ee   : > { %v4128_v33 = vpop.f32.mrf.mxu0  ;;  %v4271_v43 = vpop.f32.mrf.mxu1  ;;  %9807 = vmatmul.mubr.msk.bf16.vlgmr.msra.gmra.mxu1 %vm593_vm2, %v13338_v48 }
 0x2ef   : > { %v13454_v62 = vadd.f32 %v4128_v33, %v12899_v28  ;;  %v13457_v54 = vadd.f32 %v4271_v43, %v12902_v18  ;;  %6202 = vmatpush1.bf16.msra.mxu1 %v5881_v12  ;;  %6123 = vmatprep.mubr.bf16.mxu1 %v15774_v11  ;;  %v10309_v12 = vunpack.i.l.bf16 %v13471_v40  ;;  %v16313_v33 = vld [vmem:[#allocation125_spill] sm:$0xff] }
 0x2f0   : > { %v4218_v6 = vpop.f32.mrf.mxu0  ;;  %v4273_v44 = vpop.f32.mrf.mxu1  ;;  %9804 = vmatmul.mubr.msk.bf16.vlgmr.msra.gmra.mxu0 %vm593_vm2, %v13338_v48  ;;  %9818 = vmatprep.subr.msk.bf16.mxu1 %vm600_vm1, %v5820_v45 }
 0x2f1   : > { %v13464_v39 = vadd.f32 %v4218_v6, %v12909_v46  ;;  %v13467_v61 = vadd.f32 %v4273_v44, %v12912_v60  ;;  %6149 = vmatpush1.bf16.msra.mxu0 %v5875_v38  ;;  %6070 = vmatprep.mubr.bf16.mxu0 %v15774_v11  ;;  %v16315_v38 = vld [vmem:[#allocation48_spill] sm:$0xff] }
 0x2f2   : > { %v4220_v28 = vpop.f32.mrf.mxu0  ;;  %v4275_v18 = vpop.f32.mrf.mxu1  ;;  %9815 = vmatprep.subr.msk.bf16.mxu0 %vm600_vm1, %v5818_v58 }
 0x2f3   : > { %v13474_v35 = vadd.f32 %v4220_v28, %v12921_v63  ;;  %v13477_v45 = vadd.f32 %v4275_v18, %v12924_v57  ;;  %v13487_v58 = vpop.permute.xlu0 %10302  ;;  %v16317_v63 = vunpack.i.l.bf16 %v13383_v49  ;;  %v16318_v18 = vld [vmem:[#allocation126_spill] sm:$0xff] }
 0x2f4   : > { %v4222_v41 = vpop.f32.mrf.mxu0  ;;  %v4277_v60 = vpop.f32.mrf.mxu1 }
 0x2f5   : > { %16311 = vst [vmem:[#allocation76_spill] sm:$0xff] %v13474_v35  ;;  %16312 = vst [vmem:[#allocation81_spill] sm:$0xff] %v13477_v45  ;;  %v13482_v43 = vadd.f32 %v4222_v41, %v16313_v33  ;;  %v13485_v6 = vadd.f32 %v4277_v60, %v16315_v38  ;;  %v5789_v57 = vsel %vm5780_vm7, %v10295_v52, %v16317_v63  ;;  %v16320_v41 = vld [vmem:[#allocation49_spill] sm:$0xff]  ;;  %v10304_v60 = vunpack.i.l.bf16 %v13487_v58 }
 0x2f6   : > { %v4224_v44 = vpop.f32.mrf.mxu0  ;;  %v4281_v28 = vpop.f32.mrf.mxu1  ;;  %9808 = vmatmul.mubr.msk.bf16.gmra.mxu1 %vm593_vm2, %v13380_v34  ;;  %v16322_v38 = vunpack.i.h.bf16 %v13283_v2  ;;  %v10305_v2 = vunpack.i.h.bf16 %v13487_v58 }
 0x2f7   : > { %16314 = vst [vmem:[#allocation151_spill] sm:$0xff] %v13482_v43  ;;  %16316 = vst [vmem:[#allocation82_spill] sm:$0xff] %v13485_v6  ;;  %v13496_v46 = vadd.f32 %v4224_v44, %v16318_v18  ;;  %v13499_v33 = vadd.f32 %v4281_v28, %v16320_v41  ;;  %6219 = vmatprep.mubr.bf16.mxu1 %v15774_v11  ;;  %v5819_v43 = vpack.c.bf16 %v5789_v57, %v5789_v57  ;;  %v16324_v18 = vld [vmem:[#allocation50_spill] sm:$0xff] }
 0x2f8   : > { %v5791_v52 = vsel %vm5780_vm7, %v16322_v38, %v10294_v24  ;;  %v4228_v63 = vpop.f32.mrf.mxu0  ;;  %v4283_v6 = vpop.f32.mrf.mxu1  ;;  %9805 = vmatmul.mubr.msk.bf16.gmra.mxu0 %vm593_vm2, %v13380_v34  ;;  %v16323_v44 = vunpack.i.h.bf16 %v13471_v40 }
 0x2f9   : > { %16319 = vst [vmem:[#allocation152_spill] sm:$0xff] %v13496_v46  ;;  %16321 = vst [vmem:[#allocation83_spill] sm:$0xff] %v13499_v33  ;;  %v13514_v41 = vadd.f32 %v4228_v63, %v16324_v18  ;;  %v16326_v33 = vld [vmem:[#allocation51_spill] sm:$0xff]  ;;  %6166 = vmatprep.mubr.bf16.mxu0 %v15774_v11  ;;  %v5817_v45 = vpack.c.bf16 %v5791_v52, %v5791_v52  ;;  %v5786_v63 = vsel %vm5780_vm7, %v10304_v60, %v10305_v2 }
 0x2fa   : > { %v5784_v28 = vsel %vm5780_vm7, %v10309_v12, %v16323_v44  ;;  %v13517_v46 = vadd.f32 %v4283_v6, %v16326_v33  ;;  %v4230_v24 = vpop.f32.mrf.mxu0  ;;  %v4285_v38 = vpop.f32.mrf.mxu1  ;;  %v5893_v33 = vsel %vm600_vm1, %v5819_v43, 0  ;;  %v5822_v52 = vpack.c.bf16 %v5786_v63, %v5786_v63 }
 0x2fb   : > { %16325 = vst [vmem:[#allocation84_spill] sm:$0xff] %v13514_v41  ;;  %v13522_v57 = vadd.f32 %v4230_v24, %v12977_v1  ;;  %v13525_v35 = vadd.f32 %v4285_v38, %v12980_v26  ;;  %v5824_v44 = vpack.c.bf16 %v5784_v28, %v5784_v28  ;;  %v5887_v26 = vsel %vm600_vm1, %v5817_v45, 0  ;;  %v16330_v38 = vld [vmem:[#allocation128_spill] sm:$0xff] }
 0x2fc   : > { %16327 = vst [vmem:[#allocation153_spill] sm:$0xff] %v13517_v46  ;;  %v4232_v18 = vpop.f32.mrf.mxu0  ;;  %v4287_v6 = vpop.f32.mrf.mxu1  ;;  %v16329_v46 = vld [vmem:[#allocation52_spill] sm:$0xff] }
 0x2fd   : > { %16328 = vst [vmem:[#allocation85_spill] sm:$0xff] %v13525_v35  ;;  %v13531_v58 = vadd.f32 %v4232_v18, %v12986_v0  ;;  %v13534_v41 = vadd.f32 %v4287_v6, %v16329_v46  ;;  %v16333_v18 = vld [vmem:[#allocation53_spill] sm:$0xff] }
 0x2fe   : > { %v4234_v1 = vpop.f32.mrf.mxu0  ;;  %v4377_v24 = vpop.f32.mrf.mxu1  ;;  %9813 = vmatmul.mubr.msk.bf16.vlgmr.msra.gmra.mxu1 %vm593_vm2, %v13338_v48 }
 0x2ff   : > { %v13540_v28 = vadd.f32 %v4234_v1, %v12999_v30  ;;  %v13543_v35 = vadd.f32 %v4377_v24, %v16330_v38  ;;  %6308 = vmatpush1.bf16.msra.mxu1 %v5893_v33  ;;  %6229 = vmatprep.mubr.bf16.mxu1 %v15774_v11  ;;  %v16335_v33 = vld [vmem:[#allocation129_spill] sm:$0xff]  ;;  %v16337_v38 = vld [vmem:[#allocation54_spill] sm:$0xff] }
 0x300   : > { %v4324_v0 = vpop.f32.mrf.mxu0  ;;  %v4379_v46 = vpop.f32.mrf.mxu1  ;;  %9810 = vmatmul.mubr.msk.bf16.vlgmr.msra.gmra.mxu0 %vm593_vm2, %v13338_v48  ;;  %9824 = vmatprep.subr.msk.bf16.mxu1 %vm600_vm1, %v5824_v44 }
 0x301   : > { %v13550_v43 = vadd.f32 %v4324_v0, %v13009_v7  ;;  %v13553_v45 = vadd.f32 %v4379_v46, %v13012_v59  ;;  %6255 = vmatpush1.bf16.msra.mxu0 %v5887_v26  ;;  %6176 = vmatprep.mubr.bf16.mxu0 %v15774_v11  ;;  %v13563_v44 = vpop.permute.xlu0 %10312  ;;  %v16339_v26 = vld [vmem:[#allocation130_spill] sm:$0xff]  ;;  %v5785_v46 = vsel %vm5780_vm7, %v10305_v2, %v10309_v12 }
 0x302   : > { %v4326_v30 = vpop.f32.mrf.mxu0  ;;  %v4381_v63 = vpop.f32.mrf.mxu1  ;;  %9821 = vmatprep.subr.msk.bf16.mxu0 %vm600_vm1, %v5822_v52  ;;  %v10315_v12 = vunpack.i.h.bf16 %v13563_v44  ;;  %v10314_v2 = vunpack.i.l.bf16 %v13563_v44 }
 0x303   : > { %16331 = vst [vmem:[#allocation154_spill] sm:$0xff] %v13550_v43  ;;  %16332 = vst [vmem:[#allocation86_spill] sm:$0xff] %v13553_v45  ;;  %v13558_v6 = vadd.f32 %v4326_v30, %v16333_v18  ;;  %v13561_v1 = vadd.f32 %v4381_v63, %v16335_v33  ;;  %v16341_v30 = vunpack.i.h.bf16 %v13383_v49  ;;  %v5779_v18 = vpop.permute.xlu1 %5778  ;;  %v16342_v33 = vld [vmem:[#allocation55_spill] sm:$0xff]  ;;  %v5823_v49 = vpack.c.bf16 %v5785_v46, %v5785_v46  ;;  %v16353_v46 = vld [vmem:[#allocation58_spill] sm:$0xff] }
 0x304   : > { %v4328_v7 = vpop.f32.mrf.mxu0  ;;  %v4383_v24 = vpop.f32.mrf.mxu1 }
 0x305   : > { %16334 = vst [vmem:[#allocation155_spill] sm:$0xff] %v13558_v6  ;;  %16336 = vst [vmem:[#allocation87_spill] sm:$0xff] %v13561_v1  ;;  %v13566_v59 = vadd.f32 %v4328_v7, %v16337_v38  ;;  %v13569_v0 = vadd.f32 %v4383_v24, %v16339_v26  ;;  %v5787_v63 = vsel %vm5780_vm7, %v16341_v30, %v10304_v60  ;;  %v16344_v38 = vld [vmem:[#allocation131_spill] sm:$0xff]  ;;  %v16346_v60 = vld [vmem:[#allocation56_spill] sm:$0xff] }
 0x306   : > { %v4330_v52 = vpop.f32.mrf.mxu0  ;;  %v4387_v45 = vpop.f32.mrf.mxu1  ;;  %9814 = vmatmul.mubr.msk.bf16.gmra.mxu1 %vm593_vm2, %v13380_v34 }
 0x307   : > { %16338 = vst [vmem:[#allocation156_spill] sm:$0xff] %v13566_v59  ;;  %16340 = vst [vmem:[#allocation88_spill] sm:$0xff] %v13569_v0  ;;  %v13580_v7 = vadd.f32 %v4330_v52, %v16342_v33  ;;  %v13583_v24 = vadd.f32 %v4387_v45, %v16344_v38  ;;  %6325 = vmatprep.mubr.bf16.mxu1 %v15774_v11  ;;  %v16348_v52 = vld [vmem:[#allocation132_spill] sm:$0xff]  ;;  %v16351_v59 = vld [vmem:[#allocation57_spill] sm:$0xff] }
 0x308   : > { %v4334_v26 = vpop.f32.mrf.mxu0  ;;  %v4389_v0 = vpop.f32.mrf.mxu1  ;;  %9811 = vmatmul.mubr.msk.bf16.gmra.mxu0 %vm593_vm2, %v13380_v34 }
 0x309   : > { %16343 = vst [vmem:[#allocation157_spill] sm:$0xff] %v13580_v7  ;;  %16345 = vst [vmem:[#allocation89_spill] sm:$0xff] %v13583_v24  ;;  %v13591_v30 = vadd.f32 %v4334_v26, %v16346_v60  ;;  %v13594_v33 = vadd.f32 %v4389_v0, %v16348_v52  ;;  %6272 = vmatprep.mubr.bf16.mxu0 %v15774_v11  ;;  %v5821_v24 = vpack.c.bf16 %v5787_v63, %v5787_v63 }
 0x30a   : > { %v4336_v45 = vpop.f32.mrf.mxu0  ;;  %v4391_v38 = vpop.f32.mrf.mxu1  ;;  %v16350_v7 = vunpack.i.l.bf16 %v13077_v55  ;;  %v5782_v0 = vsel %vm5780_vm7, %v10314_v2, %v10315_v12  ;;  %v5905_v52 = vsel %vm600_vm1, %v5823_v49, 0  ;;  %v16356_v55 = vld [vmem:[#allocation133_spill] sm:$0xff]  ;;  %v16359_v49 = vld [vmem:[#allocation134_spill] sm:$0xff] }
 0x30b   : > { %16347 = vst [vmem:[#allocation158_spill] sm:$0xff] %v13591_v30  ;;  %16349 = vst [vmem:[#allocation90_spill] sm:$0xff] %v13594_v33  ;;  %v13602_v1 = vadd.f32 %v4336_v45, %v16351_v59  ;;  %v13605_v6 = vadd.f32 %v4391_v38, %v16353_v46  ;;  %v16355_v33 = vld [vmem:[#allocation60_spill] sm:$0xff]  ;;  %v5826_v45 = vpack.c.bf16 %v5782_v0, %v5782_v0  ;;  %v5899_v46 = vsel %vm600_vm1, %v5821_v24, 0  ;;  %v16363_v24 = vld [vmem:[#allocation135_spill] sm:$0xff] }
 0x30c   : > { %v5804_v44 = vsel %vm5780_vm7, %v5779_v18, %v16350_v7  ;;  %v4338_v26 = vpop.f32.mrf.mxu0  ;;  %v4393_v60 = vpop.f32.mrf.mxu1 }
 0x30d   : > { %16352 = vst [vmem:[#allocation159_spill] sm:$0xff] %v13602_v1  ;;  %16354 = vst [vmem:[#allocation91_spill] sm:$0xff] %v13605_v6  ;;  %v13611_v63 = vadd.f32 %v4338_v26, %v16355_v33  ;;  %v13614_v30 = vadd.f32 %v4393_v60, %v16356_v55  ;;  %v13616_v7 = vpop.permute.xlu0 %10317  ;;  %v5828_v59 = vpack.c.bf16 %v5804_v44, %v5804_v44  ;;  %v16357_v6 = vld [vmem:[#allocation61_spill] sm:$0xff]  ;;  %v16361_v26 = vld [vmem:[#allocation62_spill] sm:$0xff] }
 0x30e   : > { %v4340_v1 = vpop.f32.mrf.mxu0  ;;  %v4483_v38 = vpop.f32.mrf.mxu1  ;;  %9819 = vmatmul.mubr.msk.bf16.vlgmr.msra.gmra.mxu1 %vm593_vm2, %v13338_v48 }
 0x30f   : > { %v13622_v43 = vadd.f32 %v4340_v1, %v16357_v6  ;;  %v13625_v33 = vadd.f32 %v4483_v38, %v16359_v49  ;;  %6414 = vmatpush1.bf16.msra.mxu1 %v5905_v52  ;;  %6335 = vmatprep.mubr.bf16.mxu1 %v15774_v11  ;;  %v16365_v52 = vld [vmem:[#allocation63_spill] sm:$0xff]  ;;  %v16367_v38 = vld [vmem:[#allocation136_spill] sm:$0xff] }
 0x310   : > { %9830 = vmatprep.subr.msk.bf16.mxu1 %vm600_vm1, %v5828_v59  ;;  %v4430_v44 = vpop.f32.mrf.mxu0  ;;  %v4485_v0 = vpop.f32.mrf.mxu1  ;;  %9816 = vmatmul.mubr.msk.bf16.vlgmr.msra.gmra.mxu0 %vm593_vm2, %v13338_v48 }
 0x311   : > { %16358 = vst [vmem:[#allocation160_spill] sm:$0xff] %v13622_v43  ;;  %16360 = vst [vmem:[#allocation92_spill] sm:$0xff] %v13625_v33  ;;  %v13632_v60 = vadd.f32 %v4430_v44, %v16361_v26  ;;  %v13635_v55 = vadd.f32 %v4485_v0, %v16363_v24  ;;  %6361 = vmatpush1.bf16.msra.mxu0 %v5899_v46  ;;  %6282 = vmatprep.mubr.bf16.mxu0 %v15774_v11  ;;  %v13645_v33 = vpop.permute.xlu0 %10322  ;;  %v16369_v24 = vld [vmem:[#allocation64_spill] sm:$0xff]  ;;  %v16373_v0 = vld [vmem:[#allocation65_spill] sm:$0xff] }
 0x312   : > { %v4432_v6 = vpop.f32.mrf.mxu0  ;;  %v4487_v1 = vpop.f32.mrf.mxu1  ;;  %9827 = vmatprep.subr.msk.bf16.mxu0 %vm600_vm1, %v5826_v45 }
 0x313   : > { %16362 = vst [vmem:[#allocation161_spill] sm:$0xff] %v13632_v60  ;;  %16364 = vst [vmem:[#allocation94_spill] sm:$0xff] %v13635_v55  ;;  %v13640_v59 = vadd.f32 %v4432_v6, %v16365_v52  ;;  %v13643_v49 = vadd.f32 %v4487_v1, %v16367_v38  ;;  %v16371_v55 = vld [vmem:[#allocation137_spill] sm:$0xff]  ;;  %v5781_v6 = vsel %vm5780_vm7, %v10315_v12, %v5779_v18  ;;  %v16378_v38 = vunpack.i.h.bf16 %v13645_v33 }
 0x314   : > { %v4434_v44 = vpop.f32.mrf.mxu0  ;;  %v4489_v26 = vpop.f32.mrf.mxu1 }
 0x315   : > { %16366 = vst [vmem:[#allocation162_spill] sm:$0xff] %v13640_v59  ;;  %16368 = vst [vmem:[#allocation95_spill] sm:$0xff] %v13643_v49  ;;  %v13649_v46 = vadd.f32 %v4434_v44, %v16369_v24  ;;  %v13652_v60 = vadd.f32 %v4489_v26, %v16371_v55  ;;  %v16375_v24 = vld [vmem:[#allocation138_spill] sm:$0xff]  ;;  %v16377_v26 = vunpack.i.h.bf16 %v13471_v40  ;;  %v16382_v40 = vld [vmem:[#allocation139_spill] sm:$0xff] }
 0x316   : > { %v4436_v52 = vpop.f32.mrf.mxu0  ;;  %v4493_v1 = vpop.f32.mrf.mxu1  ;;  %9820 = vmatmul.mubr.msk.bf16.gmra.mxu1 %vm593_vm2, %v13380_v34  ;;  %v16385_v49 = vld [vmem:[#allocation67_spill] sm:$0xff] }
 0x317   : > { %16370 = vst [vmem:[#allocation163_spill] sm:$0xff] %v13649_v46  ;;  %16372 = vst [vmem:[#allocation96_spill] sm:$0xff] %v13652_v60  ;;  %v13662_v44 = vadd.f32 %v4436_v52, %v16373_v0  ;;  %v13665_v55 = vadd.f32 %v4493_v1, %v16375_v24  ;;  %6431 = vmatprep.mubr.bf16.mxu1 %v15774_v11  ;;  %v5783_v18 = vsel %vm5780_vm7, %v16377_v26, %v10314_v2  ;;  %v16380_v1 = vld [vmem:[#allocation66_spill] sm:$0xff]  ;;  %v6659_v2 = vpop.permute.xlu1 %6658 }
 0x318   : > { %v4440_v12 = vpop.f32.mrf.mxu0  ;;  %v4495_v45 = vpop.f32.mrf.mxu1  ;;  %9817 = vmatmul.mubr.msk.bf16.gmra.mxu0 %vm593_vm2, %v13380_v34  ;;  %v5827_v60 = vpack.c.bf16 %v5781_v6, %v5781_v6  ;;  %v16379_v0 = vunpack.i.l.bf16 %v13645_v33  ;;  %v5825_v46 = vpack.c.bf16 %v5783_v18, %v5783_v18  ;;  %v16389_v18 = vld [vmem:[#allocation68_spill] sm:$0xff] }
 0x319   : > { %16374 = vst [vmem:[#allocation164_spill] sm:$0xff] %v13662_v44  ;;  %16376 = vst [vmem:[#allocation93_spill] sm:$0xff] %v13665_v55  ;;  %v13681_v24 = vadd.f32 %v4440_v12, %v16380_v1  ;;  %v13684_v55 = vadd.f32 %v4495_v45, %v16382_v40  ;;  %6378 = vmatprep.mubr.bf16.mxu0 %v15774_v11 }
 0x31a   : > { %v6722_v52 = vsel %vm6702_vm8, %v16379_v0, %v16378_v38  ;;  %v4442_v26 = vpop.f32.mrf.mxu0  ;;  %v4497_v44 = vpop.f32.mrf.mxu1  ;;  %v16387_v38 = vunpack.i.h.bf16 %v13616_v7  ;;  %v5917_v40 = vsel %vm600_vm1, %v5827_v60, 0 }
 0x31b   : > { %16381 = vst [vmem:[#allocation8_spill] sm:$0xff] %v13681_v24  ;;  %16383 = vst [vmem:[#allocation10_spill] sm:$0xff] %v13684_v55  ;;  %v13688_v6 = vadd.f32 %v4442_v26, %v13151_v21  ;;  %v13691_v59 = vadd.f32 %v4497_v44, %v16385_v49  ;;  %v6730_v0 = vpack.c.bf16 %v6722_v52, %v6722_v52  ;;  %v16388_v55 = vld [vmem:[#allocation140_spill] sm:$0xff]  ;;  %v5911_v49 = vsel %vm600_vm1, %v5825_v46, 0  ;;  %v16396_v46 = vld [vmem:[#allocation70_spill] sm:$0xff] }
 0x31c   : > { %v6724_v12 = vsel %vm6702_vm8, %v16387_v38, %v6659_v2  ;;  %v4444_v45 = vpop.f32.mrf.mxu0  ;;  %v4499_v1 = vpop.f32.mrf.mxu1  ;;  %v16390_v38 = vld [vmem:[#allocation141_spill] sm:$0xff] }
 0x31d   : > { %16384 = vst [vmem:[#allocation9_spill] sm:$0xff] %v13688_v6  ;;  %16386 = vst [vmem:[#allocation97_spill] sm:$0xff] %v13691_v59  ;;  %v13699_v24 = vadd.f32 %v4444_v45, %v16388_v55  ;;  %v13702_v43 = vadd.f32 %v4499_v1, %v16389_v18  ;;  %v6728_v44 = vpack.c.bf16 %v6724_v12, %v6724_v12  ;;  %v16392_v59 = vld [vmem:[#allocation69_spill] sm:$0xff]  ;;  %v16394_v45 = vld [vmem:[#allocation142_spill] sm:$0xff] }
 0x31e   : > { %v4446_v21 = vpop.f32.mrf.mxu0  ;;  %v4589_v26 = vpop.f32.mrf.mxu1  ;;  %9825 = vmatmul.mubr.msk.bf16.vlgmr.msra.gmra.mxu1 %vm593_vm2, %v13338_v48  ;;  %v16404_v18 = vld [vmem:[#allocation72_spill] sm:$0xff] }
 0x31f   : > { %v13708_v52 = vadd.f32 %v4446_v21, %v16390_v38  ;;  %v13711_v6 = vadd.f32 %v4589_v26, %v16392_v59  ;;  %6520 = vmatpush1.bf16.msra.mxu1 %v5917_v40  ;;  %6441 = vmatprep.mubr.bf16.mxu1 %v15774_v11  ;;  %v13726_v21 = vpop.permute.xlu0 %10332  ;;  %v16398_v26 = vld [vmem:[#allocation143_spill] sm:$0xff] }
 0x320   : > { %v4536_v60 = vpop.f32.mrf.mxu0  ;;  %v4591_v55 = vpop.f32.mrf.mxu1  ;;  %9822 = vmatmul.mubr.msk.bf16.vlgmr.msra.gmra.mxu0 %vm593_vm2, %v13338_v48  ;;  %9842 = vmatprep.subr.msk.bf16.mxu1 %vm600_vm1, %v6730_v0  ;;  %v16400_v0 = vld [vmem:[#allocation71_spill] sm:$0xff] }
 0x321   : > { %16391 = vst [vmem:[#allocation15_spill] sm:$0xff] %v13708_v52  ;;  %16393 = vst [vmem:[#allocation11_spill] sm:$0xff] %v13711_v6  ;;  %v13718_v1 = vadd.f32 %v4536_v60, %v16394_v45  ;;  %v13721_v12 = vadd.f32 %v4591_v55, %v16396_v46  ;;  %6467 = vmatpush1.bf16.msra.mxu0 %v5911_v49  ;;  %6388 = vmatprep.mubr.bf16.mxu0 %v15774_v11  ;;  %v13734_v45 = vpop.permute.xlu1 %10327 }
 0x322   : > { %v4538_v59 = vpop.f32.mrf.mxu0  ;;  %v4593_v40 = vpop.f32.mrf.mxu1  ;;  %9839 = vmatprep.subr.msk.bf16.mxu0 %vm600_vm1, %v6728_v44  ;;  %v10330_v49 = vunpack.i.h.bf16 %v13734_v45 }
 0x323   : > { %16395 = vst [vmem:[#allocation98_spill] sm:$0xff] %v13718_v1  ;;  %16397 = vst [vmem:[#allocation12_spill] sm:$0xff] %v13721_v12  ;;  %v13729_v38 = vadd.f32 %v4538_v59, %v16398_v26  ;;  %v13732_v60 = vadd.f32 %v4593_v40, %v16400_v0  ;;  %v16402_v1 = vld [vmem:[#allocation144_spill] sm:$0xff]  ;;  %v16406_v59 = vunpack.i.l.bf16 %v13645_v33 }
 0x324   : > { %v4540_v55 = vpop.f32.mrf.mxu0  ;;  %v4595_v46 = vpop.f32.mrf.mxu1 }
 0x325   : > { %16399 = vst [vmem:[#allocation99_spill] sm:$0xff] %v13729_v38  ;;  %16401 = vst [vmem:[#allocation20_spill] sm:$0xff] %v13732_v60  ;;  %v13739_v44 = vadd.f32 %v4540_v55, %v16402_v1  ;;  %v13742_v6 = vadd.f32 %v4595_v46, %v16404_v18  ;;  %v6723_v40 = vsel %vm6702_vm8, %v6659_v2, %v16406_v59  ;;  %v16407_v60 = vld [vmem:[#allocation145_spill] sm:$0xff]  ;;  %v10329_v18 = vunpack.i.l.bf16 %v13734_v45 }
 0x326   : > { %v4542_v26 = vpop.f32.mrf.mxu0  ;;  %v4599_v0 = vpop.f32.mrf.mxu1  ;;  %9826 = vmatmul.mubr.msk.bf16.gmra.mxu1 %vm593_vm2, %v13380_v34  ;;  %v16409_v1 = vld [vmem:[#allocation73_spill] sm:$0xff]  ;;  %v16411_v46 = vunpack.i.h.bf16 %v13616_v7  ;;  %v16412_v2 = vunpack.i.l.bf16 %v13616_v7 }
 0x327   : > { %16403 = vst [vmem:[#allocation13_spill] sm:$0xff] %v13739_v44  ;;  %16405 = vst [vmem:[#allocation100_spill] sm:$0xff] %v13742_v6  ;;  %v13752_v12 = vadd.f32 %v4542_v26, %v16407_v60  ;;  %v13755_v55 = vadd.f32 %v4599_v0, %v16409_v1  ;;  %6537 = vmatprep.mubr.bf16.mxu1 %v15774_v11  ;;  %v6729_v60 = vpack.c.bf16 %v6723_v40, %v6723_v40 }
 0x328   : > { %v6725_v59 = vsel %vm6702_vm8, %v16412_v2, %v16411_v46  ;;  %v4546_v6 = vpop.f32.mrf.mxu0  ;;  %v4601_v44 = vpop.f32.mrf.mxu1  ;;  %9823 = vmatmul.mubr.msk.bf16.gmra.mxu0 %vm593_vm2, %v13380_v34  ;;  %v16413_v26 = vunpack.i.h.bf16 %v13726_v21  ;;  %v16414_v0 = vunpack.i.l.bf16 %v13726_v21 }
 0x329   : > { %16408 = vst [vmem:[#allocation14_spill] sm:$0xff] %v13752_v12  ;;  %16410 = vst [vmem:[#allocation101_spill] sm:$0xff] %v13755_v55  ;;  %v13774_v1 = vadd.f32 %v4546_v6, %v13239_v42  ;;  %v16415_v55 = vld [vmem:[#allocation146_spill] sm:$0xff]  ;;  %6484 = vmatprep.mubr.bf16.mxu0 %v15774_v11  ;;  %v6727_v38 = vpack.c.bf16 %v6725_v59, %v6725_v59 }
 0x32a   : > { %v6718_v45 = vsel %vm6702_vm8, %v16414_v0, %v16413_v26  ;;  %v13777_v12 = vadd.f32 %v4601_v44, %v16415_v55  ;;  %v4548_v46 = vpop.f32.mrf.mxu0  ;;  %v4603_v2 = vpop.f32.mrf.mxu1  ;;  %v6720_v26 = vsel %vm6702_vm8, %v10329_v18, %v10330_v49  ;;  %v6779_v44 = vsel %vm600_vm1, %v6729_v60, 0  ;;  %v16419_v60 = vld [vmem:[#allocation75_spill] sm:$0xff] }
 0x32b   : > { %v13781_v40 = vadd.f32 %v4548_v46, %v13246_v9  ;;  %v13784_v52 = vadd.f32 %v4603_v2, %v13249_v4  ;;  %v6734_v0 = vpack.c.bf16 %v6718_v45, %v6718_v45  ;;  %v6732_v59 = vpack.c.bf16 %v6720_v26, %v6720_v26  ;;  %v16418_v2 = vld [vmem:[#allocation74_spill] sm:$0xff] }
 0x32c   : > { %16416 = vst [vmem:[#allocation25_spill] sm:$0xff] %v13777_v12  ;;  %v4550_v42 = vpop.f32.mrf.mxu0  ;;  %v4605_v6 = vpop.f32.mrf.mxu1  ;;  %v6773_v4 = vsel %vm600_vm1, %v6727_v38, 0  ;;  %v16420_v38 = vld [vmem:[#allocation147_spill] sm:$0xff] }
 0x32d   : > { %16417 = vst [vmem:[#allocation6_spill] sm:$0xff] %v13784_v52  ;;  %v13790_v55 = vadd.f32 %v4550_v42, %v13255_v23  ;;  %v13793_v12 = vadd.f32 %v4605_v6, %v13258_v32 }
 0x32e   : > { %v4552_v9 = vpop.f32.mrf.mxu0  ;;  %v4695_v46 = vpop.f32.mrf.mxu1  ;;  %9831 = vmatmul.mubr.msk.bf16.vlgmr.msra.gmra.mxu1 %vm593_vm2, %v13338_v48 }
 0x32f   : > { %v13799_v45 = vadd.f32 %v4552_v9, %v13266_v51  ;;  %v13802_v52 = vadd.f32 %v4695_v46, %v16418_v2  ;;  %6912 = vmatpush1.bf16.msra.mxu1 %v6779_v44  ;;  %6547 = vmatprep.mubr.bf16.mxu1 %v15774_v11  ;;  %v13816_v44 = vpop.permute.xlu0 %10342  ;;  %v13824_v46 = vpop.permute.xlu1 %10337  ;;  %v16429_v2 = vunpack.i.h.bf16 %v13645_v33 }
 0x330   : > { %v4642_v23 = vpop.f32.mrf.mxu0  ;;  %v4697_v32 = vpop.f32.mrf.mxu1  ;;  %9828 = vmatmul.mubr.msk.bf16.vlgmr.msra.gmra.mxu0 %vm593_vm2, %v13338_v48  ;;  %9848 = vmatprep.subr.msk.bf16.mxu1 %vm600_vm1, %v6734_v0  ;;  %v16422_v48 = vld [vmem:[#allocation77_spill] sm:$0xff] }
 0x331   : > { %v13809_v26 = vadd.f32 %v4642_v23, %v16419_v60  ;;  %v13812_v42 = vadd.f32 %v4697_v32, %v16420_v38  ;;  %6859 = vmatpush1.bf16.msra.mxu0 %v6773_v4  ;;  %6494 = vmatprep.mubr.bf16.mxu0 %v15774_v11  ;;  %v16424_v60 = vld [vmem:[#allocation78_spill] sm:$0xff]  ;;  %v6721_v32 = vsel %vm6702_vm8, %v16429_v2, %v10329_v18  ;;  %v16434_v18 = vunpack.i.h.bf16 %v13816_v44 }
 0x332   : > { %v4644_v51 = vpop.f32.mrf.mxu0  ;;  %v4699_v6 = vpop.f32.mrf.mxu1  ;;  %9845 = vmatprep.subr.msk.bf16.mxu0 %vm600_vm1, %v6732_v59  ;;  %v16426_v59 = vld [vmem:[#allocation148_spill] sm:$0xff]  ;;  %v16435_v2 = vunpack.i.l.bf16 %v13816_v44 }
 0x333   : > { %16421 = vst [vmem:[#allocation16_spill] sm:$0xff] %v13812_v42  ;;  %v13819_v9 = vadd.f32 %v4644_v51, %v13286_v37  ;;  %v13822_v0 = vadd.f32 %v4699_v6, %v16422_v48  ;;  %v16428_v37 = vunpack.i.l.bf16 %v13726_v21 }
 0x334   : > { %v4646_v23 = vpop.f32.mrf.mxu0  ;;  %v4701_v4 = vpop.f32.mrf.mxu1 }
 0x335   : > { %16423 = vst [vmem:[#allocation102_spill] sm:$0xff] %v13822_v0  ;;  %v13829_v38 = vadd.f32 %v4646_v23, %v16424_v60  ;;  %v13832_v42 = vadd.f32 %v4701_v4, %v16426_v59  ;;  %v6719_v51 = vsel %vm6702_vm8, %v10330_v49, %v16428_v37  ;;  %v16430_v23 = vld [vmem:[#allocation79_spill] sm:$0xff]  ;;  %v16432_v4 = vld [vmem:[#allocation149_spill] sm:$0xff]  ;;  %v10340_v49 = vunpack.i.h.bf16 %v13824_v46 }
 0x336   : > { %v4648_v6 = vpop.f32.mrf.mxu0  ;;  %v4705_v48 = vpop.f32.mrf.mxu1  ;;  %9832 = vmatmul.mubr.msk.bf16.gmra.mxu1 %vm593_vm2, %v13380_v34  ;;  %v10339_v37 = vunpack.i.l.bf16 %v13824_v46  ;;  %v6733_v33 = vpack.c.bf16 %v6719_v51, %v6719_v51  ;;  %v6731_v51 = vpack.c.bf16 %v6721_v32, %v6721_v32 }
 0x337   : > { %16425 = vst [vmem:[#allocation17_spill] sm:$0xff] %v13829_v38  ;;  %16427 = vst [vmem:[#allocation103_spill] sm:$0xff] %v13832_v42  ;;  %v13845_v60 = vadd.f32 %v4648_v6, %v16430_v23  ;;  %v13848_v59 = vadd.f32 %v4705_v48, %v16432_v4  ;;  %6929 = vmatprep.mubr.bf16.mxu1 %v15774_v11  ;;  %v6714_v6 = vsel %vm6702_vm8, %v16435_v2, %v16434_v18  ;;  %v16436_v48 = vld [vmem:[#allocation80_spill] sm:$0xff]  ;;  %v16438_v4 = vld [vmem:[#allocation150_spill] sm:$0xff] }
 0x338   : > { %v4652_v42 = vpop.f32.mrf.mxu0  ;;  %v4707_v38 = vpop.f32.mrf.mxu1  ;;  %9829 = vmatmul.mubr.msk.bf16.gmra.mxu0 %vm593_vm2, %v13380_v34  ;;  %v13871_v34 = vld [vmem:[%s15693_s1 + $0x70] sm:$0xff]  }
 0x339   : > { %16431 = vst [vmem:[#allocation18_spill] sm:$0xff] %v13845_v60  ;;  %16433 = vst [vmem:[#allocation104_spill] sm:$0xff] %v13848_v59  ;;  %v13862_v23 = vadd.f32 %v4652_v42, %v16436_v48  ;;  %v13865_v59 = vadd.f32 %v4707_v38, %v16438_v4  ;;  %6876 = vmatprep.mubr.bf16.mxu0 %v15774_v11  ;;  %v6716_v42 = vsel %vm6702_vm8, %v10339_v37, %v10340_v49 }
 0x33a   : > { %v4654_v46 = vpop.f32.mrf.mxu0  ;;  %v4709_v60 = vpop.f32.mrf.mxu1  ;;  %v6738_v38 = vpack.c.bf16 %v6714_v6, %v6714_v6  ;;  %v6791_v4 = vsel %vm600_vm1, %v6733_v33, 0  ;;  %v6736_v32 = vpack.c.bf16 %v6716_v42, %v6716_v42  ;;  %v13911_v42 = vld [vmem:[%s15693_s1 + $0x78] sm:$0xff]  }
 0x33b   : > { %16437 = vst [vmem:[#allocation19_spill] sm:$0xff] %v13862_v23  ;;  %16439 = vst [vmem:[#allocation105_spill] sm:$0xff] %v13865_v59  ;;  %v13874_v0 = vadd.f32 %v4654_v46, %v13341_v36  ;;  %v13877_v18 = vadd.f32 %v4709_v60, %v13344_v56  ;;  %v6785_v56 = vsel %vm600_vm1, %v6731_v51, 0 }
 0x33c   : > { %v4656_v2 = vpop.f32.mrf.mxu0  ;;  %v4711_v48 = vpop.f32.mrf.mxu1 }
 0x33d   : > { %v13883_v59 = vadd.f32 %v4656_v2, %v13350_v27  ;;  %v13886_v23 = vadd.f32 %v4711_v48, %v13353_v25  ;;  %v13914_v2 = vpop.permute.xlu0 %10352 }
 0x33e   : > { %v4658_v36 = vpop.f32.mrf.mxu0  ;;  %v5087_v46 = vpop.f32.mrf.mxu1  ;;  %9843 = vmatmul.mubr.msk.bf16.vlgmr.msra.gmra.mxu1 %vm593_vm2, %v13871_v34  ;;  %v15729_v48 = vunpack.i.h.bf16 %v13914_v2 }
 0x33f   : > { %v13892_v60 = vadd.f32 %v4658_v36, %v13361_v15  ;;  %v13895_v6 = vadd.f32 %v5087_v46, %v13364_v8  ;;  %7018 = vmatpush1.bf16.msra.mxu1 %v6791_v4  ;;  %6939 = vmatprep.mubr.bf16.mxu1 %v15774_v11  ;;  %v15730_v46 = vunpack.i.l.bf16 %v13914_v2 }
 0x340   : > { %v5034_v27 = vpop.f32.mrf.mxu0  ;;  %v5089_v25 = vpop.f32.mrf.mxu1  ;;  %9840 = vmatmul.mubr.msk.bf16.vlgmr.msra.gmra.mxu0 %vm593_vm2, %v13871_v34  ;;  %9854 = vmatprep.subr.msk.bf16.mxu1 %vm600_vm1, %v6738_v38 }
 0x341   : > { %v13902_v33 = vadd.f32 %v5034_v27, %v13371_v31  ;;  %v13905_v51 = vadd.f32 %v5089_v25, %v13374_v16  ;;  %6965 = vmatpush1.bf16.msra.mxu0 %v6785_v56  ;;  %6886 = vmatprep.mubr.bf16.mxu0 %v15774_v11  ;;  %v13922_v38 = vpop.permute.xlu1 %10347 }
 0x342   : > { %v5036_v15 = vpop.f32.mrf.mxu0  ;;  %v5091_v8 = vpop.f32.mrf.mxu1  ;;  %9851 = vmatprep.subr.msk.bf16.mxu0 %vm600_vm1, %v6736_v32 }
 0x343   : > { %v13917_v31 = vadd.f32 %v5036_v15, %v13386_v19  ;;  %v13920_v16 = vadd.f32 %v5091_v8, %v13389_v20  ;;  %v16440_v19 = vunpack.i.l.bf16 %v13816_v44  ;;  %v16441_v15 = vunpack.i.h.bf16 %v13726_v21 }
 0x344   : > { %v5038_v4 = vpop.f32.mrf.mxu0  ;;  %v5093_v36 = vpop.f32.mrf.mxu1 }
 0x345   : > { %v13927_v56 = vadd.f32 %v5038_v4, %v13396_v5  ;;  %v13930_v32 = vadd.f32 %v5093_v36, %v13399_v13  ;;  %v6715_v20 = vsel %vm6702_vm8, %v10340_v49, %v16440_v19  ;;  %v6717_v8 = vsel %vm6702_vm8, %v16441_v15, %v10339_v37 }
 0x346   : > { %v5040_v27 = vpop.f32.mrf.mxu0  ;;  %v5097_v25 = vpop.f32.mrf.mxu1  ;;  %9844 = vmatmul.mubr.msk.bf16.gmra.mxu1 %vm593_vm2, %v13911_v42  ;;  %v10350_v49 = vunpack.i.h.bf16 %v13922_v38  ;;  %v10349_v4 = vunpack.i.l.bf16 %v13922_v38  ;;  %v6737_v21 = vpack.c.bf16 %v6715_v20, %v6715_v20 }
 0x347   : > { %v13943_v5 = vadd.f32 %v5040_v27, %v13412_v3  ;;  %v13946_v13 = vadd.f32 %v5097_v25, %v13415_v14  ;;  %7035 = vmatprep.mubr.bf16.mxu1 %v15774_v11  ;;  %v6710_v3 = vsel %vm6702_vm8, %v15730_v46, %v15729_v48  ;;  %v6735_v25 = vpack.c.bf16 %v6717_v8, %v6717_v8 }
 0x348   : > { %v5044_v36 = vpop.f32.mrf.mxu0  ;;  %v5099_v19 = vpop.f32.mrf.mxu1  ;;  %9841 = vmatmul.mubr.msk.bf16.gmra.mxu0 %vm593_vm2, %v13911_v42  ;;  %v6712_v48 = vsel %vm6702_vm8, %v10349_v4, %v10350_v49  ;;  %v6742_v46 = vpack.c.bf16 %v6710_v3, %v6710_v3 }
 0x349   : > { %v13960_v14 = vadd.f32 %v5044_v36, %v13429_v53  ;;  %v13963_v37 = vadd.f32 %v5099_v19, %v13432_v10  ;;  %6982 = vmatprep.mubr.bf16.mxu0 %v15774_v11  ;;  %v6803_v10 = vsel %vm600_vm1, %v6737_v21, 0  ;;  %v6740_v8 = vpack.c.bf16 %v6712_v48, %v6712_v48 }
 0x34a   : > { %v5046_v38 = vpop.f32.mrf.mxu0  ;;  %v5101_v27 = vpop.f32.mrf.mxu1 }
 0x34b   : > { %16442 = vst [vmem:[#allocation21_spill] sm:$0xff] %v13963_v37  ;;  %v13967_v20 = vadd.f32 %v5046_v38, %v13436_v29  ;;  %v13970_v15 = vadd.f32 %v5101_v27, %v13439_v47  ;;  %v6797_v47 = vsel %vm600_vm1, %v6735_v25, 0  ;;  %v14002_v25 = vpop.permute.xlu0 %10362 }
 0x34c   : > { %v5048_v53 = vpop.f32.mrf.mxu0  ;;  %v5103_v36 = vpop.f32.mrf.mxu1 }
 0x34d   : > { %v13976_v19 = vadd.f32 %v5048_v53, %v13445_v50  ;;  %v13979_v37 = vadd.f32 %v5103_v36, %v13448_v17  ;;  %v16446_v53 = vld [vmem:[#allocation76_spill] sm:$0xff] }
 0x34e   : > { %v5050_v29 = vpop.f32.mrf.mxu0  ;;  %v5193_v38 = vpop.f32.mrf.mxu1  ;;  %9849 = vmatmul.mubr.msk.bf16.vlgmr.msra.gmra.mxu1 %vm593_vm2, %v13871_v34 }
 0x34f   : > { %v13985_v3 = vadd.f32 %v5050_v29, %v13454_v62  ;;  %v13988_v27 = vadd.f32 %v5193_v38, %v13457_v54  ;;  %7124 = vmatpush1.bf16.msra.mxu1 %v6803_v10  ;;  %7045 = vmatprep.mubr.bf16.mxu1 %v15774_v11  ;;  %v16448_v10 = vld [vmem:[#allocation81_spill] sm:$0xff]  ;;  %v10364_v38 = vunpack.i.l.bf16 %v14002_v25 }
 0x350   : > { %v5140_v50 = vpop.f32.mrf.mxu0  ;;  %v5195_v17 = vpop.f32.mrf.mxu1  ;;  %9846 = vmatmul.mubr.msk.bf16.vlgmr.msra.gmra.mxu0 %vm593_vm2, %v13871_v34  ;;  %9860 = vmatprep.subr.msk.bf16.mxu1 %vm600_vm1, %v6742_v46 }
 0x351   : > { %16443 = vst [vmem:[#allocation106_spill] sm:$0xff] %v13988_v27  ;;  %v13995_v48 = vadd.f32 %v5140_v50, %v13464_v39  ;;  %v13998_v21 = vadd.f32 %v5195_v17, %v13467_v61  ;;  %7071 = vmatpush1.bf16.msra.mxu0 %v6797_v47  ;;  %6992 = vmatprep.mubr.bf16.mxu0 %v15774_v11  ;;  %v16450_v47 = vld [vmem:[#allocation151_spill] sm:$0xff]  ;;  %v16452_v17 = vld [vmem:[#allocation82_spill] sm:$0xff]  ;;  %v16455_v39 = vld [vmem:[#allocation152_spill] sm:$0xff] }
 0x352   : > { %v5142_v62 = vpop.f32.mrf.mxu0  ;;  %v5197_v54 = vpop.f32.mrf.mxu1  ;;  %9857 = vmatprep.subr.msk.bf16.mxu0 %vm600_vm1, %v6740_v8 }
 0x353   : > { %16444 = vst [vmem:[#allocation22_spill] sm:$0xff] %v13995_v48  ;;  %16445 = vst [vmem:[#allocation107_spill] sm:$0xff] %v13998_v21  ;;  %v14005_v36 = vadd.f32 %v5142_v62, %v16446_v53  ;;  %v14008_v46 = vadd.f32 %v5197_v54, %v16448_v10  ;;  %v14018_v8 = vpop.permute.xlu1 %10357  ;;  %v16454_v62 = vunpack.i.l.bf16 %v13914_v2  ;;  %v16464_v48 = vld [vmem:[#allocation85_spill] sm:$0xff] }
 0x354   : > { %v5144_v29 = vpop.f32.mrf.mxu0  ;;  %v5199_v61 = vpop.f32.mrf.mxu1 }
 0x355   : > { %16447 = vst [vmem:[#allocation42_spill] sm:$0xff] %v14005_v36  ;;  %16449 = vst [vmem:[#allocation23_spill] sm:$0xff] %v14008_v46  ;;  %v14013_v50 = vadd.f32 %v5144_v29, %v16450_v47  ;;  %v14016_v21 = vadd.f32 %v5199_v61, %v16452_v17  ;;  %v6711_v54 = vsel %vm6702_vm8, %v10350_v49, %v16454_v62  ;;  %v16457_v29 = vld [vmem:[#allocation83_spill] sm:$0xff]  ;;  %v10359_v61 = vunpack.i.l.bf16 %v14018_v8 }
 0x356   : > { %v5146_v53 = vpop.f32.mrf.mxu0  ;;  %v5203_v10 = vpop.f32.mrf.mxu1  ;;  %9850 = vmatmul.mubr.msk.bf16.gmra.mxu1 %vm593_vm2, %v13911_v42  ;;  %v16459_v17 = vunpack.i.h.bf16 %v13816_v44  ;;  %v10360_v44 = vunpack.i.h.bf16 %v14018_v8 }
 0x357   : > { %16451 = vst [vmem:[#allocation108_spill] sm:$0xff] %v14013_v50  ;;  %16453 = vst [vmem:[#allocation24_spill] sm:$0xff] %v14016_v21  ;;  %v14027_v46 = vadd.f32 %v5146_v53, %v16455_v39  ;;  %v14030_v47 = vadd.f32 %v5203_v10, %v16457_v29  ;;  %7141 = vmatprep.mubr.bf16.mxu1 %v15774_v11  ;;  %v6741_v50 = vpack.c.bf16 %v6711_v54, %v6711_v54  ;;  %v16461_v10 = vld [vmem:[#allocation84_spill] sm:$0xff] }
 0x358   : > { %v6713_v49 = vsel %vm6702_vm8, %v16459_v17, %v10349_v4  ;;  %v5150_v62 = vpop.f32.mrf.mxu0  ;;  %v5205_v21 = vpop.f32.mrf.mxu1  ;;  %9847 = vmatmul.mubr.msk.bf16.gmra.mxu0 %vm593_vm2, %v13911_v42  ;;  %v16460_v39 = vunpack.i.h.bf16 %v14002_v25 }
 0x359   : > { %16456 = vst [vmem:[#allocation26_spill] sm:$0xff] %v14027_v46  ;;  %16458 = vst [vmem:[#allocation27_spill] sm:$0xff] %v14030_v47  ;;  %v14045_v29 = vadd.f32 %v5150_v62, %v16461_v10  ;;  %v16462_v47 = vld [vmem:[#allocation153_spill] sm:$0xff]  ;;  %7088 = vmatprep.mubr.bf16.mxu0 %v15774_v11  ;;  %v6739_v36 = vpack.c.bf16 %v6713_v49, %v6713_v49  ;;  %v6708_v62 = vsel %vm6702_vm8, %v10359_v61, %v10360_v44 }
 0x35a   : > { %v6706_v53 = vsel %vm6702_vm8, %v10364_v38, %v16460_v39  ;;  %v14048_v46 = vadd.f32 %v5205_v21, %v16462_v47  ;;  %v5152_v4 = vpop.f32.mrf.mxu0  ;;  %v5207_v17 = vpop.f32.mrf.mxu1  ;;  %v6815_v47 = vsel %vm600_vm1, %v6741_v50, 0  ;;  %v6744_v49 = vpack.c.bf16 %v6708_v62, %v6708_v62  ;;  %v16465_v50 = vld [vmem:[#allocation154_spill] sm:$0xff] }
 0x35b   : > { %v14053_v54 = vadd.f32 %v5152_v4, %v13522_v57  ;;  %v14056_v27 = vadd.f32 %v5207_v17, %v16464_v48  ;;  %v6746_v39 = vpack.c.bf16 %v6706_v53, %v6706_v53  ;;  %v6809_v48 = vsel %vm600_vm1, %v6739_v36, 0  ;;  %v16467_v36 = vld [vmem:[#allocation86_spill] sm:$0xff] }
 0x35c   : > { %16463 = vst [vmem:[#allocation109_spill] sm:$0xff] %v14048_v46  ;;  %v5154_v10 = vpop.f32.mrf.mxu0  ;;  %v5209_v21 = vpop.f32.mrf.mxu1 }
 0x35d   : > { %v14062_v8 = vadd.f32 %v5154_v10, %v13531_v58  ;;  %v14065_v46 = vadd.f32 %v5209_v21, %v13534_v41  ;;  %v16469_v21 = vld [vmem:[#allocation155_spill] sm:$0xff] }
 0x35e   : > { %v5156_v57 = vpop.f32.mrf.mxu0  ;;  %v5299_v4 = vpop.f32.mrf.mxu1  ;;  %9855 = vmatmul.mubr.msk.bf16.vlgmr.msra.gmra.mxu1 %vm593_vm2, %v13871_v34 }
 0x35f   : > { %v14071_v53 = vadd.f32 %v5156_v57, %v13540_v28  ;;  %v14074_v17 = vadd.f32 %v5299_v4, %v13543_v35  ;;  %7230 = vmatpush1.bf16.msra.mxu1 %v6815_v47  ;;  %7151 = vmatprep.mubr.bf16.mxu1 %v15774_v11  ;;  %v16470_v57 = vld [vmem:[#allocation87_spill] sm:$0xff] }
 0x360   : > { %v5246_v58 = vpop.f32.mrf.mxu0  ;;  %v5301_v41 = vpop.f32.mrf.mxu1  ;;  %9852 = vmatmul.mubr.msk.bf16.vlgmr.msra.gmra.mxu0 %vm593_vm2, %v13871_v34  ;;  %9866 = vmatprep.subr.msk.bf16.mxu1 %vm600_vm1, %v6746_v39 }
 0x361   : > { %v14081_v62 = vadd.f32 %v5246_v58, %v16465_v50  ;;  %v14084_v10 = vadd.f32 %v5301_v41, %v16467_v36  ;;  %7177 = vmatpush1.bf16.msra.mxu0 %v6809_v48  ;;  %7098 = vmatprep.mubr.bf16.mxu0 %v15774_v11  ;;  %v14094_v39 = vpop.permute.xlu1 %10367  ;;  %v16474_v48 = vld [vmem:[#allocation88_spill] sm:$0xff] }
 0x362   : > { %v5248_v35 = vpop.f32.mrf.mxu0  ;;  %v5303_v28 = vpop.f32.mrf.mxu1  ;;  %9863 = vmatprep.subr.msk.bf16.mxu0 %vm600_vm1, %v6744_v49  ;;  %v8594_v49 = vld [vmem:[%s15694_s2] sm:$0xff] }
 0x363   : > { %16466 = vst [vmem:[#allocation28_spill] sm:$0xff] %v14081_v62  ;;  %16468 = vst [vmem:[#allocation110_spill] sm:$0xff] %v14084_v10  ;;  %v14089_v47 = vadd.f32 %v5248_v35, %v16469_v21  ;;  %v14092_v4 = vadd.f32 %v5303_v28, %v16470_v57  ;;  %v16472_v62 = vld [vmem:[#allocation156_spill] sm:$0xff]  ;;  %v6707_v10 = vsel %vm6702_vm8, %v10360_v44, %v10364_v38  ;;  %v16476_v21 = vunpack.i.h.bf16 %v13914_v2  ;;  %v14113_v57 = vpop.permute.xlu0 %6700  ;;  %v16479_v38 = vld [vmem:[#allocation89_spill] sm:$0xff] }
 0x364   : > { %v5250_v58 = vpop.f32.mrf.mxu0  ;;  %v5305_v50 = vpop.f32.mrf.mxu1  ;;  %8600 = vperm.xlu0 %10426, %v8594_v49   ;;  %v16481_v49 = vld [vmem:[#allocation158_spill] sm:$0xff] }
 0x365   : > { %16471 = vst [vmem:[#allocation29_spill] sm:$0xff] %v14092_v4  ;;  %v14097_v41 = vadd.f32 %v5250_v58, %v16472_v62  ;;  %v14100_v36 = vadd.f32 %v5305_v50, %v16474_v48  ;;  %v6709_v62 = vsel %vm6702_vm8, %v16476_v21, %v10359_v61  ;;  %v16477_v58 = vld [vmem:[#allocation157_spill] sm:$0xff]  ;;  %v10370_v48 = vunpack.i.h.bf16 %v14094_v39 }
 0x366   : > { %v5252_v35 = vpop.f32.mrf.mxu0  ;;  %v5309_v28 = vpop.f32.mrf.mxu1  ;;  %9856 = vmatmul.mubr.msk.bf16.gmra.mxu1 %vm593_vm2, %v13911_v42  ;;  %v6745_v61 = vpack.c.bf16 %v6707_v10, %v6707_v10 }
 0x367   : > { %16473 = vst [vmem:[#allocation111_spill] sm:$0xff] %v14097_v41  ;;  %16475 = vst [vmem:[#allocation30_spill] sm:$0xff] %v14100_v36  ;;  %v14116_v50 = vadd.f32 %v5252_v35, %v16477_v58  ;;  %v14119_v44 = vadd.f32 %v5309_v28, %v16479_v38  ;;  %7247 = vmatprep.mubr.bf16.mxu1 %v15774_v11  ;;  %v16483_v35 = vld [vmem:[#allocation90_spill] sm:$0xff] }
 0x368   : > { %v5256_v41 = vpop.f32.mrf.mxu0  ;;  %v5311_v2 = vpop.f32.mrf.mxu1  ;;  %9853 = vmatmul.mubr.msk.bf16.gmra.mxu0 %vm593_vm2, %v13911_v42  ;;  %v8595_v28 = vld [vmem:[%s15694_s2 + $0x8] sm:$0xff] }
 0x369   : > { %16478 = vst [vmem:[#allocation112_spill] sm:$0xff] %v14116_v50  ;;  %16480 = vst [vmem:[#allocation31_spill] sm:$0xff] %v14119_v44  ;;  %v14127_v21 = vadd.f32 %v5256_v41, %v16481_v49  ;;  %v14130_v58 = vadd.f32 %v5311_v2, %v16483_v35  ;;  %7194 = vmatprep.mubr.bf16.mxu0 %v15774_v11  ;;  %v6743_v44 = vpack.c.bf16 %v6709_v62, %v6709_v62  ;;  %v16486_v41 = vld [vmem:[#allocation159_spill] sm:$0xff] }
 0x36a   : > { %v5258_v38 = vpop.f32.mrf.mxu0  ;;  %v5313_v36 = vpop.f32.mrf.mxu1  ;;  %8605 = vperm.xlu1 %10427, %v8595_v28   ;;  %v16485_v50 = vunpack.i.l.bf16 %v13616_v7  ;;  %v16487_v2 = vld [vmem:[#allocation91_spill] sm:$0xff]  ;;  %v6827_v28 = vsel %vm600_vm1, %v6745_v61, 0 }
 0x36b   : > { %16482 = vst [vmem:[#allocation113_spill] sm:$0xff] %v14127_v21  ;;  %16484 = vst [vmem:[#allocation32_spill] sm:$0xff] %v14130_v58  ;;  %v14142_v49 = vadd.f32 %v5258_v38, %v16486_v41  ;;  %v14145_v35 = vadd.f32 %v5313_v36, %v16487_v2  ;;  %v16489_v58 = vunpack.i.l.bf16 %v14094_v39  ;;  %v14158_v38 = vpop.permute.xlu1 %10372  ;;  %v8596_v36 = vld [vmem:[%s15694_s2 + $0x10] sm:$0xff]  ;;  %v6821_v61 = vsel %vm600_vm1, %v6743_v44, 0  ;;  %v16498_v44 = vld [vmem:[#allocation94_spill] sm:$0xff] }
 0x36c   : > { %v6726_v10 = vsel %vm6702_vm8, %v14113_v57, %v16485_v50  ;;  %v5260_v4 = vpop.f32.mrf.mxu0  ;;  %v5315_v62 = vpop.f32.mrf.mxu1 }
 0x36d   : > { %16488 = vst [vmem:[#allocation114_spill] sm:$0xff] %v14145_v35  ;;  %v6704_v21 = vsel %vm6702_vm8, %v16489_v58, %v10370_v48  ;;  %v14153_v7 = vadd.f32 %v5260_v4, %v13611_v63  ;;  %v14156_v50 = vadd.f32 %v5315_v62, %v13614_v30  ;;  %v6750_v41 = vpack.c.bf16 %v6726_v10, %v6726_v10  ;;  %v16492_v63 = vld [vmem:[#allocation160_spill] sm:$0xff] }
 0x36e   : > { %v6748_v2 = vpack.c.bf16 %v6704_v21, %v6704_v21  ;;  %v5262_v35 = vpop.f32.mrf.mxu0  ;;  %v5405_v58 = vpop.f32.mrf.mxu1  ;;  %9861 = vmatmul.mubr.msk.bf16.vlgmr.msra.gmra.mxu1 %vm593_vm2, %v13871_v34  ;;  %8610 = vperm.xlu1 %10427, %v8596_v36   ;;  %v16494_v30 = vld [vmem:[#allocation92_spill] sm:$0xff] }
 0x36f   : > { %16490 = vst [vmem:[#allocation59_spill] sm:$0xff] %v14153_v7  ;;  %16491 = vst [vmem:[#allocation33_spill] sm:$0xff] %v14156_v50  ;;  %v14167_v4 = vadd.f32 %v5262_v35, %v16492_v63  ;;  %v14170_v62 = vadd.f32 %v5405_v58, %v16494_v30  ;;  %7336 = vmatpush1.bf16.msra.mxu1 %v6827_v28  ;;  %7257 = vmatprep.mubr.bf16.mxu1 %v15774_v11  ;;  %v16496_v50 = vld [vmem:[#allocation161_spill] sm:$0xff]  ;;  %v16500_v58 = vld [vmem:[#allocation162_spill] sm:$0xff] }
 0x370   : > { %9872 = vmatprep.subr.msk.bf16.mxu1 %vm600_vm1, %v6750_v41  ;;  %v5352_v21 = vpop.f32.mrf.mxu0  ;;  %v5407_v10 = vpop.f32.mrf.mxu1  ;;  %9858 = vmatmul.mubr.msk.bf16.vlgmr.msra.gmra.mxu0 %vm593_vm2, %v13871_v34  ;;  %v8597_v35 = vld [vmem:[%s15694_s2 + $0x18] sm:$0xff] }
 0x371   : > { %16493 = vst [vmem:[#allocation115_spill] sm:$0xff] %v14167_v4  ;;  %16495 = vst [vmem:[#allocation34_spill] sm:$0xff] %v14170_v62  ;;  %v14177_v7 = vadd.f32 %v5352_v21, %v16496_v50  ;;  %v14180_v36 = vadd.f32 %v5407_v10, %v16498_v44  ;;  %7283 = vmatpush1.bf16.msra.mxu0 %v6821_v61  ;;  %7204 = vmatprep.mubr.bf16.mxu0 %v15774_v11  ;;  %v16502_v50 = vld [vmem:[#allocation95_spill] sm:$0xff]  ;;  %v14193_v21 = vpop.permute.xlu1 %10377  ;;  %v16506_v62 = vld [vmem:[#allocation96_spill] sm:$0xff] }
 0x372   : > { %v5354_v28 = vpop.f32.mrf.mxu0  ;;  %v5409_v41 = vpop.f32.mrf.mxu1  ;;  %9869 = vmatprep.subr.msk.bf16.mxu0 %vm600_vm1, %v6748_v2  ;;  %8615 = vperm.xlu0 %10426, %v8597_v35   ;;  %v6703_v35 = vsel %vm6702_vm8, %v10370_v48, %v14113_v57  ;;  %v16513_v57 = vunpack.i.h.bf16 %v14002_v25  ;;  %v16517_v25 = vld [vmem:[#allocation10_spill] sm:$0xff] }
 0x373   : > { %16497 = vst [vmem:[#allocation116_spill] sm:$0xff] %v14177_v7  ;;  %16499 = vst [vmem:[#allocation35_spill] sm:$0xff] %v14180_v36  ;;  %v14188_v63 = vadd.f32 %v5354_v28, %v16500_v58  ;;  %v14191_v30 = vadd.f32 %v5409_v41, %v16502_v50  ;;  %v16504_v36 = vld [vmem:[#allocation163_spill] sm:$0xff]  ;;  %v6749_v58 = vpack.c.bf16 %v6703_v35, %v6703_v35  ;;  %v16519_v35 = vld [vmem:[#allocation9_spill] sm:$0xff] }
 0x374   : > { %v5356_v61 = vpop.f32.mrf.mxu0  ;;  %v5411_v10 = vpop.f32.mrf.mxu1 }
 0x375   : > { %16501 = vst [vmem:[#allocation117_spill] sm:$0xff] %v14188_v63  ;;  %16503 = vst [vmem:[#allocation36_spill] sm:$0xff] %v14191_v30  ;;  %v14197_v7 = vadd.f32 %v5356_v61, %v16504_v36  ;;  %v14200_v4 = vadd.f32 %v5411_v10, %v16506_v62  ;;  %v16508_v36 = vld [vmem:[#allocation164_spill] sm:$0xff]  ;;  %v16510_v62 = vld [vmem:[#allocation93_spill] sm:$0xff]  ;;  %v16512_v10 = vunpack.i.l.bf16 %v14094_v39 }
 0x376   : > { %v5358_v28 = vpop.f32.mrf.mxu0  ;;  %v5415_v41 = vpop.f32.mrf.mxu1  ;;  %9862 = vmatmul.mubr.msk.bf16.gmra.mxu1 %vm593_vm2, %v13911_v42  ;;  %v16521_v30 = vld [vmem:[#allocation97_spill] sm:$0xff] }
 0x377   : > { %16505 = vst [vmem:[#allocation118_spill] sm:$0xff] %v14197_v7  ;;  %16507 = vst [vmem:[#allocation37_spill] sm:$0xff] %v14200_v4  ;;  %v14211_v50 = vadd.f32 %v5358_v28, %v16508_v36  ;;  %v14214_v61 = vadd.f32 %v5415_v41, %v16510_v62  ;;  %7353 = vmatprep.mubr.bf16.mxu1 %v15774_v11  ;;  %v6705_v48 = vsel %vm6702_vm8, %v16513_v57, %v16512_v10  ;;  %v16516_v62 = vld [vmem:[#allocation8_spill] sm:$0xff]  ;;  %v7581_v10 = vpop.permute.xlu0 %7580 }
 0x378   : > { %v5362_v2 = vpop.f32.mrf.mxu0  ;;  %v5417_v44 = vpop.f32.mrf.mxu1  ;;  %9859 = vmatmul.mubr.msk.bf16.gmra.mxu0 %vm593_vm2, %v13911_v42  ;;  %v16514_v28 = vunpack.i.h.bf16 %v14193_v21  ;;  %v16515_v41 = vunpack.i.l.bf16 %v14193_v21  ;;  %v6747_v4 = vpack.c.bf16 %v6705_v48, %v6705_v48 }
 0x379   : > { %16509 = vst [vmem:[#allocation119_spill] sm:$0xff] %v14211_v50  ;;  %16511 = vst [vmem:[#allocation38_spill] sm:$0xff] %v14214_v61  ;;  %v14232_v39 = vadd.f32 %v5362_v2, %v16516_v62  ;;  %v14235_v61 = vadd.f32 %v5417_v44, %v16517_v25  ;;  %7300 = vmatprep.mubr.bf16.mxu0 %v15774_v11  ;;  %v6839_v25 = vsel %vm600_vm1, %v6749_v58, 0  ;;  %v16529_v58 = vld [vmem:[#allocation98_spill] sm:$0xff] }
 0x37a   : > { %v7644_v36 = vsel %vm7624_vm9, %v16515_v41, %v16514_v28  ;;  %v5364_v57 = vpop.f32.mrf.mxu0  ;;  %v5419_v50 = vpop.f32.mrf.mxu1  ;;  %v16523_v28 = vunpack.i.h.bf16 %v14158_v38 }
 0x37b   : > { %16518 = vst [vmem:[#allocation120_spill] sm:$0xff] %v14235_v61  ;;  %v14239_v7 = vadd.f32 %v5364_v57, %v16519_v35  ;;  %v14242_v63 = vadd.f32 %v5419_v50, %v16521_v30  ;;  %v7652_v41 = vpack.c.bf16 %v7644_v36, %v7644_v36  ;;  %v6833_v30 = vsel %vm600_vm1, %v6747_v4, 0  ;;  %v16531_v4 = vld [vmem:[#allocation12_spill] sm:$0xff] }
 0x37c   : > { %v7646_v2 = vsel %vm7624_vm9, %v16523_v28, %v7581_v10  ;;  %v5366_v44 = vpop.f32.mrf.mxu0  ;;  %v5421_v62 = vpop.f32.mrf.mxu1  ;;  %v16525_v28 = vld [vmem:[#allocation15_spill] sm:$0xff] }
 0x37d   : > { %16520 = vst [vmem:[#allocation39_spill] sm:$0xff] %v14239_v7  ;;  %16522 = vst [vmem:[#allocation121_spill] sm:$0xff] %v14242_v63  ;;  %v14250_v61 = vadd.f32 %v5366_v44, %v13699_v24  ;;  %v14253_v48 = vadd.f32 %v5421_v62, %v13702_v43  ;;  %v7650_v50 = vpack.c.bf16 %v7646_v2, %v7646_v2  ;;  %v16527_v63 = vld [vmem:[#allocation11_spill] sm:$0xff] }
 0x37e   : > { %v5368_v57 = vpop.f32.mrf.mxu0  ;;  %v5511_v35 = vpop.f32.mrf.mxu1  ;;  %9867 = vmatmul.mubr.msk.bf16.vlgmr.msra.gmra.mxu1 %vm593_vm2, %v13871_v34 }
 0x37f   : > { %16524 = vst [vmem:[#allocation40_spill] sm:$0xff] %v14253_v48  ;;  %v14259_v36 = vadd.f32 %v5368_v57, %v16525_v28  ;;  %v14262_v7 = vadd.f32 %v5511_v35, %v16527_v63  ;;  %7442 = vmatpush1.bf16.msra.mxu1 %v6839_v25  ;;  %7363 = vmatprep.mubr.bf16.mxu1 %v15774_v11  ;;  %v14277_v57 = vpop.permute.xlu1 %10387  ;;  %v16533_v35 = vld [vmem:[#allocation99_spill] sm:$0xff]  ;;  %v16539_v25 = vld [vmem:[#allocation100_spill] sm:$0xff] }
 0x380   : > { %v5458_v24 = vpop.f32.mrf.mxu0  ;;  %v5513_v43 = vpop.f32.mrf.mxu1  ;;  %9864 = vmatmul.mubr.msk.bf16.vlgmr.msra.gmra.mxu0 %vm593_vm2, %v13871_v34  ;;  %9884 = vmatprep.subr.msk.bf16.mxu1 %vm600_vm1, %v7652_v41  ;;  %v16535_v41 = vld [vmem:[#allocation20_spill] sm:$0xff] }
 0x381   : > { %16526 = vst [vmem:[#allocation122_spill] sm:$0xff] %v14259_v36  ;;  %16528 = vst [vmem:[#allocation41_spill] sm:$0xff] %v14262_v7  ;;  %v14269_v44 = vadd.f32 %v5458_v24, %v16529_v58  ;;  %v14272_v2 = vadd.f32 %v5513_v43, %v16531_v4  ;;  %7389 = vmatpush1.bf16.msra.mxu0 %v6833_v30  ;;  %7310 = vmatprep.mubr.bf16.mxu0 %v15774_v11  ;;  %v14285_v58 = vpop.permute.xlu0 %10382  ;;  %v16552_v36 = vld [vmem:[#allocation6_spill] sm:$0xff] }
 0x382   : > { %v5460_v63 = vpop.f32.mrf.mxu0  ;;  %v5515_v62 = vpop.f32.mrf.mxu1  ;;  %9881 = vmatprep.subr.msk.bf16.mxu0 %vm600_vm1, %v7650_v50  ;;  %v10385_v30 = vunpack.i.h.bf16 %v14285_v58 }
 0x383   : > { %16530 = vst [vmem:[#allocation43_spill] sm:$0xff] %v14269_v44  ;;  %16532 = vst [vmem:[#allocation44_spill] sm:$0xff] %v14272_v2  ;;  %v14280_v28 = vadd.f32 %v5460_v63, %v16533_v35  ;;  %v14283_v24 = vadd.f32 %v5515_v62, %v16535_v41  ;;  %v16537_v44 = vld [vmem:[#allocation13_spill] sm:$0xff]  ;;  %v16541_v63 = vunpack.i.l.bf16 %v14193_v21 }
 0x384   : > { %v5462_v43 = vpop.f32.mrf.mxu0  ;;  %v5517_v4 = vpop.f32.mrf.mxu1 }
 0x385   : > { %16534 = vst [vmem:[#allocation45_spill] sm:$0xff] %v14280_v28  ;;  %16536 = vst [vmem:[#allocation123_spill] sm:$0xff] %v14283_v24  ;;  %v14290_v50 = vadd.f32 %v5462_v43, %v16537_v44  ;;  %v14293_v7 = vadd.f32 %v5517_v4, %v16539_v25  ;;  %v7645_v62 = vsel %vm7624_vm9, %v7581_v10, %v16541_v63  ;;  %v16542_v24 = vld [vmem:[#allocation14_spill] sm:$0xff]  ;;  %v16544_v44 = vld [vmem:[#allocation101_spill] sm:$0xff]  ;;  %v10384_v25 = vunpack.i.l.bf16 %v14285_v58 }
 0x386   : > { %v5464_v35 = vpop.f32.mrf.mxu0  ;;  %v5521_v41 = vpop.f32.mrf.mxu1  ;;  %9868 = vmatmul.mubr.msk.bf16.gmra.mxu1 %vm593_vm2, %v13911_v42  ;;  %v16546_v4 = vunpack.i.h.bf16 %v14158_v38  ;;  %v16547_v10 = vunpack.i.l.bf16 %v14158_v38 }
 0x387   : > { %16538 = vst [vmem:[#allocation46_spill] sm:$0xff] %v14290_v50  ;;  %16540 = vst [vmem:[#allocation124_spill] sm:$0xff] %v14293_v7  ;;  %v14303_v2 = vadd.f32 %v5464_v35, %v16542_v24  ;;  %v14306_v43 = vadd.f32 %v5521_v41, %v16544_v44  ;;  %7459 = vmatprep.mubr.bf16.mxu1 %v15774_v11  ;;  %v7651_v24 = vpack.c.bf16 %v7645_v62, %v7645_v62 }
 0x388   : > { %v7647_v63 = vsel %vm7624_vm9, %v16547_v10, %v16546_v4  ;;  %v5468_v7 = vpop.f32.mrf.mxu0  ;;  %v5523_v50 = vpop.f32.mrf.mxu1  ;;  %9865 = vmatmul.mubr.msk.bf16.gmra.mxu0 %vm593_vm2, %v13911_v42  ;;  %v16548_v35 = vunpack.i.h.bf16 %v14277_v57  ;;  %v16549_v41 = vunpack.i.l.bf16 %v14277_v57 }
 0x389   : > { %16543 = vst [vmem:[#allocation47_spill] sm:$0xff] %v14303_v2  ;;  %16545 = vst [vmem:[#allocation125_spill] sm:$0xff] %v14306_v43  ;;  %v14325_v44 = vadd.f32 %v5468_v7, %v13774_v1  ;;  %v16550_v43 = vld [vmem:[#allocation25_spill] sm:$0xff]  ;;  %7406 = vmatprep.mubr.bf16.mxu0 %v15774_v11  ;;  %v7649_v28 = vpack.c.bf16 %v7647_v63, %v7647_v63 }
 0x38a   : > { %v7640_v58 = vsel %vm7624_vm9, %v16549_v41, %v16548_v35  ;;  %v14328_v2 = vadd.f32 %v5523_v50, %v16550_v43  ;;  %v5470_v4 = vpop.f32.mrf.mxu0  ;;  %v5525_v10 = vpop.f32.mrf.mxu1  ;;  %v7642_v35 = vsel %vm7624_vm9, %v10384_v25, %v10385_v30  ;;  %v7701_v50 = vsel %vm600_vm1, %v7651_v24, 0 }
 0x38b   : > { %v14332_v62 = vadd.f32 %v5470_v4, %v13781_v40  ;;  %v14335_v48 = vadd.f32 %v5525_v10, %v16552_v36  ;;  %v7656_v41 = vpack.c.bf16 %v7640_v58, %v7640_v58  ;;  %v7654_v63 = vpack.c.bf16 %v7642_v35, %v7642_v35 }
 0x38c   : > { %16551 = vst [vmem:[#allocation48_spill] sm:$0xff] %v14328_v2  ;;  %v5472_v1 = vpop.f32.mrf.mxu0  ;;  %v5527_v7 = vpop.f32.mrf.mxu1  ;;  %v7695_v36 = vsel %vm600_vm1, %v7649_v28, 0  ;;  %v16553_v28 = vld [vmem:[#allocation16_spill] sm:$0xff] }
 0x38d   : > { %v14341_v43 = vadd.f32 %v5472_v1, %v13790_v55  ;;  %v14344_v2 = vadd.f32 %v5527_v7, %v13793_v12  ;;  %v14367_v1 = vpop.permute.xlu1 %10397 }
 0x38e   : > { %v5474_v40 = vpop.f32.mrf.mxu0  ;;  %v5617_v4 = vpop.f32.mrf.mxu1  ;;  %9873 = vmatmul.mubr.msk.bf16.vlgmr.msra.gmra.mxu1 %vm593_vm2, %v13871_v34 }
 0x38f   : > { %v14350_v58 = vadd.f32 %v5474_v40, %v13799_v45  ;;  %v14353_v10 = vadd.f32 %v5617_v4, %v13802_v52  ;;  %7834 = vmatpush1.bf16.msra.mxu1 %v7701_v50  ;;  %7469 = vmatprep.mubr.bf16.mxu1 %v15774_v11  ;;  %v16561_v50 = vunpack.i.h.bf16 %v14193_v21 }
 0x390   : > { %v5564_v55 = vpop.f32.mrf.mxu0  ;;  %v5619_v12 = vpop.f32.mrf.mxu1  ;;  %9870 = vmatmul.mubr.msk.bf16.vlgmr.msra.gmra.mxu0 %vm593_vm2, %v13871_v34  ;;  %9890 = vmatprep.subr.msk.bf16.mxu1 %vm600_vm1, %v7656_v41  ;;  %v16554_v34 = vld [vmem:[#allocation102_spill] sm:$0xff] }
 0x391   : > { %v14360_v24 = vadd.f32 %v5564_v55, %v13809_v26  ;;  %v14363_v35 = vadd.f32 %v5619_v12, %v16553_v28  ;;  %7781 = vmatpush1.bf16.msra.mxu0 %v7695_v36  ;;  %7416 = vmatprep.mubr.bf16.mxu0 %v15774_v11  ;;  %v14375_v26 = vpop.permute.xlu0 %10392  ;;  %v16556_v55 = vld [vmem:[#allocation17_spill] sm:$0xff]  ;;  %v7643_v36 = vsel %vm7624_vm9, %v16561_v50, %v10384_v25  ;;  %v16566_v25 = vunpack.i.h.bf16 %v14367_v1 }
 0x392   : > { %v5566_v52 = vpop.f32.mrf.mxu0  ;;  %v5621_v45 = vpop.f32.mrf.mxu1  ;;  %9887 = vmatprep.subr.msk.bf16.mxu0 %vm600_vm1, %v7654_v63  ;;  %v16558_v63 = vld [vmem:[#allocation103_spill] sm:$0xff]  ;;  %v16567_v50 = vunpack.i.l.bf16 %v14367_v1 }
 0x393   : > { %v14370_v7 = vadd.f32 %v5566_v52, %v13819_v9  ;;  %v14373_v41 = vadd.f32 %v5621_v45, %v16554_v34  ;;  %v16560_v9 = vunpack.i.l.bf16 %v14277_v57 }
 0x394   : > { %v5568_v40 = vpop.f32.mrf.mxu0  ;;  %v5623_v4 = vpop.f32.mrf.mxu1 }
 0x395   : > { %16555 = vst [vmem:[#allocation126_spill] sm:$0xff] %v14373_v41  ;;  %v14380_v12 = vadd.f32 %v5568_v40, %v16556_v55  ;;  %v14383_v28 = vadd.f32 %v5623_v4, %v16558_v63  ;;  %v7641_v52 = vsel %vm7624_vm9, %v10385_v30, %v16560_v9  ;;  %v16562_v40 = vld [vmem:[#allocation18_spill] sm:$0xff]  ;;  %v16564_v4 = vld [vmem:[#allocation104_spill] sm:$0xff]  ;;  %v10395_v30 = vunpack.i.h.bf16 %v14375_v26 }
 0x396   : > { %v5570_v45 = vpop.f32.mrf.mxu0  ;;  %v5627_v34 = vpop.f32.mrf.mxu1  ;;  %9874 = vmatmul.mubr.msk.bf16.gmra.mxu1 %vm593_vm2, %v13911_v42  ;;  %v10394_v9 = vunpack.i.l.bf16 %v14375_v26  ;;  %v7655_v21 = vpack.c.bf16 %v7641_v52, %v7641_v52  ;;  %v7653_v52 = vpack.c.bf16 %v7643_v36, %v7643_v36 }
 0x397   : > { %16557 = vst [vmem:[#allocation49_spill] sm:$0xff] %v14380_v12  ;;  %16559 = vst [vmem:[#allocation50_spill] sm:$0xff] %v14383_v28  ;;  %v14396_v55 = vadd.f32 %v5570_v45, %v16562_v40  ;;  %v14399_v63 = vadd.f32 %v5627_v34, %v16564_v4  ;;  %7851 = vmatprep.mubr.bf16.mxu1 %v15774_v11  ;;  %v7636_v45 = vsel %vm7624_vm9, %v16567_v50, %v16566_v25  ;;  %v16568_v34 = vld [vmem:[#allocation19_spill] sm:$0xff]  ;;  %v16570_v4 = vld [vmem:[#allocation105_spill] sm:$0xff] }
 0x398   : > { %v5574_v28 = vpop.f32.mrf.mxu0  ;;  %v5629_v12 = vpop.f32.mrf.mxu1  ;;  %9871 = vmatmul.mubr.msk.bf16.gmra.mxu0 %vm593_vm2, %v13911_v42  ;;  %v14422_v42 = vld [vmem:[%s15693_s1 + $0x80] sm:$0xff]  }
 0x399   : > { %16563 = vst [vmem:[#allocation51_spill] sm:$0xff] %v14396_v55  ;;  %16565 = vst [vmem:[#allocation52_spill] sm:$0xff] %v14399_v63  ;;  %v14413_v40 = vadd.f32 %v5574_v28, %v16568_v34  ;;  %v14416_v63 = vadd.f32 %v5629_v12, %v16570_v4  ;;  %7798 = vmatprep.mubr.bf16.mxu0 %v15774_v11  ;;  %v7638_v12 = vsel %vm7624_vm9, %v10394_v9, %v10395_v30 }
 0x39a   : > { %v5576_v26 = vpop.f32.mrf.mxu0  ;;  %v5631_v55 = vpop.f32.mrf.mxu1  ;;  %v7660_v28 = vpack.c.bf16 %v7636_v45, %v7636_v45  ;;  %v7713_v4 = vsel %vm600_vm1, %v7655_v21, 0  ;;  %v7658_v36 = vpack.c.bf16 %v7638_v12, %v7638_v12  ;;  %v14462_v12 = vld [vmem:[%s15693_s1 + $0x88] sm:$0xff]  }
 0x39b   : > { %16569 = vst [vmem:[#allocation128_spill] sm:$0xff] %v14413_v40  ;;  %16571 = vst [vmem:[#allocation53_spill] sm:$0xff] %v14416_v63  ;;  %v14425_v41 = vadd.f32 %v5576_v26, %v13874_v0  ;;  %v14428_v25 = vadd.f32 %v5631_v55, %v13877_v18  ;;  %v7707_v18 = vsel %vm600_vm1, %v7653_v52, 0 }
 0x39c   : > { %v5578_v50 = vpop.f32.mrf.mxu0  ;;  %v5633_v34 = vpop.f32.mrf.mxu1 }
 0x39d   : > { %v14434_v63 = vadd.f32 %v5578_v50, %v13883_v59  ;;  %v14437_v40 = vadd.f32 %v5633_v34, %v13886_v23  ;;  %v14465_v50 = vpop.permute.xlu1 %10407 }
 0x39e   : > { %v5580_v0 = vpop.f32.mrf.mxu0  ;;  %v6009_v26 = vpop.f32.mrf.mxu1  ;;  %9885 = vmatmul.mubr.msk.bf16.vlgmr.msra.gmra.mxu1 %vm593_vm2, %v14422_v42  ;;  %v15731_v34 = vunpack.i.h.bf16 %v14465_v50 }
 0x39f   : > { %v14443_v55 = vadd.f32 %v5580_v0, %v13892_v60  ;;  %v14446_v45 = vadd.f32 %v6009_v26, %v13895_v6  ;;  %7940 = vmatpush1.bf16.msra.mxu1 %v7713_v4  ;;  %7861 = vmatprep.mubr.bf16.mxu1 %v15774_v11  ;;  %v15732_v26 = vunpack.i.l.bf16 %v14465_v50 }
 0x3a0   : > { %v5956_v59 = vpop.f32.mrf.mxu0  ;;  %v6011_v23 = vpop.f32.mrf.mxu1  ;;  %9882 = vmatmul.mubr.msk.bf16.vlgmr.msra.gmra.mxu0 %vm593_vm2, %v14422_v42  ;;  %9896 = vmatprep.subr.msk.bf16.mxu1 %vm600_vm1, %v7660_v28 }
 0x3a1   : > { %v14453_v21 = vadd.f32 %v5956_v59, %v13902_v33  ;;  %v14456_v52 = vadd.f32 %v6011_v23, %v13905_v51  ;;  %7887 = vmatpush1.bf16.msra.mxu0 %v7707_v18  ;;  %7808 = vmatprep.mubr.bf16.mxu0 %v15774_v11  ;;  %v14473_v28 = vpop.permute.xlu0 %10402 }
 0x3a2   : > { %v5958_v60 = vpop.f32.mrf.mxu0  ;;  %v6013_v6 = vpop.f32.mrf.mxu1  ;;  %9893 = vmatprep.subr.msk.bf16.mxu0 %vm600_vm1, %v7658_v36 }
 0x3a3   : > { %v14468_v33 = vadd.f32 %v5958_v60, %v13917_v31  ;;  %v14471_v51 = vadd.f32 %v6013_v6, %v13920_v16  ;;  %v16572_v31 = vunpack.i.l.bf16 %v14367_v1  ;;  %v16573_v60 = vunpack.i.h.bf16 %v14277_v57 }
 0x3a4   : > { %v5960_v4 = vpop.f32.mrf.mxu0  ;;  %v6015_v0 = vpop.f32.mrf.mxu1 }
 0x3a5   : > { %v14478_v18 = vadd.f32 %v5960_v4, %v13927_v56  ;;  %v14481_v36 = vadd.f32 %v6015_v0, %v13930_v32  ;;  %v7637_v16 = vsel %vm7624_vm9, %v10395_v30, %v16572_v31  ;;  %v7639_v6 = vsel %vm7624_vm9, %v16573_v60, %v10394_v9  ;;  %v16575_v9 = vld [vmem:[#allocation21_spill] sm:$0xff] }
 0x3a6   : > { %v5962_v59 = vpop.f32.mrf.mxu0  ;;  %v6019_v23 = vpop.f32.mrf.mxu1  ;;  %9886 = vmatmul.mubr.msk.bf16.gmra.mxu1 %vm593_vm2, %v14462_v12  ;;  %v10405_v30 = vunpack.i.h.bf16 %v14473_v28  ;;  %v10404_v4 = vunpack.i.l.bf16 %v14473_v28  ;;  %v7659_v57 = vpack.c.bf16 %v7637_v16, %v7637_v16  ;;  %v7657_v60 = vpack.c.bf16 %v7639_v6, %v7639_v6 }
 0x3a7   : > { %v14494_v56 = vadd.f32 %v5962_v59, %v13943_v5  ;;  %v14497_v32 = vadd.f32 %v6019_v23, %v13946_v13  ;;  %7957 = vmatprep.mubr.bf16.mxu1 %v15774_v11  ;;  %v7632_v5 = vsel %vm7624_vm9, %v15732_v26, %v15731_v34 }
 0x3a8   : > { %v5966_v0 = vpop.f32.mrf.mxu0  ;;  %v6021_v31 = vpop.f32.mrf.mxu1  ;;  %9883 = vmatmul.mubr.msk.bf16.gmra.mxu0 %vm593_vm2, %v14462_v12  ;;  %v7634_v34 = vsel %vm7624_vm9, %v10404_v4, %v10405_v30  ;;  %v7664_v26 = vpack.c.bf16 %v7632_v5, %v7632_v5 }
 0x3a9   : > { %16574 = vst [vmem:[#allocation129_spill] sm:$0xff] %v14497_v32  ;;  %v14511_v13 = vadd.f32 %v5966_v0, %v13960_v14  ;;  %v14514_v59 = vadd.f32 %v6021_v31, %v16575_v9  ;;  %7904 = vmatprep.mubr.bf16.mxu0 %v15774_v11  ;;  %v7725_v31 = vsel %vm600_vm1, %v7659_v57, 0  ;;  %v7662_v6 = vpack.c.bf16 %v7634_v34, %v7634_v34  ;;  %v16580_v34 = vld [vmem:[#allocation22_spill] sm:$0xff] }
 0x3aa   : > { %v5968_v28 = vpop.f32.mrf.mxu0  ;;  %v6023_v23 = vpop.f32.mrf.mxu1 }
 0x3ab   : > { %16576 = vst [vmem:[#allocation54_spill] sm:$0xff] %v14514_v59  ;;  %v14518_v16 = vadd.f32 %v5968_v28, %v13967_v20  ;;  %v14521_v32 = vadd.f32 %v6023_v23, %v13970_v15  ;;  %v7719_v15 = vsel %vm600_vm1, %v7657_v60, 0  ;;  %v16578_v23 = vld [vmem:[#allocation106_spill] sm:$0xff]  ;;  %v16582_v60 = vld [vmem:[#allocation107_spill] sm:$0xff] }
 0x3ac   : > { %v5970_v14 = vpop.f32.mrf.mxu0  ;;  %v6025_v0 = vpop.f32.mrf.mxu1 }
 0x3ad   : > { %16577 = vst [vmem:[#allocation130_spill] sm:$0xff] %v14521_v32  ;;  %v14527_v9 = vadd.f32 %v5970_v14, %v13976_v19  ;;  %v14530_v59 = vadd.f32 %v6025_v0, %v13979_v37 }
 0x3ae   : > { %v5972_v20 = vpop.f32.mrf.mxu0  ;;  %v6115_v28 = vpop.f32.mrf.mxu1  ;;  %9891 = vmatmul.mubr.msk.bf16.vlgmr.msra.gmra.mxu1 %vm593_vm2, %v14422_v42 }
 0x3af   : > { %v14536_v5 = vadd.f32 %v5972_v20, %v13985_v3  ;;  %v14539_v32 = vadd.f32 %v6115_v28, %v16578_v23  ;;  %8046 = vmatpush1.bf16.msra.mxu1 %v7725_v31  ;;  %7967 = vmatprep.mubr.bf16.mxu1 %v15774_v11  ;;  %v14553_v31 = vpop.permute.xlu1 %10417  ;;  %v16584_v20 = vld [vmem:[#allocation42_spill] sm:$0xff]  ;;  %v16586_v23 = vld [vmem:[#allocation23_spill] sm:$0xff] }
 0x3b0   : > { %v6062_v19 = vpop.f32.mrf.mxu0  ;;  %v6117_v37 = vpop.f32.mrf.mxu1  ;;  %9888 = vmatmul.mubr.msk.bf16.vlgmr.msra.gmra.mxu0 %vm593_vm2, %v14422_v42  ;;  %9902 = vmatprep.subr.msk.bf16.mxu1 %vm600_vm1, %v7664_v26 }
 0x3b1   : > { %16579 = vst [vmem:[#allocation55_spill] sm:$0xff] %v14539_v32  ;;  %v14546_v57 = vadd.f32 %v6062_v19, %v16580_v34  ;;  %v14549_v14 = vadd.f32 %v6117_v37, %v16582_v60  ;;  %7993 = vmatpush1.bf16.msra.mxu0 %v7719_v15  ;;  %7914 = vmatprep.mubr.bf16.mxu0 %v15774_v11  ;;  %v10419_v15 = vunpack.i.l.bf16 %v14553_v31  ;;  %v16588_v60 = vld [vmem:[#allocation108_spill] sm:$0xff]  ;;  %v16593_v19 = vld [vmem:[#allocation26_spill] sm:$0xff] }
 0x3b2   : > { %v6064_v3 = vpop.f32.mrf.mxu0  ;;  %v6119_v0 = vpop.f32.mrf.mxu1  ;;  %9899 = vmatprep.subr.msk.bf16.mxu0 %vm600_vm1, %v7662_v6 }
 0x3b3   : > { %16581 = vst [vmem:[#allocation131_spill] sm:$0xff] %v14546_v57  ;;  %16583 = vst [vmem:[#allocation56_spill] sm:$0xff] %v14549_v14  ;;  %v14556_v28 = vadd.f32 %v6064_v3, %v16584_v20  ;;  %v14559_v26 = vadd.f32 %v6119_v0, %v16586_v23  ;;  %v16590_v57 = vld [vmem:[#allocation24_spill] sm:$0xff]  ;;  %v14569_v6 = vpop.permute.xlu0 %10412  ;;  %v16592_v3 = vunpack.i.l.bf16 %v14465_v50 }
 0x3b4   : > { %v6066_v34 = vpop.f32.mrf.mxu0  ;;  %v6121_v37 = vpop.f32.mrf.mxu1 }
 0x3b5   : > { %16585 = vst [vmem:[#allocation132_spill] sm:$0xff] %v14556_v28  ;;  %16587 = vst [vmem:[#allocation57_spill] sm:$0xff] %v14559_v26  ;;  %v14564_v14 = vadd.f32 %v6066_v34, %v16588_v60  ;;  %v14567_v32 = vadd.f32 %v6121_v37, %v16590_v57  ;;  %v7633_v0 = vsel %vm7624_vm9, %v10405_v30, %v16592_v3  ;;  %v16595_v34 = vld [vmem:[#allocation27_spill] sm:$0xff]  ;;  %v10414_v57 = vunpack.i.l.bf16 %v14569_v6 }
 0x3b6   : > { %v6068_v20 = vpop.f32.mrf.mxu0  ;;  %v6125_v23 = vpop.f32.mrf.mxu1  ;;  %9892 = vmatmul.mubr.msk.bf16.gmra.mxu1 %vm593_vm2, %v14462_v12  ;;  %v16597_v37 = vunpack.i.h.bf16 %v14367_v1  ;;  %v10415_v1 = vunpack.i.h.bf16 %v14569_v6 }
 0x3b7   : > { %16589 = vst [vmem:[#allocation58_spill] sm:$0xff] %v14564_v14  ;;  %16591 = vst [vmem:[#allocation60_spill] sm:$0xff] %v14567_v32  ;;  %v14578_v26 = vadd.f32 %v6068_v20, %v16593_v19  ;;  %v14581_v60 = vadd.f32 %v6125_v23, %v16595_v34  ;;  %8063 = vmatprep.mubr.bf16.mxu1 %v15774_v11  ;;  %v7663_v14 = vpack.c.bf16 %v7633_v0, %v7633_v0  ;;  %v16599_v34 = vld [vmem:[#allocation109_spill] sm:$0xff] }
 0x3b8   : > { %v7635_v30 = vsel %vm7624_vm9, %v16597_v37, %v10404_v4  ;;  %v6072_v3 = vpop.f32.mrf.mxu0  ;;  %v6127_v32 = vpop.f32.mrf.mxu1  ;;  %9889 = vmatmul.mubr.msk.bf16.gmra.mxu0 %vm593_vm2, %v14462_v12  ;;  %v16598_v19 = vunpack.i.h.bf16 %v14553_v31 }
 0x3b9   : > { %16594 = vst [vmem:[#allocation133_spill] sm:$0xff] %v14578_v26  ;;  %16596 = vst [vmem:[#allocation61_spill] sm:$0xff] %v14581_v60  ;;  %v14596_v23 = vadd.f32 %v6072_v3, %v14045_v29  ;;  %v14599_v60 = vadd.f32 %v6127_v32, %v16599_v34  ;;  %8010 = vmatprep.mubr.bf16.mxu0 %v15774_v11  ;;  %v7661_v26 = vpack.c.bf16 %v7635_v30, %v7635_v30 }
 0x3ba   : > { %v7628_v20 = vsel %vm7624_vm9, %v10419_v15, %v16598_v19  ;;  %v6074_v4 = vpop.f32.mrf.mxu0  ;;  %v6129_v37 = vpop.f32.mrf.mxu1  ;;  %v7630_v29 = vsel %vm7624_vm9, %v10414_v57, %v10415_v1  ;;  %v7737_v34 = vsel %vm600_vm1, %v7663_v14, 0  ;;  %v16601_v14 = vld [vmem:[#allocation28_spill] sm:$0xff] }
 0x3bb   : > { %16600 = vst [vmem:[#allocation134_spill] sm:$0xff] %v14599_v60  ;;  %v14604_v0 = vadd.f32 %v6074_v4, %v14053_v54  ;;  %v14607_v28 = vadd.f32 %v6129_v37, %v14056_v27  ;;  %v7668_v3 = vpack.c.bf16 %v7628_v20, %v7628_v20  ;;  %v7666_v30 = vpack.c.bf16 %v7630_v29, %v7630_v29 }
 0x3bc   : > { %v6076_v19 = vpop.f32.mrf.mxu0  ;;  %v6131_v32 = vpop.f32.mrf.mxu1  ;;  %v7731_v27 = vsel %vm600_vm1, %v7661_v26, 0  ;;  %v16603_v26 = vld [vmem:[#allocation110_spill] sm:$0xff] }
 0x3bd   : > { %v14613_v6 = vadd.f32 %v6076_v19, %v14062_v8  ;;  %v14616_v60 = vadd.f32 %v6131_v32, %v14065_v46 }
 0x3be   : > { %v6078_v54 = vpop.f32.mrf.mxu0  ;;  %v6221_v4 = vpop.f32.mrf.mxu1  ;;  %9897 = vmatmul.mubr.msk.bf16.vlgmr.msra.gmra.mxu1 %vm593_vm2, %v14422_v42 }
 0x3bf   : > { %v14622_v20 = vadd.f32 %v6078_v54, %v14071_v53  ;;  %v14625_v37 = vadd.f32 %v6221_v4, %v14074_v17  ;;  %8152 = vmatpush1.bf16.msra.mxu1 %v7737_v34  ;;  %8073 = vmatprep.mubr.bf16.mxu1 %v15774_v11  ;;  %v16606_v34 = vld [vmem:[#allocation29_spill] sm:$0xff] }
 0x3c0   : > { %v6168_v8 = vpop.f32.mrf.mxu0  ;;  %v6223_v46 = vpop.f32.mrf.mxu1  ;;  %9894 = vmatmul.mubr.msk.bf16.vlgmr.msra.gmra.mxu0 %vm593_vm2, %v14422_v42  ;;  %9908 = vmatprep.subr.msk.bf16.mxu1 %vm600_vm1, %v7668_v3 }
 0x3c1   : > { %v14632_v29 = vadd.f32 %v6168_v8, %v16601_v14  ;;  %v14635_v19 = vadd.f32 %v6223_v46, %v16603_v26  ;;  %8099 = vmatpush1.bf16.msra.mxu0 %v7731_v27  ;;  %8020 = vmatprep.mubr.bf16.mxu0 %v15774_v11  ;;  %v14645_v3 = vpop.permute.xlu0 %10422  ;;  %v16608_v14 = vld [vmem:[#allocation111_spill] sm:$0xff]  ;;  %v16610_v27 = vld [vmem:[#allocation30_spill] sm:$0xff] }
 0x3c2   : > { %v6170_v53 = vpop.f32.mrf.mxu0  ;;  %v6225_v17 = vpop.f32.mrf.mxu1  ;;  %9905 = vmatprep.subr.msk.bf16.mxu0 %vm600_vm1, %v7666_v30 }
 0x3c3   : > { %16602 = vst [vmem:[#allocation62_spill] sm:$0xff] %v14632_v29  ;;  %16604 = vst [vmem:[#allocation135_spill] sm:$0xff] %v14635_v19  ;;  %v14640_v32 = vadd.f32 %v6170_v53, %v14089_v47  ;;  %v14643_v54 = vadd.f32 %v6225_v17, %v16606_v34  ;;  %v7629_v19 = vsel %vm7624_vm9, %v10415_v1, %v10419_v15  ;;  %v16612_v47 = vunpack.i.h.bf16 %v14465_v50  ;;  %v7623_v17 = vpop.permute.xlu1 %7622  ;;  %v16613_v34 = vld [vmem:[#allocation112_spill] sm:$0xff] }
 0x3c4   : > { %v6172_v4 = vpop.f32.mrf.mxu0  ;;  %v6227_v8 = vpop.f32.mrf.mxu1  ;;  %v10425_v15 = vunpack.i.h.bf16 %v14645_v3  ;;  %v10424_v1 = vunpack.i.l.bf16 %v14645_v3  ;;  %v7667_v50 = vpack.c.bf16 %v7629_v19, %v7629_v19  ;;  %v16623_v19 = vld [vmem:[#allocation114_spill] sm:$0xff] }
 0x3c5   : > { %16605 = vst [vmem:[#allocation63_spill] sm:$0xff] %v14640_v32  ;;  %16607 = vst [vmem:[#allocation136_spill] sm:$0xff] %v14643_v54  ;;  %v14648_v46 = vadd.f32 %v6172_v4, %v16608_v14  ;;  %v14651_v26 = vadd.f32 %v6227_v8, %v16610_v27  ;;  %v7631_v53 = vsel %vm7624_vm9, %v16612_v47, %v10414_v57  ;;  %v16615_v14 = vld [vmem:[#allocation31_spill] sm:$0xff]  ;;  %v16617_v57 = vld [vmem:[#allocation113_spill] sm:$0xff] }
 0x3c6   : > { %v6174_v30 = vpop.f32.mrf.mxu0  ;;  %v6231_v29 = vpop.f32.mrf.mxu1  ;;  %9898 = vmatmul.mubr.msk.bf16.gmra.mxu1 %vm593_vm2, %v14462_v12 }
 0x3c7   : > { %16609 = vst [vmem:[#allocation64_spill] sm:$0xff] %v14648_v46  ;;  %16611 = vst [vmem:[#allocation137_spill] sm:$0xff] %v14651_v26  ;;  %v14662_v4 = vadd.f32 %v6174_v30, %v16613_v34  ;;  %v14665_v8 = vadd.f32 %v6231_v29, %v16615_v14  ;;  %8169 = vmatprep.mubr.bf16.mxu1 %v15774_v11  ;;  %v16619_v30 = vld [vmem:[#allocation32_spill] sm:$0xff] }
 0x3c8   : > { %v6178_v27 = vpop.f32.mrf.mxu0  ;;  %v6233_v26 = vpop.f32.mrf.mxu1  ;;  %9895 = vmatmul.mubr.msk.bf16.gmra.mxu0 %vm593_vm2, %v14462_v12 }
 0x3c9   : > { %16614 = vst [vmem:[#allocation65_spill] sm:$0xff] %v14662_v4  ;;  %16616 = vst [vmem:[#allocation138_spill] sm:$0xff] %v14665_v8  ;;  %v14673_v47 = vadd.f32 %v6178_v27, %v16617_v57  ;;  %v14676_v34 = vadd.f32 %v6233_v26, %v16619_v30  ;;  %8116 = vmatprep.mubr.bf16.mxu0 %v15774_v11  ;;  %v7665_v8 = vpack.c.bf16 %v7631_v53, %v7631_v53 }
 0x3ca   : > { %v6180_v29 = vpop.f32.mrf.mxu0  ;;  %v6235_v14 = vpop.f32.mrf.mxu1  ;;  %v16621_v4 = vunpack.i.l.bf16 %v14158_v38  ;;  %v7626_v26 = vsel %vm7624_vm9, %v10424_v1, %v10425_v15  ;;  %v7749_v30 = vsel %vm600_vm1, %v7667_v50, 0  ;;  %v16626_v38 = vld [vmem:[#allocation33_spill] sm:$0xff] }
 0x3cb   : > { %16618 = vst [vmem:[#allocation66_spill] sm:$0xff] %v14673_v47  ;;  %16620 = vst [vmem:[#allocation139_spill] sm:$0xff] %v14676_v34  ;;  %v14684_v46 = vadd.f32 %v6180_v29, %v14142_v49  ;;  %v14687_v54 = vadd.f32 %v6235_v14, %v16623_v19  ;;  %v16625_v34 = vld [vmem:[#allocation59_spill] sm:$0xff]  ;;  %v7670_v32 = vpack.c.bf16 %v7626_v26, %v7626_v26  ;;  %v7743_v14 = vsel %vm600_vm1, %v7665_v8, 0  ;;  %v16630_v26 = vld [vmem:[#allocation116_spill] sm:$0xff] }
 0x3cc   : > { %v7648_v3 = vsel %vm7624_vm9, %v7623_v17, %v16621_v4  ;;  %v6182_v27 = vpop.f32.mrf.mxu0  ;;  %v6237_v57 = vpop.f32.mrf.mxu1  ;;  %v16627_v19 = vld [vmem:[#allocation115_spill] sm:$0xff] }
 0x3cd   : > { %16622 = vst [vmem:[#allocation67_spill] sm:$0xff] %v14684_v46  ;;  %16624 = vst [vmem:[#allocation140_spill] sm:$0xff] %v14687_v54  ;;  %v14693_v53 = vadd.f32 %v6182_v27, %v16625_v34  ;;  %v14696_v47 = vadd.f32 %v6237_v57, %v16626_v38  ;;  %v7672_v4 = vpack.c.bf16 %v7648_v3, %v7648_v3  ;;  %v16628_v46 = vld [vmem:[#allocation34_spill] sm:$0xff]  ;;  %v16632_v8 = vld [vmem:[#allocation35_spill] sm:$0xff] }
 0x3ce   : > { %v6184_v49 = vpop.f32.mrf.mxu0  ;;  %v6327_v29 = vpop.f32.mrf.mxu1  ;;  %9903 = vmatmul.mubr.msk.bf16.vlgmr.msra.gmra.mxu1 %vm593_vm2, %v14422_v42  ;;  %v16634_v38 = vld [vmem:[#allocation117_spill] sm:$0xff] }
 0x3cf   : > { %v14702_v54 = vadd.f32 %v6184_v49, %v16627_v19  ;;  %v14705_v50 = vadd.f32 %v6327_v29, %v16628_v46  ;;  %8258 = vmatpush1.bf16.msra.mxu1 %v7749_v30  ;;  %8179 = vmatprep.mubr.bf16.mxu1 %v15774_v11  ;;  %v16635_v49 = vld [vmem:[#allocation36_spill] sm:$0xff] }
 0x3d0   : > { %9914 = vmatprep.subr.msk.bf16.mxu1 %vm600_vm1, %v7672_v4  ;;  %v6274_v34 = vpop.f32.mrf.mxu0  ;;  %v6329_v3 = vpop.f32.mrf.mxu1  ;;  %9900 = vmatmul.mubr.msk.bf16.vlgmr.msra.gmra.mxu0 %vm593_vm2, %v14422_v42 }
 0x3d1   : > { %16629 = vst [vmem:[#allocation68_spill] sm:$0xff] %v14705_v50  ;;  %v14712_v27 = vadd.f32 %v6274_v34, %v16630_v26  ;;  %v14715_v57 = vadd.f32 %v6329_v3, %v16632_v8  ;;  %8205 = vmatpush1.bf16.msra.mxu0 %v7743_v14  ;;  %8126 = vmatprep.mubr.bf16.mxu0 %v15774_v11  ;;  %v16636_v34 = vld [vmem:[#allocation118_spill] sm:$0xff]  ;;  %v16637_v3 = vld [vmem:[#allocation37_spill] sm:$0xff] }
 0x3d2   : > { %v6276_v46 = vpop.f32.mrf.mxu0  ;;  %v6331_v30 = vpop.f32.mrf.mxu1  ;;  %9911 = vmatprep.subr.msk.bf16.mxu0 %vm600_vm1, %v7670_v32  ;;  %v7625_v14 = vsel %vm7624_vm9, %v10425_v15, %v7623_v17  ;;  %v16638_v32 = vld [vmem:[#allocation119_spill] sm:$0xff] }
 0x3d3   : > { %16631 = vst [vmem:[#allocation141_spill] sm:$0xff] %v14712_v27  ;;  %16633 = vst [vmem:[#allocation69_spill] sm:$0xff] %v14715_v57  ;;  %v14720_v4 = vadd.f32 %v6276_v46, %v16634_v38  ;;  %v14723_v29 = vadd.f32 %v6331_v30, %v16635_v49  ;;  %v16640_v30 = vld [vmem:[#allocation38_spill] sm:$0xff]  ;;  %v16642_v49 = vunpack.i.h.bf16 %v14553_v31  ;;  %v7671_v15 = vpack.c.bf16 %v7625_v14, %v7625_v14 }
 0x3d4   : > { %v6278_v19 = vpop.f32.mrf.mxu0  ;;  %v6333_v50 = vpop.f32.mrf.mxu1 }
 0x3d5   : > { %v14726_v26 = vadd.f32 %v6278_v19, %v16636_v34  ;;  %v14729_v8 = vadd.f32 %v6333_v50, %v16637_v3  ;;  %v7627_v50 = vsel %vm7624_vm9, %v16642_v49, %v10424_v1  ;;  %v16646_v1 = vld [vmem:[#allocation121_spill] sm:$0xff]  ;;  %v7761_v14 = vsel %vm600_vm1, %v7671_v15, 0 }
 0x3d6   : > { %v6280_v57 = vpop.f32.mrf.mxu0  ;;  %v6337_v27 = vpop.f32.mrf.mxu1  ;;  %9904 = vmatmul.mubr.msk.bf16.gmra.mxu1 %vm593_vm2, %v14462_v12  ;;  %v7669_v31 = vpack.c.bf16 %v7627_v50, %v7627_v50 }
 0x3d7   : > { %v14736_v46 = vadd.f32 %v6280_v57, %v16638_v32  ;;  %v14739_v38 = vadd.f32 %v6337_v27, %v16640_v30  ;;  %8275 = vmatprep.mubr.bf16.mxu1 %v15774_v11  ;;  %v16643_v57 = vld [vmem:[#allocation120_spill] sm:$0xff]  ;;  %v16645_v30 = vld [vmem:[#allocation39_spill] sm:$0xff] }
 0x3d8   : > { %v6284_v19 = vpop.f32.mrf.mxu0  ;;  %v6339_v17 = vpop.f32.mrf.mxu1  ;;  %9901 = vmatmul.mubr.msk.bf16.gmra.mxu0 %vm593_vm2, %v14462_v12  ;;  %v7755_v50 = vsel %vm600_vm1, %v7669_v31, 0 }
 0x3d9   : > { %16639 = vst [vmem:[#allocation142_spill] sm:$0xff] %v14736_v46  ;;  %16641 = vst [vmem:[#allocation70_spill] sm:$0xff] %v14739_v38  ;;  %v14749_v34 = vadd.f32 %v6284_v19, %v14232_v39  ;;  %v14752_v3 = vadd.f32 %v6339_v17, %v16643_v57  ;;  %8222 = vmatprep.mubr.bf16.mxu0 %v15774_v11  ;;  %v16649_v19 = vld [vmem:[#allocation40_spill] sm:$0xff] }
 0x3da   : > { %v6286_v27 = vpop.f32.mrf.mxu0  ;;  %v6341_v32 = vpop.f32.mrf.mxu1 }
 0x3db   : > { %16644 = vst [vmem:[#allocation143_spill] sm:$0xff] %v14752_v3  ;;  %v14756_v22 = vadd.f32 %v6286_v27, %v16645_v30  ;;  %v14759_v49 = vadd.f32 %v6341_v32, %v16646_v1  ;;  %v16651_v27 = vld [vmem:[#allocation122_spill] sm:$0xff]  ;;  %v16653_v30 = vld [vmem:[#allocation41_spill] sm:$0xff] }
 0x3dc   : > { %v6288_v38 = vpop.f32.mrf.mxu0  ;;  %v6343_v46 = vpop.f32.mrf.mxu1 }
 0x3dd   : > { %16647 = vst [vmem:[#allocation71_spill] sm:$0xff] %v14759_v49  ;;  %v14763_v39 = vadd.f32 %v6288_v38, %v14250_v61  ;;  %v14766_v17 = vadd.f32 %v6343_v46, %v16649_v19  ;;  %v16655_v46 = vld [vmem:[#allocation43_spill] sm:$0xff]  ;;  %v16656_v19 = vld [vmem:[#allocation44_spill] sm:$0xff] }
 0x3de   : > { %v6290_v57 = vpop.f32.mrf.mxu0  ;;  %v6433_v3 = vpop.f32.mrf.mxu1  ;;  %9909 = vmatmul.mubr.msk.bf16.vlgmr.msra.gmra.mxu1 %vm593_vm2, %v14422_v42 }
 0x3df   : > { %16648 = vst [vmem:[#allocation144_spill] sm:$0xff] %v14763_v39  ;;  %16650 = vst [vmem:[#allocation72_spill] sm:$0xff] %v14766_v17  ;;  %v14772_v32 = vadd.f32 %v6290_v57, %v16651_v27  ;;  %v14775_v1 = vadd.f32 %v6433_v3, %v16653_v30  ;;  %8364 = vmatpush1.bf16.msra.mxu1 %v7761_v14  ;;  %8285 = vmatprep.mubr.bf16.mxu1 %v15774_v11  ;;  %v16658_v57 = vld [vmem:[#allocation45_spill] sm:$0xff]  ;;  %v16659_v27 = vld [vmem:[#allocation123_spill] sm:$0xff] }
 0x3e0   : > { %v6380_v61 = vpop.f32.mrf.mxu0  ;;  %v6435_v38 = vpop.f32.mrf.mxu1  ;;  %9906 = vmatmul.mubr.msk.bf16.vlgmr.msra.gmra.mxu0 %vm593_vm2, %v14422_v42  ;;  %v16660_v39 = vld [vmem:[#allocation46_spill] sm:$0xff] }
 0x3e1   : > { %16652 = vst [vmem:[#allocation145_spill] sm:$0xff] %v14772_v32  ;;  %16654 = vst [vmem:[#allocation73_spill] sm:$0xff] %v14775_v1  ;;  %v14781_v15 = vadd.f32 %v6380_v61, %v16655_v46  ;;  %v14784_v17 = vadd.f32 %v6435_v38, %v16656_v19  ;;  %8311 = vmatpush1.bf16.msra.mxu0 %v7755_v50  ;;  %8232 = vmatprep.mubr.bf16.mxu0 %v15774_v11  ;;  %v16661_v61 = vld [vmem:[#allocation124_spill] sm:$0xff]  ;;  %v16662_v19 = vld [vmem:[#allocation47_spill] sm:$0xff] }
 0x3e2   : > { %v6382_v31 = vpop.f32.mrf.mxu0  ;;  %v6437_v3 = vpop.f32.mrf.mxu1 }
 0x3e3   : > { %16657 = vst [vmem:[#allocation146_spill] sm:$0xff] %v14784_v17  ;;  %v14788_v14 = vadd.f32 %v6382_v31, %v16658_v57  ;;  %v14791_v30 = vadd.f32 %v6437_v3, %v16659_v27  ;;  %v16664_v31 = vld [vmem:[#allocation125_spill] sm:$0xff] }
 0x3e4   : > { %v6384_v1 = vpop.f32.mrf.mxu0  ;;  %v6439_v32 = vpop.f32.mrf.mxu1 }
 0x3e5   : > { %v14794_v49 = vadd.f32 %v6384_v1, %v16660_v39  ;;  %v14797_v46 = vadd.f32 %v6439_v32, %v16661_v61  ;;  %v16666_v32 = vld [vmem:[#allocation48_spill] sm:$0xff] }
 0x3e6   : > { %v6386_v38 = vpop.f32.mrf.mxu0  ;;  %v6443_v50 = vpop.f32.mrf.mxu1  ;;  %9910 = vmatmul.mubr.msk.bf16.gmra.mxu1 %vm593_vm2, %v14462_v12 }
 0x3e7   : > { %v14802_v17 = vadd.f32 %v6386_v38, %v16662_v19  ;;  %v14805_v57 = vadd.f32 %v6443_v50, %v16664_v31  ;;  %8381 = vmatprep.mubr.bf16.mxu1 %v15774_v11 }
 0x3e8   : > { %v6390_v3 = vpop.f32.mrf.mxu0  ;;  %v6445_v27 = vpop.f32.mrf.mxu1  ;;  %9907 = vmatmul.mubr.msk.bf16.gmra.mxu0 %vm593_vm2, %v14462_v12 }
 0x3e9   : > { %16663 = vst [vmem:[#allocation74_spill] sm:$0xff] %v14802_v17  ;;  %16665 = vst [vmem:[#allocation75_spill] sm:$0xff] %v14805_v57  ;;  %v14811_v39 = vadd.f32 %v6390_v3, %v14325_v44  ;;  %v14814_v1 = vadd.f32 %v6445_v27, %v16666_v32  ;;  %8328 = vmatprep.mubr.bf16.mxu0 %v15774_v11 }
 0x3ea   : > { %v6392_v61 = vpop.f32.mrf.mxu0  ;;  %v6447_v38 = vpop.f32.mrf.mxu1 }
 0x3eb   : > { %v14818_v50 = vadd.f32 %v6392_v61, %v14332_v62  ;;  %v14821_v19 = vadd.f32 %v6447_v38, %v14335_v48  ;;  %v16669_v38 = vld [vmem:[#allocation126_spill] sm:$0xff] }
 0x3ec   : > { %v6394_v31 = vpop.f32.mrf.mxu0  ;;  %v6449_v57 = vpop.f32.mrf.mxu1 }
 0x3ed   : > { %v14824_v17 = vadd.f32 %v6394_v31, %v14341_v43  ;;  %v14827_v44 = vadd.f32 %v6449_v57, %v14344_v2 }
 0x3ee   : > { %v6396_v3 = vpop.f32.mrf.mxu0  ;;  %v6539_v27 = vpop.f32.mrf.mxu1  ;;  %9915 = vmatmul.mubr.msk.bf16.vlgmr.msra.gmra.mxu1 %vm593_vm2, %v14422_v42 }
 0x3ef   : > { %v14832_v32 = vadd.f32 %v6396_v3, %v14350_v58  ;;  %v14835_v62 = vadd.f32 %v6539_v27, %v14353_v10  ;;  %8391 = vmatprep.mubr.bf16.mxu1 %v15774_v11 }
 0x3f0   : > { %v6486_v48 = vpop.f32.mrf.mxu0  ;;  %v6541_v61 = vpop.f32.mrf.mxu1  ;;  %9912 = vmatmul.mubr.msk.bf16.vlgmr.msra.gmra.mxu0 %vm593_vm2, %v14422_v42 }
 0x3f1   : > { %16667 = vst [vmem:[#allocation147_spill] sm:$0xff] %v14835_v62  ;;  %v14841_v2 = vadd.f32 %v6486_v48, %v14360_v24  ;;  %v14844_v43 = vadd.f32 %v6541_v61, %v14363_v35  ;;  %8338 = vmatprep.mubr.bf16.mxu0 %v15774_v11  ;;  %v16671_v62 = vld [vmem:[#allocation49_spill] sm:$0xff]  ;;  %v16673_v24 = vld [vmem:[#allocation50_spill] sm:$0xff]  ;;  %v16675_v11 = vld [vmem:[#allocation51_spill] sm:$0xff] }
 0x3f2   : > { %v6488_v58 = vpop.f32.mrf.mxu0  ;;  %v6543_v57 = vpop.f32.mrf.mxu1 }
 0x3f3   : > { %16668 = vst [vmem:[#allocation77_spill] sm:$0xff] %v14844_v43  ;;  %v14848_v10 = vadd.f32 %v6488_v58, %v14370_v7  ;;  %v14851_v31 = vadd.f32 %v6543_v57, %v16669_v38  ;;  %v16676_v7 = vld [vmem:[#allocation52_spill] sm:$0xff] }
 0x3f4   : > { %v6490_v3 = vpop.f32.mrf.mxu0  ;;  %v6545_v27 = vpop.f32.mrf.mxu1 }
 0x3f5   : > { %16670 = vst [vmem:[#allocation78_spill] sm:$0xff] %v14851_v31  ;;  %v14854_v42 = vadd.f32 %v6490_v3, %v16671_v62  ;;  %v14857_v48 = vadd.f32 %v6545_v27, %v16673_v24  ;;  %v16677_v62 = vld [vmem:[#allocation128_spill] sm:$0xff]  ;;  %v16678_v27 = vld [vmem:[#allocation53_spill] sm:$0xff] }
 0x3f6   : > { %v6492_v35 = vpop.f32.mrf.mxu0  ;;  %v6549_v61 = vpop.f32.mrf.mxu1  ;;  %9916 = vmatmul.mubr.msk.bf16.gmra.mxu1 %vm593_vm2, %v14462_v12 }
 0x3f7   : > { %16672 = vst [vmem:[#allocation148_spill] sm:$0xff] %v14854_v42  ;;  %16674 = vst [vmem:[#allocation79_spill] sm:$0xff] %v14857_v48  ;;  %v14862_v43 = vadd.f32 %v6492_v35, %v16675_v11  ;;  %v14865_v58 = vadd.f32 %v6549_v61, %v16676_v7 }
 0x3f8   : > { %v6496_v57 = vpop.f32.mrf.mxu0  ;;  %v6551_v38 = vpop.f32.mrf.mxu1  ;;  %9913 = vmatmul.mubr.msk.bf16.gmra.mxu0 %vm593_vm2, %v14462_v12 }
 0x3f9   : > { %v14870_v3 = vadd.f32 %v6496_v57, %v16677_v62  ;;  %v14873_v24 = vadd.f32 %v6551_v38, %v16678_v27 }
 0x3fa   : > { %v6498_v48 = vpop.f32.mrf.mxu0  ;;  %v6553_v42 = vpop.f32.mrf.mxu1 }
 0x3fb   : > { %v14876_v31 = vadd.f32 %v6498_v48, %v14425_v41  ;;  %v14879_v35 = vadd.f32 %v6553_v42, %v14428_v25 }
 0x3fc   : > { %v6500_v61 = vpop.f32.mrf.mxu0  ;;  %v6555_v11 = vpop.f32.mrf.mxu1 }
 0x3fd   : > { %v14882_v7 = vadd.f32 %v6500_v61, %v14434_v63  ;;  %v14885_v12 = vadd.f32 %v6555_v11, %v14437_v40 }
 0x3fe   : > { %v6502_v57 = vpop.f32.mrf.mxu0  ;;  %v6931_v62 = vpop.f32.mrf.mxu1 }
 0x3ff   : > { %v14888_v38 = vadd.f32 %v6502_v57, %v14443_v55  ;;  %v14891_v27 = vadd.f32 %v6931_v62, %v14446_v45 }
 0x400   : > { %v6878_v41 = vpop.f32.mrf.mxu0  ;;  %v6933_v48 = vpop.f32.mrf.mxu1 }
 0x401   : > { %v14894_v25 = vadd.f32 %v6878_v41, %v14453_v21  ;;  %v14897_v42 = vadd.f32 %v6933_v48, %v14456_v52  ;;  %v16682_v48 = vld [vmem:[#allocation129_spill] sm:$0xff] }
 0x402   : > { %v6880_v63 = vpop.f32.mrf.mxu0  ;;  %v6935_v61 = vpop.f32.mrf.mxu1 }
 0x403   : > { %16679 = vst [vmem:[#allocation149_spill] sm:$0xff] %v14897_v42  ;;  %v14900_v40 = vadd.f32 %v6880_v63, %v14468_v33  ;;  %v14903_v11 = vadd.f32 %v6935_v61, %v14471_v51  ;;  %v16683_v61 = vld [vmem:[#allocation54_spill] sm:$0xff] }
 0x404   : > { %v6882_v55 = vpop.f32.mrf.mxu0  ;;  %v6937_v57 = vpop.f32.mrf.mxu1 }
 0x405   : > { %16680 = vst [vmem:[#allocation80_spill] sm:$0xff] %v14903_v11  ;;  %v14906_v45 = vadd.f32 %v6882_v55, %v14478_v18  ;;  %v14909_v62 = vadd.f32 %v6937_v57, %v14481_v36  ;;  %v16686_v57 = vld [vmem:[#allocation130_spill] sm:$0xff] }
 0x406   : > { %v6884_v21 = vpop.f32.mrf.mxu0  ;;  %v6941_v41 = vpop.f32.mrf.mxu1 }
 0x407   : > { %16681 = vst [vmem:[#allocation150_spill] sm:$0xff] %v14909_v62  ;;  %v14912_v52 = vadd.f32 %v6884_v21, %v14494_v56  ;;  %v14915_v42 = vadd.f32 %v6941_v41, %v16682_v48 }
 0x408   : > { %v6888_v33 = vpop.f32.mrf.mxu0  ;;  %v6943_v63 = vpop.f32.mrf.mxu1 }
 0x409   : > { %v14918_v51 = vadd.f32 %v6888_v33, %v14511_v13  ;;  %v14921_v11 = vadd.f32 %v6943_v63, %v16683_v61  ;;  %v16691_v61 = vld [vmem:[#allocation55_spill] sm:$0xff] }
 0x40a   : > { %v6890_v18 = vpop.f32.mrf.mxu0  ;;  %v6945_v55 = vpop.f32.mrf.mxu1 }
 0x40b   : > { %16684 = vst [vmem:[#allocation76_spill] sm:$0xff] %v14921_v11  ;;  %v14924_v36 = vadd.f32 %v6890_v18, %v14518_v16  ;;  %v14927_v62 = vadd.f32 %v6945_v55, %v16686_v57  ;;  %v16693_v55 = vld [vmem:[#allocation131_spill] sm:$0xff] }
 0x40c   : > { %v6892_v56 = vpop.f32.mrf.mxu0  ;;  %v6947_v21 = vpop.f32.mrf.mxu1 }
 0x40d   : > { %16685 = vst [vmem:[#allocation81_spill] sm:$0xff] %v14924_v36  ;;  %16687 = vst [vmem:[#allocation151_spill] sm:$0xff] %v14927_v62  ;;  %v14930_v41 = vadd.f32 %v6892_v56, %v14527_v9  ;;  %v14933_v48 = vadd.f32 %v6947_v21, %v14530_v59  ;;  %v16695_v62 = vld [vmem:[#allocation56_spill] sm:$0xff] }
 0x40e   : > { %v6894_v13 = vpop.f32.mrf.mxu0  ;;  %v7037_v33 = vpop.f32.mrf.mxu1  ;;  %v16697_v59 = vld [vmem:[#allocation132_spill] sm:$0xff] }
 0x40f   : > { %16688 = vst [vmem:[#allocation82_spill] sm:$0xff] %v14930_v41  ;;  %16689 = vst [vmem:[#allocation152_spill] sm:$0xff] %v14933_v48  ;;  %v14936_v63 = vadd.f32 %v6894_v13, %v14536_v5  ;;  %v14939_v11 = vadd.f32 %v7037_v33, %v16691_v61  ;;  %v16698_v48 = vld [vmem:[#allocation57_spill] sm:$0xff]  ;;  %v16700_v33 = vld [vmem:[#allocation58_spill] sm:$0xff] }
 0x410   : > { %v6984_v16 = vpop.f32.mrf.mxu0  ;;  %v7039_v18 = vpop.f32.mrf.mxu1 }
 0x411   : > { %16690 = vst [vmem:[#allocation83_spill] sm:$0xff] %v14936_v63  ;;  %16692 = vst [vmem:[#allocation84_spill] sm:$0xff] %v14939_v11  ;;  %v14942_v57 = vadd.f32 %v6984_v16, %v16693_v55  ;;  %v14945_v36 = vadd.f32 %v7039_v18, %v16695_v62  ;;  %v16701_v11 = vld [vmem:[#allocation60_spill] sm:$0xff]  ;;  %v16702_v62 = vld [vmem:[#allocation133_spill] sm:$0xff] }
 0x412   : > { %v6986_v9 = vpop.f32.mrf.mxu0  ;;  %v7041_v56 = vpop.f32.mrf.mxu1 }
 0x413   : > { %16694 = vst [vmem:[#allocation153_spill] sm:$0xff] %v14942_v57  ;;  %16696 = vst [vmem:[#allocation85_spill] sm:$0xff] %v14945_v36  ;;  %v14948_v21 = vadd.f32 %v6986_v9, %v16697_v59  ;;  %v14951_v41 = vadd.f32 %v7041_v56, %v16698_v48  ;;  %v16703_v36 = vld [vmem:[#allocation61_spill] sm:$0xff]  ;;  %v16704_v56 = vld [vmem:[#allocation134_spill] sm:$0xff] }
 0x414   : > { %v6988_v5 = vpop.f32.mrf.mxu0  ;;  %v7043_v13 = vpop.f32.mrf.mxu1 }
 0x415   : > { %16699 = vst [vmem:[#allocation154_spill] sm:$0xff] %v14951_v41  ;;  %v14954_v61 = vadd.f32 %v6988_v5, %v16700_v33  ;;  %v14957_v63 = vadd.f32 %v7043_v13, %v16701_v11 }
 0x416   : > { %v6990_v16 = vpop.f32.mrf.mxu0  ;;  %v7047_v55 = vpop.f32.mrf.mxu1 }
 0x417   : > { %v14960_v18 = vadd.f32 %v6990_v16, %v16702_v62  ;;  %v14963_v57 = vadd.f32 %v7047_v55, %v16703_v36 }
 0x418   : > { %v6994_v9 = vpop.f32.mrf.mxu0  ;;  %v7049_v59 = vpop.f32.mrf.mxu1 }
 0x419   : > { %v14966_v48 = vadd.f32 %v6994_v9, %v14596_v23  ;;  %v14969_v41 = vadd.f32 %v7049_v59, %v16704_v56 }
 0x41a   : > { %v6996_v5 = vpop.f32.mrf.mxu0  ;;  %v7051_v33 = vpop.f32.mrf.mxu1 }
 0x41b   : > { %v14972_v11 = vadd.f32 %v6996_v5, %v14604_v0  ;;  %v14975_v13 = vadd.f32 %v7051_v33, %v14607_v28  ;;  %v16711_v28 = vld [vmem:[#allocation62_spill] sm:$0xff] }
 0x41c   : > { %v6998_v16 = vpop.f32.mrf.mxu0  ;;  %v7053_v62 = vpop.f32.mrf.mxu1 }
 0x41d   : > { %16705 = vst [vmem:[#allocation86_spill] sm:$0xff] %v14972_v11  ;;  %16706 = vst [vmem:[#allocation155_spill] sm:$0xff] %v14975_v13  ;;  %v14978_v36 = vadd.f32 %v6998_v16, %v14613_v6  ;;  %v14981_v55 = vadd.f32 %v7053_v62, %v14616_v60  ;;  %v16713_v13 = vld [vmem:[#allocation135_spill] sm:$0xff] }
 0x41e   : > { %v7000_v23 = vpop.f32.mrf.mxu0  ;;  %v7143_v9 = vpop.f32.mrf.mxu1  ;;  %v16715_v60 = vld [vmem:[#allocation63_spill] sm:$0xff] }
 0x41f   : > { %16707 = vst [vmem:[#allocation87_spill] sm:$0xff] %v14978_v36  ;;  %16708 = vst [vmem:[#allocation156_spill] sm:$0xff] %v14981_v55  ;;  %v14984_v59 = vadd.f32 %v7000_v23, %v14622_v20  ;;  %v14987_v56 = vadd.f32 %v7143_v9, %v14625_v37  ;;  %v16717_v55 = vld [vmem:[#allocation136_spill] sm:$0xff] }
 0x420   : > { %v7090_v0 = vpop.f32.mrf.mxu0  ;;  %v7145_v5 = vpop.f32.mrf.mxu1  ;;  %v16719_v37 = vld [vmem:[#allocation64_spill] sm:$0xff] }
 0x421   : > { %16709 = vst [vmem:[#allocation88_spill] sm:$0xff] %v14984_v59  ;;  %16710 = vst [vmem:[#allocation157_spill] sm:$0xff] %v14987_v56  ;;  %v14990_v33 = vadd.f32 %v7090_v0, %v16711_v28  ;;  %v14993_v11 = vadd.f32 %v7145_v5, %v16713_v13  ;;  %v16721_v56 = vld [vmem:[#allocation137_spill] sm:$0xff] }
 0x422   : > { %v7092_v6 = vpop.f32.mrf.mxu0  ;;  %v7147_v16 = vpop.f32.mrf.mxu1  ;;  %v16723_v13 = vld [vmem:[#allocation65_spill] sm:$0xff] }
 0x423   : > { %16712 = vst [vmem:[#allocation89_spill] sm:$0xff] %v14990_v33  ;;  %16714 = vst [vmem:[#allocation158_spill] sm:$0xff] %v14993_v11  ;;  %v14996_v62 = vadd.f32 %v7092_v6, %v16715_v60  ;;  %v14999_v36 = vadd.f32 %v7147_v16, %v16717_v55  ;;  %v16724_v11 = vld [vmem:[#allocation138_spill] sm:$0xff] }
 0x424   : > { %v7094_v20 = vpop.f32.mrf.mxu0  ;;  %v7149_v23 = vpop.f32.mrf.mxu1  ;;  %v16725_v55 = vld [vmem:[#allocation66_spill] sm:$0xff] }
 0x425   : > { %16716 = vst [vmem:[#allocation90_spill] sm:$0xff] %v14996_v62  ;;  %16718 = vst [vmem:[#allocation159_spill] sm:$0xff] %v14999_v36  ;;  %v15002_v9 = vadd.f32 %v7094_v20, %v16719_v37  ;;  %v15005_v59 = vadd.f32 %v7149_v23, %v16721_v56  ;;  %v16726_v36 = vld [vmem:[#allocation139_spill] sm:$0xff] }
 0x426   : > { %v7096_v0 = vpop.f32.mrf.mxu0  ;;  %v7153_v28 = vpop.f32.mrf.mxu1  ;;  %v16728_v56 = vld [vmem:[#allocation67_spill] sm:$0xff] }
 0x427   : > { %16720 = vst [vmem:[#allocation91_spill] sm:$0xff] %v15002_v9  ;;  %16722 = vst [vmem:[#allocation160_spill] sm:$0xff] %v15005_v59  ;;  %v15008_v5 = vadd.f32 %v7096_v0, %v16723_v13  ;;  %v15011_v33 = vadd.f32 %v7153_v28, %v16724_v11  ;;  %v16730_v59 = vld [vmem:[#allocation140_spill] sm:$0xff] }
 0x428   : > { %v7100_v6 = vpop.f32.mrf.mxu0  ;;  %v7155_v60 = vpop.f32.mrf.mxu1 }
 0x429   : > { %v15014_v16 = vadd.f32 %v7100_v6, %v16725_v55  ;;  %v15017_v62 = vadd.f32 %v7155_v60, %v16726_v36  ;;  %v16732_v60 = vld [vmem:[#allocation68_spill] sm:$0xff] }
 0x42a   : > { %v7102_v20 = vpop.f32.mrf.mxu0  ;;  %v7157_v37 = vpop.f32.mrf.mxu1 }
 0x42b   : > { %16727 = vst [vmem:[#allocation92_spill] sm:$0xff] %v15017_v62  ;;  %v15020_v23 = vadd.f32 %v7102_v20, %v16728_v56  ;;  %v15023_v9 = vadd.f32 %v7157_v37, %v16730_v59  ;;  %v16733_v59 = vld [vmem:[#allocation141_spill] sm:$0xff] }
 0x42c   : > { %v7104_v0 = vpop.f32.mrf.mxu0  ;;  %v7159_v13 = vpop.f32.mrf.mxu1 }
 0x42d   : > { %16729 = vst [vmem:[#allocation161_spill] sm:$0xff] %v15020_v23  ;;  %16731 = vst [vmem:[#allocation94_spill] sm:$0xff] %v15023_v9  ;;  %v15026_v11 = vadd.f32 %v7104_v0, %v14693_v53  ;;  %v15029_v28 = vadd.f32 %v7159_v13, %v14696_v47  ;;  %v16735_v9 = vld [vmem:[#allocation69_spill] sm:$0xff] }
 0x42e   : > { %v7106_v6 = vpop.f32.mrf.mxu0  ;;  %v7249_v55 = vpop.f32.mrf.mxu1 }
 0x42f   : > { %v15032_v36 = vadd.f32 %v7106_v6, %v14702_v54  ;;  %v15035_v62 = vadd.f32 %v7249_v55, %v16732_v60 }
 0x430   : > { %v7196_v20 = vpop.f32.mrf.mxu0  ;;  %v7251_v56 = vpop.f32.mrf.mxu1 }
 0x431   : > { %v15038_v37 = vadd.f32 %v7196_v20, %v16733_v59  ;;  %v15041_v23 = vadd.f32 %v7251_v56, %v16735_v9  ;;  %v16740_v9 = vld [vmem:[#allocation142_spill] sm:$0xff] }
 0x432   : > { %v7198_v53 = vpop.f32.mrf.mxu0  ;;  %v7253_v0 = vpop.f32.mrf.mxu1 }
 0x433   : > { %16734 = vst [vmem:[#allocation162_spill] sm:$0xff] %v15038_v37  ;;  %16736 = vst [vmem:[#allocation95_spill] sm:$0xff] %v15041_v23  ;;  %v15044_v47 = vadd.f32 %v7198_v53, %v14720_v4  ;;  %v15047_v13 = vadd.f32 %v7253_v0, %v14723_v29  ;;  %v16742_v23 = vld [vmem:[#allocation70_spill] sm:$0xff]  ;;  %v16745_v0 = vld [vmem:[#allocation143_spill] sm:$0xff] }
 0x434   : > { %v7200_v54 = vpop.f32.mrf.mxu0  ;;  %v7255_v6 = vpop.f32.mrf.mxu1 }
 0x435   : > { %16737 = vst [vmem:[#allocation163_spill] sm:$0xff] %v15047_v13  ;;  %v15050_v55 = vadd.f32 %v7200_v54, %v14726_v26  ;;  %v15053_v60 = vadd.f32 %v7255_v6, %v14729_v8  ;;  %v16748_v6 = vld [vmem:[#allocation71_spill] sm:$0xff] }
 0x436   : > { %v7202_v20 = vpop.f32.mrf.mxu0  ;;  %v7259_v59 = vpop.f32.mrf.mxu1 }
 0x437   : > { %16738 = vst [vmem:[#allocation96_spill] sm:$0xff] %v15050_v55  ;;  %16739 = vst [vmem:[#allocation164_spill] sm:$0xff] %v15053_v60  ;;  %v15056_v56 = vadd.f32 %v7202_v20, %v16740_v9  ;;  %v15059_v37 = vadd.f32 %v7259_v59, %v16742_v23  ;;  %v16750_v23 = vld [vmem:[#allocation144_spill] sm:$0xff] }
 0x438   : > { %v7206_v4 = vpop.f32.mrf.mxu0  ;;  %v7261_v53 = vpop.f32.mrf.mxu1 }
 0x439   : > { %16741 = vst [vmem:[#allocation93_spill] sm:$0xff] %v15056_v56  ;;  %16743 = vst [vmem:[#allocation8_spill] sm:$0xff] %v15059_v37  ;;  %v15062_v29 = vadd.f32 %v7206_v4, %v14749_v34  ;;  %v15065_v13 = vadd.f32 %v7261_v53, %v16745_v0  ;;  %v16752_v37 = vld [vmem:[#allocation72_spill] sm:$0xff]  ;;  %v16754_v53 = vld [vmem:[#allocation145_spill] sm:$0xff] }
 0x43a   : > { %v7208_v26 = vpop.f32.mrf.mxu0  ;;  %v7263_v54 = vpop.f32.mrf.mxu1 }
 0x43b   : > { %16744 = vst [vmem:[#allocation10_spill] sm:$0xff] %v15062_v29  ;;  %16746 = vst [vmem:[#allocation9_spill] sm:$0xff] %v15065_v13  ;;  %v15068_v8 = vadd.f32 %v7208_v26, %v14756_v22  ;;  %v15071_v60 = vadd.f32 %v7263_v54, %v16748_v6  ;;  %v16756_v13 = vld [vmem:[#allocation73_spill] sm:$0xff]  ;;  %v16759_v6 = vld [vmem:[#allocation146_spill] sm:$0xff] }
 0x43c   : > { %v7210_v20 = vpop.f32.mrf.mxu0  ;;  %v7265_v9 = vpop.f32.mrf.mxu1 }
 0x43d   : > { %16747 = vst [vmem:[#allocation97_spill] sm:$0xff] %v15068_v8  ;;  %16749 = vst [vmem:[#allocation15_spill] sm:$0xff] %v15071_v60  ;;  %v15074_v59 = vadd.f32 %v7210_v20, %v16750_v23  ;;  %v15077_v56 = vadd.f32 %v7265_v9, %v16752_v37  ;;  %v16819_v8 = vld [vmem:[#allocation83_spill] sm:$0xff] }
 0x43e   : > { %v7212_v34 = vpop.f32.mrf.mxu0  ;;  %v7355_v4 = vpop.f32.mrf.mxu1 }
 0x43f   : > { %16751 = vst [vmem:[#allocation11_spill] sm:$0xff] %v15074_v59  ;;  %16753 = vst [vmem:[#allocation98_spill] sm:$0xff] %v15077_v56  ;;  %v15080_v0 = vadd.f32 %v7212_v34, %v16754_v53  ;;  %v15083_v29 = vadd.f32 %v7355_v4, %v16756_v13 }
 0x440   : > { %v7302_v22 = vpop.f32.mrf.mxu0  ;;  %v7357_v26 = vpop.f32.mrf.mxu1 }
 0x441   : > { %16755 = vst [vmem:[#allocation12_spill] sm:$0xff] %v15080_v0  ;;  %16757 = vst [vmem:[#allocation99_spill] sm:$0xff] %v15083_v29  ;;  %v15086_v54 = vadd.f32 %v7302_v22, %v14781_v15  ;;  %v15089_v60 = vadd.f32 %v7357_v26, %v16759_v6  ;;  %v16765_v26 = vld [vmem:[#allocation74_spill] sm:$0xff] }
 0x442   : > { %v7304_v20 = vpop.f32.mrf.mxu0  ;;  %v7359_v23 = vpop.f32.mrf.mxu1 }
 0x443   : > { %16758 = vst [vmem:[#allocation20_spill] sm:$0xff] %v15086_v54  ;;  %16760 = vst [vmem:[#allocation13_spill] sm:$0xff] %v15089_v60  ;;  %v15092_v37 = vadd.f32 %v7304_v20, %v14788_v14  ;;  %v15095_v9 = vadd.f32 %v7359_v23, %v14791_v30  ;;  %v16767_v60 = vld [vmem:[#allocation75_spill] sm:$0xff] }
 0x444   : > { %v7306_v34 = vpop.f32.mrf.mxu0  ;;  %v7361_v53 = vpop.f32.mrf.mxu1 }
 0x445   : > { %16761 = vst [vmem:[#allocation100_spill] sm:$0xff] %v15092_v37  ;;  %16762 = vst [vmem:[#allocation14_spill] sm:$0xff] %v15095_v9  ;;  %v15098_v13 = vadd.f32 %v7306_v34, %v14794_v49  ;;  %v15101_v4 = vadd.f32 %v7361_v53, %v14797_v46  ;;  %v16805_v37 = vld [vmem:[#allocation80_spill] sm:$0xff] }
 0x446   : > { %v7308_v15 = vpop.f32.mrf.mxu0  ;;  %v7365_v22 = vpop.f32.mrf.mxu1 }
 0x447   : > { %16763 = vst [vmem:[#allocation101_spill] sm:$0xff] %v15098_v13  ;;  %16764 = vst [vmem:[#allocation25_spill] sm:$0xff] %v15101_v4  ;;  %v15104_v6 = vadd.f32 %v7308_v15, %v16765_v26  ;;  %v15107_v54 = vadd.f32 %v7365_v22, %v16767_v60 }
 0x448   : > { %v7312_v14 = vpop.f32.mrf.mxu0  ;;  %v7367_v20 = vpop.f32.mrf.mxu1 }
 0x449   : > { %16766 = vst [vmem:[#allocation6_spill] sm:$0xff] %v15104_v6  ;;  %16768 = vst [vmem:[#allocation16_spill] sm:$0xff] %v15107_v54  ;;  %v15110_v30 = vadd.f32 %v7312_v14, %v14811_v39  ;;  %v15113_v23 = vadd.f32 %v7367_v20, %v14814_v1  ;;  %v16776_v20 = vld [vmem:[#allocation147_spill] sm:$0xff] }
 0x44a   : > { %v7314_v49 = vpop.f32.mrf.mxu0  ;;  %v7369_v34 = vpop.f32.mrf.mxu1 }
 0x44b   : > { %16769 = vst [vmem:[#allocation102_spill] sm:$0xff] %v15110_v30  ;;  %16770 = vst [vmem:[#allocation17_spill] sm:$0xff] %v15113_v23  ;;  %v15116_v46 = vadd.f32 %v7314_v49, %v14818_v50  ;;  %v15119_v53 = vadd.f32 %v7369_v34, %v14821_v19  ;;  %v16779_v34 = vld [vmem:[#allocation77_spill] sm:$0xff]  ;;  %v15235_v30 = vld [vmem:[%s15695_s3 + $0x10] sm:$0xff] }
 0x44c   : > { %v7316_v15 = vpop.f32.mrf.mxu0  ;;  %v7371_v26 = vpop.f32.mrf.mxu1  ;;  %16800 = vst [vmem:[#allocation31_spill] sm:$0xff] %v15235_v30 }
 0x44d   : > { %16771 = vst [vmem:[#allocation103_spill] sm:$0xff] %v15116_v46  ;;  %16772 = vst [vmem:[#allocation18_spill] sm:$0xff] %v15119_v53  ;;  %v15122_v60 = vadd.f32 %v7316_v15, %v14824_v17  ;;  %v15125_v22 = vadd.f32 %v7371_v26, %v14827_v44  ;;  %v16782_v26 = vld [vmem:[#allocation78_spill] sm:$0xff] }
 0x44e   : > { %v7318_v39 = vpop.f32.mrf.mxu0  ;;  %v7461_v14 = vpop.f32.mrf.mxu1 }
 0x44f   : > { %16773 = vst [vmem:[#allocation104_spill] sm:$0xff] %v15122_v60  ;;  %16774 = vst [vmem:[#allocation19_spill] sm:$0xff] %v15125_v22  ;;  %v15128_v1 = vadd.f32 %v7318_v39, %v14832_v32  ;;  %v15131_v23 = vadd.f32 %v7461_v14, %v16776_v20  ;;  %v16784_v14 = vld [vmem:[#allocation148_spill] sm:$0xff] }
 0x450   : > { %v7408_v50 = vpop.f32.mrf.mxu0  ;;  %v7463_v49 = vpop.f32.mrf.mxu1 }
 0x451   : > { %16775 = vst [vmem:[#allocation105_spill] sm:$0xff] %v15128_v1  ;;  %16777 = vst [vmem:[#allocation21_spill] sm:$0xff] %v15131_v23  ;;  %v15134_v19 = vadd.f32 %v7408_v50, %v14841_v2  ;;  %v15137_v53 = vadd.f32 %v7463_v49, %v16779_v34  ;;  %v16786_v23 = vld [vmem:[#allocation79_spill] sm:$0xff] }
 0x452   : > { %v7410_v17 = vpop.f32.mrf.mxu0  ;;  %v7465_v15 = vpop.f32.mrf.mxu1 }
 0x453   : > { %16778 = vst [vmem:[#allocation106_spill] sm:$0xff] %v15134_v19  ;;  %16780 = vst [vmem:[#allocation22_spill] sm:$0xff] %v15137_v53  ;;  %v15140_v44 = vadd.f32 %v7410_v17, %v14848_v10  ;;  %v15143_v22 = vadd.f32 %v7465_v15, %v16782_v26 }
 0x454   : > { %v7412_v32 = vpop.f32.mrf.mxu0  ;;  %v7467_v39 = vpop.f32.mrf.mxu1 }
 0x455   : > { %16781 = vst [vmem:[#allocation107_spill] sm:$0xff] %v15140_v44  ;;  %16783 = vst [vmem:[#allocation42_spill] sm:$0xff] %v15143_v22  ;;  %v15146_v20 = vadd.f32 %v7412_v32, %v16784_v14  ;;  %v15149_v1 = vadd.f32 %v7467_v39, %v16786_v23  ;;  %v16792_v23 = vld [vmem:[#allocation127_spill] sm:$0xff] }
 0x456   : > { %v7414_v2 = vpop.f32.mrf.mxu0  ;;  %v7471_v50 = vpop.f32.mrf.mxu1  ;;  %v9109_v39 = vsub.s32 0, %v16792_v23 }
 0x457   : > { %16785 = vst [vmem:[#allocation23_spill] sm:$0xff] %v15146_v20  ;;  %16787 = vst [vmem:[#allocation108_spill] sm:$0xff] %v15149_v1  ;;  %v15152_v49 = vadd.f32 %v7414_v2, %v14862_v43  ;;  %v15155_v34 = vadd.f32 %v7471_v50, %v14865_v58  ;;  %v9121_v1 = vsub.s32 3, %v16792_v23  ;;  %v9113_v43 = vsub.s32 1, %v16792_v23 }
 0x458   : > { %v7418_v10 = vpop.f32.mrf.mxu0  ;;  %v7473_v17 = vpop.f32.mrf.mxu1  ;;  %v9117_v2 = vsub.s32 2, %v16792_v23  ;;  %v15257_v59 = vrot.slane %v15235_v30, %v9109_v39 }
 0x459   : > { %16788 = vst [vmem:[#allocation24_spill] sm:$0xff] %v15152_v49  ;;  %16789 = vst [vmem:[#allocation26_spill] sm:$0xff] %v15155_v34  ;;  %v15158_v15 = vadd.f32 %v7418_v10, %v14870_v3  ;;  %v15161_v26 = vadd.f32 %v7473_v17, %v14873_v24  ;;  %v9101_v3 = vld [vmem:[%s15695_s3] sm:$0xff]  ;;  %v9133_v24 = vsub.s32 6, %v16792_v23  ;;  %v15178_v10 = vsub.s32 4, %v16792_v23 }
 0x45a   : > { %v7420_v32 = vpop.f32.mrf.mxu0  ;;  %v7475_v14 = vpop.f32.mrf.mxu1  ;;  %v15195_v34 = vrot.slane %v9101_v3, %v9109_v39  ;;  %v15197_v49 = vrot.slane %v9101_v3, %v9121_v1  ;;  %v15199_v20 = vrot.slane %v9101_v3, %v9113_v43  ;;  %v15254_v56 = vrot.slane %v15235_v30, %v9117_v2  ;;  %16807 = vst [vmem:[#allocation115_spill] sm:$0xff] %v15257_v59 }
 0x45b   : > { %16790 = vst [vmem:[#allocation27_spill] sm:$0xff] %v15158_v15  ;;  %16791 = vst [vmem:[#allocation109_spill] sm:$0xff] %v15161_v26  ;;  %v15168_v58 = vadd.f32 %v7420_v32, %v14876_v31  ;;  %v15171_v50 = vadd.f32 %v7475_v14, %v14879_v35  ;;  %v15181_v15 = vsub.s32 7, %v16792_v23  ;;  %v15184_v31 = vsub.s32 5, %v16792_v23  ;;  %v9102_v14 = vld [vmem:[%s15695_s3 + $0x8] sm:$0xff] }
 0x45c   : > { %v7422_v17 = vpop.f32.mrf.mxu0  ;;  %v7477_v26 = vpop.f32.mrf.mxu1  ;;  %v15201_v23 = vrot.slane %v9101_v3, %v9117_v2  ;;  %v15220_v19 = vrot.slane %v9102_v14, %v9117_v2  ;;  %v15228_v60 = vrot.slane %v9102_v14, %v9121_v1  ;;  %v15230_v46 = vrot.slane %v9102_v14, %v9113_v43  ;;  %16806 = vst [vmem:[#allocation33_spill] sm:$0xff] %v15254_v56  ;;  %v16811_v2 = vld [vmem:[#allocation150_spill] sm:$0xff] }
 0x45d   : > { %16793 = vst [vmem:[#allocation28_spill] sm:$0xff] %v15168_v58  ;;  %16794 = vst [vmem:[#allocation110_spill] sm:$0xff] %v15171_v50  ;;  %v15187_v35 = vadd.f32 %v7422_v17, %v14882_v7  ;;  %v15190_v32 = vadd.f32 %v7477_v26, %v14885_v12  ;;  %v15207_v26 = vpop.permute.xlu0 %8600  ;;  %v15209_v17 = vrot.slane %v9101_v3, %v9133_v24 }
 0x45e   : > { %16795 = vst [vmem:[#allocation29_spill] sm:$0xff] %v15184_v31  ;;  %v7424_v50 = vpop.f32.mrf.mxu0  ;;  %v7853_v58 = vpop.f32.mrf.mxu1  ;;  %v15215_v44 = vrot.slane %v9101_v3, %v15181_v15  ;;  %v15218_v53 = vrot.slane %v9101_v3, %v15184_v31  ;;  %v15238_v4 = vrot.slane %v9102_v14, %v9133_v24  ;;  %v15250_v9 = vrot.slane %v9102_v14, %v15184_v31 }
 0x45f   : > { %16796 = vst [vmem:[#allocation111_spill] sm:$0xff] %v15187_v35  ;;  %16797 = vst [vmem:[#allocation30_spill] sm:$0xff] %v15190_v32  ;;  %v15204_v7 = vadd.f32 %v7424_v50, %v14888_v38  ;;  %v8404_v12 = vadd.f32 %v7853_v58, %v14891_v27  ;;  %v15212_v32 = vrot.slane %v9101_v3, %v15178_v10  ;;  %v16799_v58 = vld [vmem:[#allocation149_spill] sm:$0xff] }
 0x460   : > { %v7800_v35 = vpop.f32.mrf.mxu0  ;;  %v7855_v22 = vpop.f32.mrf.mxu1  ;;  %v15222_v38 = vrot.slane %v9102_v14, %v9109_v39  ;;  %16801 = vst [vmem:[#allocation113_spill] sm:$0xff] %v15238_v4  ;;  %16804 = vst [vmem:[#allocation59_spill] sm:$0xff] %v15250_v9 }
 0x461   : > { %16798 = vst [vmem:[#allocation112_spill] sm:$0xff] %v15204_v7  ;;  %v8402_v27 = vadd.f32 %v7800_v35, %v14894_v25  ;;  %v8405_v50 = vadd.f32 %v7855_v22, %v16799_v58  ;;  %v15226_v7 = vpop.permute.xlu1 %8605  ;;  %v8620_v54 = vadd.f32 %v15207_v26, %v8404_v12  ;;  %v15241_v25 = vrot.slane %v9102_v14, %v15178_v10 }
 0x462   : > { %v7802_v3 = vpop.f32.mrf.mxu0  ;;  %v7857_v6 = vpop.f32.mrf.mxu1  ;;  %v15244_v22 = vrot.slane %v9102_v14, %v15181_v15  ;;  %v15267_v14 = vrot.slane %v15235_v30, %v9133_v24 }
 0x463   : > { %16802 = vst [vmem:[#allocation32_spill] sm:$0xff] %v15241_v25  ;;  %v8618_v35 = vadd.f32 %v15207_v26, %v8402_v27  ;;  %v8621_v58 = vadd.f32 %v15207_v26, %v8405_v50  ;;  %v8403_v13 = vadd.f32 %v7802_v3, %v14900_v40  ;;  %v8428_v12 = vadd.f32 %v7857_v6, %v16805_v37  ;;  %v16821_v25 = vld [vmem:[#allocation153_spill] sm:$0xff] }
 0x464   : > { %16803 = vst [vmem:[#allocation114_spill] sm:$0xff] %v15244_v22  ;;  %v7804_v29 = vpop.f32.mrf.mxu0  ;;  %v7859_v0 = vpop.f32.mrf.mxu1  ;;  %v15260_v22 = vrot.slane %v15235_v30, %v9121_v1  ;;  %v15264_v40 = vrot.slane %v15235_v30, %v9113_v43  ;;  %16810 = vst [vmem:[#allocation35_spill] sm:$0xff] %v15267_v14  ;;  %v8716_v37 = vmax.f32 %v8620_v54, 0.0 }
 0x465   : > { %v8714_v27 = vmax.f32 %v8618_v35, 0.0  ;;  %v8619_v50 = vadd.f32 %v15207_v26, %v8403_v13  ;;  %v8426_v6 = vadd.f32 %v7804_v29, %v14906_v45  ;;  %v8429_v3 = vadd.f32 %v7859_v0, %v16811_v2  ;;  %v15274_v43 = vpop.permute.xlu1 %8610 }
 0x466   : > { %16808 = vst [vmem:[#allocation34_spill] sm:$0xff] %v15260_v22  ;;  %16809 = vst [vmem:[#allocation116_spill] sm:$0xff] %v15264_v40  ;;  %v7806_v31 = vpop.f32.mrf.mxu0  ;;  %v8644_v39 = vadd.f32 %v15226_v7, %v8428_v12  ;;  %v7863_v56 = vpop.f32.mrf.mxu1  ;;  %v8717_v35 = vmax.f32 %v8621_v58, 0.0 }
 0x467   : > { %v9227_v1 = vmul.f32 %v15195_v34, %v8714_v27  ;;  %v8715_v22 = vmax.f32 %v8619_v50, 0.0  ;;  %v8427_v13 = vadd.f32 %v7806_v31, %v14912_v52  ;;  %v8642_v24 = vadd.f32 %v15226_v7, %v8426_v6  ;;  %v16812_v27 = vld [vmem:[#allocation76_spill] sm:$0xff] }
 0x468   : > { %v8645_v54 = vadd.f32 %v15226_v7, %v8429_v3  ;;  %v8740_v14 = vmax.f32 %v8644_v39, 0.0  ;;  %v8452_v45 = vadd.f32 %v7863_v56, %v14915_v42  ;;  %v7810_v29 = vpop.f32.mrf.mxu0  ;;  %v7865_v0 = vpop.f32.mrf.mxu1  ;;  %v9229_v52 = vmul.f32 %v15201_v23, %v8716_v37 }
 0x469   : > { %v9228_v12 = vmul.f32 %v15199_v20, %v8715_v22  ;;  %v8643_v2 = vadd.f32 %v15226_v7, %v8427_v13  ;;  %v8450_v58 = vadd.f32 %v7810_v29, %v14918_v51  ;;  %v8453_v50 = vadd.f32 %v7865_v0, %v16812_v27  ;;  %v16814_v29 = vld [vmem:[#allocation81_spill] sm:$0xff] }
 0x46a   : > { %v8738_v31 = vmax.f32 %v8642_v24, 0.0  ;;  %v8741_v40 = vmax.f32 %v8645_v54, 0.0  ;;  %v7812_v6 = vpop.f32.mrf.mxu0  ;;  %v7867_v59 = vpop.f32.mrf.mxu1  ;;  %v15286_v3 = vrot.slane %v15235_v30, %v15178_v10  ;;  %v8668_v39 = vadd.f32 %v15274_v43, %v8452_v45 }
 0x46b   : > { %v9323_v42 = vadd.f32 %v9228_v12, %v9227_v1  ;;  %v8739_v56 = vmax.f32 %v8643_v2, 0.0  ;;  %v8666_v22 = vadd.f32 %v15274_v43, %v8450_v58  ;;  %v9230_v51 = vmul.f32 %v15197_v49, %v8717_v35  ;;  %v15302_v45 = vpop.permute.xlu0 %8615  ;;  %v16816_v58 = vld [vmem:[#allocation151_spill] sm:$0xff] }
 0x46c   : > { %16813 = vst [vmem:[#allocation117_spill] sm:$0xff] %v15286_v3  ;;  %v9253_v13 = vmul.f32 %v15201_v23, %v8740_v14  ;;  %v8451_v37 = vadd.f32 %v7812_v6, %v16814_v29  ;;  %v7814_v24 = vpop.f32.mrf.mxu0  ;;  %v7869_v54 = vpop.f32.mrf.mxu1  ;;  %v15295_v0 = vrot.slane %v15235_v30, %v15181_v15  ;;  %v9251_v1 = vmul.f32 %v15195_v34, %v8738_v31  ;;  %v16817_v6 = vld [vmem:[#allocation82_spill] sm:$0xff] }
 0x46d   : > { %v9324_v10 = vadd.f32 %v9323_v42, %v9229_v52  ;;  %v9252_v12 = vmul.f32 %v15199_v20, %v8739_v56  ;;  %v15300_v2 = vadd.f32 %v15274_v43, %v8453_v50  ;;  %v8762_v35 = vmax.f32 %v8666_v22, 0.0 }
 0x46e   : > { %16815 = vst [vmem:[#allocation36_spill] sm:$0xff] %v15295_v0  ;;  %v8667_v14 = vadd.f32 %v15274_v43, %v8451_v37  ;;  %v8476_v27 = vadd.f32 %v7867_v59, %v16816_v58  ;;  %v8474_v29 = vadd.f32 %v7814_v24, %v16817_v6  ;;  %v7816_v3 = vpop.f32.mrf.mxu0  ;;  %v7959_v15 = vpop.f32.mrf.mxu1  ;;  %v9254_v52 = vmul.f32 %v15197_v49, %v8741_v40  ;;  %v16818_v0 = vld [vmem:[#allocation152_spill] sm:$0xff] }
 0x46f   : > { %v9348_v42 = vadd.f32 %v9252_v12, %v9251_v1  ;;  %v8764_v31 = vmax.f32 %v8668_v39, 0.0  ;;  %v8477_v56 = vadd.f32 %v7869_v54, %v16818_v0  ;;  %v8475_v4 = vadd.f32 %v7816_v3, %v16819_v8  ;;  %v16820_v58 = vld [vmem:[#allocation84_spill] sm:$0xff] }
 0x470   : > { %v8763_v30 = vmax.f32 %v8667_v14, 0.0  ;;  %v8690_v50 = vadd.f32 %v15302_v45, %v8474_v29  ;;  %v8692_v22 = vadd.f32 %v15302_v45, %v8476_v27  ;;  %v7906_v37 = vpop.f32.mrf.mxu0  ;;  %v7961_v9 = vpop.f32.mrf.mxu1  ;;  %v8408_v6 = vadd.f32 %v7959_v15, %v16820_v58 }
 0x471   : > { %v9349_v59 = vadd.f32 %v9348_v42, %v9253_v13  ;;  %v8693_v24 = vadd.f32 %v15302_v45, %v8477_v56  ;;  %v8406_v40 = vadd.f32 %v7906_v37, %v16821_v25  ;;  %v9275_v39 = vmul.f32 %v15195_v34, %v8762_v35  ;;  %v16822_v37 = vld [vmem:[#allocation85_spill] sm:$0xff] }
 0x472   : > { %v9276_v54 = vmul.f32 %v15199_v20, %v8763_v30  ;;  %v8786_v0 = vmax.f32 %v8690_v50, 0.0  ;;  %v8691_v1 = vadd.f32 %v15302_v45, %v8475_v4  ;;  %v7908_v12 = vpop.f32.mrf.mxu0  ;;  %v7963_v8 = vpop.f32.mrf.mxu1  ;;  %v8765_v3 = vmax.f32 %v15300_v2, 0.0 }
 0x473   : > { %v8788_v14 = vmax.f32 %v8692_v22, 0.0  ;;  %v8622_v13 = vadd.f32 %v15207_v26, %v8406_v40  ;;  %v9325_v27 = vadd.f32 %v9324_v10, %v9230_v51  ;;  %v9277_v29 = vmul.f32 %v15201_v23, %v8764_v31  ;;  %v16823_v51 = vld [vmem:[#allocation154_spill] sm:$0xff] }
 0x474   : > { %v9373_v15 = vadd.f32 %v9276_v54, %v9275_v39  ;;  %v8789_v42 = vmax.f32 %v8693_v24, 0.0  ;;  %v8787_v25 = vmax.f32 %v8691_v1, 0.0  ;;  %v7910_v56 = vpop.f32.mrf.mxu0  ;;  %v7965_v35 = vpop.f32.mrf.mxu1  ;;  %v9299_v30 = vmul.f32 %v15195_v34, %v8786_v0 }
 0x475   : > { %v8624_v50 = vadd.f32 %v15207_v26, %v8408_v6  ;;  %v8718_v4 = vmax.f32 %v8622_v13, 0.0  ;;  %v8409_v58 = vadd.f32 %v7961_v9, %v16822_v37  ;;  %v8407_v22 = vadd.f32 %v7908_v12, %v14948_v21 }
 0x476   : > { %v9374_v55 = vadd.f32 %v9373_v15, %v9277_v29  ;;  %v9300_v2 = vmul.f32 %v15199_v20, %v8787_v25  ;;  %v8432_v10 = vadd.f32 %v7963_v8, %v16823_v51  ;;  %v7912_v31 = vpop.f32.mrf.mxu0  ;;  %v7969_v40 = vpop.f32.mrf.mxu1  ;;  %v9301_v24 = vmul.f32 %v15201_v23, %v8788_v14 }
 0x477   : > { %v9231_v39 = vmul.f32 %v15212_v32, %v8718_v4  ;;  %v8625_v34 = vadd.f32 %v15207_v26, %v8409_v58  ;;  %v8430_v6 = vadd.f32 %v7910_v56, %v14954_v61  ;;  %v8623_v9 = vadd.f32 %v15207_v26, %v8407_v22 }
 0x478   : > { %v9398_v54 = vadd.f32 %v9300_v2, %v9299_v30  ;;  %v8648_v0 = vadd.f32 %v15226_v7, %v8432_v10  ;;  %v9350_v20 = vadd.f32 %v9349_v59, %v9254_v52  ;;  %v7916_v1 = vpop.f32.mrf.mxu0  ;;  %v7971_v21 = vpop.f32.mrf.mxu1  ;;  %v8720_v12 = vmax.f32 %v8624_v50, 0.0 }
 0x479   : > { %v9326_v8 = vadd.f32 %v9325_v27, %v9231_v39  ;;  %v8646_v13 = vadd.f32 %v15226_v7, %v8430_v6  ;;  %v8433_v23 = vadd.f32 %v7965_v35, %v14957_v63  ;;  %v9278_v14 = vmul.f32 %v15197_v49, %v8765_v3  ;;  %v16824_v39 = vld [vmem:[#allocation86_spill] sm:$0xff] }
 0x47a   : > { %v9399_v29 = vadd.f32 %v9398_v54, %v9301_v24  ;;  %v8719_v15 = vmax.f32 %v8623_v9, 0.0  ;;  %v8431_v61 = vadd.f32 %v7912_v31, %v14960_v18  ;;  %v7918_v25 = vpop.f32.mrf.mxu0  ;;  %v7973_v56 = vpop.f32.mrf.mxu1  ;;  %v9302_v30 = vmul.f32 %v15197_v49, %v8789_v42 }
 0x47b   : > { %v8721_v4 = vmax.f32 %v8625_v34, 0.0  ;;  %v8742_v52 = vmax.f32 %v8646_v13, 0.0  ;;  %v8456_v59 = vadd.f32 %v7969_v40, %v14963_v57  ;;  %v8744_v50 = vmax.f32 %v8648_v0, 0.0  ;;  %v16826_v13 = vld [vmem:[#allocation87_spill] sm:$0xff] }
 0x47c   : > { %v9232_v27 = vmul.f32 %v15218_v53, %v8719_v15  ;;  %v8647_v37 = vadd.f32 %v15226_v7, %v8431_v61  ;;  %v8454_v63 = vadd.f32 %v7916_v1, %v14966_v48  ;;  %v7920_v3 = vpop.f32.mrf.mxu0  ;;  %v7975_v35 = vpop.f32.mrf.mxu1  ;;  %v9233_v58 = vmul.f32 %v15209_v17, %v8720_v12 }
 0x47d   : > { %v9255_v18 = vmul.f32 %v15212_v32, %v8742_v52  ;;  %v8649_v2 = vadd.f32 %v15226_v7, %v8433_v23  ;;  %v9375_v49 = vadd.f32 %v9374_v55, %v9278_v14  ;;  %v8457_v51 = vadd.f32 %v7971_v21, %v14969_v41  ;;  %v16825_v21 = vld [vmem:[#allocation155_spill] sm:$0xff] }
 0x47e   : > { %v9327_v42 = vadd.f32 %v9326_v8, %v9232_v27  ;;  %v8743_v22 = vmax.f32 %v8647_v37, 0.0  ;;  %v8670_v57 = vadd.f32 %v15274_v43, %v8454_v63  ;;  %v7922_v10 = vpop.f32.mrf.mxu0  ;;  %v8065_v31 = vpop.f32.mrf.mxu1  ;;  %v9234_v40 = vmul.f32 %v15215_v44, %v8721_v4 }
 0x47f   : > { %v9351_v48 = vadd.f32 %v9350_v20, %v9255_v18  ;;  %v8672_v24 = vadd.f32 %v15274_v43, %v8456_v59  ;;  %v8455_v34 = vadd.f32 %v7918_v25, %v16824_v39  ;;  %v9257_v54 = vmul.f32 %v15209_v17, %v8744_v50  ;;  %v16827_v50 = vld [vmem:[#allocation156_spill] sm:$0xff]  ;;  %v16830_v39 = vld [vmem:[#allocation89_spill] sm:$0xff] }
 0x480   : > { %v9328_v6 = vadd.f32 %v9327_v42, %v9233_v58  ;;  %v9256_v55 = vmul.f32 %v15218_v53, %v8743_v22  ;;  %v8766_v9 = vmax.f32 %v8670_v57, 0.0  ;;  %v8012_v0 = vpop.f32.mrf.mxu0  ;;  %v8067_v1 = vpop.f32.mrf.mxu1  ;;  %v8673_v12 = vadd.f32 %v15274_v43, %v8457_v51 }
 0x481   : > { %v8671_v41 = vadd.f32 %v15274_v43, %v8455_v34  ;;  %v8480_v8 = vadd.f32 %v7973_v56, %v16825_v21  ;;  %v8478_v20 = vadd.f32 %v7920_v3, %v16826_v13  ;;  %v8745_v23 = vmax.f32 %v8649_v2, 0.0  ;;  %v16828_v56 = vld [vmem:[#allocation88_spill] sm:$0xff] }
 0x482   : > { %v9352_v14 = vadd.f32 %v9351_v48, %v9256_v55  ;;  %v9279_v15 = vmul.f32 %v15212_v32, %v8766_v9  ;;  %v9400_v61 = vadd.f32 %v9399_v29, %v9302_v30  ;;  %v8014_v25 = vpop.f32.mrf.mxu0  ;;  %v8069_v4 = vpop.f32.mrf.mxu1  ;;  %v8768_v52 = vmax.f32 %v8672_v24, 0.0  ;;  %v16829_v48 = vld [vmem:[#allocation157_spill] sm:$0xff] }
 0x483   : > { %v8767_v59 = vmax.f32 %v8671_v41, 0.0  ;;  %v8694_v27 = vadd.f32 %v15302_v45, %v8478_v20  ;;  %v8481_v37 = vadd.f32 %v7975_v35, %v16827_v50  ;;  %v8696_v18 = vadd.f32 %v15302_v45, %v8480_v8 }
 0x484   : > { %v9353_v63 = vadd.f32 %v9352_v14, %v9257_v54  ;;  %v9376_v58 = vadd.f32 %v9375_v49, %v9279_v15  ;;  %v8479_v42 = vadd.f32 %v7922_v10, %v16828_v56  ;;  %v8016_v3 = vpop.f32.mrf.mxu0  ;;  %v8071_v2 = vpop.f32.mrf.mxu1  ;;  %v8769_v22 = vmax.f32 %v8673_v12, 0.0  ;;  %v16832_v15 = vld [vmem:[#allocation90_spill] sm:$0xff] }
 0x485   : > { %v9280_v57 = vmul.f32 %v15218_v53, %v8767_v59  ;;  %v8790_v29 = vmax.f32 %v8694_v27, 0.0  ;;  %v8697_v30 = vadd.f32 %v15302_v45, %v8481_v37  ;;  %v8412_v24 = vadd.f32 %v8065_v31, %v16829_v48 }
 0x486   : > { %v8695_v51 = vadd.f32 %v15302_v45, %v8479_v42  ;;  %v8410_v35 = vadd.f32 %v8012_v0, %v16830_v39  ;;  %v9329_v34 = vadd.f32 %v9328_v6, %v9234_v40  ;;  %v8018_v49 = vpop.f32.mrf.mxu0  ;;  %v8075_v54 = vpop.f32.mrf.mxu1  ;;  %v9258_v55 = vmul.f32 %v15215_v44, %v8745_v23  ;;  %v16831_v40 = vld [vmem:[#allocation158_spill] sm:$0xff]  ;;  %v16834_v42 = vld [vmem:[#allocation91_spill] sm:$0xff]  ;;  %v16835_v39 = vld [vmem:[#allocation160_spill] sm:$0xff] }
 0x487   : > { %v9281_v10 = vmul.f32 %v15209_v17, %v8768_v52  ;;  %v9377_v9 = vadd.f32 %v9376_v58, %v9280_v57  ;;  %v9303_v12 = vmul.f32 %v15212_v32, %v8790_v29  ;;  %v8792_v41 = vmax.f32 %v8696_v18, 0.0  ;;  %v16833_v18 = vld [vmem:[#allocation159_spill] sm:$0xff] }
 0x488   : > { %v8791_v21 = vmax.f32 %v8695_v51, 0.0  ;;  %v8628_v8 = vadd.f32 %v15207_v26, %v8412_v24  ;;  %v8626_v13 = vadd.f32 %v15207_v26, %v8410_v35  ;;  %v8022_v20 = vpop.f32.mrf.mxu0  ;;  %v8077_v31 = vpop.f32.mrf.mxu1  ;;  %v8413_v6 = vadd.f32 %v8067_v1, %v16831_v40 }
 0x489   : > { %v9378_v14 = vadd.f32 %v9377_v9, %v9281_v10  ;;  %v9401_v0 = vadd.f32 %v9400_v61, %v9303_v12  ;;  %v8411_v59 = vadd.f32 %v8014_v25, %v16832_v15  ;;  %v9282_v23 = vmul.f32 %v15215_v44, %v8769_v22 }
 0x48a   : > { %v8793_v52 = vmax.f32 %v8697_v30, 0.0  ;;  %v9304_v27 = vmul.f32 %v15218_v53, %v8791_v21  ;;  %v8722_v32 = vmax.f32 %v8626_v13, 0.0  ;;  %v8024_v50 = vpop.f32.mrf.mxu0  ;;  %v8079_v37 = vpop.f32.mrf.mxu1  ;;  %v8436_v56 = vadd.f32 %v8069_v4, %v16833_v18 }
 0x48b   : > { %v8627_v58 = vadd.f32 %v15207_v26, %v8411_v59  ;;  %v8434_v57 = vadd.f32 %v8016_v3, %v16834_v42  ;;  %v9354_v29 = vadd.f32 %v9353_v63, %v9258_v55  ;;  %v9305_v61 = vmul.f32 %v15209_v17, %v8792_v41 }
 0x48c   : > { %v9402_v1 = vadd.f32 %v9401_v0, %v9304_v27  ;;  %v8724_v51 = vmax.f32 %v8628_v8, 0.0  ;;  %v9235_v25 = vmul.f32 %v15222_v38, %v8722_v32  ;;  %v8026_v22 = vpop.f32.mrf.mxu0  ;;  %v8081_v30 = vpop.f32.mrf.mxu1  ;;  %v8629_v53 = vadd.f32 %v15207_v26, %v8413_v6  ;;  %v16836_v27 = vld [vmem:[#allocation92_spill] sm:$0xff] }
 0x48d   : > { %v8723_v48 = vmax.f32 %v8627_v58, 0.0  ;;  %v8650_v24 = vadd.f32 %v15226_v7, %v8434_v57  ;;  %v8437_v35 = vadd.f32 %v8071_v2, %v16835_v39  ;;  %v8652_v3 = vadd.f32 %v15226_v7, %v8436_v56 }
 0x48e   : > { %v9403_v10 = vadd.f32 %v9402_v1, %v9305_v61  ;;  %v9330_v4 = vadd.f32 %v9329_v34, %v9235_v25  ;;  %v8435_v63 = vadd.f32 %v8018_v49, %v15008_v5  ;;  %v8028_v17 = vpop.f32.mrf.mxu0  ;;  %v8171_v55 = vpop.f32.mrf.mxu1  ;;  %v9306_v9 = vmul.f32 %v15215_v44, %v8793_v52 }
 0x48f   : > { %v9236_v12 = vmul.f32 %v15230_v46, %v8723_v48  ;;  %v8746_v41 = vmax.f32 %v8650_v24, 0.0  ;;  %v8653_v21 = vadd.f32 %v15226_v7, %v8437_v35  ;;  %v8460_v13 = vadd.f32 %v8075_v54, %v15011_v33 }
 0x490   : > { %v8651_v8 = vadd.f32 %v15226_v7, %v8435_v63  ;;  %v8458_v2 = vadd.f32 %v8022_v20, %v15014_v16  ;;  %v9379_v34 = vadd.f32 %v9378_v14, %v9282_v23  ;;  %v8118_v0 = vpop.f32.mrf.mxu0  ;;  %v8173_v40 = vpop.f32.mrf.mxu1  ;;  %v9237_v5 = vmul.f32 %v15220_v19, %v8724_v51  ;;  %v16837_v20 = vld [vmem:[#allocation161_spill] sm:$0xff] }
 0x491   : > { %v8725_v49 = vmax.f32 %v8629_v53, 0.0  ;;  %v9331_v6 = vadd.f32 %v9330_v4, %v9236_v12  ;;  %v9259_v44 = vmul.f32 %v15222_v38, %v8746_v41  ;;  %v8748_v15 = vmax.f32 %v8652_v3, 0.0 }
 0x492   : > { %v8747_v59 = vmax.f32 %v8651_v8, 0.0  ;;  %v8674_v52 = vadd.f32 %v15274_v43, %v8458_v2  ;;  %v8461_v32 = vadd.f32 %v8077_v31, %v16836_v27  ;;  %v8120_v58 = vpop.f32.mrf.mxu0  ;;  %v8175_v18 = vpop.f32.mrf.mxu1  ;;  %v8676_v16 = vadd.f32 %v15274_v43, %v8460_v13  ;;  %v16838_v31 = vld [vmem:[#allocation94_spill] sm:$0xff] }
 0x493   : > { %v9332_v33 = vadd.f32 %v9331_v6, %v9237_v5  ;;  %v9355_v54 = vadd.f32 %v9354_v29, %v9259_v44  ;;  %v8459_v14 = vadd.f32 %v8024_v50, %v16837_v20  ;;  %v8749_v23 = vmax.f32 %v8653_v21, 0.0  ;;  %v16839_v44 = vld [vmem:[#allocation162_spill] sm:$0xff] }
 0x494   : > { %v9260_v56 = vmul.f32 %v15230_v46, %v8747_v59  ;;  %v8770_v42 = vmax.f32 %v8674_v52, 0.0  ;;  %v8677_v57 = vadd.f32 %v15274_v43, %v8461_v32  ;;  %v8122_v61 = vpop.f32.mrf.mxu0  ;;  %v15399_v1 = vpop.f32.mrf.mxu1  ;;  %v8484_v25 = vadd.f32 %v8079_v37, %v16838_v31 }
 0x495   : > { %v8675_v51 = vadd.f32 %v15274_v43, %v8459_v14  ;;  %v8482_v53 = vadd.f32 %v8026_v22, %v15026_v11  ;;  %v9404_v29 = vadd.f32 %v9403_v10, %v9306_v9  ;;  %v9238_v48 = vmul.f32 %v15228_v60, %v8725_v49 }
 0x496   : > { %v9261_v50 = vmul.f32 %v15220_v19, %v8748_v15  ;;  %v9356_v24 = vadd.f32 %v9355_v54, %v9260_v56  ;;  %v9283_v39 = vmul.f32 %v15222_v38, %v8770_v42  ;;  %v8124_v35 = vpop.f32.mrf.mxu0  ;;  %v15407_v4 = vpop.f32.mrf.mxu1  ;;  %v8772_v3 = vmax.f32 %v8676_v16, 0.0  ;;  %v16840_v16 = vld [vmem:[#allocation95_spill] sm:$0xff] }
 0x497   : > { %v8771_v63 = vmax.f32 %v8675_v51, 0.0  ;;  %v8700_v12 = vadd.f32 %v15302_v45, %v8484_v25  ;;  %v8698_v41 = vadd.f32 %v15302_v45, %v8482_v53  ;;  %v8485_v11 = vadd.f32 %v8081_v30, %v15029_v28  ;;  %v16841_v25 = vld [vmem:[#allocation163_spill] sm:$0xff] }
 0x498   : > { %v9357_v37 = vadd.f32 %v9356_v24, %v9261_v50  ;;  %v9380_v21 = vadd.f32 %v9379_v34, %v9283_v39  ;;  %v8483_v22 = vadd.f32 %v8028_v17, %v15032_v36  ;;  %v8128_v10 = vpop.f32.mrf.mxu0  ;;  %v15413_v9 = vpop.f32.mrf.mxu1  ;;  %v9262_v8 = vmul.f32 %v15228_v60, %v8749_v23  ;;  %v16843_v39 = vld [vmem:[#allocation32_spill] sm:$0xff] }
 0x499   : > { %v8773_v13 = vmax.f32 %v8677_v57, 0.0  ;;  %v9284_v2 = vmul.f32 %v15230_v46, %v8771_v63  ;;  %v8794_v5 = vmax.f32 %v8698_v41, 0.0  ;;  %v8416_v6 = vadd.f32 %v8171_v55, %v15035_v62 }
 0x49a   : > { %v8699_v49 = vadd.f32 %v15302_v45, %v8483_v22  ;;  %v8414_v15 = vadd.f32 %v8118_v0, %v16839_v44  ;;  %v9333_v34 = vadd.f32 %v9332_v33, %v9238_v48  ;;  %v15420_v59 = vpop.f32.mrf.mxu0  ;;  %v15422_v28 = vpop.f32.mrf.mxu1  ;;  %v9285_v36 = vmul.f32 %v15220_v19, %v8772_v3 }
 0x49b   : > { %v9381_v30 = vadd.f32 %v9380_v21, %v9284_v2  ;;  %v8796_v17 = vmax.f32 %v8700_v12, 0.0  ;;  %v9307_v52 = vmul.f32 %v15222_v38, %v8794_v5  ;;  %v8701_v27 = vadd.f32 %v15302_v45, %v8485_v11  ;;  %v16844_v11 = vld [vmem:[#allocation164_spill] sm:$0xff] }
 0x49c   : > { %v8795_v32 = vmax.f32 %v8699_v49, 0.0  ;;  %v8630_v54 = vadd.f32 %v15207_v26, %v8414_v15  ;;  %v8417_v62 = vadd.f32 %v8173_v40, %v16840_v16  ;;  %v15429_v55 = vpop.f32.mrf.mxu0  ;;  %v15431_v0 = vpop.f32.mrf.mxu1  ;;  %v8632_v14 = vadd.f32 %v15207_v26, %v8416_v6  ;;  %v16846_v49 = vld [vmem:[#allocation59_spill] sm:$0xff] }
 0x49d   : > { %v9382_v33 = vadd.f32 %v9381_v30, %v9285_v36  ;;  %v9405_v20 = vadd.f32 %v9404_v29, %v9307_v52  ;;  %v8415_v23 = vadd.f32 %v8120_v58, %v15044_v47  ;;  %v9286_v56 = vmul.f32 %v15228_v60, %v8773_v13  ;;  %v16842_v29 = vld [vmem:[#allocation96_spill] sm:$0xff] }
 0x49e   : > { %v9308_v38 = vmul.f32 %v15230_v46, %v8795_v32  ;;  %v8726_v42 = vmax.f32 %v8630_v54, 0.0  ;;  %v8633_v57 = vadd.f32 %v15207_v26, %v8417_v62  ;;  %v15438_v51 = vpop.f32.mrf.mxu0  ;;  %v15440_v40 = vpop.f32.mrf.mxu1  ;;  %v8440_v53 = vadd.f32 %v8175_v18, %v16841_v25  ;;  %v16847_v30 = vld [vmem:[#allocation8_spill] sm:$0xff]  ;;  %v16849_v54 = vld [vmem:[#allocation113_spill] sm:$0xff] }
 0x49f   : > { %v8631_v31 = vadd.f32 %v15207_v26, %v8415_v23  ;;  %v8438_v48 = vadd.f32 %v8122_v61, %v16842_v29  ;;  %v9358_v50 = vadd.f32 %v9357_v37, %v9262_v8  ;;  %v9309_v47 = vmul.f32 %v15220_v19, %v8796_v17  ;;  %v16845_v19 = vld [vmem:[#allocation93_spill] sm:$0xff] }
 0x4a0   : > { %v8797_v58 = vmax.f32 %v8701_v27, 0.0  ;;  %v9406_v24 = vadd.f32 %v9405_v20, %v9308_v38  ;;  %v9239_v46 = vmul.f32 %v16843_v39, %v8726_v42  ;;  %v15447_v3 = vpop.f32.mrf.mxu0  ;;  %v15449_v63 = vpop.f32.mrf.mxu1  ;;  %v8728_v12 = vmax.f32 %v8632_v14, 0.0 }
 0x4a1   : > { %v8727_v41 = vmax.f32 %v8631_v31, 0.0  ;;  %v8654_v21 = vadd.f32 %v15226_v7, %v8438_v48  ;;  %v8441_v18 = vadd.f32 %v15399_v1, %v16844_v11  ;;  %v8656_v37 = vadd.f32 %v15226_v7, %v8440_v53  ;;  %v16851_v31 = vld [vmem:[#allocation97_spill] sm:$0xff]  ;;  %v16852_v53 = vld [vmem:[#allocation114_spill] sm:$0xff] }
 0x4a2   : > { %v9407_v22 = vadd.f32 %v9406_v24, %v9309_v47  ;;  %v9334_v61 = vadd.f32 %v9333_v34, %v9239_v46  ;;  %v8439_v8 = vadd.f32 %v8124_v35, %v16845_v19  ;;  %v15456_v13 = vpop.f32.mrf.mxu0  ;;  %v15458_v2 = vpop.f32.mrf.mxu1  ;;  %v8729_v5 = vmax.f32 %v8633_v57, 0.0  ;;  %v16848_v34 = vld [vmem:[#allocation10_spill] sm:$0xff]  ;;  %v16850_v57 = vld [vmem:[#allocation9_spill] sm:$0xff] }
 0x4a3   : > { %v9240_v6 = vmul.f32 %v16846_v49, %v8727_v41  ;;  %v8750_v44 = vmax.f32 %v8654_v21, 0.0  ;;  %v8657_v15 = vadd.f32 %v15226_v7, %v8441_v18  ;;  %v8464_v1 = vadd.f32 %v15407_v4, %v16847_v30  ;;  %v16853_v41 = vld [vmem:[#allocation15_spill] sm:$0xff] }
 0x4a4   : > { %v8655_v36 = vadd.f32 %v15226_v7, %v8439_v8  ;;  %v8462_v17 = vadd.f32 %v8128_v10, %v16848_v34  ;;  %v9383_v52 = vadd.f32 %v9382_v33, %v9286_v56  ;;  %v15466_v27 = vpop.f32.mrf.mxu0  ;;  %v15468_v35 = vpop.f32.mrf.mxu1  ;;  %v9310_v32 = vmul.f32 %v15228_v60, %v8797_v58  ;;  %v16854_v21 = vld [vmem:[#allocation11_spill] sm:$0xff] }
 0x4a5   : > { %v9241_v16 = vmul.f32 %v16849_v54, %v8728_v12  ;;  %v9335_v62 = vadd.f32 %v9334_v61, %v9240_v6  ;;  %v9263_v20 = vmul.f32 %v16843_v39, %v8750_v44  ;;  %v8752_v14 = vmax.f32 %v8656_v37, 0.0  ;;  %v16855_v44 = vld [vmem:[#allocation98_spill] sm:$0xff] }
 0x4a6   : > { %v8751_v23 = vmax.f32 %v8655_v36, 0.0  ;;  %v8680_v38 = vadd.f32 %v15274_v43, %v8464_v1  ;;  %v8678_v4 = vadd.f32 %v15274_v43, %v8462_v17  ;;  %v15475_v42 = vpop.f32.mrf.mxu0  ;;  %v15477_v10 = vpop.f32.mrf.mxu1  ;;  %v8465_v60 = vadd.f32 %v15413_v9, %v16850_v57 }
 0x4a7   : > { %v9336_v33 = vadd.f32 %v9335_v62, %v9241_v16  ;;  %v9359_v56 = vadd.f32 %v9358_v50, %v9263_v20  ;;  %v8463_v25 = vadd.f32 %v15420_v59, %v16851_v31  ;;  %v9242_v29 = vmul.f32 %v16852_v53, %v8729_v5  ;;  %v16857_v20 = vld [vmem:[#allocation99_spill] sm:$0xff] }
 0x4a8   : > { %v8753_v48 = vmax.f32 %v8657_v15, 0.0  ;;  %v9264_v47 = vmul.f32 %v16846_v49, %v8751_v23  ;;  %v8774_v58 = vmax.f32 %v8678_v4, 0.0  ;;  %v15485_v24 = vpop.f32.mrf.mxu0  ;;  %v15487_v46 = vpop.f32.mrf.mxu1  ;;  %v8488_v50 = vadd.f32 %v15422_v28, %v16853_v41 }
 0x4a9   : > { %v8679_v12 = vadd.f32 %v15274_v43, %v8463_v25  ;;  %v8486_v9 = vadd.f32 %v15429_v55, %v16854_v21  ;;  %v9408_v11 = vadd.f32 %v9407_v22, %v9310_v32  ;;  %v9265_v59 = vmul.f32 %v16849_v54, %v8752_v14  ;;  %v16856_v22 = vld [vmem:[#allocation12_spill] sm:$0xff] }
 0x4aa   : > { %v9360_v18 = vadd.f32 %v9359_v56, %v9264_v47  ;;  %v8776_v61 = vmax.f32 %v8680_v38, 0.0  ;;  %v9287_v37 = vmul.f32 %v16843_v39, %v8774_v58  ;;  %v15496_v19 = vpop.f32.mrf.mxu0  ;;  %v8681_v8 = vadd.f32 %v15274_v43, %v8465_v60  ;;  %v15505_v1 = vpop.f32.mrf.mxu1  ;;  %v16858_v14 = vld [vmem:[#allocation20_spill] sm:$0xff] }
 0x4ab   : > { %v8775_v5 = vmax.f32 %v8679_v12, 0.0  ;;  %v8702_v6 = vadd.f32 %v15302_v45, %v8486_v9  ;;  %v8489_v28 = vadd.f32 %v15431_v0, %v16855_v44  ;;  %v8704_v55 = vadd.f32 %v15302_v45, %v8488_v50 }
 0x4ac   : > { %v9361_v15 = vadd.f32 %v9360_v18, %v9265_v59  ;;  %v9384_v36 = vadd.f32 %v9383_v52, %v9287_v37  ;;  %v8487_v30 = vadd.f32 %v15438_v51, %v16856_v22  ;;  %v9266_v34 = vmul.f32 %v16852_v53, %v8753_v48  ;;  %v15510_v62 = vpop.f32.mrf.mxu0  ;;  %v16859_v48 = vld [vmem:[#allocation13_spill] sm:$0xff]  ;;  %v15522_v58 = vpop.f32.mrf.mxu1 }
 0x4ad   : > { %v9288_v17 = vmul.f32 %v16846_v49, %v8775_v5  ;;  %v8798_v32 = vmax.f32 %v8702_v6, 0.0  ;;  %v8705_v16 = vadd.f32 %v15302_v45, %v8489_v28  ;;  %v8420_v52 = vadd.f32 %v15440_v40, %v16857_v20  ;;  %v16863_v6 = vld [vmem:[#allocation115_spill] sm:$0xff] }
 0x4ae   : > { %v8703_v0 = vadd.f32 %v15302_v45, %v8487_v30  ;;  %v8418_v23 = vadd.f32 %v15447_v3, %v16858_v14  ;;  %v9337_v51 = vadd.f32 %v9336_v33, %v9242_v29  ;;  %v9289_v38 = vmul.f32 %v16849_v54, %v8776_v61  ;;  %v16860_v33 = vld [vmem:[#allocation100_spill] sm:$0xff]  ;;  %v15527_v41 = vpop.f32.mrf.mxu0  ;;  %v16862_v61 = vld [vmem:[#allocation101_spill] sm:$0xff] }
 0x4af   : > { %v8777_v4 = vmax.f32 %v8681_v8, 0.0  ;;  %v9385_v56 = vadd.f32 %v9384_v36, %v9288_v17  ;;  %v9311_v57 = vmul.f32 %v16843_v39, %v8798_v32  ;;  %v8800_v60 = vmax.f32 %v8704_v55, 0.0  ;;  %v16864_v32 = vld [vmem:[#allocation25_spill] sm:$0xff] }
 0x4b0   : > { %v8799_v31 = vmax.f32 %v8703_v0, 0.0  ;;  %v8634_v25 = vadd.f32 %v15207_v26, %v8418_v23  ;;  %v8421_v47 = vadd.f32 %v15449_v63, %v16859_v48  ;;  %v8636_v3 = vadd.f32 %v15207_v26, %v8420_v52  ;;  %v16861_v63 = vld [vmem:[#allocation14_spill] sm:$0xff]  ;;  %v8330_v30 = vpop.f32.mrf.mxu0  ;;  %v16866_v0 = vld [vmem:[#allocation116_spill] sm:$0xff] }
 0x4b1   : > { %v9386_v40 = vadd.f32 %v9385_v56, %v9289_v38  ;;  %v9409_v12 = vadd.f32 %v9408_v11, %v9311_v57  ;;  %v8419_v29 = vadd.f32 %v15456_v13, %v16860_v33  ;;  %v8801_v50 = vmax.f32 %v8705_v16, 0.0  ;;  %v16867_v23 = vld [vmem:[#allocation16_spill] sm:$0xff] }
 0x4b2   : > { %v9312_v39 = vmul.f32 %v16846_v49, %v8799_v31  ;;  %v8730_v21 = vmax.f32 %v8634_v25, 0.0  ;;  %v8637_v9 = vadd.f32 %v15207_v26, %v8421_v47  ;;  %v8444_v18 = vadd.f32 %v15458_v2, %v16861_v63  ;;  %v8383_v49 = vpop.f32.mrf.mxu1  ;;  %v8332_v25 = vpop.f32.mrf.mxu0 }
 0x4b3   : > { %v8635_v59 = vadd.f32 %v15207_v26, %v8419_v29  ;;  %v8442_v11 = vadd.f32 %v15466_v27, %v16862_v61  ;;  %v9362_v37 = vadd.f32 %v9361_v15, %v9266_v34  ;;  %v9290_v8 = vmul.f32 %v16852_v53, %v8777_v4  ;;  %v16865_v15 = vld [vmem:[#allocation6_spill] sm:$0xff] }
 0x4b4   : > { %v9313_v13 = vmul.f32 %v16849_v54, %v8800_v60  ;;  %v9410_v5 = vadd.f32 %v9409_v12, %v9312_v39  ;;  %v9243_v44 = vmul.f32 %v16863_v6, %v8730_v21  ;;  %v8732_v28 = vmax.f32 %v8636_v3, 0.0  ;;  %v16868_v4 = vld [vmem:[#allocation102_spill] sm:$0xff]  ;;  %v8385_v57 = vpop.f32.mrf.mxu1  ;;  %v16870_v3 = vld [vmem:[#allocation17_spill] sm:$0xff] }
 0x4b5   : > { %v8731_v36 = vmax.f32 %v8635_v59, 0.0  ;;  %v8660_v55 = vadd.f32 %v15226_v7, %v8444_v18  ;;  %v8658_v22 = vadd.f32 %v15226_v7, %v8442_v11  ;;  %v8445_v27 = vadd.f32 %v15468_v35, %v16864_v32  ;;  %v16869_v35 = vld [vmem:[#allocation33_spill] sm:$0xff]  ;;  %v16872_v39 = vld [vmem:[#allocation34_spill] sm:$0xff] }
 0x4b6   : > { %v9411_v2 = vadd.f32 %v9410_v5, %v9313_v13  ;;  %v9338_v17 = vadd.f32 %v9337_v51, %v9243_v44  ;;  %v8443_v34 = vadd.f32 %v15475_v42, %v16865_v15  ;;  %v9314_v54 = vmul.f32 %v16852_v53, %v8801_v50  ;;  %v8387_v18 = vpop.f32.mrf.mxu1  ;;  %v16873_v11 = vld [vmem:[#allocation18_spill] sm:$0xff]  ;;  %v8334_v5 = vpop.f32.mrf.mxu0 }
 0x4b7   : > { %v8733_v16 = vmax.f32 %v8637_v9, 0.0  ;;  %v9244_v20 = vmul.f32 %v16866_v0, %v8731_v36  ;;  %v8754_v52 = vmax.f32 %v8658_v22, 0.0  ;;  %v8468_v38 = vadd.f32 %v15477_v10, %v16867_v23  ;;  %v16878_v23 = vld [vmem:[#allocation31_spill] sm:$0xff] }
 0x4b8   : > { %v8659_v14 = vadd.f32 %v15226_v7, %v8443_v34  ;;  %v8466_v51 = vadd.f32 %v15485_v24, %v16868_v4  ;;  %v9387_v56 = vadd.f32 %v9386_v40, %v9290_v8  ;;  %v9245_v60 = vmul.f32 %v16869_v35, %v8732_v28  ;;  %v16871_v40 = vld [vmem:[#allocation103_spill] sm:$0xff]  ;;  %v16874_v8 = vld [vmem:[#allocation104_spill] sm:$0xff]  ;;  %v8336_v4 = vpop.f32.mrf.mxu0 }
 0x4b9   : > { %v9339_v31 = vadd.f32 %v9338_v17, %v9244_v20  ;;  %v8756_v42 = vmax.f32 %v8660_v55, 0.0  ;;  %v9267_v53 = vmul.f32 %v16863_v6, %v8754_v52  ;;  %v8661_v48 = vadd.f32 %v15226_v7, %v8445_v27 }
 0x4ba   : > { %v8755_v47 = vmax.f32 %v8659_v14, 0.0  ;;  %v8682_v12 = vadd.f32 %v15274_v43, %v8466_v51  ;;  %v8469_v10 = vadd.f32 %v15487_v46, %v16870_v3  ;;  %v8684_v24 = vadd.f32 %v15274_v43, %v8468_v38  ;;  %v16877_v14 = vld [vmem:[#allocation29_spill] sm:$0xff] }
 0x4bb   : > { %v9340_v33 = vadd.f32 %v9339_v31, %v9245_v60  ;;  %v9363_v29 = vadd.f32 %v9362_v37, %v9267_v53  ;;  %v8467_v50 = vadd.f32 %v15496_v19, %v16871_v40  ;;  %v9246_v21 = vmul.f32 %v16872_v39, %v8733_v16  ;;  %v16879_v60 = vld [vmem:[#allocation21_spill] sm:$0xff]  ;;  %v16880_v31 = vld [vmem:[#allocation106_spill] sm:$0xff] }
 0x4bc   : > { %v9268_v9 = vmul.f32 %v16866_v0, %v8755_v47  ;;  %v8778_v59 = vmax.f32 %v8682_v12, 0.0  ;;  %v8685_v63 = vadd.f32 %v15274_v43, %v8469_v10  ;;  %v8492_v46 = vadd.f32 %v15505_v1, %v16873_v11  ;;  %v16875_v1 = vld [vmem:[#allocation19_spill] sm:$0xff] }
 0x4bd   : > { %v8683_v61 = vadd.f32 %v15274_v43, %v8467_v50  ;;  %v8490_v37 = vadd.f32 %v15510_v62, %v16874_v8  ;;  %v9412_v13 = vadd.f32 %v9411_v2, %v9314_v54  ;;  %v9269_v19 = vmul.f32 %v16869_v35, %v8756_v42  ;;  %v16876_v62 = vld [vmem:[#allocation105_spill] sm:$0xff]  ;;  %v8389_v54 = vpop.f32.mrf.mxu1 }
 0x4be   : > { %v8757_v44 = vmax.f32 %v8661_v48, 0.0  ;;  %v9364_v28 = vadd.f32 %v9363_v29, %v9268_v9  ;;  %v9291_v36 = vmul.f32 %v16863_v6, %v8778_v59  ;;  %v8780_v55 = vmax.f32 %v8684_v24, 0.0 }
 0x4bf   : > { %v8779_v22 = vmax.f32 %v8683_v61, 0.0  ;;  %v8708_v17 = vadd.f32 %v15302_v45, %v8492_v46  ;;  %v8706_v32 = vadd.f32 %v15302_v45, %v8490_v37  ;;  %v8493_v34 = vadd.f32 %v15522_v58, %v16875_v1  ;;  %v8393_v24 = vpop.f32.mrf.mxu1  ;;  %v16883_v46 = vld [vmem:[#allocation42_spill] sm:$0xff]  ;;  %v16884_v37 = vld [vmem:[#allocation23_spill] sm:$0xff] }
 0x4c0   : > { %v9365_v27 = vadd.f32 %v9364_v28, %v9269_v19  ;;  %v9388_v15 = vadd.f32 %v9387_v56, %v9291_v36  ;;  %v8491_v2 = vadd.f32 %v15527_v41, %v16876_v62  ;;  %v8781_v16 = vmax.f32 %v8685_v63, 0.0 }
 0x4c1   : > { %v9292_v20 = vmul.f32 %v16866_v0, %v8779_v22  ;;  %v8802_v52 = vmax.f32 %v8706_v32, 0.0  ;;  %v15580_v38 = vrot.slane %v16878_v23, %v16877_v14  ;;  %v8424_v56 = vadd.f32 %v8383_v49, %v16879_v60  ;;  %v16881_v49 = vld [vmem:[#allocation22_spill] sm:$0xff]  ;;  %v16886_v32 = vld [vmem:[#allocation108_spill] sm:$0xff]  ;;  %v16889_v23 = vld [vmem:[#allocation27_spill] sm:$0xff] }
 0x4c2   : > { %v8707_v51 = vadd.f32 %v15302_v45, %v8491_v2  ;;  %v8422_v42 = vadd.f32 %v8330_v30, %v16880_v31  ;;  %v9341_v58 = vadd.f32 %v9340_v33, %v9246_v21  ;;  %v9270_v53 = vmul.f32 %v16872_v39, %v8757_v44  ;;  %v16882_v30 = vld [vmem:[#allocation107_spill] sm:$0xff]  ;;  %v8340_v21 = vpop.f32.mrf.mxu0 }
 0x4c3   : > { %v9293_v41 = vmul.f32 %v16869_v35, %v8780_v55  ;;  %v9389_v48 = vadd.f32 %v9388_v15, %v9292_v20  ;;  %v9315_v47 = vmul.f32 %v16863_v6, %v8802_v52  ;;  %v8804_v12 = vmax.f32 %v8708_v17, 0.0  ;;  %v8395_v55 = vpop.f32.mrf.mxu1  ;;  %v16888_v52 = vld [vmem:[#allocation26_spill] sm:$0xff] }
 0x4c4   : > { %v8709_v3 = vadd.f32 %v15302_v45, %v8493_v34  ;;  %v8803_v10 = vmax.f32 %v8707_v51, 0.0  ;;  %v8638_v29 = vadd.f32 %v15207_v26, %v8422_v42  ;;  %v8425_v9 = vadd.f32 %v8385_v57, %v16881_v49  ;;  %v8342_v1 = vpop.f32.mrf.mxu0 }
 0x4c5   : > { %v9390_v40 = vadd.f32 %v9389_v48, %v9293_v41  ;;  %v9413_v50 = vadd.f32 %v9412_v13, %v9315_v47  ;;  %v8423_v33 = vadd.f32 %v8332_v25, %v16882_v30  ;;  %v9294_v59 = vmul.f32 %v16872_v39, %v8781_v16  ;;  %v16885_v25 = vld [vmem:[#allocation117_spill] sm:$0xff]  ;;  %v8397_v60 = vpop.f32.mrf.mxu1 }
 0x4c6   : > { %v9316_v63 = vmul.f32 %v16866_v0, %v8803_v10  ;;  %v8640_v6 = vadd.f32 %v15207_v26, %v8424_v56  ;;  %v8734_v61 = vmax.f32 %v8638_v29, 0.0  ;;  %v8448_v8 = vadd.f32 %v8387_v18, %v16883_v46  ;;  %v16890_v47 = vld [vmem:[#allocation109_spill] sm:$0xff]  ;;  %v16895_v46 = vld [vmem:[#allocation36_spill] sm:$0xff] }
 0x4c7   : > { %v8639_v11 = vadd.f32 %v15207_v26, %v8423_v33  ;;  %v8446_v19 = vadd.f32 %v8334_v5, %v16884_v37  ;;  %v9366_v44 = vadd.f32 %v9365_v27, %v9270_v53  ;;  %v9317_v13 = vmul.f32 %v16869_v35, %v8804_v12  ;;  %v16887_v27 = vld [vmem:[#allocation24_spill] sm:$0xff]  ;;  %v8399_v33 = vpop.f32.mrf.mxu1 }
 0x4c8   : > { %v8805_v57 = vmax.f32 %v8709_v3, 0.0  ;;  %v9414_v28 = vadd.f32 %v9413_v50, %v9316_v63  ;;  %v9247_v36 = vmul.f32 %v16885_v25, %v8734_v61  ;;  %v8641_v22 = vadd.f32 %v15207_v26, %v8425_v9  ;;  %v16893_v9 = vld [vmem:[#allocation110_spill] sm:$0xff]  ;;  %v16894_v63 = vld [vmem:[#allocation111_spill] sm:$0xff] }
 0x4c9   : > { %v8735_v0 = vmax.f32 %v8639_v11, 0.0  ;;  %v8662_v17 = vadd.f32 %v15226_v7, %v8446_v19  ;;  %v8449_v15 = vadd.f32 %v8389_v54, %v16886_v32  ;;  %v8664_v5 = vadd.f32 %v15226_v7, %v8448_v8 }
 0x4ca   : > { %v9415_v34 = vadd.f32 %v9414_v28, %v9317_v13  ;;  %v9342_v18 = vadd.f32 %v9341_v58, %v9247_v36  ;;  %v8447_v62 = vadd.f32 %v8336_v4, %v16887_v27  ;;  %v8736_v35 = vmax.f32 %v8640_v6, 0.0  ;;  %v8344_v58 = vpop.f32.mrf.mxu0  ;;  %v16896_v36 = vld [vmem:[#allocation30_spill] sm:$0xff] }
 0x4cb   : > { %v9248_v2 = vmul.f32 %v15580_v38, %v8735_v0  ;;  %v8758_v16 = vmax.f32 %v8662_v17, 0.0  ;;  %v8665_v20 = vadd.f32 %v15226_v7, %v8449_v15  ;;  %v8472_v14 = vadd.f32 %v8393_v24, %v16888_v52  ;;  %v16892_v24 = vld [vmem:[#allocation28_spill] sm:$0xff] }
 0x4cc   : > { %v8663_v26 = vadd.f32 %v15226_v7, %v8447_v62  ;;  %v8470_v51 = vadd.f32 %v8340_v21, %v16889_v23  ;;  %v9391_v54 = vadd.f32 %v9390_v40, %v9294_v59  ;;  %v9318_v56 = vmul.f32 %v16872_v39, %v8805_v57  ;;  %v16891_v7 = vld [vmem:[#allocation35_spill] sm:$0xff]  ;;  %v8346_v11 = vpop.f32.mrf.mxu0  ;;  %v16897_v0 = vld [vmem:[#allocation112_spill] sm:$0xff] }
 0x4cd   : > { %v8737_v31 = vmax.f32 %v8641_v22, 0.0  ;;  %v9343_v42 = vadd.f32 %v9342_v18, %v9248_v2  ;;  %v9271_v4 = vmul.f32 %v16885_v25, %v8758_v16  ;;  %v8760_v53 = vmax.f32 %v8664_v5, 0.0 }
 0x4ce   : > { %v8759_v41 = vmax.f32 %v8663_v26, 0.0  ;;  %v8686_v48 = vadd.f32 %v15274_v43, %v8470_v51  ;;  %v8473_v12 = vadd.f32 %v8395_v55, %v16890_v47  ;;  %v9249_v3 = vmul.f32 %v16891_v7, %v8736_v35 }
 0x4cf   : > { %v9367_v10 = vadd.f32 %v9366_v44, %v9271_v4  ;;  %v8688_v29 = vadd.f32 %v15274_v43, %v8472_v14  ;;  %v8471_v40 = vadd.f32 %v8342_v1, %v16892_v24  ;;  %v8761_v50 = vmax.f32 %v8665_v20, 0.0 }
 0x4d0   : > { %v9272_v39 = vmul.f32 %v15580_v38, %v8759_v41  ;;  %v8782_v49 = vmax.f32 %v8686_v48, 0.0  ;;  %v8496_v30 = vadd.f32 %v8397_v60, %v16893_v9  ;;  %v8689_v21 = vadd.f32 %v15274_v43, %v8473_v12  ;;  %v16899_v12 = vld [vmem:[#allocation127_spill] sm:$0xff] }
 0x4d1   : > { %v8687_v59 = vadd.f32 %v15274_v43, %v8471_v40  ;;  %v8494_v6 = vadd.f32 %v8344_v58, %v16894_v63  ;;  %v9416_v61 = vadd.f32 %v9415_v34, %v9318_v56  ;;  %v9250_v8 = vmul.f32 %v16895_v46, %v8737_v31 }
 0x4d2   : > { %v9273_v37 = vmul.f32 %v16891_v7, %v8760_v53  ;;  %v9368_v19 = vadd.f32 %v9367_v10, %v9272_v39  ;;  %v9295_v44 = vmul.f32 %v16885_v25, %v8782_v49  ;;  %v8784_v13 = vmax.f32 %v8688_v29, 0.0  ;;  %v16898_v53 = vld [vmem:[#allocation7_spill] sm:$0xff] }
 0x4d3   : > { %v8783_v57 = vmax.f32 %v8687_v59, 0.0  ;;  %v8710_v28 = vadd.f32 %v15302_v45, %v8494_v6  ;;  %v8497_v55 = vadd.f32 %v8399_v33, %v16896_v36  ;;  %v8712_v43 = vadd.f32 %v15302_v45, %v8496_v30 }
 0x4d4   : > { %v9392_v22 = vadd.f32 %v9391_v54, %v9295_v44  ;;  %v8495_v17 = vadd.f32 %v8346_v11, %v16897_v0  ;;  %v9344_v32 = vadd.f32 %v9343_v42, %v9249_v3  ;;  %v9274_v15 = vmul.f32 %v16895_v46, %v8761_v50 }
 0x4d5   : > { %v8785_v1 = vmax.f32 %v8689_v21, 0.0  ;;  %v9296_v34 = vmul.f32 %v15580_v38, %v8783_v57  ;;  %v8806_v18 = vmax.f32 %v8710_v28, 0.0  ;;  %v8713_v5 = vadd.f32 %v15302_v45, %v8497_v55 }
 0x4d6   : > { %v8711_v27 = vadd.f32 %v15302_v45, %v8495_v17  ;;  %v9345_v62 = vadd.f32 %v9344_v32, %v9250_v8  ;;  %v9369_v35 = vadd.f32 %v9368_v19, %v9273_v37  ;;  %v9297_v2 = vmul.f32 %v16891_v7, %v8784_v13 }
 0x4d7   : > { %v9393_v16 = vadd.f32 %v9392_v22, %v9296_v34  ;;  %v9319_v20 = vmul.f32 %v16885_v25, %v8806_v18  ;;  %v8808_v26 = vmax.f32 %v8712_v43, 0.0  ;;  %v9298_v23 = vmul.f32 %v16895_v46, %v8785_v1 }
 0x4d8   : > { %v8807_v52 = vmax.f32 %v8711_v27, 0.0  ;;  %9346 = vadd.xlane.f32.xlu1 %v9345_v62  ;;  %v9370_v14 = vadd.f32 %v9369_v35, %v9274_v15  ;;  %v8809_v60 = vmax.f32 %v8713_v5, 0.0  ;;  %v9431_v41 = vadd.s32 4294967288, %v16898_v53 }
 0x4d9   : > { %v9417_v51 = vadd.f32 %v9416_v61, %v9319_v20  ;;  %v9394_v54 = vadd.f32 %v9393_v16, %v9297_v2  ;;  %v9321_v31 = vmul.f32 %v16891_v7, %v8808_v26  ;;  %v9438_v48 = vadd.s32 4294967280, %v16898_v53 }
 0x4da   : > { %v9320_v56 = vmul.f32 %v15580_v38, %v8807_v52  ;;  %9371 = vadd.xlane.f32.xlu0 %v9370_v14  ;;  %v9322_v4 = vmul.f32 %v16895_v46, %v8809_v60  ;;  %v9434_v3 = vsub.s32 %v9431_v41, %v16899_v12  ;;  %v9445_v38 = vadd.s32 4294967272, %v16898_v53 }
 0x4db   : > { %v9395_v45 = vadd.f32 %v9394_v54, %v9298_v23  ;;  %v9441_v7 = vsub.s32 %v9438_v48, %v16899_v12  ;;  %v9429_v10 = vsub.s32 %v16898_v53, %v16899_v12 }
 0x4dc   : > { %v9418_v42 = vadd.f32 %v9417_v51, %v9320_v56  ;;  %v9448_v50 = vsub.s32 %v9445_v38, %v16899_v12 }
 0x4de   : > { %9396 = vadd.xlane.f32.xlu0 %v9395_v45  ;;  %v9419_v25 = vadd.f32 %v9418_v42, %v9321_v31 }
 0x4e0   : > { %v9420_v58 = vadd.f32 %v9419_v25, %v9322_v4 }
 0x4e2   : > { %9421 = vadd.xlane.f32.xlu1 %v9420_v58 }
 0x561   : > { %v9347_v29 = vpop.xlane.xlu1 %9346 }
 0x562   : > { %v9430_v49 = vrot.slane %v9347_v29, %v9429_v10 }
 0x563   : > { %v9372_v47 = vpop.xlane.xlu0 %9371 }
 0x564   : > { %v9435_v40 = vrot.slane %v9372_v47, %v9434_v3 }
 0x566   : > { %v9437_v30 = vsel %vm9436_vm10, %v9435_v40, %v9430_v49 }
 0x567   : > { %v9397_v24 = vpop.xlane.xlu0 %9396 }
 0x568   : > { %v9442_v39 = vrot.slane %v9397_v24, %v9441_v7 }
 0x56a   : > { %v9444_v21 = vsel %vm9443_vm11, %v9442_v39, %v9437_v30 }
 0x56b   : > { %v9422_v9 = vpop.xlane.xlu1 %9421 }
 0x56c   : > { %v9449_v33 = vrot.slane %v9422_v9, %v9448_v50 }
 0x56e   : > { %v9451_v59 = vsel %vm9450_vm12, %v9449_v33, %v9444_v21 }
 0x56f   : > { %9454 = vst.msk [vmem:[%s212_s30] sm:$0x1] %vm9453_vm13, %v9451_v59 }
 0x570   : > { %10471 = shalt.err (!%p10468_p5)
}
 0x571   : > { %s10472_s14 = scalar_lea.hbm %s15652_s9, 16  ;;  %s10476_s24 = scalar_lea.hbm %s15696_s4, 32 }
 0x572   : > { %p10473_p6 = scmp.ne.s32.totalorder %s15652_s9, %s10472_s14  ;;  %p10477_p10 = scmp.lt.s32.totalorder %s15652_s9, %s15696_s4 }
 0x573   : > { %p10478_p11 = scmp.lt.s32.totalorder %s10476_s24, %s10472_s14 }
 0x574   : > { %p10474_p7 = pnand %p10473_p6, %p10612_p4 }
 0x575   : > { %p10479_p12 = por %p10478_p11, %p10477_p10 }
 0x576   : > { %p10475_p9 = pneg %p10474_p7 }
 0x578   : > { %p10480_p13 = pnand %p10479_p12, %p10475_p9 }
 0x57a   : > { %10483 = shalt.err (!%p10480_p13)
}
 0x57b   : > { %9921 = dma.vmem_to_hbm [thread:$0]  (%p10612_p4), %s9469_s5, 16, %s15652_s9, %s9456_s10  }
 0x57c PF: > { %p9927_p0 = scmp.ge.s32.totalorder %s10534_s20, 2  ;;  %s9480_s7 = sand.u32 1, %s10514_s15  }
 0x57d   : > { %s9481_s30 = scalar_lea.sflag [#allocation4], %s9480_s7 }
 0x57e   : > { %p9924_p1 = pnand %p9927_p0, %p10619_p8 }
 0x580   : > { %p9925_p2 = pneg %p9924_p1 }
 0x582   : > { %10509 = dma.done.wait (%p9925_p2), %s9481_s30, 16  }
 0x583   : > { %10511 = vsyncadd (%p9925_p2), %s9481_s30, 4294967280  ;;  %s17_s20 = sadd.s32 1, %s10534_s20   ;;  %s16900_s15 = smov %s10518_s16 }
 0x584   : > { %p14_p3 = scmp.ge.s32.totalorder %s17_s20, 4   ;;  %s16901_s16 = smov %s10522_s17 }
 0x585   : > { %s16902_s17 = smov %s10625_s28  ;;  %s16903_s18 = smov %s10530_s19 }
 0x586   : > { %s16904_s19 = smov %s16906_s23  ;;  %16 = sbr.rel (!%p14_p3) target bundleno = 4 (0x4), region = 87 }
 0x58b   :  { %9485 = vsyncpa [#allocation4], 1 }
 0x58c   :  { %9487 = vsyncpa [#allocation4 + $0x1], 1 }

</bundles_post_ra>
